<compile_context>
chip_gen: v5e
topology: v5e:2x2
jax: 0.10.0
libtpu: 0.0.40
codegen_flags: <defaults>
</compile_context>

<pallas_src>
import jax
import jax.numpy as jnp
from jax import lax
from jax.experimental import pallas as pl
from jax.experimental.pallas import tpu as pltpu

PAD = 0  # constants.PAD

# ---------------- model sizes (small, consistent with the module) ----------------
VOCAB = 64          # tokenizer.no_words
EMB = 16            # args['embedding_dim']
Q_HID = 32          # args['query_hidden']
ANS_DIM = 8         # args['answer_dim']
IMG_DIM = 24        # args['image_dim']   (vgg16 -> no bbox concat)
V_FEAT = 16         # args['v_feature']
S_HID = 32          # args['session_hidden']
D_HID = 32          # args['decoder_hidden']

LANES = 128         # every hidden / gate / vocab output is zero-padded to 128 lanes
G3 = 3 * LANES      # gates live in 128-lane blocks: [ r | z | n ]

_VMEM = pl.BlockSpec(memory_space=pltpu.MemorySpace.VMEM)


# =============================== fused Pallas kernel ===============================

def _qgen_fused_kernel(
    # activations / indices
    qs_lens_ref, turn_ref, gather_ref, gt_ref,
    q_emb_ref, ans_ref, v_ref, dec_emb_ref,
    # query GRU weights (per-gate 128-lane blocks)
    q_wih_ref, q_whh_ref, q_bi_ref, q_bhn_ref,
    # session GRU weights (input projection split into [query | answer] parts)
    s_wihq_ref, s_wiha_ref, s_whh_ref, s_bi_ref, s_bhn_ref,
    # decoder GRU weights
    d_wih_ref, d_whh_ref, d_bi_ref, d_bhn_ref,
    # image_compress (conv1x1) + decoder_linear (concat folded into two matmuls)
    wc_ref, bc_ref, w1_ref, w2_ref, bdl_ref,
    # vocab projection
    wout_ref, bout_ref,
    # output
    loss_ref,
    # scratch
    q_out_sc, dec_out_sc,
):
    f32 = jnp.float32
    B = qs_lens_ref.shape[0]
    TQ = q_emb_ref.shape[0] // B
    MT = ans_ref.shape[0] // B
    TD = dec_emb_ref.shape[0] // B
    H = LANES

    def gru_step(gi_t, h, whh_ref, bhn_ref):
        # gate blocks are 128-lane aligned -> these slices are vreg boundaries (free)
        gh = jnp.dot(h, whh_ref[...], preferred_element_type=f32)
        r = jax.nn.sigmoid(gi_t[:, 0:H] + gh[:, 0:H])
        z = jax.nn.sigmoid(gi_t[:, H:2 * H] + gh[:, H:2 * H])
        n = jnp.tanh(gi_t[:, 2 * H:3 * H] + r * (gh[:, 2 * H:3 * H] + bhn_ref[...]))
        return (1.0 - z) * n + z * h

    # ---------------- query GRU (hoisted input projection, unrolled recurrence) ----
    q_gi = jnp.dot(q_emb_ref[...], q_wih_ref[...],
                   preferred_element_type=f32) + q_bi_ref[...]          # (TQ*B, 384)
    q_len = qs_lens_ref[...]                                            # (B, 1) int32
    h = jnp.zeros((B, H), f32)
    for t in range(TQ):
        h_new = gru_step(q_gi[t * B:(t + 1) * B, :], h, q_whh_ref, q_bhn_ref)
        valid = t < q_len                                               # packed-seq mask
        h = jnp.where(valid, h_new, h)
        # pad_packed_sequence semantics: positions past each row's length read as 0
        q_out_sc[pl.ds(t * B, B), :] = jnp.where(valid, h, 0.0)

    # -------- gather question summaries at q_indexes via one-hot matmul (no dyn idx) --
    q_all = q_out_sc[...]                                               # (TQ*B, 128)
    col = lax.broadcasted_iota(jnp.int32, (MT * B, TQ * B), 1)
    onehot = (col == gather_ref[...]).astype(f32)                       # (MT*B, TQ*B)
    sess_q = jnp.dot(onehot, q_all, preferred_element_type=f32)         # (MT*B, 128)

    # ---------------- session GRU: input = [question summary | answer embedding] ------
    s_gi = (jnp.dot(sess_q, s_wihq_ref[...], preferred_element_type=f32)
            + jnp.dot(ans_ref[...], s_wiha_ref[...], preferred_element_type=f32)
            + s_bi_ref[...])                                            # (MT*B, 384)
    n_turn = turn_ref[...]                                              # (B, 1)
    h = jnp.zeros((B, H), f32)
    for t in range(MT):
        h_new = gru_step(s_gi[t * B:(t + 1) * B, :], h, s_whh_ref, s_bhn_ref)
        h = jnp.where(t < n_turn, h_new, h)   # h == hidden at each row's last valid turn

    # ---------------- image_compress (Conv1d k=1) + decoder_linear ---------------------
    v_comp = jnp.dot(v_ref[...], wc_ref[...], preferred_element_type=f32) + bc_ref[...]
    dec_state = (jnp.dot(h, w1_ref[...], preferred_element_type=f32)
                 + jnp.dot(v_comp, w2_ref[...], preferred_element_type=f32)
                 + bdl_ref[...])                                        # (B, 128)

    # ---------------- decoder GRU (teacher forcing; all rows full length -> no masks) --
    d_gi = jnp.dot(dec_emb_ref[...], d_wih_ref[...],
                   preferred_element_type=f32) + d_bi_ref[...]          # (TD*B, 384)
    h = dec_state
    for t in range(TD):
        h = gru_step(d_gi[t * B:(t + 1) * B, :], h, d_whh_ref, d_bhn_ref)
        dec_out_sc[pl.ds(t * B, B), :] = h

    # ---------------- vocab projection + mean cross-entropy (ignore_index=PAD) --------
    logits = jnp.dot(dec_out_sc[...], wout_ref[...],
                     preferred_element_type=f32) + bout_ref[...]        # (TD*B, 128)
    N = TD * B
    lane = lax.broadcasted_iota(jnp.int32, (N, LANES), 1)
    logits = jnp.where(lane < VOCAB, logits, -1e30)                     # kill padded lanes
    m = jnp.max(logits, axis=-1, keepdims=True)
    lse = m + jnp.log(jnp.sum(jnp.exp(logits - m), axis=-1, keepdims=True))
    tgt = gt_ref[...]                                                   # (N, 1) int32
    tgt_logit = jnp.sum(jnp.where(lane == tgt, logits, 0.0), axis=-1, keepdims=True)
    valid = (tgt != PAD).astype(f32)
    count = jnp.maximum(jnp.sum(valid), 1.0)                            # guard all-PAD case
    loss_ref[...] = jnp.reshape(jnp.sum((lse - tgt_logit) * valid) / count, (1, 1))


# =============================== parameters ===============================

def init_params(key):
    """Logical (PyTorch-layout) parameters."""
    ks = jax.random.split(key, 12)
    s = 0.08

    def gru_params(k, in_dim, hid):
        k1, k2, k3, k4 = jax.random.split(k, 4)
        return dict(
            wih_t=jax.random.normal(k1, (in_dim, 3 * hid), jnp.float32) * s,  # (D, 3H), r|z|n
            whh_t=jax.random.normal(k2, (hid, 3 * hid), jnp.float32) * s,     # (H, 3H)
            bih=jax.random.normal(k3, (3 * hid,), jnp.float32) * s,
            bhh=jax.random.normal(k4, (3 * hid,), jnp.float32) * s,
        )

    return dict(
        word_embed=jax.random.normal(ks[0], (VOCAB, EMB), jnp.float32) * 0.1,   # MyEmbedding
        ans_embed=jax.random.normal(ks[1], (3, ANS_DIM), jnp.float32) * 0.1,    # normal_(0, 0.1)
        query_gru=gru_params(ks[2], EMB, Q_HID),
        session_gru=gru_params(ks[3], Q_HID + ANS_DIM, S_HID),
        decoder_gru=gru_params(ks[4], EMB, D_HID),
        wc_t=jax.random.normal(ks[5], (IMG_DIM, V_FEAT), jnp.float32) * s,      # conv1x1
        bc=jax.random.normal(ks[6], (V_FEAT,), jnp.float32) * s,
        wdl_t=jax.random.normal(ks[7], (S_HID + V_FEAT, D_HID), jnp.float32) * s,
        bdl=jax.random.normal(ks[8], (D_HID,), jnp.float32) * s,
        wout_t=jax.random.normal(ks[9], (D_HID, VOCAB), jnp.float32) * s,
        bout=jax.random.normal(ks[10], (VOCAB,), jnp.float32) * s,
    )


def _pad2(x, rows, cols):
    return jnp.zeros((rows, cols), jnp.float32).at[:x.shape[0], :x.shape[1]].set(x)


def _pad_row(v, cols):
    return jnp.zeros((1, cols), jnp.float32).at[0, :v.shape[0]].set(v)


def _gate_cols(w_t, hid):
    """(rows, 3*hid) contiguous gates -> (rows, 3*128) with 128-lane gate blocks."""
    out = jnp.zeros((w_t.shape[0], G3), jnp.float32)
    for g in range(3):
        out = out.at[:, g * LANES:g * LANES + hid].set(w_t[:, g * hid:(g + 1) * hid])
    return out


def _gru_kernel_weights(g, hid):
    wih = _gate_cols(g['wih_t'], hid)                                   # (D, 384)
    whh = _pad2(_gate_cols(g['whh_t'], hid), LANES, G3)                 # (128, 384)
    bih, bhh = g['bih'], g['bhh']
    bi = jnp.concatenate([                                               # fold b_ih+b_hh for r,z
        _pad_row(bih[0:hid] + bhh[0:hid], LANES),
        _pad_row(bih[hid:2 * hid] + bhh[hid:2 * hid], LANES),
        _pad_row(bih[2 * hid:3 * hid], LANES)], axis=1)                  # (1, 384)
    bhn = _pad_row(bhh[2 * hid:3 * hid], LANES)                          # (1, 128)
    return wih, whh, bi, bhn


def prepare_kernel_params(p):
    """Build the 128-lane padded, per-gate-block kernel layout."""
    q_wih, q_whh, q_bi, q_bhn = _gru_kernel_weights(p['query_gru'], Q_HID)
    d_wih, d_whh, d_bi, d_bhn = _gru_kernel_weights(p['decoder_gru'], D_HID)
    s_wih, s_whh, s_bi, s_bhn = _gru_kernel_weights(p['session_gru'], S_HID)
    # split the session input projection so the [query | answer] concat never materializes
    s_wihq = _pad2(s_wih[:Q_HID], LANES, G3)         # contracts over the padded 128 lanes
    s_wiha = s_wih[Q_HID:]                           # (ANS_DIM, 384)

    return dict(
        word_embed=p['word_embed'], ans_embed=p['ans_embed'],
        q_wih=q_wih, q_whh=q_whh, q_bi=q_bi, q_bhn=q_bhn,
        s_wihq=s_wihq, s_wiha=s_wiha, s_whh=s_whh, s_bi=s_bi, s_bhn=s_bhn,
        d_wih=d_wih, d_whh=d_whh, d_bi=d_bi, d_bhn=d_bhn,
        wc=_pad2(p['wc_t'], IMG_DIM, LANES), bc=_pad_row(p['bc'], LANES),
        w1=_pad2(p['wdl_t'][:S_HID], LANES, LANES),
        w2=_pad2(p['wdl_t'][S_HID:], LANES, LANES),
        bdl=_pad_row(p['bdl'], LANES),
        wout=_pad2(p['wout_t'], LANES, LANES), bout=_pad_row(p['bout'], LANES),
    )


# =============================== forward ===============================

def qgen_forward(kp, questions, qs_lens, q_indexes, answers, turn, v_feature, y):
    B, L = questions.shape
    MT = q_indexes.shape[1]

    # ---- embedding lookups & layout glue (plain JAX) ----
    q_emb = kp['word_embed'][questions]                              # (B, L, E)
    ans_emb = kp['ans_embed'][answers]                               # (B, MT, A)
    y_in = y[:, :-1]
    TD = y_in.shape[1]
    dec_emb = kp['word_embed'][y_in]                                 # (B, TD, E)

    # time-major flatten: row = t * B + b (matches the in-kernel per-step slices)
    q_emb_f = jnp.transpose(q_emb, (1, 0, 2)).reshape(L * B, EMB).astype(jnp.float32)
    ans_f = jnp.transpose(ans_emb, (1, 0, 2)).reshape(MT * B, ANS_DIM).astype(jnp.float32)
    dec_emb_f = jnp.transpose(dec_emb, (1, 0, 2)).reshape(TD * B, EMB).astype(jnp.float32)

    # flat row ids for the question-summary gather: q_indexes[b, mt] * B + b
    qidx = jnp.clip(q_indexes, 0, L - 1).astype(jnp.int32)
    gather_rows = (qidx.T * B + jnp.arange(B, dtype=jnp.int32)[None, :]).reshape(MT * B, 1)

    # visual branch: vgg16 -> v_num == 1, visual_att=False -> uniform attention, so the
    # einsum with att == 1 is the identity; visual_dropout(p=0)/eval is identity too.
    v = v_feature.astype(jnp.float32)                                # (B, IMG_DIM)

    gt_t = jnp.transpose(y[:, 1:], (1, 0)).reshape(TD * B, 1).astype(jnp.int32)

    loss = pl.pallas_call(
        _qgen_fused_kernel,
        out_shape=jax.ShapeDtypeStruct((1, 1), jnp.float32),
        in_specs=[_VMEM] * 28,
        out_specs=_VMEM,
        scratch_shapes=[pltpu.VMEM((L * B, LANES), jnp.float32),      # query per-step hiddens
                        pltpu.VMEM((TD * B, LANES), jnp.float32)],    # decoder per-step hiddens
    )(qs_lens.reshape(B, 1).astype(jnp.int32),
      turn.reshape(B, 1).astype(jnp.int32),
      gather_rows, gt_t,
      q_emb_f, ans_f, v, dec_emb_f,
      kp['q_wih'], kp['q_whh'], kp['q_bi'], kp['q_bhn'],
      kp['s_wihq'], kp['s_wiha'], kp['s_whh'], kp['s_bi'], kp['s_bhn'],
      kp['d_wih'], kp['d_whh'], kp['d_bi'], kp['d_bhn'],
      kp['wc'], kp['bc'], kp['w1'], kp['w2'], kp['bdl'],
      kp['wout'], kp['bout'])

    # TODO(synk): GRUDecoderBase internals not provided; assumed standard
    #             embed -> GRU(h0=decoder_state) -> Linear(hidden, n_vocab).
    return 0, loss[0, 0]


# =============================== main ===============================

if __name__ == "__main__":
    key = jax.random.PRNGKey(0)
    k_p, k_q, k_v, k_y = jax.random.split(key, 4)

    params = prepare_kernel_params(init_params(k_p))

    B, L, MT, TY = 2, 12, 4, 8

    questions = jax.random.randint(k_q, (B, L), 1, VOCAB, dtype=jnp.int32)
    qs_lens = jnp.array([12, 10], dtype=jnp.int32)
    q_indexes = jnp.array([[2, 5, 8, 11],
                           [1, 4, 7, 0]], dtype=jnp.int32)
    answers = jnp.array([[0, 1, 2, 1],
                         [2, 0, 1, 0]], dtype=jnp.int32)
    turn = jnp.array([4, 3], dtype=jnp.int32)
    v_feature = jax.random.normal(k_v, (B, IMG_DIM), jnp.float32)
    y_body = jax.random.randint(k_y, (B, TY), 1, VOCAB, dtype=jnp.int32)
    # append some PADs so the ignore_index path is exercised
    pad_mask = jnp.array([[1, 1, 1, 1, 1, 1, 0, 0],
                          [1, 1, 1, 1, 1, 0, 0, 0]], dtype=jnp.int32)
    y = y_body * pad_mask

    fwd = jax.jit(qgen_forward)
    _, gen_loss = fwd(params, questions, qs_lens, q_indexes, answers, turn, v_feature, y)
    gen_loss = jax.block_until_ready(gen_loss)
    assert jnp.isfinite(gen_loss)
    print("KERNEL_OK")
</pallas_src>

<mosaic_0001>
module attributes {stable_mosaic.version = 11 : i64} {
  func.func @_qgen_fused_kernel(%arg0: memref<2x1xi32, #tpu.memory_space<vmem>>, %arg1: memref<2x1xi32, #tpu.memory_space<vmem>>, %arg2: memref<8x1xi32, #tpu.memory_space<vmem>>, %arg3: memref<14x1xi32, #tpu.memory_space<vmem>>, %arg4: memref<24x16xf32, #tpu.memory_space<vmem>>, %arg5: memref<8x8xf32, #tpu.memory_space<vmem>>, %arg6: memref<2x24xf32, #tpu.memory_space<vmem>>, %arg7: memref<14x16xf32, #tpu.memory_space<vmem>>, %arg8: memref<16x384xf32, #tpu.memory_space<vmem>>, %arg9: memref<128x384xf32, #tpu.memory_space<vmem>>, %arg10: memref<1x384xf32, #tpu.memory_space<vmem>>, %arg11: memref<1x128xf32, #tpu.memory_space<vmem>>, %arg12: memref<128x384xf32, #tpu.memory_space<vmem>>, %arg13: memref<8x384xf32, #tpu.memory_space<vmem>>, %arg14: memref<128x384xf32, #tpu.memory_space<vmem>>, %arg15: memref<1x384xf32, #tpu.memory_space<vmem>>, %arg16: memref<1x128xf32, #tpu.memory_space<vmem>>, %arg17: memref<16x384xf32, #tpu.memory_space<vmem>>, %arg18: memref<128x384xf32, #tpu.memory_space<vmem>>, %arg19: memref<1x384xf32, #tpu.memory_space<vmem>>, %arg20: memref<1x128xf32, #tpu.memory_space<vmem>>, %arg21: memref<24x128xf32, #tpu.memory_space<vmem>>, %arg22: memref<1x128xf32, #tpu.memory_space<vmem>>, %arg23: memref<128x128xf32, #tpu.memory_space<vmem>>, %arg24: memref<128x128xf32, #tpu.memory_space<vmem>>, %arg25: memref<1x128xf32, #tpu.memory_space<vmem>>, %arg26: memref<128x128xf32, #tpu.memory_space<vmem>>, %arg27: memref<1x128xf32, #tpu.memory_space<vmem>>, %arg28: memref<1x1xf32, #tpu.memory_space<vmem>>, %arg29: memref<24x128xf32, #tpu.memory_space<vmem>>, %arg30: memref<14x128xf32, #tpu.memory_space<vmem>>) attributes {dimension_semantics = [], scalar_prefetch = 0 : i64, scratch_operands = 2 : i64, tpu.core_type = #tpu.core_type<tc>} {
    %c0 = arith.constant 0 : index
    %c0_0 = arith.constant 0 : index
    %0 = vector.load %arg4[%c0, %c0_0] : memref<24x16xf32, #tpu.memory_space<vmem>>, vector<24x16xf32>
    %c0_1 = arith.constant 0 : index
    %c0_2 = arith.constant 0 : index
    %1 = vector.load %arg8[%c0_1, %c0_2] : memref<16x384xf32, #tpu.memory_space<vmem>>, vector<16x384xf32>
    %cst = arith.constant dense<0.000000e+00> : vector<24x384xf32>
    %2 = tpu.matmul %0, %1, %cst {dimension_numbers = #tpu.dot_dimension_numbers<[1], [0], [0], [1], [0, 0, 1, 1], [], []>} : vector<24x16xf32>, vector<16x384xf32>, vector<24x384xf32> -> vector<24x384xf32>
    %c0_3 = arith.constant 0 : index
    %c0_4 = arith.constant 0 : index
    %3 = vector.load %arg10[%c0_3, %c0_4] : memref<1x384xf32, #tpu.memory_space<vmem>>, vector<1x384xf32>
    %4 = vector.broadcast %3 : vector<1x384xf32> to vector<24x384xf32>
    %5 = arith.addf %2, %4 : vector<24x384xf32>
    %c0_5 = arith.constant 0 : index
    %c0_6 = arith.constant 0 : index
    %6 = vector.load %arg0[%c0_5, %c0_6] : memref<2x1xi32, #tpu.memory_space<vmem>>, vector<2x1xi32>
    %cst_7 = arith.constant 0.000000e+00 : f32
    %7 = vector.broadcast %cst_7 : f32 to vector<2x128xf32>
    %8 = vector.extract_strided_slice %5 {offsets = [0, 0], sizes = [2, 384], strides = [1, 1]} : vector<24x384xf32> to vector<2x384xf32>
    %c0_8 = arith.constant 0 : index
    %c0_9 = arith.constant 0 : index
    %9 = vector.load %arg9[%c0_8, %c0_9] : memref<128x384xf32, #tpu.memory_space<vmem>>, vector<128x384xf32>
    %cst_10 = arith.constant dense<0.000000e+00> : vector<2x384xf32>
    %10 = tpu.matmul %7, %9, %cst_10 {dimension_numbers = #tpu.dot_dimension_numbers<[1], [0], [0], [1], [0, 0, 1, 1], [], []>} : vector<2x128xf32>, vector<128x384xf32>, vector<2x384xf32> -> vector<2x384xf32>
    %11 = vector.extract_strided_slice %8 {offsets = [0, 0], sizes = [2, 128], strides = [1, 1]} : vector<2x384xf32> to vector<2x128xf32>
    %12 = vector.extract_strided_slice %10 {offsets = [0, 0], sizes = [2, 128], strides = [1, 1]} : vector<2x384xf32> to vector<2x128xf32>
    %13 = arith.addf %11, %12 : vector<2x128xf32>
    %14 = arith.negf %13 : vector<2x128xf32>
    %15 = math.exp %14 : vector<2x128xf32>
    %cst_11 = arith.constant 1.000000e+00 : f32
    %16 = vector.broadcast %cst_11 : f32 to vector<2x128xf32>
    %17 = arith.addf %16, %15 : vector<2x128xf32>
    %18 = arith.divf %16, %17 : vector<2x128xf32>
    %19 = vector.extract_strided_slice %8 {offsets = [0, 128], sizes = [2, 128], strides = [1, 1]} : vector<2x384xf32> to vector<2x128xf32>
    %20 = vector.extract_strided_slice %10 {offsets = [0, 128], sizes = [2, 128], strides = [1, 1]} : vector<2x384xf32> to vector<2x128xf32>
    %21 = arith.addf %19, %20 : vector<2x128xf32>
    %22 = arith.negf %21 : vector<2x128xf32>
    %23 = math.exp %22 : vector<2x128xf32>
    %cst_12 = arith.constant 1.000000e+00 : f32
    %24 = vector.broadcast %cst_12 : f32 to vector<2x128xf32>
    %25 = arith.addf %24, %23 : vector<2x128xf32>
    %26 = arith.divf %24, %25 : vector<2x128xf32>
    %27 = vector.extract_strided_slice %8 {offsets = [0, 256], sizes = [2, 128], strides = [1, 1]} : vector<2x384xf32> to vector<2x128xf32>
    %28 = vector.extract_strided_slice %10 {offsets = [0, 256], sizes = [2, 128], strides = [1, 1]} : vector<2x384xf32> to vector<2x128xf32>
    %c0_13 = arith.constant 0 : index
    %c0_14 = arith.constant 0 : index
    %29 = vector.load %arg11[%c0_13, %c0_14] : memref<1x128xf32, #tpu.memory_space<vmem>>, vector<1x128xf32>
    %30 = vector.broadcast %29 : vector<1x128xf32> to vector<2x128xf32>
    %31 = arith.addf %28, %30 : vector<2x128xf32>
    %32 = arith.mulf %18, %31 : vector<2x128xf32>
    %33 = arith.addf %27, %32 : vector<2x128xf32>
    %34 = math.tanh %33 : vector<2x128xf32>
    %cst_15 = arith.constant 1.000000e+00 : f32
    %35 = vector.broadcast %cst_15 : f32 to vector<2x128xf32>
    %36 = arith.subf %35, %26 : vector<2x128xf32>
    %37 = arith.mulf %36, %34 : vector<2x128xf32>
    %38 = arith.mulf %26, %7 : vector<2x128xf32>
    %39 = arith.addf %37, %38 : vector<2x128xf32>
    %c0_i32 = arith.constant 0 : i32
    %40 = vector.broadcast %c0_i32 : i32 to vector<2x1xi32>
    %41 = arith.cmpi sgt, %6, %40 : vector<2x1xi32>
    %42 = vector.shape_cast %41 : vector<2x1xi1> to vector<2x1xi1>
    %43 = vector.broadcast %42 : vector<2x1xi1> to vector<2x128xi1>
    %44 = arith.select %43, %39, %7 : vector<2x128xi1>, vector<2x128xf32>
    %cst_16 = arith.constant 0.000000e+00 : f32
    %45 = vector.shape_cast %41 : vector<2x1xi1> to vector<2x1xi1>
    %46 = vector.broadcast %45 : vector<2x1xi1> to vector<2x128xi1>
    %47 = vector.broadcast %cst_16 : f32 to vector<2x128xf32>
    %48 = arith.select %46, %44, %47 : vector<2x128xi1>, vector<2x128xf32>
    %c0_17 = arith.constant 0 : index
    %c0_18 = arith.constant 0 : index
    %49 = vector.load %arg29[%c0_17, %c0_18] : memref<24x128xf32, #tpu.memory_space<vmem>>, vector<2x128xf32>
    tpu.vector_store %arg29[%c0_17, %c0_18], %48 {strides = array<i32>} : memref<24x128xf32, #tpu.memory_space<vmem>>, vector<2x128xf32>,
    %50 = vector.extract_strided_slice %5 {offsets = [2, 0], sizes = [2, 384], strides = [1, 1]} : vector<24x384xf32> to vector<2x384xf32>
    %c0_19 = arith.constant 0 : index
    %c0_20 = arith.constant 0 : index
    %51 = vector.load %arg9[%c0_19, %c0_20] : memref<128x384xf32, #tpu.memory_space<vmem>>, vector<128x384xf32>
    %cst_21 = arith.constant dense<0.000000e+00> : vector<2x384xf32>
    %52 = tpu.matmul %44, %51, %cst_21 {dimension_numbers = #tpu.dot_dimension_numbers<[1], [0], [0], [1], [0, 0, 1, 1], [], []>} : vector<2x128xf32>, vector<128x384xf32>, vector<2x384xf32> -> vector<2x384xf32>
    %53 = vector.extract_strided_slice %50 {offsets = [0, 0], sizes = [2, 128], strides = [1, 1]} : vector<2x384xf32> to vector<2x128xf32>
    %54 = vector.extract_strided_slice %52 {offsets = [0, 0], sizes = [2, 128], strides = [1, 1]} : vector<2x384xf32> to vector<2x128xf32>
    %55 = arith.addf %53, %54 : vector<2x128xf32>
    %56 = arith.negf %55 : vector<2x128xf32>
    %57 = math.exp %56 : vector<2x128xf32>
    %cst_22 = arith.constant 1.000000e+00 : f32
    %58 = vector.broadcast %cst_22 : f32 to vector<2x128xf32>
    %59 = arith.addf %58, %57 : vector<2x128xf32>
    %60 = arith.divf %58, %59 : vector<2x128xf32>
    %61 = vector.extract_strided_slice %50 {offsets = [0, 128], sizes = [2, 128], strides = [1, 1]} : vector<2x384xf32> to vector<2x128xf32>
    %62 = vector.extract_strided_slice %52 {offsets = [0, 128], sizes = [2, 128], strides = [1, 1]} : vector<2x384xf32> to vector<2x128xf32>
    %63 = arith.addf %61, %62 : vector<2x128xf32>
    %64 = arith.negf %63 : vector<2x128xf32>
    %65 = math.exp %64 : vector<2x128xf32>
    %cst_23 = arith.constant 1.000000e+00 : f32
    %66 = vector.broadcast %cst_23 : f32 to vector<2x128xf32>
    %67 = arith.addf %66, %65 : vector<2x128xf32>
    %68 = arith.divf %66, %67 : vector<2x128xf32>
    %69 = vector.extract_strided_slice %50 {offsets = [0, 256], sizes = [2, 128], strides = [1, 1]} : vector<2x384xf32> to vector<2x128xf32>
    %70 = vector.extract_strided_slice %52 {offsets = [0, 256], sizes = [2, 128], strides = [1, 1]} : vector<2x384xf32> to vector<2x128xf32>
    %c0_24 = arith.constant 0 : index
    %c0_25 = arith.constant 0 : index
    %71 = vector.load %arg11[%c0_24, %c0_25] : memref<1x128xf32, #tpu.memory_space<vmem>>, vector<1x128xf32>
    %72 = vector.broadcast %71 : vector<1x128xf32> to vector<2x128xf32>
    %73 = arith.addf %70, %72 : vector<2x128xf32>
    %74 = arith.mulf %60, %73 : vector<2x128xf32>
    %75 = arith.addf %69, %74 : vector<2x128xf32>
    %76 = math.tanh %75 : vector<2x128xf32>
    %cst_26 = arith.constant 1.000000e+00 : f32
    %77 = vector.broadcast %cst_26 : f32 to vector<2x128xf32>
    %78 = arith.subf %77, %68 : vector<2x128xf32>
    %79 = arith.mulf %78, %76 : vector<2x128xf32>
    %80 = arith.mulf %68, %44 : vector<2x128xf32>
    %81 = arith.addf %79, %80 : vector<2x128xf32>
    %c1_i32 = arith.constant 1 : i32
    %82 = vector.broadcast %c1_i32 : i32 to vector<2x1xi32>
    %83 = arith.cmpi sgt, %6, %82 : vector<2x1xi32>
    %84 = vector.shape_cast %83 : vector<2x1xi1> to vector<2x1xi1>
    %85 = vector.broadcast %84 : vector<2x1xi1> to vector<2x128xi1>
    %86 = arith.select %85, %81, %44 : vector<2x128xi1>, vector<2x128xf32>
    %cst_27 = arith.constant 0.000000e+00 : f32
    %87 = vector.shape_cast %83 : vector<2x1xi1> to vector<2x1xi1>
    %88 = vector.broadcast %87 : vector<2x1xi1> to vector<2x128xi1>
    %89 = vector.broadcast %cst_27 : f32 to vector<2x128xf32>
    %90 = arith.select %88, %86, %89 : vector<2x128xi1>, vector<2x128xf32>
    %c2 = arith.constant 2 : index
    %c0_28 = arith.constant 0 : index
    %91 = vector.load %arg29[%c2, %c0_28] : memref<24x128xf32, #tpu.memory_space<vmem>>, vector<2x128xf32>
    tpu.vector_store %arg29[%c2, %c0_28], %90 {strides = array<i32>} : memref<24x128xf32, #tpu.memory_space<vmem>>, vector<2x128xf32>,
    %92 = vector.extract_strided_slice %5 {offsets = [4, 0], sizes = [2, 384], strides = [1, 1]} : vector<24x384xf32> to vector<2x384xf32>
    %c0_29 = arith.constant 0 : index
    %c0_30 = arith.constant 0 : index
    %93 = vector.load %arg9[%c0_29, %c0_30] : memref<128x384xf32, #tpu.memory_space<vmem>>, vector<128x384xf32>
    %cst_31 = arith.constant dense<0.000000e+00> : vector<2x384xf32>
    %94 = tpu.matmul %86, %93, %cst_31 {dimension_numbers = #tpu.dot_dimension_numbers<[1], [0], [0], [1], [0, 0, 1, 1], [], []>} : vector<2x128xf32>, vector<128x384xf32>, vector<2x384xf32> -> vector<2x384xf32>
    %95 = vector.extract_strided_slice %92 {offsets = [0, 0], sizes = [2, 128], strides = [1, 1]} : vector<2x384xf32> to vector<2x128xf32>
    %96 = vector.extract_strided_slice %94 {offsets = [0, 0], sizes = [2, 128], strides = [1, 1]} : vector<2x384xf32> to vector<2x128xf32>
    %97 = arith.addf %95, %96 : vector<2x128xf32>
    %98 = arith.negf %97 : vector<2x128xf32>
    %99 = math.exp %98 : vector<2x128xf32>
    %cst_32 = arith.constant 1.000000e+00 : f32
    %100 = vector.broadcast %cst_32 : f32 to vector<2x128xf32>
    %101 = arith.addf %100, %99 : vector<2x128xf32>
    %102 = arith.divf %100, %101 : vector<2x128xf32>
    %103 = vector.extract_strided_slice %92 {offsets = [0, 128], sizes = [2, 128], strides = [1, 1]} : vector<2x384xf32> to vector<2x128xf32>
    %104 = vector.extract_strided_slice %94 {offsets = [0, 128], sizes = [2, 128], strides = [1, 1]} : vector<2x384xf32> to vector<2x128xf32>
    %105 = arith.addf %103, %104 : vector<2x128xf32>
    %106 = arith.negf %105 : vector<2x128xf32>
    %107 = math.exp %106 : vector<2x128xf32>
    %cst_33 = arith.constant 1.000000e+00 : f32
    %108 = vector.broadcast %cst_33 : f32 to vector<2x128xf32>
    %109 = arith.addf %108, %107 : vector<2x128xf32>
    %110 = arith.divf %108, %109 : vector<2x128xf32>
    %111 = vector.extract_strided_slice %92 {offsets = [0, 256], sizes = [2, 128], strides = [1, 1]} : vector<2x384xf32> to vector<2x128xf32>
    %112 = vector.extract_strided_slice %94 {offsets = [0, 256], sizes = [2, 128], strides = [1, 1]} : vector<2x384xf32> to vector<2x128xf32>
    %c0_34 = arith.constant 0 : index
    %c0_35 = arith.constant 0 : index
    %113 = vector.load %arg11[%c0_34, %c0_35] : memref<1x128xf32, #tpu.memory_space<vmem>>, vector<1x128xf32>
    %114 = vector.broadcast %113 : vector<1x128xf32> to vector<2x128xf32>
    %115 = arith.addf %112, %114 : vector<2x128xf32>
    %116 = arith.mulf %102, %115 : vector<2x128xf32>
    %117 = arith.addf %111, %116 : vector<2x128xf32>
    %118 = math.tanh %117 : vector<2x128xf32>
    %cst_36 = arith.constant 1.000000e+00 : f32
    %119 = vector.broadcast %cst_36 : f32 to vector<2x128xf32>
    %120 = arith.subf %119, %110 : vector<2x128xf32>
    %121 = arith.mulf %120, %118 : vector<2x128xf32>
    %122 = arith.mulf %110, %86 : vector<2x128xf32>
    %123 = arith.addf %121, %122 : vector<2x128xf32>
    %c2_i32 = arith.constant 2 : i32
    %124 = vector.broadcast %c2_i32 : i32 to vector<2x1xi32>
    %125 = arith.cmpi sgt, %6, %124 : vector<2x1xi32>
    %126 = vector.shape_cast %125 : vector<2x1xi1> to vector<2x1xi1>
    %127 = vector.broadcast %126 : vector<2x1xi1> to vector<2x128xi1>
    %128 = arith.select %127, %123, %86 : vector<2x128xi1>, vector<2x128xf32>
    %cst_37 = arith.constant 0.000000e+00 : f32
    %129 = vector.shape_cast %125 : vector<2x1xi1> to vector<2x1xi1>
    %130 = vector.broadcast %129 : vector<2x1xi1> to vector<2x128xi1>
    %131 = vector.broadcast %cst_37 : f32 to vector<2x128xf32>
    %132 = arith.select %130, %128, %131 : vector<2x128xi1>, vector<2x128xf32>
    %c4 = arith.constant 4 : index
    %c0_38 = arith.constant 0 : index
    %133 = vector.load %arg29[%c4, %c0_38] : memref<24x128xf32, #tpu.memory_space<vmem>>, vector<2x128xf32>
    tpu.vector_store %arg29[%c4, %c0_38], %132 {strides = array<i32>} : memref<24x128xf32, #tpu.memory_space<vmem>>, vector<2x128xf32>,
    %134 = vector.extract_strided_slice %5 {offsets = [6, 0], sizes = [2, 384], strides = [1, 1]} : vector<24x384xf32> to vector<2x384xf32>
    %c0_39 = arith.constant 0 : index
    %c0_40 = arith.constant 0 : index
    %135 = vector.load %arg9[%c0_39, %c0_40] : memref<128x384xf32, #tpu.memory_space<vmem>>, vector<128x384xf32>
    %cst_41 = arith.constant dense<0.000000e+00> : vector<2x384xf32>
    %136 = tpu.matmul %128, %135, %cst_41 {dimension_numbers = #tpu.dot_dimension_numbers<[1], [0], [0], [1], [0, 0, 1, 1], [], []>} : vector<2x128xf32>, vector<128x384xf32>, vector<2x384xf32> -> vector<2x384xf32>
    %137 = vector.extract_strided_slice %134 {offsets = [0, 0], sizes = [2, 128], strides = [1, 1]} : vector<2x384xf32> to vector<2x128xf32>
    %138 = vector.extract_strided_slice %136 {offsets = [0, 0], sizes = [2, 128], strides = [1, 1]} : vector<2x384xf32> to vector<2x128xf32>
    %139 = arith.addf %137, %138 : vector<2x128xf32>
    %140 = arith.negf %139 : vector<2x128xf32>
    %141 = math.exp %140 : vector<2x128xf32>
    %cst_42 = arith.constant 1.000000e+00 : f32
    %142 = vector.broadcast %cst_42 : f32 to vector<2x128xf32>
    %143 = arith.addf %142, %141 : vector<2x128xf32>
    %144 = arith.divf %142, %143 : vector<2x128xf32>
    %145 = vector.extract_strided_slice %134 {offsets = [0, 128], sizes = [2, 128], strides = [1, 1]} : vector<2x384xf32> to vector<2x128xf32>
    %146 = vector.extract_strided_slice %136 {offsets = [0, 128], sizes = [2, 128], strides = [1, 1]} : vector<2x384xf32> to vector<2x128xf32>
    %147 = arith.addf %145, %146 : vector<2x128xf32>
    %148 = arith.negf %147 : vector<2x128xf32>
    %149 = math.exp %148 : vector<2x128xf32>
    %cst_43 = arith.constant 1.000000e+00 : f32
    %150 = vector.broadcast %cst_43 : f32 to vector<2x128xf32>
    %151 = arith.addf %150, %149 : vector<2x128xf32>
    %152 = arith.divf %150, %151 : vector<2x128xf32>
    %153 = vector.extract_strided_slice %134 {offsets = [0, 256], sizes = [2, 128], strides = [1, 1]} : vector<2x384xf32> to vector<2x128xf32>
    %154 = vector.extract_strided_slice %136 {offsets = [0, 256], sizes = [2, 128], strides = [1, 1]} : vector<2x384xf32> to vector<2x128xf32>
    %c0_44 = arith.constant 0 : index
    %c0_45 = arith.constant 0 : index
    %155 = vector.load %arg11[%c0_44, %c0_45] : memref<1x128xf32, #tpu.memory_space<vmem>>, vector<1x128xf32>
    %156 = vector.broadcast %155 : vector<1x128xf32> to vector<2x128xf32>
    %157 = arith.addf %154, %156 : vector<2x128xf32>
    %158 = arith.mulf %144, %157 : vector<2x128xf32>
    %159 = arith.addf %153, %158 : vector<2x128xf32>
    %160 = math.tanh %159 : vector<2x128xf32>
    %cst_46 = arith.constant 1.000000e+00 : f32
    %161 = vector.broadcast %cst_46 : f32 to vector<2x128xf32>
    %162 = arith.subf %161, %152 : vector<2x128xf32>
    %163 = arith.mulf %162, %160 : vector<2x128xf32>
    %164 = arith.mulf %152, %128 : vector<2x128xf32>
    %165 = arith.addf %163, %164 : vector<2x128xf32>
    %c3_i32 = arith.constant 3 : i32
    %166 = vector.broadcast %c3_i32 : i32 to vector<2x1xi32>
    %167 = arith.cmpi sgt, %6, %166 : vector<2x1xi32>
    %168 = vector.shape_cast %167 : vector<2x1xi1> to vector<2x1xi1>
    %169 = vector.broadcast %168 : vector<2x1xi1> to vector<2x128xi1>
    %170 = arith.select %169, %165, %128 : vector<2x128xi1>, vector<2x128xf32>
    %cst_47 = arith.constant 0.000000e+00 : f32
    %171 = vector.shape_cast %167 : vector<2x1xi1> to vector<2x1xi1>
    %172 = vector.broadcast %171 : vector<2x1xi1> to vector<2x128xi1>
    %173 = vector.broadcast %cst_47 : f32 to vector<2x128xf32>
    %174 = arith.select %172, %170, %173 : vector<2x128xi1>, vector<2x128xf32>
    %c6 = arith.constant 6 : index
    %c0_48 = arith.constant 0 : index
    %175 = vector.load %arg29[%c6, %c0_48] : memref<24x128xf32, #tpu.memory_space<vmem>>, vector<2x128xf32>
    tpu.vector_store %arg29[%c6, %c0_48], %174 {strides = array<i32>} : memref<24x128xf32, #tpu.memory_space<vmem>>, vector<2x128xf32>,
    %176 = vector.extract_strided_slice %5 {offsets = [8, 0], sizes = [2, 384], strides = [1, 1]} : vector<24x384xf32> to vector<2x384xf32>
    %c0_49 = arith.constant 0 : index
    %c0_50 = arith.constant 0 : index
    %177 = vector.load %arg9[%c0_49, %c0_50] : memref<128x384xf32, #tpu.memory_space<vmem>>, vector<128x384xf32>
    %cst_51 = arith.constant dense<0.000000e+00> : vector<2x384xf32>
    %178 = tpu.matmul %170, %177, %cst_51 {dimension_numbers = #tpu.dot_dimension_numbers<[1], [0], [0], [1], [0, 0, 1, 1], [], []>} : vector<2x128xf32>, vector<128x384xf32>, vector<2x384xf32> -> vector<2x384xf32>
    %179 = vector.extract_strided_slice %176 {offsets = [0, 0], sizes = [2, 128], strides = [1, 1]} : vector<2x384xf32> to vector<2x128xf32>
    %180 = vector.extract_strided_slice %178 {offsets = [0, 0], sizes = [2, 128], strides = [1, 1]} : vector<2x384xf32> to vector<2x128xf32>
    %181 = arith.addf %179, %180 : vector<2x128xf32>
    %182 = arith.negf %181 : vector<2x128xf32>
    %183 = math.exp %182 : vector<2x128xf32>
    %cst_52 = arith.constant 1.000000e+00 : f32
    %184 = vector.broadcast %cst_52 : f32 to vector<2x128xf32>
    %185 = arith.addf %184, %183 : vector<2x128xf32>
    %186 = arith.divf %184, %185 : vector<2x128xf32>
    %187 = vector.extract_strided_slice %176 {offsets = [0, 128], sizes = [2, 128], strides = [1, 1]} : vector<2x384xf32> to vector<2x128xf32>
    %188 = vector.extract_strided_slice %178 {offsets = [0, 128], sizes = [2, 128], strides = [1, 1]} : vector<2x384xf32> to vector<2x128xf32>
    %189 = arith.addf %187, %188 : vector<2x128xf32>
    %190 = arith.negf %189 : vector<2x128xf32>
    %191 = math.exp %190 : vector<2x128xf32>
    %cst_53 = arith.constant 1.000000e+00 : f32
    %192 = vector.broadcast %cst_53 : f32 to vector<2x128xf32>
    %193 = arith.addf %192, %191 : vector<2x128xf32>
    %194 = arith.divf %192, %193 : vector<2x128xf32>
    %195 = vector.extract_strided_slice %176 {offsets = [0, 256], sizes = [2, 128], strides = [1, 1]} : vector<2x384xf32> to vector<2x128xf32>
    %196 = vector.extract_strided_slice %178 {offsets = [0, 256], sizes = [2, 128], strides = [1, 1]} : vector<2x384xf32> to vector<2x128xf32>
    %c0_54 = arith.constant 0 : index
    %c0_55 = arith.constant 0 : index
    %197 = vector.load %arg11[%c0_54, %c0_55] : memref<1x128xf32, #tpu.memory_space<vmem>>, vector<1x128xf32>
    %198 = vector.broadcast %197 : vector<1x128xf32> to vector<2x128xf32>
    %199 = arith.addf %196, %198 : vector<2x128xf32>
    %200 = arith.mulf %186, %199 : vector<2x128xf32>
    %201 = arith.addf %195, %200 : vector<2x128xf32>
    %202 = math.tanh %201 : vector<2x128xf32>
    %cst_56 = arith.constant 1.000000e+00 : f32
    %203 = vector.broadcast %cst_56 : f32 to vector<2x128xf32>
    %204 = arith.subf %203, %194 : vector<2x128xf32>
    %205 = arith.mulf %204, %202 : vector<2x128xf32>
    %206 = arith.mulf %194, %170 : vector<2x128xf32>
    %207 = arith.addf %205, %206 : vector<2x128xf32>
    %c4_i32 = arith.constant 4 : i32
    %208 = vector.broadcast %c4_i32 : i32 to vector<2x1xi32>
    %209 = arith.cmpi sgt, %6, %208 : vector<2x1xi32>
    %210 = vector.shape_cast %209 : vector<2x1xi1> to vector<2x1xi1>
    %211 = vector.broadcast %210 : vector<2x1xi1> to vector<2x128xi1>
    %212 = arith.select %211, %207, %170 : vector<2x128xi1>, vector<2x128xf32>
    %cst_57 = arith.constant 0.000000e+00 : f32
    %213 = vector.shape_cast %209 : vector<2x1xi1> to vector<2x1xi1>
    %214 = vector.broadcast %213 : vector<2x1xi1> to vector<2x128xi1>
    %215 = vector.broadcast %cst_57 : f32 to vector<2x128xf32>
    %216 = arith.select %214, %212, %215 : vector<2x128xi1>, vector<2x128xf32>
    %c8 = arith.constant 8 : index
    %c0_58 = arith.constant 0 : index
    %217 = vector.load %arg29[%c8, %c0_58] : memref<24x128xf32, #tpu.memory_space<vmem>>, vector<2x128xf32>
    tpu.vector_store %arg29[%c8, %c0_58], %216 {strides = array<i32>} : memref<24x128xf32, #tpu.memory_space<vmem>>, vector<2x128xf32>,
    %218 = vector.extract_strided_slice %5 {offsets = [10, 0], sizes = [2, 384], strides = [1, 1]} : vector<24x384xf32> to vector<2x384xf32>
    %c0_59 = arith.constant 0 : index
    %c0_60 = arith.constant 0 : index
    %219 = vector.load %arg9[%c0_59, %c0_60] : memref<128x384xf32, #tpu.memory_space<vmem>>, vector<128x384xf32>
    %cst_61 = arith.constant dense<0.000000e+00> : vector<2x384xf32>
    %220 = tpu.matmul %212, %219, %cst_61 {dimension_numbers = #tpu.dot_dimension_numbers<[1], [0], [0], [1], [0, 0, 1, 1], [], []>} : vector<2x128xf32>, vector<128x384xf32>, vector<2x384xf32> -> vector<2x384xf32>
    %221 = vector.extract_strided_slice %218 {offsets = [0, 0], sizes = [2, 128], strides = [1, 1]} : vector<2x384xf32> to vector<2x128xf32>
    %222 = vector.extract_strided_slice %220 {offsets = [0, 0], sizes = [2, 128], strides = [1, 1]} : vector<2x384xf32> to vector<2x128xf32>
    %223 = arith.addf %221, %222 : vector<2x128xf32>
    %224 = arith.negf %223 : vector<2x128xf32>
    %225 = math.exp %224 : vector<2x128xf32>
    %cst_62 = arith.constant 1.000000e+00 : f32
    %226 = vector.broadcast %cst_62 : f32 to vector<2x128xf32>
    %227 = arith.addf %226, %225 : vector<2x128xf32>
    %228 = arith.divf %226, %227 : vector<2x128xf32>
    %229 = vector.extract_strided_slice %218 {offsets = [0, 128], sizes = [2, 128], strides = [1, 1]} : vector<2x384xf32> to vector<2x128xf32>
    %230 = vector.extract_strided_slice %220 {offsets = [0, 128], sizes = [2, 128], strides = [1, 1]} : vector<2x384xf32> to vector<2x128xf32>
    %231 = arith.addf %229, %230 : vector<2x128xf32>
    %232 = arith.negf %231 : vector<2x128xf32>
    %233 = math.exp %232 : vector<2x128xf32>
    %cst_63 = arith.constant 1.000000e+00 : f32
    %234 = vector.broadcast %cst_63 : f32 to vector<2x128xf32>
    %235 = arith.addf %234, %233 : vector<2x128xf32>
    %236 = arith.divf %234, %235 : vector<2x128xf32>
    %237 = vector.extract_strided_slice %218 {offsets = [0, 256], sizes = [2, 128], strides = [1, 1]} : vector<2x384xf32> to vector<2x128xf32>
    %238 = vector.extract_strided_slice %220 {offsets = [0, 256], sizes = [2, 128], strides = [1, 1]} : vector<2x384xf32> to vector<2x128xf32>
    %c0_64 = arith.constant 0 : index
    %c0_65 = arith.constant 0 : index
    %239 = vector.load %arg11[%c0_64, %c0_65] : memref<1x128xf32, #tpu.memory_space<vmem>>, vector<1x128xf32>
    %240 = vector.broadcast %239 : vector<1x128xf32> to vector<2x128xf32>
    %241 = arith.addf %238, %240 : vector<2x128xf32>
    %242 = arith.mulf %228, %241 : vector<2x128xf32>
    %243 = arith.addf %237, %242 : vector<2x128xf32>
    %244 = math.tanh %243 : vector<2x128xf32>
    %cst_66 = arith.constant 1.000000e+00 : f32
    %245 = vector.broadcast %cst_66 : f32 to vector<2x128xf32>
    %246 = arith.subf %245, %236 : vector<2x128xf32>
    %247 = arith.mulf %246, %244 : vector<2x128xf32>
    %248 = arith.mulf %236, %212 : vector<2x128xf32>
    %249 = arith.addf %247, %248 : vector<2x128xf32>
    %c5_i32 = arith.constant 5 : i32
    %250 = vector.broadcast %c5_i32 : i32 to vector<2x1xi32>
    %251 = arith.cmpi sgt, %6, %250 : vector<2x1xi32>
    %252 = vector.shape_cast %251 : vector<2x1xi1> to vector<2x1xi1>
    %253 = vector.broadcast %252 : vector<2x1xi1> to vector<2x128xi1>
    %254 = arith.select %253, %249, %212 : vector<2x128xi1>, vector<2x128xf32>
    %cst_67 = arith.constant 0.000000e+00 : f32
    %255 = vector.shape_cast %251 : vector<2x1xi1> to vector<2x1xi1>
    %256 = vector.broadcast %255 : vector<2x1xi1> to vector<2x128xi1>
    %257 = vector.broadcast %cst_67 : f32 to vector<2x128xf32>
    %258 = arith.select %256, %254, %257 : vector<2x128xi1>, vector<2x128xf32>
    %c10 = arith.constant 10 : index
    %c0_68 = arith.constant 0 : index
    %259 = vector.load %arg29[%c10, %c0_68] : memref<24x128xf32, #tpu.memory_space<vmem>>, vector<2x128xf32>
    tpu.vector_store %arg29[%c10, %c0_68], %258 {strides = array<i32>} : memref<24x128xf32, #tpu.memory_space<vmem>>, vector<2x128xf32>,
    %260 = vector.extract_strided_slice %5 {offsets = [12, 0], sizes = [2, 384], strides = [1, 1]} : vector<24x384xf32> to vector<2x384xf32>
    %c0_69 = arith.constant 0 : index
    %c0_70 = arith.constant 0 : index
    %261 = vector.load %arg9[%c0_69, %c0_70] : memref<128x384xf32, #tpu.memory_space<vmem>>, vector<128x384xf32>
    %cst_71 = arith.constant dense<0.000000e+00> : vector<2x384xf32>
    %262 = tpu.matmul %254, %261, %cst_71 {dimension_numbers = #tpu.dot_dimension_numbers<[1], [0], [0], [1], [0, 0, 1, 1], [], []>} : vector<2x128xf32>, vector<128x384xf32>, vector<2x384xf32> -> vector<2x384xf32>
    %263 = vector.extract_strided_slice %260 {offsets = [0, 0], sizes = [2, 128], strides = [1, 1]} : vector<2x384xf32> to vector<2x128xf32>
    %264 = vector.extract_strided_slice %262 {offsets = [0, 0], sizes = [2, 128], strides = [1, 1]} : vector<2x384xf32> to vector<2x128xf32>
    %265 = arith.addf %263, %264 : vector<2x128xf32>
    %266 = arith.negf %265 : vector<2x128xf32>
    %267 = math.exp %266 : vector<2x128xf32>
    %cst_72 = arith.constant 1.000000e+00 : f32
    %268 = vector.broadcast %cst_72 : f32 to vector<2x128xf32>
    %269 = arith.addf %268, %267 : vector<2x128xf32>
    %270 = arith.divf %268, %269 : vector<2x128xf32>
    %271 = vector.extract_strided_slice %260 {offsets = [0, 128], sizes = [2, 128], strides = [1, 1]} : vector<2x384xf32> to vector<2x128xf32>
    %272 = vector.extract_strided_slice %262 {offsets = [0, 128], sizes = [2, 128], strides = [1, 1]} : vector<2x384xf32> to vector<2x128xf32>
    %273 = arith.addf %271, %272 : vector<2x128xf32>
    %274 = arith.negf %273 : vector<2x128xf32>
    %275 = math.exp %274 : vector<2x128xf32>
    %cst_73 = arith.constant 1.000000e+00 : f32
    %276 = vector.broadcast %cst_73 : f32 to vector<2x128xf32>
    %277 = arith.addf %276, %275 : vector<2x128xf32>
    %278 = arith.divf %276, %277 : vector<2x128xf32>
    %279 = vector.extract_strided_slice %260 {offsets = [0, 256], sizes = [2, 128], strides = [1, 1]} : vector<2x384xf32> to vector<2x128xf32>
    %280 = vector.extract_strided_slice %262 {offsets = [0, 256], sizes = [2, 128], strides = [1, 1]} : vector<2x384xf32> to vector<2x128xf32>
    %c0_74 = arith.constant 0 : index
    %c0_75 = arith.constant 0 : index
    %281 = vector.load %arg11[%c0_74, %c0_75] : memref<1x128xf32, #tpu.memory_space<vmem>>, vector<1x128xf32>
    %282 = vector.broadcast %281 : vector<1x128xf32> to vector<2x128xf32>
    %283 = arith.addf %280, %282 : vector<2x128xf32>
    %284 = arith.mulf %270, %283 : vector<2x128xf32>
    %285 = arith.addf %279, %284 : vector<2x128xf32>
    %286 = math.tanh %285 : vector<2x128xf32>
    %cst_76 = arith.constant 1.000000e+00 : f32
    %287 = vector.broadcast %cst_76 : f32 to vector<2x128xf32>
    %288 = arith.subf %287, %278 : vector<2x128xf32>
    %289 = arith.mulf %288, %286 : vector<2x128xf32>
    %290 = arith.mulf %278, %254 : vector<2x128xf32>
    %291 = arith.addf %289, %290 : vector<2x128xf32>
    %c6_i32 = arith.constant 6 : i32
    %292 = vector.broadcast %c6_i32 : i32 to vector<2x1xi32>
    %293 = arith.cmpi sgt, %6, %292 : vector<2x1xi32>
    %294 = vector.shape_cast %293 : vector<2x1xi1> to vector<2x1xi1>
    %295 = vector.broadcast %294 : vector<2x1xi1> to vector<2x128xi1>
    %296 = arith.select %295, %291, %254 : vector<2x128xi1>, vector<2x128xf32>
    %cst_77 = arith.constant 0.000000e+00 : f32
    %297 = vector.shape_cast %293 : vector<2x1xi1> to vector<2x1xi1>
    %298 = vector.broadcast %297 : vector<2x1xi1> to vector<2x128xi1>
    %299 = vector.broadcast %cst_77 : f32 to vector<2x128xf32>
    %300 = arith.select %298, %296, %299 : vector<2x128xi1>, vector<2x128xf32>
    %c12 = arith.constant 12 : index
    %c0_78 = arith.constant 0 : index
    %301 = vector.load %arg29[%c12, %c0_78] : memref<24x128xf32, #tpu.memory_space<vmem>>, vector<2x128xf32>
    tpu.vector_store %arg29[%c12, %c0_78], %300 {strides = array<i32>} : memref<24x128xf32, #tpu.memory_space<vmem>>, vector<2x128xf32>,
    %302 = vector.extract_strided_slice %5 {offsets = [14, 0], sizes = [2, 384], strides = [1, 1]} : vector<24x384xf32> to vector<2x384xf32>
    %c0_79 = arith.constant 0 : index
    %c0_80 = arith.constant 0 : index
    %303 = vector.load %arg9[%c0_79, %c0_80] : memref<128x384xf32, #tpu.memory_space<vmem>>, vector<128x384xf32>
    %cst_81 = arith.constant dense<0.000000e+00> : vector<2x384xf32>
    %304 = tpu.matmul %296, %303, %cst_81 {dimension_numbers = #tpu.dot_dimension_numbers<[1], [0], [0], [1], [0, 0, 1, 1], [], []>} : vector<2x128xf32>, vector<128x384xf32>, vector<2x384xf32> -> vector<2x384xf32>
    %305 = vector.extract_strided_slice %302 {offsets = [0, 0], sizes = [2, 128], strides = [1, 1]} : vector<2x384xf32> to vector<2x128xf32>
    %306 = vector.extract_strided_slice %304 {offsets = [0, 0], sizes = [2, 128], strides = [1, 1]} : vector<2x384xf32> to vector<2x128xf32>
    %307 = arith.addf %305, %306 : vector<2x128xf32>
    %308 = arith.negf %307 : vector<2x128xf32>
    %309 = math.exp %308 : vector<2x128xf32>
    %cst_82 = arith.constant 1.000000e+00 : f32
    %310 = vector.broadcast %cst_82 : f32 to vector<2x128xf32>
    %311 = arith.addf %310, %309 : vector<2x128xf32>
    %312 = arith.divf %310, %311 : vector<2x128xf32>
    %313 = vector.extract_strided_slice %302 {offsets = [0, 128], sizes = [2, 128], strides = [1, 1]} : vector<2x384xf32> to vector<2x128xf32>
    %314 = vector.extract_strided_slice %304 {offsets = [0, 128], sizes = [2, 128], strides = [1, 1]} : vector<2x384xf32> to vector<2x128xf32>
    %315 = arith.addf %313, %314 : vector<2x128xf32>
    %316 = arith.negf %315 : vector<2x128xf32>
    %317 = math.exp %316 : vector<2x128xf32>
    %cst_83 = arith.constant 1.000000e+00 : f32
    %318 = vector.broadcast %cst_83 : f32 to vector<2x128xf32>
    %319 = arith.addf %318, %317 : vector<2x128xf32>
    %320 = arith.divf %318, %319 : vector<2x128xf32>
    %321 = vector.extract_strided_slice %302 {offsets = [0, 256], sizes = [2, 128], strides = [1, 1]} : vector<2x384xf32> to vector<2x128xf32>
    %322 = vector.extract_strided_slice %304 {offsets = [0, 256], sizes = [2, 128], strides = [1, 1]} : vector<2x384xf32> to vector<2x128xf32>
    %c0_84 = arith.constant 0 : index
    %c0_85 = arith.constant 0 : index
    %323 = vector.load %arg11[%c0_84, %c0_85] : memref<1x128xf32, #tpu.memory_space<vmem>>, vector<1x128xf32>
    %324 = vector.broadcast %323 : vector<1x128xf32> to vector<2x128xf32>
    %325 = arith.addf %322, %324 : vector<2x128xf32>
    %326 = arith.mulf %312, %325 : vector<2x128xf32>
    %327 = arith.addf %321, %326 : vector<2x128xf32>
    %328 = math.tanh %327 : vector<2x128xf32>
    %cst_86 = arith.constant 1.000000e+00 : f32
    %329 = vector.broadcast %cst_86 : f32 to vector<2x128xf32>
    %330 = arith.subf %329, %320 : vector<2x128xf32>
    %331 = arith.mulf %330, %328 : vector<2x128xf32>
    %332 = arith.mulf %320, %296 : vector<2x128xf32>
    %333 = arith.addf %331, %332 : vector<2x128xf32>
    %c7_i32 = arith.constant 7 : i32
    %334 = vector.broadcast %c7_i32 : i32 to vector<2x1xi32>
    %335 = arith.cmpi sgt, %6, %334 : vector<2x1xi32>
    %336 = vector.shape_cast %335 : vector<2x1xi1> to vector<2x1xi1>
    %337 = vector.broadcast %336 : vector<2x1xi1> to vector<2x128xi1>
    %338 = arith.select %337, %333, %296 : vector<2x128xi1>, vector<2x128xf32>
    %cst_87 = arith.constant 0.000000e+00 : f32
    %339 = vector.shape_cast %335 : vector<2x1xi1> to vector<2x1xi1>
    %340 = vector.broadcast %339 : vector<2x1xi1> to vector<2x128xi1>
    %341 = vector.broadcast %cst_87 : f32 to vector<2x128xf32>
    %342 = arith.select %340, %338, %341 : vector<2x128xi1>, vector<2x128xf32>
    %c14 = arith.constant 14 : index
    %c0_88 = arith.constant 0 : index
    %343 = vector.load %arg29[%c14, %c0_88] : memref<24x128xf32, #tpu.memory_space<vmem>>, vector<2x128xf32>
    tpu.vector_store %arg29[%c14, %c0_88], %342 {strides = array<i32>} : memref<24x128xf32, #tpu.memory_space<vmem>>, vector<2x128xf32>,
    %344 = vector.extract_strided_slice %5 {offsets = [16, 0], sizes = [2, 384], strides = [1, 1]} : vector<24x384xf32> to vector<2x384xf32>
    %c0_89 = arith.constant 0 : index
    %c0_90 = arith.constant 0 : index
    %345 = vector.load %arg9[%c0_89, %c0_90] : memref<128x384xf32, #tpu.memory_space<vmem>>, vector<128x384xf32>
    %cst_91 = arith.constant dense<0.000000e+00> : vector<2x384xf32>
    %346 = tpu.matmul %338, %345, %cst_91 {dimension_numbers = #tpu.dot_dimension_numbers<[1], [0], [0], [1], [0, 0, 1, 1], [], []>} : vector<2x128xf32>, vector<128x384xf32>, vector<2x384xf32> -> vector<2x384xf32>
    %347 = vector.extract_strided_slice %344 {offsets = [0, 0], sizes = [2, 128], strides = [1, 1]} : vector<2x384xf32> to vector<2x128xf32>
    %348 = vector.extract_strided_slice %346 {offsets = [0, 0], sizes = [2, 128], strides = [1, 1]} : vector<2x384xf32> to vector<2x128xf32>
    %349 = arith.addf %347, %348 : vector<2x128xf32>
    %350 = arith.negf %349 : vector<2x128xf32>
    %351 = math.exp %350 : vector<2x128xf32>
    %cst_92 = arith.constant 1.000000e+00 : f32
    %352 = vector.broadcast %cst_92 : f32 to vector<2x128xf32>
    %353 = arith.addf %352, %351 : vector<2x128xf32>
    %354 = arith.divf %352, %353 : vector<2x128xf32>
    %355 = vector.extract_strided_slice %344 {offsets = [0, 128], sizes = [2, 128], strides = [1, 1]} : vector<2x384xf32> to vector<2x128xf32>
    %356 = vector.extract_strided_slice %346 {offsets = [0, 128], sizes = [2, 128], strides = [1, 1]} : vector<2x384xf32> to vector<2x128xf32>
    %357 = arith.addf %355, %356 : vector<2x128xf32>
    %358 = arith.negf %357 : vector<2x128xf32>
    %359 = math.exp %358 : vector<2x128xf32>
    %cst_93 = arith.constant 1.000000e+00 : f32
    %360 = vector.broadcast %cst_93 : f32 to vector<2x128xf32>
    %361 = arith.addf %360, %359 : vector<2x128xf32>
    %362 = arith.divf %360, %361 : vector<2x128xf32>
    %363 = vector.extract_strided_slice %344 {offsets = [0, 256], sizes = [2, 128], strides = [1, 1]} : vector<2x384xf32> to vector<2x128xf32>
    %364 = vector.extract_strided_slice %346 {offsets = [0, 256], sizes = [2, 128], strides = [1, 1]} : vector<2x384xf32> to vector<2x128xf32>
    %c0_94 = arith.constant 0 : index
    %c0_95 = arith.constant 0 : index
    %365 = vector.load %arg11[%c0_94, %c0_95] : memref<1x128xf32, #tpu.memory_space<vmem>>, vector<1x128xf32>
    %366 = vector.broadcast %365 : vector<1x128xf32> to vector<2x128xf32>
    %367 = arith.addf %364, %366 : vector<2x128xf32>
    %368 = arith.mulf %354, %367 : vector<2x128xf32>
    %369 = arith.addf %363, %368 : vector<2x128xf32>
    %370 = math.tanh %369 : vector<2x128xf32>
    %cst_96 = arith.constant 1.000000e+00 : f32
    %371 = vector.broadcast %cst_96 : f32 to vector<2x128xf32>
    %372 = arith.subf %371, %362 : vector<2x128xf32>
    %373 = arith.mulf %372, %370 : vector<2x128xf32>
    %374 = arith.mulf %362, %338 : vector<2x128xf32>
    %375 = arith.addf %373, %374 : vector<2x128xf32>
    %c8_i32 = arith.constant 8 : i32
    %376 = vector.broadcast %c8_i32 : i32 to vector<2x1xi32>
    %377 = arith.cmpi sgt, %6, %376 : vector<2x1xi32>
    %378 = vector.shape_cast %377 : vector<2x1xi1> to vector<2x1xi1>
    %379 = vector.broadcast %378 : vector<2x1xi1> to vector<2x128xi1>
    %380 = arith.select %379, %375, %338 : vector<2x128xi1>, vector<2x128xf32>
    %cst_97 = arith.constant 0.000000e+00 : f32
    %381 = vector.shape_cast %377 : vector<2x1xi1> to vector<2x1xi1>
    %382 = vector.broadcast %381 : vector<2x1xi1> to vector<2x128xi1>
    %383 = vector.broadcast %cst_97 : f32 to vector<2x128xf32>
    %384 = arith.select %382, %380, %383 : vector<2x128xi1>, vector<2x128xf32>
    %c16 = arith.constant 16 : index
    %c0_98 = arith.constant 0 : index
    %385 = vector.load %arg29[%c16, %c0_98] : memref<24x128xf32, #tpu.memory_space<vmem>>, vector<2x128xf32>
    tpu.vector_store %arg29[%c16, %c0_98], %384 {strides = array<i32>} : memref<24x128xf32, #tpu.memory_space<vmem>>, vector<2x128xf32>,
    %386 = vector.extract_strided_slice %5 {offsets = [18, 0], sizes = [2, 384], strides = [1, 1]} : vector<24x384xf32> to vector<2x384xf32>
    %c0_99 = arith.constant 0 : index
    %c0_100 = arith.constant 0 : index
    %387 = vector.load %arg9[%c0_99, %c0_100] : memref<128x384xf32, #tpu.memory_space<vmem>>, vector<128x384xf32>
    %cst_101 = arith.constant dense<0.000000e+00> : vector<2x384xf32>
    %388 = tpu.matmul %380, %387, %cst_101 {dimension_numbers = #tpu.dot_dimension_numbers<[1], [0], [0], [1], [0, 0, 1, 1], [], []>} : vector<2x128xf32>, vector<128x384xf32>, vector<2x384xf32> -> vector<2x384xf32>
    %389 = vector.extract_strided_slice %386 {offsets = [0, 0], sizes = [2, 128], strides = [1, 1]} : vector<2x384xf32> to vector<2x128xf32>
    %390 = vector.extract_strided_slice %388 {offsets = [0, 0], sizes = [2, 128], strides = [1, 1]} : vector<2x384xf32> to vector<2x128xf32>
    %391 = arith.addf %389, %390 : vector<2x128xf32>
    %392 = arith.negf %391 : vector<2x128xf32>
    %393 = math.exp %392 : vector<2x128xf32>
    %cst_102 = arith.constant 1.000000e+00 : f32
    %394 = vector.broadcast %cst_102 : f32 to vector<2x128xf32>
    %395 = arith.addf %394, %393 : vector<2x128xf32>
    %396 = arith.divf %394, %395 : vector<2x128xf32>
    %397 = vector.extract_strided_slice %386 {offsets = [0, 128], sizes = [2, 128], strides = [1, 1]} : vector<2x384xf32> to vector<2x128xf32>
    %398 = vector.extract_strided_slice %388 {offsets = [0, 128], sizes = [2, 128], strides = [1, 1]} : vector<2x384xf32> to vector<2x128xf32>
    %399 = arith.addf %397, %398 : vector<2x128xf32>
    %400 = arith.negf %399 : vector<2x128xf32>
    %401 = math.exp %400 : vector<2x128xf32>
    %cst_103 = arith.constant 1.000000e+00 : f32
    %402 = vector.broadcast %cst_103 : f32 to vector<2x128xf32>
    %403 = arith.addf %402, %401 : vector<2x128xf32>
    %404 = arith.divf %402, %403 : vector<2x128xf32>
    %405 = vector.extract_strided_slice %386 {offsets = [0, 256], sizes = [2, 128], strides = [1, 1]} : vector<2x384xf32> to vector<2x128xf32>
    %406 = vector.extract_strided_slice %388 {offsets = [0, 256], sizes = [2, 128], strides = [1, 1]} : vector<2x384xf32> to vector<2x128xf32>
    %c0_104 = arith.constant 0 : index
    %c0_105 = arith.constant 0 : index
    %407 = vector.load %arg11[%c0_104, %c0_105] : memref<1x128xf32, #tpu.memory_space<vmem>>, vector<1x128xf32>
    %408 = vector.broadcast %407 : vector<1x128xf32> to vector<2x128xf32>
    %409 = arith.addf %406, %408 : vector<2x128xf32>
    %410 = arith.mulf %396, %409 : vector<2x128xf32>
    %411 = arith.addf %405, %410 : vector<2x128xf32>
    %412 = math.tanh %411 : vector<2x128xf32>
    %cst_106 = arith.constant 1.000000e+00 : f32
    %413 = vector.broadcast %cst_106 : f32 to vector<2x128xf32>
    %414 = arith.subf %413, %404 : vector<2x128xf32>
    %415 = arith.mulf %414, %412 : vector<2x128xf32>
    %416 = arith.mulf %404, %380 : vector<2x128xf32>
    %417 = arith.addf %415, %416 : vector<2x128xf32>
    %c9_i32 = arith.constant 9 : i32
    %418 = vector.broadcast %c9_i32 : i32 to vector<2x1xi32>
    %419 = arith.cmpi sgt, %6, %418 : vector<2x1xi32>
    %420 = vector.shape_cast %419 : vector<2x1xi1> to vector<2x1xi1>
    %421 = vector.broadcast %420 : vector<2x1xi1> to vector<2x128xi1>
    %422 = arith.select %421, %417, %380 : vector<2x128xi1>, vector<2x128xf32>
    %cst_107 = arith.constant 0.000000e+00 : f32
    %423 = vector.shape_cast %419 : vector<2x1xi1> to vector<2x1xi1>
    %424 = vector.broadcast %423 : vector<2x1xi1> to vector<2x128xi1>
    %425 = vector.broadcast %cst_107 : f32 to vector<2x128xf32>
    %426 = arith.select %424, %422, %425 : vector<2x128xi1>, vector<2x128xf32>
    %c18 = arith.constant 18 : index
    %c0_108 = arith.constant 0 : index
    %427 = vector.load %arg29[%c18, %c0_108] : memref<24x128xf32, #tpu.memory_space<vmem>>, vector<2x128xf32>
    tpu.vector_store %arg29[%c18, %c0_108], %426 {strides = array<i32>} : memref<24x128xf32, #tpu.memory_space<vmem>>, vector<2x128xf32>,
    %428 = vector.extract_strided_slice %5 {offsets = [20, 0], sizes = [2, 384], strides = [1, 1]} : vector<24x384xf32> to vector<2x384xf32>
    %c0_109 = arith.constant 0 : index
    %c0_110 = arith.constant 0 : index
    %429 = vector.load %arg9[%c0_109, %c0_110] : memref<128x384xf32, #tpu.memory_space<vmem>>, vector<128x384xf32>
    %cst_111 = arith.constant dense<0.000000e+00> : vector<2x384xf32>
    %430 = tpu.matmul %422, %429, %cst_111 {dimension_numbers = #tpu.dot_dimension_numbers<[1], [0], [0], [1], [0, 0, 1, 1], [], []>} : vector<2x128xf32>, vector<128x384xf32>, vector<2x384xf32> -> vector<2x384xf32>
    %431 = vector.extract_strided_slice %428 {offsets = [0, 0], sizes = [2, 128], strides = [1, 1]} : vector<2x384xf32> to vector<2x128xf32>
    %432 = vector.extract_strided_slice %430 {offsets = [0, 0], sizes = [2, 128], strides = [1, 1]} : vector<2x384xf32> to vector<2x128xf32>
    %433 = arith.addf %431, %432 : vector<2x128xf32>
    %434 = arith.negf %433 : vector<2x128xf32>
    %435 = math.exp %434 : vector<2x128xf32>
    %cst_112 = arith.constant 1.000000e+00 : f32
    %436 = vector.broadcast %cst_112 : f32 to vector<2x128xf32>
    %437 = arith.addf %436, %435 : vector<2x128xf32>
    %438 = arith.divf %436, %437 : vector<2x128xf32>
    %439 = vector.extract_strided_slice %428 {offsets = [0, 128], sizes = [2, 128], strides = [1, 1]} : vector<2x384xf32> to vector<2x128xf32>
    %440 = vector.extract_strided_slice %430 {offsets = [0, 128], sizes = [2, 128], strides = [1, 1]} : vector<2x384xf32> to vector<2x128xf32>
    %441 = arith.addf %439, %440 : vector<2x128xf32>
    %442 = arith.negf %441 : vector<2x128xf32>
    %443 = math.exp %442 : vector<2x128xf32>
    %cst_113 = arith.constant 1.000000e+00 : f32
    %444 = vector.broadcast %cst_113 : f32 to vector<2x128xf32>
    %445 = arith.addf %444, %443 : vector<2x128xf32>
    %446 = arith.divf %444, %445 : vector<2x128xf32>
    %447 = vector.extract_strided_slice %428 {offsets = [0, 256], sizes = [2, 128], strides = [1, 1]} : vector<2x384xf32> to vector<2x128xf32>
    %448 = vector.extract_strided_slice %430 {offsets = [0, 256], sizes = [2, 128], strides = [1, 1]} : vector<2x384xf32> to vector<2x128xf32>
    %c0_114 = arith.constant 0 : index
    %c0_115 = arith.constant 0 : index
    %449 = vector.load %arg11[%c0_114, %c0_115] : memref<1x128xf32, #tpu.memory_space<vmem>>, vector<1x128xf32>
    %450 = vector.broadcast %449 : vector<1x128xf32> to vector<2x128xf32>
    %451 = arith.addf %448, %450 : vector<2x128xf32>
    %452 = arith.mulf %438, %451 : vector<2x128xf32>
    %453 = arith.addf %447, %452 : vector<2x128xf32>
    %454 = math.tanh %453 : vector<2x128xf32>
    %cst_116 = arith.constant 1.000000e+00 : f32
    %455 = vector.broadcast %cst_116 : f32 to vector<2x128xf32>
    %456 = arith.subf %455, %446 : vector<2x128xf32>
    %457 = arith.mulf %456, %454 : vector<2x128xf32>
    %458 = arith.mulf %446, %422 : vector<2x128xf32>
    %459 = arith.addf %457, %458 : vector<2x128xf32>
    %c10_i32 = arith.constant 10 : i32
    %460 = vector.broadcast %c10_i32 : i32 to vector<2x1xi32>
    %461 = arith.cmpi sgt, %6, %460 : vector<2x1xi32>
    %462 = vector.shape_cast %461 : vector<2x1xi1> to vector<2x1xi1>
    %463 = vector.broadcast %462 : vector<2x1xi1> to vector<2x128xi1>
    %464 = arith.select %463, %459, %422 : vector<2x128xi1>, vector<2x128xf32>
    %cst_117 = arith.constant 0.000000e+00 : f32
    %465 = vector.shape_cast %461 : vector<2x1xi1> to vector<2x1xi1>
    %466 = vector.broadcast %465 : vector<2x1xi1> to vector<2x128xi1>
    %467 = vector.broadcast %cst_117 : f32 to vector<2x128xf32>
    %468 = arith.select %466, %464, %467 : vector<2x128xi1>, vector<2x128xf32>
    %c20 = arith.constant 20 : index
    %c0_118 = arith.constant 0 : index
    %469 = vector.load %arg29[%c20, %c0_118] : memref<24x128xf32, #tpu.memory_space<vmem>>, vector<2x128xf32>
    tpu.vector_store %arg29[%c20, %c0_118], %468 {strides = array<i32>} : memref<24x128xf32, #tpu.memory_space<vmem>>, vector<2x128xf32>,
    %470 = vector.extract_strided_slice %5 {offsets = [22, 0], sizes = [2, 384], strides = [1, 1]} : vector<24x384xf32> to vector<2x384xf32>
    %c0_119 = arith.constant 0 : index
    %c0_120 = arith.constant 0 : index
    %471 = vector.load %arg9[%c0_119, %c0_120] : memref<128x384xf32, #tpu.memory_space<vmem>>, vector<128x384xf32>
    %cst_121 = arith.constant dense<0.000000e+00> : vector<2x384xf32>
    %472 = tpu.matmul %464, %471, %cst_121 {dimension_numbers = #tpu.dot_dimension_numbers<[1], [0], [0], [1], [0, 0, 1, 1], [], []>} : vector<2x128xf32>, vector<128x384xf32>, vector<2x384xf32> -> vector<2x384xf32>
    %473 = vector.extract_strided_slice %470 {offsets = [0, 0], sizes = [2, 128], strides = [1, 1]} : vector<2x384xf32> to vector<2x128xf32>
    %474 = vector.extract_strided_slice %472 {offsets = [0, 0], sizes = [2, 128], strides = [1, 1]} : vector<2x384xf32> to vector<2x128xf32>
    %475 = arith.addf %473, %474 : vector<2x128xf32>
    %476 = arith.negf %475 : vector<2x128xf32>
    %477 = math.exp %476 : vector<2x128xf32>
    %cst_122 = arith.constant 1.000000e+00 : f32
    %478 = vector.broadcast %cst_122 : f32 to vector<2x128xf32>
    %479 = arith.addf %478, %477 : vector<2x128xf32>
    %480 = arith.divf %478, %479 : vector<2x128xf32>
    %481 = vector.extract_strided_slice %470 {offsets = [0, 128], sizes = [2, 128], strides = [1, 1]} : vector<2x384xf32> to vector<2x128xf32>
    %482 = vector.extract_strided_slice %472 {offsets = [0, 128], sizes = [2, 128], strides = [1, 1]} : vector<2x384xf32> to vector<2x128xf32>
    %483 = arith.addf %481, %482 : vector<2x128xf32>
    %484 = arith.negf %483 : vector<2x128xf32>
    %485 = math.exp %484 : vector<2x128xf32>
    %cst_123 = arith.constant 1.000000e+00 : f32
    %486 = vector.broadcast %cst_123 : f32 to vector<2x128xf32>
    %487 = arith.addf %486, %485 : vector<2x128xf32>
    %488 = arith.divf %486, %487 : vector<2x128xf32>
    %489 = vector.extract_strided_slice %470 {offsets = [0, 256], sizes = [2, 128], strides = [1, 1]} : vector<2x384xf32> to vector<2x128xf32>
    %490 = vector.extract_strided_slice %472 {offsets = [0, 256], sizes = [2, 128], strides = [1, 1]} : vector<2x384xf32> to vector<2x128xf32>
    %c0_124 = arith.constant 0 : index
    %c0_125 = arith.constant 0 : index
    %491 = vector.load %arg11[%c0_124, %c0_125] : memref<1x128xf32, #tpu.memory_space<vmem>>, vector<1x128xf32>
    %492 = vector.broadcast %491 : vector<1x128xf32> to vector<2x128xf32>
    %493 = arith.addf %490, %492 : vector<2x128xf32>
    %494 = arith.mulf %480, %493 : vector<2x128xf32>
    %495 = arith.addf %489, %494 : vector<2x128xf32>
    %496 = math.tanh %495 : vector<2x128xf32>
    %cst_126 = arith.constant 1.000000e+00 : f32
    %497 = vector.broadcast %cst_126 : f32 to vector<2x128xf32>
    %498 = arith.subf %497, %488 : vector<2x128xf32>
    %499 = arith.mulf %498, %496 : vector<2x128xf32>
    %500 = arith.mulf %488, %464 : vector<2x128xf32>
    %501 = arith.addf %499, %500 : vector<2x128xf32>
    %c11_i32 = arith.constant 11 : i32
    %502 = vector.broadcast %c11_i32 : i32 to vector<2x1xi32>
    %503 = arith.cmpi sgt, %6, %502 : vector<2x1xi32>
    %504 = vector.shape_cast %503 : vector<2x1xi1> to vector<2x1xi1>
    %505 = vector.broadcast %504 : vector<2x1xi1> to vector<2x128xi1>
    %506 = arith.select %505, %501, %464 : vector<2x128xi1>, vector<2x128xf32>
    %cst_127 = arith.constant 0.000000e+00 : f32
    %507 = vector.shape_cast %503 : vector<2x1xi1> to vector<2x1xi1>
    %508 = vector.broadcast %507 : vector<2x1xi1> to vector<2x128xi1>
    %509 = vector.broadcast %cst_127 : f32 to vector<2x128xf32>
    %510 = arith.select %508, %506, %509 : vector<2x128xi1>, vector<2x128xf32>
    %c22 = arith.constant 22 : index
    %c0_128 = arith.constant 0 : index
    %511 = vector.load %arg29[%c22, %c0_128] : memref<24x128xf32, #tpu.memory_space<vmem>>, vector<2x128xf32>
    tpu.vector_store %arg29[%c22, %c0_128], %510 {strides = array<i32>} : memref<24x128xf32, #tpu.memory_space<vmem>>, vector<2x128xf32>,
    %c0_129 = arith.constant 0 : index
    %c0_130 = arith.constant 0 : index
    %512 = vector.load %arg29[%c0_129, %c0_130] : memref<24x128xf32, #tpu.memory_space<vmem>>, vector<24x128xf32>
    %513 = tpu.iota {dimensions = array<i32: 1>} : vector<8x24xi32>
    %c0_131 = arith.constant 0 : index
    %c0_132 = arith.constant 0 : index
    %514 = vector.load %arg2[%c0_131, %c0_132] : memref<8x1xi32, #tpu.memory_space<vmem>>, vector<8x1xi32>
    %515 = vector.broadcast %514 : vector<8x1xi32> to vector<8x24xi32>
    %516 = arith.cmpi eq, %513, %515 : vector<8x24xi32>
    %517 = arith.extui %516 : vector<8x24xi1> to vector<8x24xi32>
    %518 = arith.sitofp %517 : vector<8x24xi32> to vector<8x24xf32>
    %cst_133 = arith.constant dense<0.000000e+00> : vector<8x128xf32>
    %519 = tpu.matmul %518, %512, %cst_133 {dimension_numbers = #tpu.dot_dimension_numbers<[1], [0], [0], [1], [0, 0, 1, 1], [], []>} : vector<8x24xf32>, vector<24x128xf32>, vector<8x128xf32> -> vector<8x128xf32>
    %c0_134 = arith.constant 0 : index
    %c0_135 = arith.constant 0 : index
    %520 = vector.load %arg12[%c0_134, %c0_135] : memref<128x384xf32, #tpu.memory_space<vmem>>, vector<128x384xf32>
    %cst_136 = arith.constant dense<0.000000e+00> : vector<8x384xf32>
    %521 = tpu.matmul %519, %520, %cst_136 {dimension_numbers = #tpu.dot_dimension_numbers<[1], [0], [0], [1], [0, 0, 1, 1], [], []>} : vector<8x128xf32>, vector<128x384xf32>, vector<8x384xf32> -> vector<8x384xf32>
    %c0_137 = arith.constant 0 : index
    %c0_138 = arith.constant 0 : index
    %522 = vector.load %arg5[%c0_137, %c0_138] : memref<8x8xf32, #tpu.memory_space<vmem>>, vector<8x8xf32>
    %c0_139 = arith.constant 0 : index
    %c0_140 = arith.constant 0 : index
    %523 = vector.load %arg13[%c0_139, %c0_140] : memref<8x384xf32, #tpu.memory_space<vmem>>, vector<8x384xf32>
    %cst_141 = arith.constant dense<0.000000e+00> : vector<8x384xf32>
    %524 = tpu.matmul %522, %523, %cst_141 {dimension_numbers = #tpu.dot_dimension_numbers<[1], [0], [0], [1], [0, 0, 1, 1], [], []>} : vector<8x8xf32>, vector<8x384xf32>, vector<8x384xf32> -> vector<8x384xf32>
    %525 = arith.addf %521, %524 : vector<8x384xf32>
    %c0_142 = arith.constant 0 : index
    %c0_143 = arith.constant 0 : index
    %526 = vector.load %arg15[%c0_142, %c0_143] : memref<1x384xf32, #tpu.memory_space<vmem>>, vector<1x384xf32>
    %527 = vector.broadcast %526 : vector<1x384xf32> to vector<8x384xf32>
    %528 = arith.addf %525, %527 : vector<8x384xf32>
    %c0_144 = arith.constant 0 : index
    %c0_145 = arith.constant 0 : index
    %529 = vector.load %arg1[%c0_144, %c0_145] : memref<2x1xi32, #tpu.memory_space<vmem>>, vector<2x1xi32>
    %cst_146 = arith.constant 0.000000e+00 : f32
    %530 = vector.broadcast %cst_146 : f32 to vector<2x128xf32>
    %531 = vector.extract_strided_slice %528 {offsets = [0, 0], sizes = [2, 384], strides = [1, 1]} : vector<8x384xf32> to vector<2x384xf32>
    %c0_147 = arith.constant 0 : index
    %c0_148 = arith.constant 0 : index
    %532 = vector.load %arg14[%c0_147, %c0_148] : memref<128x384xf32, #tpu.memory_space<vmem>>, vector<128x384xf32>
    %cst_149 = arith.constant dense<0.000000e+00> : vector<2x384xf32>
    %533 = tpu.matmul %530, %532, %cst_149 {dimension_numbers = #tpu.dot_dimension_numbers<[1], [0], [0], [1], [0, 0, 1, 1], [], []>} : vector<2x128xf32>, vector<128x384xf32>, vector<2x384xf32> -> vector<2x384xf32>
    %534 = vector.extract_strided_slice %531 {offsets = [0, 0], sizes = [2, 128], strides = [1, 1]} : vector<2x384xf32> to vector<2x128xf32>
    %535 = vector.extract_strided_slice %533 {offsets = [0, 0], sizes = [2, 128], strides = [1, 1]} : vector<2x384xf32> to vector<2x128xf32>
    %536 = arith.addf %534, %535 : vector<2x128xf32>
    %537 = arith.negf %536 : vector<2x128xf32>
    %538 = math.exp %537 : vector<2x128xf32>
    %cst_150 = arith.constant 1.000000e+00 : f32
    %539 = vector.broadcast %cst_150 : f32 to vector<2x128xf32>
    %540 = arith.addf %539, %538 : vector<2x128xf32>
    %541 = arith.divf %539, %540 : vector<2x128xf32>
    %542 = vector.extract_strided_slice %531 {offsets = [0, 128], sizes = [2, 128], strides = [1, 1]} : vector<2x384xf32> to vector<2x128xf32>
    %543 = vector.extract_strided_slice %533 {offsets = [0, 128], sizes = [2, 128], strides = [1, 1]} : vector<2x384xf32> to vector<2x128xf32>
    %544 = arith.addf %542, %543 : vector<2x128xf32>
    %545 = arith.negf %544 : vector<2x128xf32>
    %546 = math.exp %545 : vector<2x128xf32>
    %cst_151 = arith.constant 1.000000e+00 : f32
    %547 = vector.broadcast %cst_151 : f32 to vector<2x128xf32>
    %548 = arith.addf %547, %546 : vector<2x128xf32>
    %549 = arith.divf %547, %548 : vector<2x128xf32>
    %550 = vector.extract_strided_slice %531 {offsets = [0, 256], sizes = [2, 128], strides = [1, 1]} : vector<2x384xf32> to vector<2x128xf32>
    %551 = vector.extract_strided_slice %533 {offsets = [0, 256], sizes = [2, 128], strides = [1, 1]} : vector<2x384xf32> to vector<2x128xf32>
    %c0_152 = arith.constant 0 : index
    %c0_153 = arith.constant 0 : index
    %552 = vector.load %arg16[%c0_152, %c0_153] : memref<1x128xf32, #tpu.memory_space<vmem>>, vector<1x128xf32>
    %553 = vector.broadcast %552 : vector<1x128xf32> to vector<2x128xf32>
    %554 = arith.addf %551, %553 : vector<2x128xf32>
    %555 = arith.mulf %541, %554 : vector<2x128xf32>
    %556 = arith.addf %550, %555 : vector<2x128xf32>
    %557 = math.tanh %556 : vector<2x128xf32>
    %cst_154 = arith.constant 1.000000e+00 : f32
    %558 = vector.broadcast %cst_154 : f32 to vector<2x128xf32>
    %559 = arith.subf %558, %549 : vector<2x128xf32>
    %560 = arith.mulf %559, %557 : vector<2x128xf32>
    %561 = arith.mulf %549, %530 : vector<2x128xf32>
    %562 = arith.addf %560, %561 : vector<2x128xf32>
    %c0_i32_155 = arith.constant 0 : i32
    %563 = vector.broadcast %c0_i32_155 : i32 to vector<2x1xi32>
    %564 = arith.cmpi sgt, %529, %563 : vector<2x1xi32>
    %565 = vector.shape_cast %564 : vector<2x1xi1> to vector<2x1xi1>
    %566 = vector.broadcast %565 : vector<2x1xi1> to vector<2x128xi1>
    %567 = arith.select %566, %562, %530 : vector<2x128xi1>, vector<2x128xf32>
    %568 = vector.extract_strided_slice %528 {offsets = [2, 0], sizes = [2, 384], strides = [1, 1]} : vector<8x384xf32> to vector<2x384xf32>
    %c0_156 = arith.constant 0 : index
    %c0_157 = arith.constant 0 : index
    %569 = vector.load %arg14[%c0_156, %c0_157] : memref<128x384xf32, #tpu.memory_space<vmem>>, vector<128x384xf32>
    %cst_158 = arith.constant dense<0.000000e+00> : vector<2x384xf32>
    %570 = tpu.matmul %567, %569, %cst_158 {dimension_numbers = #tpu.dot_dimension_numbers<[1], [0], [0], [1], [0, 0, 1, 1], [], []>} : vector<2x128xf32>, vector<128x384xf32>, vector<2x384xf32> -> vector<2x384xf32>
    %571 = vector.extract_strided_slice %568 {offsets = [0, 0], sizes = [2, 128], strides = [1, 1]} : vector<2x384xf32> to vector<2x128xf32>
    %572 = vector.extract_strided_slice %570 {offsets = [0, 0], sizes = [2, 128], strides = [1, 1]} : vector<2x384xf32> to vector<2x128xf32>
    %573 = arith.addf %571, %572 : vector<2x128xf32>
    %574 = arith.negf %573 : vector<2x128xf32>
    %575 = math.exp %574 : vector<2x128xf32>
    %cst_159 = arith.constant 1.000000e+00 : f32
    %576 = vector.broadcast %cst_159 : f32 to vector<2x128xf32>
    %577 = arith.addf %576, %575 : vector<2x128xf32>
    %578 = arith.divf %576, %577 : vector<2x128xf32>
    %579 = vector.extract_strided_slice %568 {offsets = [0, 128], sizes = [2, 128], strides = [1, 1]} : vector<2x384xf32> to vector<2x128xf32>
    %580 = vector.extract_strided_slice %570 {offsets = [0, 128], sizes = [2, 128], strides = [1, 1]} : vector<2x384xf32> to vector<2x128xf32>
    %581 = arith.addf %579, %580 : vector<2x128xf32>
    %582 = arith.negf %581 : vector<2x128xf32>
    %583 = math.exp %582 : vector<2x128xf32>
    %cst_160 = arith.constant 1.000000e+00 : f32
    %584 = vector.broadcast %cst_160 : f32 to vector<2x128xf32>
    %585 = arith.addf %584, %583 : vector<2x128xf32>
    %586 = arith.divf %584, %585 : vector<2x128xf32>
    %587 = vector.extract_strided_slice %568 {offsets = [0, 256], sizes = [2, 128], strides = [1, 1]} : vector<2x384xf32> to vector<2x128xf32>
    %588 = vector.extract_strided_slice %570 {offsets = [0, 256], sizes = [2, 128], strides = [1, 1]} : vector<2x384xf32> to vector<2x128xf32>
    %c0_161 = arith.constant 0 : index
    %c0_162 = arith.constant 0 : index
    %589 = vector.load %arg16[%c0_161, %c0_162] : memref<1x128xf32, #tpu.memory_space<vmem>>, vector<1x128xf32>
    %590 = vector.broadcast %589 : vector<1x128xf32> to vector<2x128xf32>
    %591 = arith.addf %588, %590 : vector<2x128xf32>
    %592 = arith.mulf %578, %591 : vector<2x128xf32>
    %593 = arith.addf %587, %592 : vector<2x128xf32>
    %594 = math.tanh %593 : vector<2x128xf32>
    %cst_163 = arith.constant 1.000000e+00 : f32
    %595 = vector.broadcast %cst_163 : f32 to vector<2x128xf32>
    %596 = arith.subf %595, %586 : vector<2x128xf32>
    %597 = arith.mulf %596, %594 : vector<2x128xf32>
    %598 = arith.mulf %586, %567 : vector<2x128xf32>
    %599 = arith.addf %597, %598 : vector<2x128xf32>
    %c1_i32_164 = arith.constant 1 : i32
    %600 = vector.broadcast %c1_i32_164 : i32 to vector<2x1xi32>
    %601 = arith.cmpi sgt, %529, %600 : vector<2x1xi32>
    %602 = vector.shape_cast %601 : vector<2x1xi1> to vector<2x1xi1>
    %603 = vector.broadcast %602 : vector<2x1xi1> to vector<2x128xi1>
    %604 = arith.select %603, %599, %567 : vector<2x128xi1>, vector<2x128xf32>
    %605 = vector.extract_strided_slice %528 {offsets = [4, 0], sizes = [2, 384], strides = [1, 1]} : vector<8x384xf32> to vector<2x384xf32>
    %c0_165 = arith.constant 0 : index
    %c0_166 = arith.constant 0 : index
    %606 = vector.load %arg14[%c0_165, %c0_166] : memref<128x384xf32, #tpu.memory_space<vmem>>, vector<128x384xf32>
    %cst_167 = arith.constant dense<0.000000e+00> : vector<2x384xf32>
    %607 = tpu.matmul %604, %606, %cst_167 {dimension_numbers = #tpu.dot_dimension_numbers<[1], [0], [0], [1], [0, 0, 1, 1], [], []>} : vector<2x128xf32>, vector<128x384xf32>, vector<2x384xf32> -> vector<2x384xf32>
    %608 = vector.extract_strided_slice %605 {offsets = [0, 0], sizes = [2, 128], strides = [1, 1]} : vector<2x384xf32> to vector<2x128xf32>
    %609 = vector.extract_strided_slice %607 {offsets = [0, 0], sizes = [2, 128], strides = [1, 1]} : vector<2x384xf32> to vector<2x128xf32>
    %610 = arith.addf %608, %609 : vector<2x128xf32>
    %611 = arith.negf %610 : vector<2x128xf32>
    %612 = math.exp %611 : vector<2x128xf32>
    %cst_168 = arith.constant 1.000000e+00 : f32
    %613 = vector.broadcast %cst_168 : f32 to vector<2x128xf32>
    %614 = arith.addf %613, %612 : vector<2x128xf32>
    %615 = arith.divf %613, %614 : vector<2x128xf32>
    %616 = vector.extract_strided_slice %605 {offsets = [0, 128], sizes = [2, 128], strides = [1, 1]} : vector<2x384xf32> to vector<2x128xf32>
    %617 = vector.extract_strided_slice %607 {offsets = [0, 128], sizes = [2, 128], strides = [1, 1]} : vector<2x384xf32> to vector<2x128xf32>
    %618 = arith.addf %616, %617 : vector<2x128xf32>
    %619 = arith.negf %618 : vector<2x128xf32>
    %620 = math.exp %619 : vector<2x128xf32>
    %cst_169 = arith.constant 1.000000e+00 : f32
    %621 = vector.broadcast %cst_169 : f32 to vector<2x128xf32>
    %622 = arith.addf %621, %620 : vector<2x128xf32>
    %623 = arith.divf %621, %622 : vector<2x128xf32>
    %624 = vector.extract_strided_slice %605 {offsets = [0, 256], sizes = [2, 128], strides = [1, 1]} : vector<2x384xf32> to vector<2x128xf32>
    %625 = vector.extract_strided_slice %607 {offsets = [0, 256], sizes = [2, 128], strides = [1, 1]} : vector<2x384xf32> to vector<2x128xf32>
    %c0_170 = arith.constant 0 : index
    %c0_171 = arith.constant 0 : index
    %626 = vector.load %arg16[%c0_170, %c0_171] : memref<1x128xf32, #tpu.memory_space<vmem>>, vector<1x128xf32>
    %627 = vector.broadcast %626 : vector<1x128xf32> to vector<2x128xf32>
    %628 = arith.addf %625, %627 : vector<2x128xf32>
    %629 = arith.mulf %615, %628 : vector<2x128xf32>
    %630 = arith.addf %624, %629 : vector<2x128xf32>
    %631 = math.tanh %630 : vector<2x128xf32>
    %cst_172 = arith.constant 1.000000e+00 : f32
    %632 = vector.broadcast %cst_172 : f32 to vector<2x128xf32>
    %633 = arith.subf %632, %623 : vector<2x128xf32>
    %634 = arith.mulf %633, %631 : vector<2x128xf32>
    %635 = arith.mulf %623, %604 : vector<2x128xf32>
    %636 = arith.addf %634, %635 : vector<2x128xf32>
    %c2_i32_173 = arith.constant 2 : i32
    %637 = vector.broadcast %c2_i32_173 : i32 to vector<2x1xi32>
    %638 = arith.cmpi sgt, %529, %637 : vector<2x1xi32>
    %639 = vector.shape_cast %638 : vector<2x1xi1> to vector<2x1xi1>
    %640 = vector.broadcast %639 : vector<2x1xi1> to vector<2x128xi1>
    %641 = arith.select %640, %636, %604 : vector<2x128xi1>, vector<2x128xf32>
    %642 = vector.extract_strided_slice %528 {offsets = [6, 0], sizes = [2, 384], strides = [1, 1]} : vector<8x384xf32> to vector<2x384xf32>
    %c0_174 = arith.constant 0 : index
    %c0_175 = arith.constant 0 : index
    %643 = vector.load %arg14[%c0_174, %c0_175] : memref<128x384xf32, #tpu.memory_space<vmem>>, vector<128x384xf32>
    %cst_176 = arith.constant dense<0.000000e+00> : vector<2x384xf32>
    %644 = tpu.matmul %641, %643, %cst_176 {dimension_numbers = #tpu.dot_dimension_numbers<[1], [0], [0], [1], [0, 0, 1, 1], [], []>} : vector<2x128xf32>, vector<128x384xf32>, vector<2x384xf32> -> vector<2x384xf32>
    %645 = vector.extract_strided_slice %642 {offsets = [0, 0], sizes = [2, 128], strides = [1, 1]} : vector<2x384xf32> to vector<2x128xf32>
    %646 = vector.extract_strided_slice %644 {offsets = [0, 0], sizes = [2, 128], strides = [1, 1]} : vector<2x384xf32> to vector<2x128xf32>
    %647 = arith.addf %645, %646 : vector<2x128xf32>
    %648 = arith.negf %647 : vector<2x128xf32>
    %649 = math.exp %648 : vector<2x128xf32>
    %cst_177 = arith.constant 1.000000e+00 : f32
    %650 = vector.broadcast %cst_177 : f32 to vector<2x128xf32>
    %651 = arith.addf %650, %649 : vector<2x128xf32>
    %652 = arith.divf %650, %651 : vector<2x128xf32>
    %653 = vector.extract_strided_slice %642 {offsets = [0, 128], sizes = [2, 128], strides = [1, 1]} : vector<2x384xf32> to vector<2x128xf32>
    %654 = vector.extract_strided_slice %644 {offsets = [0, 128], sizes = [2, 128], strides = [1, 1]} : vector<2x384xf32> to vector<2x128xf32>
    %655 = arith.addf %653, %654 : vector<2x128xf32>
    %656 = arith.negf %655 : vector<2x128xf32>
    %657 = math.exp %656 : vector<2x128xf32>
    %cst_178 = arith.constant 1.000000e+00 : f32
    %658 = vector.broadcast %cst_178 : f32 to vector<2x128xf32>
    %659 = arith.addf %658, %657 : vector<2x128xf32>
    %660 = arith.divf %658, %659 : vector<2x128xf32>
    %661 = vector.extract_strided_slice %642 {offsets = [0, 256], sizes = [2, 128], strides = [1, 1]} : vector<2x384xf32> to vector<2x128xf32>
    %662 = vector.extract_strided_slice %644 {offsets = [0, 256], sizes = [2, 128], strides = [1, 1]} : vector<2x384xf32> to vector<2x128xf32>
    %c0_179 = arith.constant 0 : index
    %c0_180 = arith.constant 0 : index
    %663 = vector.load %arg16[%c0_179, %c0_180] : memref<1x128xf32, #tpu.memory_space<vmem>>, vector<1x128xf32>
    %664 = vector.broadcast %663 : vector<1x128xf32> to vector<2x128xf32>
    %665 = arith.addf %662, %664 : vector<2x128xf32>
    %666 = arith.mulf %652, %665 : vector<2x128xf32>
    %667 = arith.addf %661, %666 : vector<2x128xf32>
    %668 = math.tanh %667 : vector<2x128xf32>
    %cst_181 = arith.constant 1.000000e+00 : f32
    %669 = vector.broadcast %cst_181 : f32 to vector<2x128xf32>
    %670 = arith.subf %669, %660 : vector<2x128xf32>
    %671 = arith.mulf %670, %668 : vector<2x128xf32>
    %672 = arith.mulf %660, %641 : vector<2x128xf32>
    %673 = arith.addf %671, %672 : vector<2x128xf32>
    %c3_i32_182 = arith.constant 3 : i32
    %674 = vector.broadcast %c3_i32_182 : i32 to vector<2x1xi32>
    %675 = arith.cmpi sgt, %529, %674 : vector<2x1xi32>
    %676 = vector.shape_cast %675 : vector<2x1xi1> to vector<2x1xi1>
    %677 = vector.broadcast %676 : vector<2x1xi1> to vector<2x128xi1>
    %678 = arith.select %677, %673, %641 : vector<2x128xi1>, vector<2x128xf32>
    %c0_183 = arith.constant 0 : index
    %c0_184 = arith.constant 0 : index
    %679 = vector.load %arg6[%c0_183, %c0_184] : memref<2x24xf32, #tpu.memory_space<vmem>>, vector<2x24xf32>
    %c0_185 = arith.constant 0 : index
    %c0_186 = arith.constant 0 : index
    %680 = vector.load %arg21[%c0_185, %c0_186] : memref<24x128xf32, #tpu.memory_space<vmem>>, vector<24x128xf32>
    %cst_187 = arith.constant dense<0.000000e+00> : vector<2x128xf32>
    %681 = tpu.matmul %679, %680, %cst_187 {dimension_numbers = #tpu.dot_dimension_numbers<[1], [0], [0], [1], [0, 0, 1, 1], [], []>} : vector<2x24xf32>, vector<24x128xf32>, vector<2x128xf32> -> vector<2x128xf32>
    %c0_188 = arith.constant 0 : index
    %c0_189 = arith.constant 0 : index
    %682 = vector.load %arg22[%c0_188, %c0_189] : memref<1x128xf32, #tpu.memory_space<vmem>>, vector<1x128xf32>
    %683 = vector.broadcast %682 : vector<1x128xf32> to vector<2x128xf32>
    %684 = arith.addf %681, %683 : vector<2x128xf32>
    %c0_190 = arith.constant 0 : index
    %c0_191 = arith.constant 0 : index
    %685 = vector.load %arg23[%c0_190, %c0_191] : memref<128x128xf32, #tpu.memory_space<vmem>>, vector<128x128xf32>
    %cst_192 = arith.constant dense<0.000000e+00> : vector<2x128xf32>
    %686 = tpu.matmul %678, %685, %cst_192 {dimension_numbers = #tpu.dot_dimension_numbers<[1], [0], [0], [1], [0, 0, 1, 1], [], []>} : vector<2x128xf32>, vector<128x128xf32>, vector<2x128xf32> -> vector<2x128xf32>
    %c0_193 = arith.constant 0 : index
    %c0_194 = arith.constant 0 : index
    %687 = vector.load %arg24[%c0_193, %c0_194] : memref<128x128xf32, #tpu.memory_space<vmem>>, vector<128x128xf32>
    %cst_195 = arith.constant dense<0.000000e+00> : vector<2x128xf32>
    %688 = tpu.matmul %684, %687, %cst_195 {dimension_numbers = #tpu.dot_dimension_numbers<[1], [0], [0], [1], [0, 0, 1, 1], [], []>} : vector<2x128xf32>, vector<128x128xf32>, vector<2x128xf32> -> vector<2x128xf32>
    %689 = arith.addf %686, %688 : vector<2x128xf32>
    %c0_196 = arith.constant 0 : index
    %c0_197 = arith.constant 0 : index
    %690 = vector.load %arg25[%c0_196, %c0_197] : memref<1x128xf32, #tpu.memory_space<vmem>>, vector<1x128xf32>
    %691 = vector.broadcast %690 : vector<1x128xf32> to vector<2x128xf32>
    %692 = arith.addf %689, %691 : vector<2x128xf32>
    %c0_198 = arith.constant 0 : index
    %c0_199 = arith.constant 0 : index
    %693 = vector.load %arg7[%c0_198, %c0_199] : memref<14x16xf32, #tpu.memory_space<vmem>>, vector<14x16xf32>
    %c0_200 = arith.constant 0 : index
    %c0_201 = arith.constant 0 : index
    %694 = vector.load %arg17[%c0_200, %c0_201] : memref<16x384xf32, #tpu.memory_space<vmem>>, vector<16x384xf32>
    %cst_202 = arith.constant dense<0.000000e+00> : vector<14x384xf32>
    %695 = tpu.matmul %693, %694, %cst_202 {dimension_numbers = #tpu.dot_dimension_numbers<[1], [0], [0], [1], [0, 0, 1, 1], [], []>} : vector<14x16xf32>, vector<16x384xf32>, vector<14x384xf32> -> vector<14x384xf32>
    %c0_203 = arith.constant 0 : index
    %c0_204 = arith.constant 0 : index
    %696 = vector.load %arg19[%c0_203, %c0_204] : memref<1x384xf32, #tpu.memory_space<vmem>>, vector<1x384xf32>
    %697 = vector.broadcast %696 : vector<1x384xf32> to vector<14x384xf32>
    %698 = arith.addf %695, %697 : vector<14x384xf32>
    %699 = vector.extract_strided_slice %698 {offsets = [0, 0], sizes = [2, 384], strides = [1, 1]} : vector<14x384xf32> to vector<2x384xf32>
    %c0_205 = arith.constant 0 : index
    %c0_206 = arith.constant 0 : index
    %700 = vector.load %arg18[%c0_205, %c0_206] : memref<128x384xf32, #tpu.memory_space<vmem>>, vector<128x384xf32>
    %cst_207 = arith.constant dense<0.000000e+00> : vector<2x384xf32>
    %701 = tpu.matmul %692, %700, %cst_207 {dimension_numbers = #tpu.dot_dimension_numbers<[1], [0], [0], [1], [0, 0, 1, 1], [], []>} : vector<2x128xf32>, vector<128x384xf32>, vector<2x384xf32> -> vector<2x384xf32>
    %702 = vector.extract_strided_slice %699 {offsets = [0, 0], sizes = [2, 128], strides = [1, 1]} : vector<2x384xf32> to vector<2x128xf32>
    %703 = vector.extract_strided_slice %701 {offsets = [0, 0], sizes = [2, 128], strides = [1, 1]} : vector<2x384xf32> to vector<2x128xf32>
    %704 = arith.addf %702, %703 : vector<2x128xf32>
    %705 = arith.negf %704 : vector<2x128xf32>
    %706 = math.exp %705 : vector<2x128xf32>
    %cst_208 = arith.constant 1.000000e+00 : f32
    %707 = vector.broadcast %cst_208 : f32 to vector<2x128xf32>
    %708 = arith.addf %707, %706 : vector<2x128xf32>
    %709 = arith.divf %707, %708 : vector<2x128xf32>
    %710 = vector.extract_strided_slice %699 {offsets = [0, 128], sizes = [2, 128], strides = [1, 1]} : vector<2x384xf32> to vector<2x128xf32>
    %711 = vector.extract_strided_slice %701 {offsets = [0, 128], sizes = [2, 128], strides = [1, 1]} : vector<2x384xf32> to vector<2x128xf32>
    %712 = arith.addf %710, %711 : vector<2x128xf32>
    %713 = arith.negf %712 : vector<2x128xf32>
    %714 = math.exp %713 : vector<2x128xf32>
    %cst_209 = arith.constant 1.000000e+00 : f32
    %715 = vector.broadcast %cst_209 : f32 to vector<2x128xf32>
    %716 = arith.addf %715, %714 : vector<2x128xf32>
    %717 = arith.divf %715, %716 : vector<2x128xf32>
    %718 = vector.extract_strided_slice %699 {offsets = [0, 256], sizes = [2, 128], strides = [1, 1]} : vector<2x384xf32> to vector<2x128xf32>
    %719 = vector.extract_strided_slice %701 {offsets = [0, 256], sizes = [2, 128], strides = [1, 1]} : vector<2x384xf32> to vector<2x128xf32>
    %c0_210 = arith.constant 0 : index
    %c0_211 = arith.constant 0 : index
    %720 = vector.load %arg20[%c0_210, %c0_211] : memref<1x128xf32, #tpu.memory_space<vmem>>, vector<1x128xf32>
    %721 = vector.broadcast %720 : vector<1x128xf32> to vector<2x128xf32>
    %722 = arith.addf %719, %721 : vector<2x128xf32>
    %723 = arith.mulf %709, %722 : vector<2x128xf32>
    %724 = arith.addf %718, %723 : vector<2x128xf32>
    %725 = math.tanh %724 : vector<2x128xf32>
    %cst_212 = arith.constant 1.000000e+00 : f32
    %726 = vector.broadcast %cst_212 : f32 to vector<2x128xf32>
    %727 = arith.subf %726, %717 : vector<2x128xf32>
    %728 = arith.mulf %727, %725 : vector<2x128xf32>
    %729 = arith.mulf %717, %692 : vector<2x128xf32>
    %730 = arith.addf %728, %729 : vector<2x128xf32>
    %c0_213 = arith.constant 0 : index
    %c0_214 = arith.constant 0 : index
    %731 = vector.load %arg30[%c0_213, %c0_214] : memref<14x128xf32, #tpu.memory_space<vmem>>, vector<2x128xf32>
    tpu.vector_store %arg30[%c0_213, %c0_214], %730 {strides = array<i32>} : memref<14x128xf32, #tpu.memory_space<vmem>>, vector<2x128xf32>,
    %732 = vector.extract_strided_slice %698 {offsets = [2, 0], sizes = [2, 384], strides = [1, 1]} : vector<14x384xf32> to vector<2x384xf32>
    %c0_215 = arith.constant 0 : index
    %c0_216 = arith.constant 0 : index
    %733 = vector.load %arg18[%c0_215, %c0_216] : memref<128x384xf32, #tpu.memory_space<vmem>>, vector<128x384xf32>
    %cst_217 = arith.constant dense<0.000000e+00> : vector<2x384xf32>
    %734 = tpu.matmul %730, %733, %cst_217 {dimension_numbers = #tpu.dot_dimension_numbers<[1], [0], [0], [1], [0, 0, 1, 1], [], []>} : vector<2x128xf32>, vector<128x384xf32>, vector<2x384xf32> -> vector<2x384xf32>
    %735 = vector.extract_strided_slice %732 {offsets = [0, 0], sizes = [2, 128], strides = [1, 1]} : vector<2x384xf32> to vector<2x128xf32>
    %736 = vector.extract_strided_slice %734 {offsets = [0, 0], sizes = [2, 128], strides = [1, 1]} : vector<2x384xf32> to vector<2x128xf32>
    %737 = arith.addf %735, %736 : vector<2x128xf32>
    %738 = arith.negf %737 : vector<2x128xf32>
    %739 = math.exp %738 : vector<2x128xf32>
    %cst_218 = arith.constant 1.000000e+00 : f32
    %740 = vector.broadcast %cst_218 : f32 to vector<2x128xf32>
    %741 = arith.addf %740, %739 : vector<2x128xf32>
    %742 = arith.divf %740, %741 : vector<2x128xf32>
    %743 = vector.extract_strided_slice %732 {offsets = [0, 128], sizes = [2, 128], strides = [1, 1]} : vector<2x384xf32> to vector<2x128xf32>
    %744 = vector.extract_strided_slice %734 {offsets = [0, 128], sizes = [2, 128], strides = [1, 1]} : vector<2x384xf32> to vector<2x128xf32>
    %745 = arith.addf %743, %744 : vector<2x128xf32>
    %746 = arith.negf %745 : vector<2x128xf32>
    %747 = math.exp %746 : vector<2x128xf32>
    %cst_219 = arith.constant 1.000000e+00 : f32
    %748 = vector.broadcast %cst_219 : f32 to vector<2x128xf32>
    %749 = arith.addf %748, %747 : vector<2x128xf32>
    %750 = arith.divf %748, %749 : vector<2x128xf32>
    %751 = vector.extract_strided_slice %732 {offsets = [0, 256], sizes = [2, 128], strides = [1, 1]} : vector<2x384xf32> to vector<2x128xf32>
    %752 = vector.extract_strided_slice %734 {offsets = [0, 256], sizes = [2, 128], strides = [1, 1]} : vector<2x384xf32> to vector<2x128xf32>
    %c0_220 = arith.constant 0 : index
    %c0_221 = arith.constant 0 : index
    %753 = vector.load %arg20[%c0_220, %c0_221] : memref<1x128xf32, #tpu.memory_space<vmem>>, vector<1x128xf32>
    %754 = vector.broadcast %753 : vector<1x128xf32> to vector<2x128xf32>
    %755 = arith.addf %752, %754 : vector<2x128xf32>
    %756 = arith.mulf %742, %755 : vector<2x128xf32>
    %757 = arith.addf %751, %756 : vector<2x128xf32>
    %758 = math.tanh %757 : vector<2x128xf32>
    %cst_222 = arith.constant 1.000000e+00 : f32
    %759 = vector.broadcast %cst_222 : f32 to vector<2x128xf32>
    %760 = arith.subf %759, %750 : vector<2x128xf32>
    %761 = arith.mulf %760, %758 : vector<2x128xf32>
    %762 = arith.mulf %750, %730 : vector<2x128xf32>
    %763 = arith.addf %761, %762 : vector<2x128xf32>
    %c2_223 = arith.constant 2 : index
    %c0_224 = arith.constant 0 : index
    %764 = vector.load %arg30[%c2_223, %c0_224] : memref<14x128xf32, #tpu.memory_space<vmem>>, vector<2x128xf32>
    tpu.vector_store %arg30[%c2_223, %c0_224], %763 {strides = array<i32>} : memref<14x128xf32, #tpu.memory_space<vmem>>, vector<2x128xf32>,
    %765 = vector.extract_strided_slice %698 {offsets = [4, 0], sizes = [2, 384], strides = [1, 1]} : vector<14x384xf32> to vector<2x384xf32>
    %c0_225 = arith.constant 0 : index
    %c0_226 = arith.constant 0 : index
    %766 = vector.load %arg18[%c0_225, %c0_226] : memref<128x384xf32, #tpu.memory_space<vmem>>, vector<128x384xf32>
    %cst_227 = arith.constant dense<0.000000e+00> : vector<2x384xf32>
    %767 = tpu.matmul %763, %766, %cst_227 {dimension_numbers = #tpu.dot_dimension_numbers<[1], [0], [0], [1], [0, 0, 1, 1], [], []>} : vector<2x128xf32>, vector<128x384xf32>, vector<2x384xf32> -> vector<2x384xf32>
    %768 = vector.extract_strided_slice %765 {offsets = [0, 0], sizes = [2, 128], strides = [1, 1]} : vector<2x384xf32> to vector<2x128xf32>
    %769 = vector.extract_strided_slice %767 {offsets = [0, 0], sizes = [2, 128], strides = [1, 1]} : vector<2x384xf32> to vector<2x128xf32>
    %770 = arith.addf %768, %769 : vector<2x128xf32>
    %771 = arith.negf %770 : vector<2x128xf32>
    %772 = math.exp %771 : vector<2x128xf32>
    %cst_228 = arith.constant 1.000000e+00 : f32
    %773 = vector.broadcast %cst_228 : f32 to vector<2x128xf32>
    %774 = arith.addf %773, %772 : vector<2x128xf32>
    %775 = arith.divf %773, %774 : vector<2x128xf32>
    %776 = vector.extract_strided_slice %765 {offsets = [0, 128], sizes = [2, 128], strides = [1, 1]} : vector<2x384xf32> to vector<2x128xf32>
    %777 = vector.extract_strided_slice %767 {offsets = [0, 128], sizes = [2, 128], strides = [1, 1]} : vector<2x384xf32> to vector<2x128xf32>
    %778 = arith.addf %776, %777 : vector<2x128xf32>
    %779 = arith.negf %778 : vector<2x128xf32>
    %780 = math.exp %779 : vector<2x128xf32>
    %cst_229 = arith.constant 1.000000e+00 : f32
    %781 = vector.broadcast %cst_229 : f32 to vector<2x128xf32>
    %782 = arith.addf %781, %780 : vector<2x128xf32>
    %783 = arith.divf %781, %782 : vector<2x128xf32>
    %784 = vector.extract_strided_slice %765 {offsets = [0, 256], sizes = [2, 128], strides = [1, 1]} : vector<2x384xf32> to vector<2x128xf32>
    %785 = vector.extract_strided_slice %767 {offsets = [0, 256], sizes = [2, 128], strides = [1, 1]} : vector<2x384xf32> to vector<2x128xf32>
    %c0_230 = arith.constant 0 : index
    %c0_231 = arith.constant 0 : index
    %786 = vector.load %arg20[%c0_230, %c0_231] : memref<1x128xf32, #tpu.memory_space<vmem>>, vector<1x128xf32>
    %787 = vector.broadcast %786 : vector<1x128xf32> to vector<2x128xf32>
    %788 = arith.addf %785, %787 : vector<2x128xf32>
    %789 = arith.mulf %775, %788 : vector<2x128xf32>
    %790 = arith.addf %784, %789 : vector<2x128xf32>
    %791 = math.tanh %790 : vector<2x128xf32>
    %cst_232 = arith.constant 1.000000e+00 : f32
    %792 = vector.broadcast %cst_232 : f32 to vector<2x128xf32>
    %793 = arith.subf %792, %783 : vector<2x128xf32>
    %794 = arith.mulf %793, %791 : vector<2x128xf32>
    %795 = arith.mulf %783, %763 : vector<2x128xf32>
    %796 = arith.addf %794, %795 : vector<2x128xf32>
    %c4_233 = arith.constant 4 : index
    %c0_234 = arith.constant 0 : index
    %797 = vector.load %arg30[%c4_233, %c0_234] : memref<14x128xf32, #tpu.memory_space<vmem>>, vector<2x128xf32>
    tpu.vector_store %arg30[%c4_233, %c0_234], %796 {strides = array<i32>} : memref<14x128xf32, #tpu.memory_space<vmem>>, vector<2x128xf32>,
    %798 = vector.extract_strided_slice %698 {offsets = [6, 0], sizes = [2, 384], strides = [1, 1]} : vector<14x384xf32> to vector<2x384xf32>
    %c0_235 = arith.constant 0 : index
    %c0_236 = arith.constant 0 : index
    %799 = vector.load %arg18[%c0_235, %c0_236] : memref<128x384xf32, #tpu.memory_space<vmem>>, vector<128x384xf32>
    %cst_237 = arith.constant dense<0.000000e+00> : vector<2x384xf32>
    %800 = tpu.matmul %796, %799, %cst_237 {dimension_numbers = #tpu.dot_dimension_numbers<[1], [0], [0], [1], [0, 0, 1, 1], [], []>} : vector<2x128xf32>, vector<128x384xf32>, vector<2x384xf32> -> vector<2x384xf32>
    %801 = vector.extract_strided_slice %798 {offsets = [0, 0], sizes = [2, 128], strides = [1, 1]} : vector<2x384xf32> to vector<2x128xf32>
    %802 = vector.extract_strided_slice %800 {offsets = [0, 0], sizes = [2, 128], strides = [1, 1]} : vector<2x384xf32> to vector<2x128xf32>
    %803 = arith.addf %801, %802 : vector<2x128xf32>
    %804 = arith.negf %803 : vector<2x128xf32>
    %805 = math.exp %804 : vector<2x128xf32>
    %cst_238 = arith.constant 1.000000e+00 : f32
    %806 = vector.broadcast %cst_238 : f32 to vector<2x128xf32>
    %807 = arith.addf %806, %805 : vector<2x128xf32>
    %808 = arith.divf %806, %807 : vector<2x128xf32>
    %809 = vector.extract_strided_slice %798 {offsets = [0, 128], sizes = [2, 128], strides = [1, 1]} : vector<2x384xf32> to vector<2x128xf32>
    %810 = vector.extract_strided_slice %800 {offsets = [0, 128], sizes = [2, 128], strides = [1, 1]} : vector<2x384xf32> to vector<2x128xf32>
    %811 = arith.addf %809, %810 : vector<2x128xf32>
    %812 = arith.negf %811 : vector<2x128xf32>
    %813 = math.exp %812 : vector<2x128xf32>
    %cst_239 = arith.constant 1.000000e+00 : f32
    %814 = vector.broadcast %cst_239 : f32 to vector<2x128xf32>
    %815 = arith.addf %814, %813 : vector<2x128xf32>
    %816 = arith.divf %814, %815 : vector<2x128xf32>
    %817 = vector.extract_strided_slice %798 {offsets = [0, 256], sizes = [2, 128], strides = [1, 1]} : vector<2x384xf32> to vector<2x128xf32>
    %818 = vector.extract_strided_slice %800 {offsets = [0, 256], sizes = [2, 128], strides = [1, 1]} : vector<2x384xf32> to vector<2x128xf32>
    %c0_240 = arith.constant 0 : index
    %c0_241 = arith.constant 0 : index
    %819 = vector.load %arg20[%c0_240, %c0_241] : memref<1x128xf32, #tpu.memory_space<vmem>>, vector<1x128xf32>
    %820 = vector.broadcast %819 : vector<1x128xf32> to vector<2x128xf32>
    %821 = arith.addf %818, %820 : vector<2x128xf32>
    %822 = arith.mulf %808, %821 : vector<2x128xf32>
    %823 = arith.addf %817, %822 : vector<2x128xf32>
    %824 = math.tanh %823 : vector<2x128xf32>
    %cst_242 = arith.constant 1.000000e+00 : f32
    %825 = vector.broadcast %cst_242 : f32 to vector<2x128xf32>
    %826 = arith.subf %825, %816 : vector<2x128xf32>
    %827 = arith.mulf %826, %824 : vector<2x128xf32>
    %828 = arith.mulf %816, %796 : vector<2x128xf32>
    %829 = arith.addf %827, %828 : vector<2x128xf32>
    %c6_243 = arith.constant 6 : index
    %c0_244 = arith.constant 0 : index
    %830 = vector.load %arg30[%c6_243, %c0_244] : memref<14x128xf32, #tpu.memory_space<vmem>>, vector<2x128xf32>
    tpu.vector_store %arg30[%c6_243, %c0_244], %829 {strides = array<i32>} : memref<14x128xf32, #tpu.memory_space<vmem>>, vector<2x128xf32>,
    %831 = vector.extract_strided_slice %698 {offsets = [8, 0], sizes = [2, 384], strides = [1, 1]} : vector<14x384xf32> to vector<2x384xf32>
    %c0_245 = arith.constant 0 : index
    %c0_246 = arith.constant 0 : index
    %832 = vector.load %arg18[%c0_245, %c0_246] : memref<128x384xf32, #tpu.memory_space<vmem>>, vector<128x384xf32>
    %cst_247 = arith.constant dense<0.000000e+00> : vector<2x384xf32>
    %833 = tpu.matmul %829, %832, %cst_247 {dimension_numbers = #tpu.dot_dimension_numbers<[1], [0], [0], [1], [0, 0, 1, 1], [], []>} : vector<2x128xf32>, vector<128x384xf32>, vector<2x384xf32> -> vector<2x384xf32>
    %834 = vector.extract_strided_slice %831 {offsets = [0, 0], sizes = [2, 128], strides = [1, 1]} : vector<2x384xf32> to vector<2x128xf32>
    %835 = vector.extract_strided_slice %833 {offsets = [0, 0], sizes = [2, 128], strides = [1, 1]} : vector<2x384xf32> to vector<2x128xf32>
    %836 = arith.addf %834, %835 : vector<2x128xf32>
    %837 = arith.negf %836 : vector<2x128xf32>
    %838 = math.exp %837 : vector<2x128xf32>
    %cst_248 = arith.constant 1.000000e+00 : f32
    %839 = vector.broadcast %cst_248 : f32 to vector<2x128xf32>
    %840 = arith.addf %839, %838 : vector<2x128xf32>
    %841 = arith.divf %839, %840 : vector<2x128xf32>
    %842 = vector.extract_strided_slice %831 {offsets = [0, 128], sizes = [2, 128], strides = [1, 1]} : vector<2x384xf32> to vector<2x128xf32>
    %843 = vector.extract_strided_slice %833 {offsets = [0, 128], sizes = [2, 128], strides = [1, 1]} : vector<2x384xf32> to vector<2x128xf32>
    %844 = arith.addf %842, %843 : vector<2x128xf32>
    %845 = arith.negf %844 : vector<2x128xf32>
    %846 = math.exp %845 : vector<2x128xf32>
    %cst_249 = arith.constant 1.000000e+00 : f32
    %847 = vector.broadcast %cst_249 : f32 to vector<2x128xf32>
    %848 = arith.addf %847, %846 : vector<2x128xf32>
    %849 = arith.divf %847, %848 : vector<2x128xf32>
    %850 = vector.extract_strided_slice %831 {offsets = [0, 256], sizes = [2, 128], strides = [1, 1]} : vector<2x384xf32> to vector<2x128xf32>
    %851 = vector.extract_strided_slice %833 {offsets = [0, 256], sizes = [2, 128], strides = [1, 1]} : vector<2x384xf32> to vector<2x128xf32>
    %c0_250 = arith.constant 0 : index
    %c0_251 = arith.constant 0 : index
    %852 = vector.load %arg20[%c0_250, %c0_251] : memref<1x128xf32, #tpu.memory_space<vmem>>, vector<1x128xf32>
    %853 = vector.broadcast %852 : vector<1x128xf32> to vector<2x128xf32>
    %854 = arith.addf %851, %853 : vector<2x128xf32>
    %855 = arith.mulf %841, %854 : vector<2x128xf32>
    %856 = arith.addf %850, %855 : vector<2x128xf32>
    %857 = math.tanh %856 : vector<2x128xf32>
    %cst_252 = arith.constant 1.000000e+00 : f32
    %858 = vector.broadcast %cst_252 : f32 to vector<2x128xf32>
    %859 = arith.subf %858, %849 : vector<2x128xf32>
    %860 = arith.mulf %859, %857 : vector<2x128xf32>
    %861 = arith.mulf %849, %829 : vector<2x128xf32>
    %862 = arith.addf %860, %861 : vector<2x128xf32>
    %c8_253 = arith.constant 8 : index
    %c0_254 = arith.constant 0 : index
    %863 = vector.load %arg30[%c8_253, %c0_254] : memref<14x128xf32, #tpu.memory_space<vmem>>, vector<2x128xf32>
    tpu.vector_store %arg30[%c8_253, %c0_254], %862 {strides = array<i32>} : memref<14x128xf32, #tpu.memory_space<vmem>>, vector<2x128xf32>,
    %864 = vector.extract_strided_slice %698 {offsets = [10, 0], sizes = [2, 384], strides = [1, 1]} : vector<14x384xf32> to vector<2x384xf32>
    %c0_255 = arith.constant 0 : index
    %c0_256 = arith.constant 0 : index
    %865 = vector.load %arg18[%c0_255, %c0_256] : memref<128x384xf32, #tpu.memory_space<vmem>>, vector<128x384xf32>
    %cst_257 = arith.constant dense<0.000000e+00> : vector<2x384xf32>
    %866 = tpu.matmul %862, %865, %cst_257 {dimension_numbers = #tpu.dot_dimension_numbers<[1], [0], [0], [1], [0, 0, 1, 1], [], []>} : vector<2x128xf32>, vector<128x384xf32>, vector<2x384xf32> -> vector<2x384xf32>
    %867 = vector.extract_strided_slice %864 {offsets = [0, 0], sizes = [2, 128], strides = [1, 1]} : vector<2x384xf32> to vector<2x128xf32>
    %868 = vector.extract_strided_slice %866 {offsets = [0, 0], sizes = [2, 128], strides = [1, 1]} : vector<2x384xf32> to vector<2x128xf32>
    %869 = arith.addf %867, %868 : vector<2x128xf32>
    %870 = arith.negf %869 : vector<2x128xf32>
    %871 = math.exp %870 : vector<2x128xf32>
    %cst_258 = arith.constant 1.000000e+00 : f32
    %872 = vector.broadcast %cst_258 : f32 to vector<2x128xf32>
    %873 = arith.addf %872, %871 : vector<2x128xf32>
    %874 = arith.divf %872, %873 : vector<2x128xf32>
    %875 = vector.extract_strided_slice %864 {offsets = [0, 128], sizes = [2, 128], strides = [1, 1]} : vector<2x384xf32> to vector<2x128xf32>
    %876 = vector.extract_strided_slice %866 {offsets = [0, 128], sizes = [2, 128], strides = [1, 1]} : vector<2x384xf32> to vector<2x128xf32>
    %877 = arith.addf %875, %876 : vector<2x128xf32>
    %878 = arith.negf %877 : vector<2x128xf32>
    %879 = math.exp %878 : vector<2x128xf32>
    %cst_259 = arith.constant 1.000000e+00 : f32
    %880 = vector.broadcast %cst_259 : f32 to vector<2x128xf32>
    %881 = arith.addf %880, %879 : vector<2x128xf32>
    %882 = arith.divf %880, %881 : vector<2x128xf32>
    %883 = vector.extract_strided_slice %864 {offsets = [0, 256], sizes = [2, 128], strides = [1, 1]} : vector<2x384xf32> to vector<2x128xf32>
    %884 = vector.extract_strided_slice %866 {offsets = [0, 256], sizes = [2, 128], strides = [1, 1]} : vector<2x384xf32> to vector<2x128xf32>
    %c0_260 = arith.constant 0 : index
    %c0_261 = arith.constant 0 : index
    %885 = vector.load %arg20[%c0_260, %c0_261] : memref<1x128xf32, #tpu.memory_space<vmem>>, vector<1x128xf32>
    %886 = vector.broadcast %885 : vector<1x128xf32> to vector<2x128xf32>
    %887 = arith.addf %884, %886 : vector<2x128xf32>
    %888 = arith.mulf %874, %887 : vector<2x128xf32>
    %889 = arith.addf %883, %888 : vector<2x128xf32>
    %890 = math.tanh %889 : vector<2x128xf32>
    %cst_262 = arith.constant 1.000000e+00 : f32
    %891 = vector.broadcast %cst_262 : f32 to vector<2x128xf32>
    %892 = arith.subf %891, %882 : vector<2x128xf32>
    %893 = arith.mulf %892, %890 : vector<2x128xf32>
    %894 = arith.mulf %882, %862 : vector<2x128xf32>
    %895 = arith.addf %893, %894 : vector<2x128xf32>
    %c10_263 = arith.constant 10 : index
    %c0_264 = arith.constant 0 : index
    %896 = vector.load %arg30[%c10_263, %c0_264] : memref<14x128xf32, #tpu.memory_space<vmem>>, vector<2x128xf32>
    tpu.vector_store %arg30[%c10_263, %c0_264], %895 {strides = array<i32>} : memref<14x128xf32, #tpu.memory_space<vmem>>, vector<2x128xf32>,
    %897 = vector.extract_strided_slice %698 {offsets = [12, 0], sizes = [2, 384], strides = [1, 1]} : vector<14x384xf32> to vector<2x384xf32>
    %c0_265 = arith.constant 0 : index
    %c0_266 = arith.constant 0 : index
    %898 = vector.load %arg18[%c0_265, %c0_266] : memref<128x384xf32, #tpu.memory_space<vmem>>, vector<128x384xf32>
    %cst_267 = arith.constant dense<0.000000e+00> : vector<2x384xf32>
    %899 = tpu.matmul %895, %898, %cst_267 {dimension_numbers = #tpu.dot_dimension_numbers<[1], [0], [0], [1], [0, 0, 1, 1], [], []>} : vector<2x128xf32>, vector<128x384xf32>, vector<2x384xf32> -> vector<2x384xf32>
    %900 = vector.extract_strided_slice %897 {offsets = [0, 0], sizes = [2, 128], strides = [1, 1]} : vector<2x384xf32> to vector<2x128xf32>
    %901 = vector.extract_strided_slice %899 {offsets = [0, 0], sizes = [2, 128], strides = [1, 1]} : vector<2x384xf32> to vector<2x128xf32>
    %902 = arith.addf %900, %901 : vector<2x128xf32>
    %903 = arith.negf %902 : vector<2x128xf32>
    %904 = math.exp %903 : vector<2x128xf32>
    %cst_268 = arith.constant 1.000000e+00 : f32
    %905 = vector.broadcast %cst_268 : f32 to vector<2x128xf32>
    %906 = arith.addf %905, %904 : vector<2x128xf32>
    %907 = arith.divf %905, %906 : vector<2x128xf32>
    %908 = vector.extract_strided_slice %897 {offsets = [0, 128], sizes = [2, 128], strides = [1, 1]} : vector<2x384xf32> to vector<2x128xf32>
    %909 = vector.extract_strided_slice %899 {offsets = [0, 128], sizes = [2, 128], strides = [1, 1]} : vector<2x384xf32> to vector<2x128xf32>
    %910 = arith.addf %908, %909 : vector<2x128xf32>
    %911 = arith.negf %910 : vector<2x128xf32>
    %912 = math.exp %911 : vector<2x128xf32>
    %cst_269 = arith.constant 1.000000e+00 : f32
    %913 = vector.broadcast %cst_269 : f32 to vector<2x128xf32>
    %914 = arith.addf %913, %912 : vector<2x128xf32>
    %915 = arith.divf %913, %914 : vector<2x128xf32>
    %916 = vector.extract_strided_slice %897 {offsets = [0, 256], sizes = [2, 128], strides = [1, 1]} : vector<2x384xf32> to vector<2x128xf32>
    %917 = vector.extract_strided_slice %899 {offsets = [0, 256], sizes = [2, 128], strides = [1, 1]} : vector<2x384xf32> to vector<2x128xf32>
    %c0_270 = arith.constant 0 : index
    %c0_271 = arith.constant 0 : index
    %918 = vector.load %arg20[%c0_270, %c0_271] : memref<1x128xf32, #tpu.memory_space<vmem>>, vector<1x128xf32>
    %919 = vector.broadcast %918 : vector<1x128xf32> to vector<2x128xf32>
    %920 = arith.addf %917, %919 : vector<2x128xf32>
    %921 = arith.mulf %907, %920 : vector<2x128xf32>
    %922 = arith.addf %916, %921 : vector<2x128xf32>
    %923 = math.tanh %922 : vector<2x128xf32>
    %cst_272 = arith.constant 1.000000e+00 : f32
    %924 = vector.broadcast %cst_272 : f32 to vector<2x128xf32>
    %925 = arith.subf %924, %915 : vector<2x128xf32>
    %926 = arith.mulf %925, %923 : vector<2x128xf32>
    %927 = arith.mulf %915, %895 : vector<2x128xf32>
    %928 = arith.addf %926, %927 : vector<2x128xf32>
    %c12_273 = arith.constant 12 : index
    %c0_274 = arith.constant 0 : index
    %929 = vector.load %arg30[%c12_273, %c0_274] : memref<14x128xf32, #tpu.memory_space<vmem>>, vector<2x128xf32>
    tpu.vector_store %arg30[%c12_273, %c0_274], %928 {strides = array<i32>} : memref<14x128xf32, #tpu.memory_space<vmem>>, vector<2x128xf32>,
    %c0_275 = arith.constant 0 : index
    %c0_276 = arith.constant 0 : index
    %930 = vector.load %arg30[%c0_275, %c0_276] : memref<14x128xf32, #tpu.memory_space<vmem>>, vector<14x128xf32>
    %c0_277 = arith.constant 0 : index
    %c0_278 = arith.constant 0 : index
    %931 = vector.load %arg26[%c0_277, %c0_278] : memref<128x128xf32, #tpu.memory_space<vmem>>, vector<128x128xf32>
    %cst_279 = arith.constant dense<0.000000e+00> : vector<14x128xf32>
    %932 = tpu.matmul %930, %931, %cst_279 {dimension_numbers = #tpu.dot_dimension_numbers<[1], [0], [0], [1], [0, 0, 1, 1], [], []>} : vector<14x128xf32>, vector<128x128xf32>, vector<14x128xf32> -> vector<14x128xf32>
    %c0_280 = arith.constant 0 : index
    %c0_281 = arith.constant 0 : index
    %933 = vector.load %arg27[%c0_280, %c0_281] : memref<1x128xf32, #tpu.memory_space<vmem>>, vector<1x128xf32>
    %934 = vector.broadcast %933 : vector<1x128xf32> to vector<14x128xf32>
    %935 = arith.addf %932, %934 : vector<14x128xf32>
    %936 = tpu.iota {dimensions = array<i32: 1>} : vector<14x128xi32>
    %c64_i32 = arith.constant 64 : i32
    %937 = vector.broadcast %c64_i32 : i32 to vector<14x128xi32>
    %938 = arith.cmpi slt, %936, %937 : vector<14x128xi32>
    %cst_282 = arith.constant -1.000000e+30 : f32
    %939 = vector.broadcast %cst_282 : f32 to vector<14x128xf32>
    %940 = arith.select %938, %935, %939 : vector<14x128xi1>, vector<14x128xf32>
    %cst_283 = arith.constant dense<0xFF800000> : vector<14xf32>
    %941 = vector.multi_reduction <maximumf>, %940, %cst_283 [1] : vector<14x128xf32> to vector<14xf32>
    %942 = vector.shape_cast %941 : vector<14xf32> to vector<14x1xf32>
    %943 = vector.broadcast %942 : vector<14x1xf32> to vector<14x128xf32>
    %944 = arith.subf %940, %943 : vector<14x128xf32>
    %945 = math.exp %944 : vector<14x128xf32>
    %cst_284 = arith.constant dense<0.000000e+00> : vector<14xf32>
    %946 = vector.multi_reduction <add>, %945, %cst_284 [1] : vector<14x128xf32> to vector<14xf32>
    %947 = vector.shape_cast %946 : vector<14xf32> to vector<14x1xf32>
    %948 = math.log %947 : vector<14x1xf32>
    %949 = arith.addf %942, %948 : vector<14x1xf32>
    %c0_285 = arith.constant 0 : index
    %c0_286 = arith.constant 0 : index
    %950 = vector.load %arg3[%c0_285, %c0_286] : memref<14x1xi32, #tpu.memory_space<vmem>>, vector<14x1xi32>
    %951 = vector.broadcast %950 : vector<14x1xi32> to vector<14x128xi32>
    %952 = arith.cmpi eq, %936, %951 : vector<14x128xi32>
    %cst_287 = arith.constant 0.000000e+00 : f32
    %953 = vector.broadcast %cst_287 : f32 to vector<14x128xf32>
    %954 = arith.select %952, %940, %953 : vector<14x128xi1>, vector<14x128xf32>
    %cst_288 = arith.constant dense<0.000000e+00> : vector<14xf32>
    %955 = vector.multi_reduction <add>, %954, %cst_288 [1] : vector<14x128xf32> to vector<14xf32>
    %956 = vector.shape_cast %955 : vector<14xf32> to vector<14x1xf32>
    %c0_i32_289 = arith.constant 0 : i32
    %957 = vector.broadcast %c0_i32_289 : i32 to vector<14x1xi32>
    %958 = arith.cmpi ne, %950, %957 : vector<14x1xi32>
    %959 = arith.extui %958 : vector<14x1xi1> to vector<14x1xi32>
    %960 = arith.sitofp %959 : vector<14x1xi32> to vector<14x1xf32>
    %961 = vector.shape_cast %960 : vector<14x1xf32> to vector<1x14x1xf32>
    %cst_290 = arith.constant dense<0.000000e+00> : vector<1xf32>
    %962 = vector.multi_reduction <add>, %961, %cst_290 [1, 2] : vector<1x14x1xf32> to vector<1xf32>
    %963 = vector.shape_cast %962 : vector<1xf32> to vector<1x1x1xf32>
    %964 = vector.extract %963[0, 0, 0] : f32 from vector<1x1x1xf32>
    %cst_291 = arith.constant 1.000000e+00 : f32
    %965 = arith.maximumf %964, %cst_291 : f32
    %966 = arith.subf %949, %956 : vector<14x1xf32>
    %967 = arith.mulf %966, %960 : vector<14x1xf32>
    %968 = vector.shape_cast %967 : vector<14x1xf32> to vector<1x14x1xf32>
    %cst_292 = arith.constant dense<0.000000e+00> : vector<1xf32>
    %969 = vector.multi_reduction <add>, %968, %cst_292 [1, 2] : vector<1x14x1xf32> to vector<1xf32>
    %970 = vector.shape_cast %969 : vector<1xf32> to vector<1x1x1xf32>
    %971 = vector.extract %970[0, 0, 0] : f32 from vector<1x1x1xf32>
    %972 = arith.divf %971, %965 : f32
    %973 = vector.broadcast %972 : f32 to vector<1x1xf32>
    %c0_293 = arith.constant 0 : index
    %c0_294 = arith.constant 0 : index
    %974 = vector.load %arg28[%c0_293, %c0_294] : memref<1x1xf32, #tpu.memory_space<vmem>>, vector<1x1xf32>
    tpu.vector_store %arg28[%c0_293, %c0_294], %973 {strides = array<i32>} : memref<1x1xf32, #tpu.memory_space<vmem>>, vector<1x1xf32>,
    return
  }
}

</mosaic_0001>

<bundles_post_ra>
// kernel: qgen_forward.1
= control target key start
LH: loop header
LB: loop body
LE: loop exit
PB: predicated region body
PF: predicated region fallthrough
CT: control target
= control target key end

     0   :  { %s8321_s0 = inlined_call_operand.vmem [shape: s32[2,1], index: 0, kind: input, shape index: {}]   ;;  %s8322_s1 = inlined_call_operand.vmem [shape: s32[2,1], index: 1, kind: input, shape index: {}]   ;;  %s8323_s2 = inlined_call_operand.vmem [shape: s32[8,1], index: 2, kind: input, shape index: {}]   ;;  %s8324_s3 = inlined_call_operand.vmem [shape: s32[14,1], index: 3, kind: input, shape index: {}]   ;;  %s8325_s4 = inlined_call_operand.vmem [shape: f32[24,16], index: 4, kind: input, shape index: {}]   ;;  %s8326_s5 = inlined_call_operand.vmem [shape: f32[8,8], index: 5, kind: input, shape index: {}]   ;;  %s8327_s6 = inlined_call_operand.vmem [shape: f32[2,24], index: 6, kind: input, shape index: {}]   ;;  %s8328_s7 = inlined_call_operand.vmem [shape: f32[14,16], index: 7, kind: input, shape index: {}]   ;;  %s8329_s8 = inlined_call_operand.vmem [shape: f32[16,384], index: 8, kind: input, shape index: {}]   ;;  %s8330_s9 = inlined_call_operand.vmem [shape: f32[128,384], index: 9, kind: input, shape index: {}]   ;;  %s8331_s10 = inlined_call_operand.vmem [shape: f32[1,384], index: 10, kind: input, shape index: {}]   ;;  %s8332_s11 = inlined_call_operand.vmem [shape: f32[1,128], index: 11, kind: input, shape index: {}]   ;;  %s8333_s12 = inlined_call_operand.hbm [shape: f32[128,384], index: 12, kind: input, shape index: {}]   ;;  %s8334_s13 = inlined_call_operand.vmem [shape: f32[8,384], index: 13, kind: input, shape index: {}]   ;;  %s8335_s14 = inlined_call_operand.hbm [shape: f32[128,384], index: 14, kind: input, shape index: {}]   ;;  %s8336_s15 = inlined_call_operand.vmem [shape: f32[1,384], index: 15, kind: input, shape index: {}]   ;;  %s8337_s16 = inlined_call_operand.vmem [shape: f32[1,128], index: 16, kind: input, shape index: {}]   ;;  %s8338_s17 = inlined_call_operand.vmem [shape: f32[16,384], index: 17, kind: input, shape index: {}]   ;;  %s8339_s18 = inlined_call_operand.hbm [shape: f32[128,384], index: 18, kind: input, shape index: {}]   ;;  %s8340_s19 = inlined_call_operand.vmem [shape: f32[1,384], index: 19, kind: input, shape index: {}]   ;;  %s8341_s20 = inlined_call_operand.vmem [shape: f32[1,128], index: 20, kind: input, shape index: {}]   ;;  %s8342_s21 = inlined_call_operand.vmem [shape: f32[24,128], index: 21, kind: input, shape index: {}]   ;;  %s8343_s22 = inlined_call_operand.vmem [shape: f32[1,128], index: 22, kind: input, shape index: {}]   ;;  %s8344_s23 = inlined_call_operand.vmem [shape: f32[128,128], index: 23, kind: input, shape index: {}]   ;;  %s8345_s24 = inlined_call_operand.vmem [shape: f32[128,128], index: 24, kind: input, shape index: {}]   ;;  %s8346_s25 = inlined_call_operand.vmem [shape: f32[1,128], index: 25, kind: input, shape index: {}]   ;;  %s8347_s26 = inlined_call_operand.vmem [shape: f32[128,128], index: 26, kind: input, shape index: {}]   ;;  %s8348_s27 = inlined_call_operand.vmem [shape: f32[1,128], index: 27, kind: input, shape index: {}]   ;;  %s8349_s28 = inlined_call_operand.hbm [shape: f32[1,1], index: 28, kind: output, shape index: {}]  }
   0x1   :  { %8371 = sst [smem:[#allocation20_spill]] %s8321_s0 }
   0x2   :  { %8372 = sst [smem:[#allocation21_spill]] %s8322_s1 }
   0x3   :  { %8373 = sst [smem:[#allocation22_spill]] %s8323_s2 }
   0x4   :  { %8374 = sst [smem:[#allocation23_spill]] %s8324_s3 }
   0x5   :  { %8375 = sst [smem:[#allocation24_spill]] %s8325_s4 }
   0x6   :  { %8376 = sst [smem:[#allocation25_spill]] %s8326_s5 }
   0x7   :  { %8377 = sst [smem:[#allocation26_spill]] %s8327_s6 }
   0x8   :  { %8378 = sst [smem:[#allocation27_spill]] %s8328_s7 }
   0x9   :  { %8379 = sst [smem:[#allocation28_spill]] %s8329_s8 }
   0xa   :  { %8380 = sst [smem:[#allocation29_spill]] %s8330_s9 }
   0xb   :  { %8381 = sst [smem:[#allocation30_spill]] %s8331_s10 }
   0xc   :  { %8382 = sst [smem:[#allocation31_spill]] %s8332_s11 }
   0xd   :  { %8383 = sst [smem:[#allocation32_spill]] %s8333_s12 }
   0xe   :  { %8384 = sst [smem:[#allocation33_spill]] %s8349_s28 }
   0xf   :  { %33 = vsyncpa [#allocation5], 0 }
  0x10   :  { %34 = vsyncpa [#allocation8], 0 }
  0x11   :  { %35 = vsyncpa [#allocation6], 0  ;;  %s79_s9 = sshll.u32 %s8335_s14, 4  ;;  %s5205_s30 = smov [#allocation7]   ;;  %s80_s9 = int_to_ptr.hbm [resolvable:$true] %s79_s9 }
  0x12   :  { %s81_s3 = sshll.u32 %s5205_s30, 4  ;;  %s8385_s0 = sld [smem:[#allocation32_spill]]  ;;  %s82_s3 = int_to_ptr.vmem [resolvable:$true] %s81_s3 }
  0x13   :  { %s5206_s29 = smov 384   ;;  %s5207_s2 = smov 24  }
  0x14   :  { %87 = dma.hbm_to_vmem [thread:$0]  %s80_s9, 6144, %s82_s3, [#allocation8], %s5206_s29, %s5206_s29, %s5207_s2  }
  0x15   :  { %s5208_s7 = smov [#allocation4]   ;;  %s98_s28 = sshll.u32 %s8339_s18, 4  ;;  %s99_s28 = int_to_ptr.hbm [resolvable:$true] %s98_s28 }
  0x16   :  { %s66_s12 = sshll.u32 %s5208_s7, 4  ;;  %s5209_s14 = smov [#allocation9]   ;;  %s67_s12 = int_to_ptr.vmem [resolvable:$true] %s66_s12 }
  0x17   :  { %s100_s8 = sshll.u32 %s5209_s14, 4  ;;  %s101_s8 = int_to_ptr.vmem [resolvable:$true] %s100_s8 }
  0x18   :  { %s64_s11 = sshll.u32 %s8385_s0, 4  ;;  %s65_s11 = int_to_ptr.hbm [resolvable:$true] %s64_s11 }
  0x19   :  { %72 = dma.hbm_to_vmem [thread:$0]  %s65_s11, 6144, %s67_s12, [#allocation5], %s5206_s29, %s5206_s29, %s5207_s2  }
  0x1a   :  { %106 = dma.hbm_to_vmem [thread:$0]  %s99_s28, 6144, %s101_s8, [#allocation8], %s5206_s29, %s5206_s29, %s5207_s2  }
  0x1b   :  { %5199 = dma.done.wait [#allocation5], 6144  }
  0x1c   :  { %5200 = vsyncadd [#allocation5], 4294961152 }
  0x1d   :  { %5201 = dma.done.wait [#allocation8], 12288  }
  0x1e   :  { %5202 = vsyncadd [#allocation8], 4294955008  ;;  %s8386_s30 = sld [smem:[#allocation28_spill]]  ;;  %vm154_vm0 = vcmask 130048   ;;  %v8360_v13 = vmov 0   ;;  %v8358_v56 = vmov 0.0  }
  0x1f   :  { %s8387_s2 = sld [smem:[#allocation29_spill]]  ;;  %4833 = vset.pattern.permute.xlu0 %v8360_v13  ;;  %4834 = vset.pattern.permute.xlu1 %v8360_v13  ;;  %s5212_s12 = smov 1.0  }
  0x20   :  { %s8388_s3 = sld [smem:[#allocation24_spill]]  ;;  %4835 = vset.pattern.permute.xlu2 %v8360_v13 }
  0x21   :  { %s8389_s28 = sld [smem:[#allocation20_spill]] }
  0x22   :  { %s8391_s14 = sld [smem:[#allocation21_spill]] }
  0x23   :  { %s8392_s9 = sld [smem:[#allocation30_spill]] }
  0x24   :  { %v143_v0 = vld [vmem:[%s8386_s30 + $0x18] sm:$0xff]  ;;  %v144_v1 = vld [vmem:[%s8386_s30 + $0x20] sm:$0xff]  ;;  %v141_v3 = vld [vmem:[%s8386_s30 + $0x8] sm:$0xff]  ;;  %s8396_s10 = sld [smem:[#allocation31_spill]] }
  0x25   :  { %v140_v2 = vld [vmem:[%s8386_s30] sm:$0xff]  ;;  %178 = vmatpush.msra.mxu0 %v143_v0  ;;  %204 = vmatpush.msra.mxu3 %v144_v1  ;;  %v5383_v4 = vld [vmem:[%s8387_s2 + $0x168] sm:$0xff]  ;;  %v5388_v5 = vld [vmem:[%s8387_s2 + $0x170] sm:$0xff]  ;;  %s8400_s7 = sld [smem:[#allocation23_spill]] }
  0x26   :  { %v5393_v6 = vld [vmem:[%s8387_s2 + $0x150] sm:$0xff]  ;;  %v5398_v7 = vld [vmem:[%s8387_s2 + $0x158] sm:$0xff]  ;;  %v5405_v8 = vld [vmem:[%s8388_s3] sm:$0xff]  ;;  %s8408_s5 = sld [smem:[#allocation25_spill]] }
  0x27   :  { %179 = vmatpush.msra.mxu0 %v140_v2  ;;  %205 = vmatpush.msra.mxu3 %v141_v3  ;;  %v5410_v9 = vld [vmem:[%s8387_s2 + $0x138] sm:$0xff]  ;;  %v5415_v10 = vld [vmem:[%s8387_s2 + $0x140] sm:$0xff]  ;;  %v5431_v12 = vld [vmem:[%s8387_s2 + $0x128] sm:$0xff]  ;;  %s8410_s1 = sld [smem:[#allocation26_spill]] }
  0x28   :  { %4743 = vmatmul.msk.f32.vlgmr.msra.gmra.mxu0 %vm154_vm0, %v5405_v8  ;;  %4746 = vmatmul.msk.f32.vlgmr.msra.gmra.mxu3 %vm154_vm0, %v5405_v8  ;;  %v5426_v11 = vld [vmem:[%s8387_s2 + $0x120] sm:$0xff]  ;;  %v5440_v14 = vld [vmem:[%s8387_s2 + $0x108] sm:$0xff]  ;;  %v5445_v15 = vld [vmem:[%s8387_s2 + $0x110] sm:$0xff]  ;;  %s8411_s29 = sld [smem:[#allocation27_spill]] }
  0x29   :  { %291 = vmatpush.msrb.mxu3 %v5383_v4  ;;  %311 = vmatpush.msrb.mxu0 %v5388_v5  ;;  %v5453_v16 = vld [vmem:[%s8388_s3 + $0x8] sm:$0xff]  ;;  %v5458_v17 = vld [vmem:[%s8387_s2 + $0xf0] sm:$0xff]  ;;  %v5463_v18 = vld [vmem:[%s8387_s2 + $0xf8] sm:$0xff] }
  0x2a   :  { %v5470_v19 = vld [vmem:[%s8387_s2 + $0xd8] sm:$0xff]  ;;  %v5475_v20 = vld [vmem:[%s8387_s2 + $0xe0] sm:$0xff]  ;;  %v5501_v24 = vld [vmem:[%s8387_s2 + $0xc8] sm:$0xff] }
  0x2b   :  { %292 = vmatpush.msrb.mxu3 %v5393_v6  ;;  %312 = vmatpush.msrb.mxu0 %v5398_v7  ;;  %v5484_v21 = vld [vmem:[%s8387_s2 + $0x178] sm:$0xff]  ;;  %v5491_v22 = vld [vmem:[%s8387_s2 + $0x160] sm:$0xff]  ;;  %v5509_v25 = vld [vmem:[%s8387_s2 + $0x148] sm:$0xff] }
  0x2c   :  { %v5496_v23 = vld [vmem:[%s8387_s2 + $0xc0] sm:$0xff]  ;;  %331 = vmatpush.msra.mxu1 %v5484_v21  ;;  %v5519_v27 = vld [vmem:[%s8387_s2 + $0xa8] sm:$0xff]  ;;  %v5524_v28 = vld [vmem:[%s8387_s2 + $0xb0] sm:$0xff] }
  0x2d   :  { %293 = vmatpush.msrb.mxu3 %v5410_v9  ;;  %313 = vmatpush.msrb.mxu0 %v5415_v10  ;;  %v5514_v26 = vld [vmem:[%s8389_s28] sm:$0x3]  ;;  %v5533_v29 = vld [vmem:[%s8387_s2 + $0x90] sm:$0xff]  ;;  %v5538_v30 = vld [vmem:[%s8387_s2 + $0x98] sm:$0xff] }
  0x2e   :  { %332 = vmatpush.msra.mxu1 %v5491_v22  ;;  %vm403_vm1 = vcmp.gt.s32.totalorder %v5514_v26, 0  ;;  %v5543_v31 = vld [vmem:[%s8388_s3 + $0x10] sm:$0xff]  ;;  %v5549_v33 = vld [vmem:[%s8387_s2 + $0x78] sm:$0xff]  ;;  %v5554_v34 = vld [vmem:[%s8387_s2 + $0x80] sm:$0xff]  ;;  %vm583_vm2 = vcmp.gt.s32.totalorder %v5514_v26, 1  ;;  %vm1488_vm3 = vcmp.gt.s32.totalorder %v5514_v26, 6 }
  0x2f   :  { %294 = vmatpush.msrb.mxu3 %v5426_v11  ;;  %314 = vmatpush.msrb.mxu0 %v5431_v12  ;;  %v404_v32 = vsel %vm403_vm1, 1, %v8360_v13  ;;  %v5563_v35 = vld [vmem:[%s8387_s2 + $0x130] sm:$0xff]  ;;  %v145_v36 = vld [vmem:[%s8386_s30 + $0x28] sm:$0xff]  ;;  %v5571_v37 = vld [vmem:[%s8387_s2 + $0x60] sm:$0xff]  ;;  %v584_v41 = vsel %vm583_vm2, 1, %v8360_v13  ;;  %v1489_v55 = vsel %vm1488_vm3, 1, %v8360_v13 }
  0x30   :  { %4744 = vmatmul.msk.f32.gmra.mxu0 %vm154_vm0, %v5453_v16  ;;  %4747 = vmatmul.msk.f32.gmra.mxu3 %vm154_vm0, %v5453_v16  ;;  %v5576_v38 = vld [vmem:[%s8387_s2 + $0x68] sm:$0xff]  ;;  %v5585_v39 = vld [vmem:[%s8387_s2 + $0x118] sm:$0xff]  ;;  %v5592_v40 = vld [vmem:[%s8387_s2 + $0x100] sm:$0xff]  ;;  %vm2025_vm4 = vcmp.gt.s32.totalorder %v5514_v26, 9  ;;  %vm767_vm15 = vcmp.gt.s32.totalorder %v5514_v26, 2  ;;  %vm951_vm1 = vcmp.gt.s32.totalorder %v5514_v26, 3 }
  0x31   :  { %295 = vmatpush.msrb.mxu3 %v5440_v14  ;;  %315 = vmatpush.msrb.mxu0 %v5445_v15  ;;  %v142_v42 = vld [vmem:[%s8386_s30 + $0x10] sm:$0xff]  ;;  %v5601_v43 = vld [vmem:[%s8387_s2 + $0x48] sm:$0xff]  ;;  %v5624_v47 = vld [vmem:[%s8387_s2 + $0x38] sm:$0xff]  ;;  %v2026_v61 = vsel %vm2025_vm4, 1, %v8360_v13  ;;  %s8390_s30 = sld [smem:[#allocation22_spill]] }
  0x32   :  { %333 = vmatpush.msra.mxu1 %v5509_v25  ;;  %406 = vperm.xlu0 %4833, %v404_v32   ;;  %v5606_v44 = vld [vmem:[%s8387_s2 + $0x50] sm:$0xff]  ;;  %v5614_v45 = vld [vmem:[%s8387_s2 + $0xe8] sm:$0xff]  ;;  %v5640_v49 = vld [vmem:[%s8387_s2 + $0x18] sm:$0xff] }
  0x33   :  { %296 = vmatpush.msrb.mxu3 %v5458_v17  ;;  %316 = vmatpush.msrb.mxu0 %v5463_v18  ;;  %v5619_v46 = vld [vmem:[%s8387_s2 + $0x30] sm:$0xff]  ;;  %v5645_v50 = vld [vmem:[%s8387_s2 + $0x20] sm:$0xff]  ;;  %v5655_v51 = vld [vmem:[%s8387_s2 + $0xb8] sm:$0xff] }
  0x34   :  { %334 = vmatpush.msra.mxu1 %v5563_v35  ;;  %230 = vmatpush.msra.mxu2 %v145_v36  ;;  %v5635_v48 = vld [vmem:[%s8387_s2 + $0xd0] sm:$0xff]  ;;  %v5661_v52 = vld [vmem:[%s8387_s2] sm:$0xff]  ;;  %v5666_v53 = vld [vmem:[%s8387_s2 + $0x8] sm:$0xff] }
  0x35   :  { %297 = vmatpush.msrb.mxu3 %v5470_v19  ;;  %317 = vmatpush.msrb.mxu0 %v5475_v20  ;;  %v5676_v54 = vld [vmem:[%s8387_s2 + $0xa0] sm:$0xff]  ;;  %v5687_v57 = vld [vmem:[%s8387_s2 + $0x88] sm:$0xff]  ;;  %v5693_v58 = vld [vmem:[%s8387_s2 + $0x70] sm:$0xff] }
  0x36   :  { %335 = vmatpush.msra.mxu1 %v5585_v39  ;;  %231 = vmatpush.msra.mxu2 %v142_v42  ;;  %v5703_v59 = vld [vmem:[%s8387_s2 + $0x58] sm:$0xff]  ;;  %v5712_v60 = vld [vmem:[%s8387_s2 + $0x40] sm:$0xff]  ;;  %v5722_v62 = vld [vmem:[%s8387_s2 + $0x28] sm:$0xff] }
  0x37   :  { %298 = vmatpush.msrb.mxu3 %v5496_v23  ;;  %318 = vmatpush.msrb.mxu0 %v5501_v24  ;;  %v5730_v63 = vld [vmem:[%s8387_s2 + $0x10] sm:$0xff]  ;;  %v2409_v0 = vld [vmem:[%s8390_s30] sm:$0xff] }
  0x38   :  { %4745 = vmatmul.msk.f32.gmra.mxu0 %vm154_vm0, %v5543_v31  ;;  %4748 = vmatmul.msk.f32.gmra.mxu3 %vm154_vm0, %v5543_v31  ;;  %v5750_v1 = vld [vmem:[%s8391_s14] sm:$0x3] }
  0x39   :  { %299 = vmatpush.msrb.mxu3 %v5519_v27  ;;  %319 = vmatpush.msrb.mxu0 %v5524_v28  ;;  %vm3045_vm5 = vcmp.gt.s32.totalorder %v5750_v1, 2 }
  0x3a   :  { %336 = vmatpush.msra.mxu1 %v5592_v40  ;;  %586 = vperm.xlu0 %4833, %v584_v41   ;;  %v3046_v2 = vsel %vm3045_vm5, 1, %v8360_v13  ;;  %v4836_v41 = vld [vmem:[%s8396_s10] ss:$0 sm:$0xff] }
  0x3b   :  { %300 = vmatpush.msrb.mxu3 %v5533_v29  ;;  %320 = vmatpush.msrb.mxu0 %v5538_v30 }
  0x3c   :  { %337 = vmatpush.msra.mxu1 %v5614_v45  ;;  %4749 = vmatmul.msk.f32.vlgmr.msra.gmra.mxu2 %vm154_vm0, %v5405_v8 }
  0x3d   :  { %301 = vmatpush.msrb.mxu3 %v5549_v33  ;;  %321 = vmatpush.msrb.mxu0 %v5554_v34 }
  0x3e   :  { %338 = vmatpush.msra.mxu1 %v5635_v48  ;;  %459 = vmatpush.msrb.mxu2 %v5383_v4 }
  0x3f   :  { %302 = vmatpush.msrb.mxu3 %v5571_v37  ;;  %322 = vmatpush.msrb.mxu0 %v5576_v38 }
  0x40   :  { %339 = vmatpush.msra.mxu1 %v5655_v51  ;;  %460 = vmatpush.msrb.mxu2 %v5393_v6 }
  0x41   :  { %303 = vmatpush.msrb.mxu3 %v5601_v43  ;;  %323 = vmatpush.msrb.mxu0 %v5606_v44 }
  0x42   :  { %340 = vmatpush.msra.mxu1 %v5676_v54  ;;  %1491 = vperm.xlu0 %4833, %v1489_v55  }
  0x43   :  { %304 = vmatpush.msrb.mxu3 %v5619_v46  ;;  %324 = vmatpush.msrb.mxu0 %v5624_v47 }
  0x44   :  { %341 = vmatpush.msra.mxu1 %v5687_v57  ;;  %461 = vmatpush.msrb.mxu2 %v5410_v9 }
  0x45   :  { %305 = vmatpush.msrb.mxu3 %v5640_v49  ;;  %325 = vmatpush.msrb.mxu0 %v5645_v50 }
  0x46   :  { %342 = vmatpush.msra.mxu1 %v5693_v58  ;;  %462 = vmatpush.msrb.mxu2 %v5426_v11 }
  0x47   :  { %306 = vmatpush.msrb.mxu3 %v5661_v52  ;;  %326 = vmatpush.msrb.mxu0 %v5666_v53 }
  0x48   :  { %307 = vmatmul.f32.vlgmr.msrb.gmra.mxu3 %v8358_v56  ;;  %327 = vmatmul.f32.vlgmr.msrb.gmra.mxu0 %v8358_v56 }
  0x49   :  { %479 = vmatpush.msra.mxu3 %v5388_v5  ;;  %499 = vmatpush.msra.mxu0 %v5484_v21 }
  0x4a   :  { %343 = vmatpush.msra.mxu1 %v5703_v59  ;;  %463 = vmatpush.msrb.mxu2 %v5440_v14 }
  0x4b   :  { %480 = vmatpush.msra.mxu3 %v5398_v7  ;;  %500 = vmatpush.msra.mxu0 %v5491_v22 }
  0x4c   :  { %344 = vmatpush.msra.mxu1 %v5712_v60  ;;  %2028 = vperm.xlu0 %4833, %v2026_v61  }
  0x4d   :  { %481 = vmatpush.msra.mxu3 %v5415_v10  ;;  %501 = vmatpush.msra.mxu0 %v5509_v25 }
  0x4e   :  { %345 = vmatpush.msra.mxu1 %v5722_v62  ;;  %464 = vmatpush.msrb.mxu2 %v5458_v17 }
  0x4f   :  { %482 = vmatpush.msra.mxu3 %v5431_v12  ;;  %502 = vmatpush.msra.mxu0 %v5563_v35 }
  0x50   :  { %346 = vmatpush.msra.mxu1 %v5730_v63  ;;  %465 = vmatpush.msrb.mxu2 %v5470_v19 }
  0x51   :  { %483 = vmatpush.msra.mxu3 %v5445_v15  ;;  %503 = vmatpush.msra.mxu0 %v5585_v39 }
  0x52   :  { %347 = vmatmul.f32.vlgmr.msra.gmra.mxu1 %v8358_v56  ;;  %466 = vmatpush.msrb.mxu2 %v5496_v23 }
  0x53   :  { %484 = vmatpush.msra.mxu3 %v5463_v18  ;;  %504 = vmatpush.msra.mxu0 %v5592_v40 }
  0x54   :  { %4750 = vmatmul.msk.f32.gmra.mxu2 %vm154_vm0, %v5453_v16  ;;  %2411 = vperm.xlu0 %4833, %v2409_v0  }
  0x55   :  { %485 = vmatpush.msra.mxu3 %v5475_v20  ;;  %505 = vmatpush.msra.mxu0 %v5614_v45 }
  0x56   :  { %467 = vmatpush.msrb.mxu2 %v5519_v27  ;;  %643 = vmatpush.msrb.mxu1 %v5383_v4  ;;  %v146_v4 = vld [vmem:[%s8392_s9] sm:$0x7] }
  0x57   :  { %486 = vmatpush.msra.mxu3 %v5501_v24  ;;  %506 = vmatpush.msra.mxu0 %v5635_v48 }
  0x58   :  { %468 = vmatpush.msrb.mxu2 %v5533_v29  ;;  %644 = vmatpush.msrb.mxu1 %v5393_v6  ;;  %v148_v6 = vperm.slane %v146_v4, 0 }
  0x59   :  { %487 = vmatpush.msra.mxu3 %v5524_v28  ;;  %507 = vmatpush.msra.mxu0 %v5655_v51 }
  0x5a   :  { %469 = vmatpush.msrb.mxu2 %v5549_v33  ;;  %645 = vmatpush.msrb.mxu1 %v5410_v9  ;;  %v149_v9 = vperm.slane %v146_v4, 1 }
  0x5b   :  { %488 = vmatpush.msra.mxu3 %v5538_v30  ;;  %508 = vmatpush.msra.mxu0 %v5676_v54 }
  0x5c   :  { %470 = vmatpush.msrb.mxu2 %v5571_v37  ;;  %3048 = vperm.xlu0 %4833, %v3046_v2  }
  0x5d   :  { %489 = vmatpush.msra.mxu3 %v5554_v34  ;;  %509 = vmatpush.msra.mxu0 %v5687_v57 }
  0x5e   :  { %4751 = vmatmul.msk.f32.gmra.mxu2 %vm154_vm0, %v5543_v31  ;;  %646 = vmatpush.msrb.mxu1 %v5426_v11 }
  0x5f   :  { %490 = vmatpush.msra.mxu3 %v5576_v38  ;;  %510 = vmatpush.msra.mxu0 %v5693_v58 }
  0x60   :  { %471 = vmatpush.msrb.mxu2 %v5601_v43  ;;  %647 = vmatpush.msrb.mxu1 %v5440_v14 }
  0x61   :  { %491 = vmatpush.msra.mxu3 %v5606_v44  ;;  %511 = vmatpush.msra.mxu0 %v5703_v59 }
  0x62   :  { %472 = vmatpush.msrb.mxu2 %v5619_v46  ;;  %648 = vmatpush.msrb.mxu1 %v5458_v17 }
  0x63   :  { %492 = vmatpush.msra.mxu3 %v5624_v47  ;;  %512 = vmatpush.msra.mxu0 %v5712_v60 }
  0x64   :  { %473 = vmatpush.msrb.mxu2 %v5640_v49  ;;  %649 = vmatpush.msrb.mxu1 %v5470_v19 }
  0x65   :  { %493 = vmatpush.msra.mxu3 %v5645_v50  ;;  %513 = vmatpush.msra.mxu0 %v5722_v62 }
  0x66   :  { %474 = vmatpush.msrb.mxu2 %v5661_v52  ;;  %650 = vmatpush.msrb.mxu1 %v5496_v23 }
  0x67   :  { %494 = vmatpush.msra.mxu3 %v5666_v53  ;;  %514 = vmatpush.msra.mxu0 %v5730_v63 }
  0x68   :  { %663 = vmatpush.msra.mxu2 %v5388_v5  ;;  %651 = vmatpush.msrb.mxu1 %v5519_v27 }
  0x69   :  { %683 = vmatpush.msrb.mxu3 %v5484_v21 }
  0x6a   :  { %664 = vmatpush.msra.mxu2 %v5398_v7  ;;  %652 = vmatpush.msrb.mxu1 %v5533_v29 }
  0x6b   :  { %684 = vmatpush.msrb.mxu3 %v5491_v22 }
  0x6c   :  { %665 = vmatpush.msra.mxu2 %v5415_v10  ;;  %653 = vmatpush.msrb.mxu1 %v5549_v33 }
  0x6d   :  { %685 = vmatpush.msrb.mxu3 %v5509_v25 }
  0x6e   :  { %666 = vmatpush.msra.mxu2 %v5431_v12  ;;  %654 = vmatpush.msrb.mxu1 %v5571_v37 }
  0x6f   :  { %686 = vmatpush.msrb.mxu3 %v5563_v35 }
  0x70   :  { %667 = vmatpush.msra.mxu2 %v5445_v15  ;;  %655 = vmatpush.msrb.mxu1 %v5601_v43 }
  0x71   :  { %687 = vmatpush.msrb.mxu3 %v5585_v39 }
  0x72   :  { %668 = vmatpush.msra.mxu2 %v5463_v18  ;;  %656 = vmatpush.msrb.mxu1 %v5619_v46  ;;  %v5852_v46 = vperm.slane %v146_v4, 2 }
  0x73   :  { %688 = vmatpush.msrb.mxu3 %v5592_v40 }
  0x74   :  { %669 = vmatpush.msra.mxu2 %v5475_v20  ;;  %657 = vmatpush.msrb.mxu1 %v5640_v49  ;;  %8397 = vst [vmem:[#allocation17_spill] sm:$0xff] %v5852_v46 }
  0x75   :  { %689 = vmatpush.msrb.mxu3 %v5614_v45 }
  0x76   :  { %670 = vmatpush.msra.mxu2 %v5501_v24  ;;  %658 = vmatpush.msrb.mxu1 %v5661_v52 }
  0x77   :  { %690 = vmatpush.msrb.mxu3 %v5635_v48 }
  0x78   :  { %671 = vmatpush.msra.mxu2 %v5524_v28 }
  0x79   :  { %691 = vmatpush.msrb.mxu3 %v5655_v51 }
  0x7a   :  { %672 = vmatpush.msra.mxu2 %v5538_v30 }
  0x7b   :  { %692 = vmatpush.msrb.mxu3 %v5676_v54 }
  0x7c   :  { %673 = vmatpush.msra.mxu2 %v5554_v34 }
  0x7d   :  { %693 = vmatpush.msrb.mxu3 %v5687_v57 }
  0x7e   :  { %674 = vmatpush.msra.mxu2 %v5576_v38 }
  0x7f   :  { %694 = vmatpush.msrb.mxu3 %v5693_v58 }
  0x80   :  { %675 = vmatpush.msra.mxu2 %v5606_v44 }
  0x81   :  { %695 = vmatpush.msrb.mxu3 %v5703_v59 }
  0x82   :  { %676 = vmatpush.msra.mxu2 %v5624_v47 }
  0x83   :  { %696 = vmatpush.msrb.mxu3 %v5712_v60 }
  0x84   :  { %677 = vmatpush.msra.mxu2 %v5645_v50 }
  0x85   :  { %697 = vmatpush.msrb.mxu3 %v5722_v62 }
  0x86   :  { %678 = vmatpush.msra.mxu2 %v5666_v53 }
  0x87   :  { %698 = vmatpush.msrb.mxu3 %v5730_v63 }
  0xa5   :  { %v181_v3 = vpop.f32.mrf.mxu0 }
  0xa6   :  { %v5846_v23 = vadd.f32 %v181_v3, %v148_v6  ;;  %v407_v3 = vpop.permute.xlu0 %406 }
  0xa7   :  { %vm408_vm14 = vcmp.eq.s32.totalorder %v407_v3, 1 }
  0xab   :  { %v207_v5 = vpop.f32.mrf.mxu3 }
  0xac   :  { %v5843_v17 = vadd.f32 %v207_v5, %v149_v9 }
  0xad   :  { %v184_v7 = vpop.f32.mrf.mxu0 }
  0xae   :  { %v5835_v8 = vadd.f32 %v184_v7, %v148_v6 }
  0xb0   :  { %8393 = vst [vmem:[#allocation14_spill] sm:$0xff] %v5835_v8 }
  0xb3   :  { %v210_v10 = vpop.f32.mrf.mxu3 }
  0xb4   :  { %v5837_v11 = vadd.f32 %v210_v10, %v149_v9 }
  0xb5   :  { %v187_v12 = vpop.f32.mrf.mxu0 }
  0xb6   :  { %v5839_v14 = vadd.f32 %v187_v12, %v148_v6 }
  0xb8   :  { %8394 = vst [vmem:[#allocation15_spill] sm:$0xff] %v5839_v14 }
  0xbb   :  { %v213_v15 = vpop.f32.mrf.mxu3 }
  0xbc   :  { %v5841_v16 = vadd.f32 %v213_v15, %v149_v9 }
  0xbe   :  { %8395 = vst [vmem:[#allocation16_spill] sm:$0xff] %v5841_v16 }
  0xbf   :  { %v233_v48 = vpop.f32.mrf.mxu2 }
  0xc0   :  { %v5855_v53 = vadd.f32 %v233_v48, %v5852_v46 }
  0xc5   :  { %v328_v18 = vpop.f32.mrf.mxu0 }
  0xc6   :  { %v371_v19 = vadd.f32 %v328_v18, %v5843_v17 }
  0xc8   :  { %v4753_v20 = vmul.f32 -1.442695, %v371_v19 }
  0xca   :  { %4859 = vpow2.f32 %v4753_v20 }
  0xcb   :  { %v308_v24 = vpop.f32.mrf.mxu3 }
  0xcc   :  { %v351_v27 = vadd.f32 %v308_v24, %v5846_v23 }
  0xce   :  { %v4752_v28 = vmul.f32 -1.442695, %v351_v27 }
  0xcf   :  { %v348_v42 = vpop.f32.mrf.mxu1 }
  0xd0   :  { %v4860_v29 = vpop.eup %4859  ;;  %4861 = vpow2.f32 %v4752_v28  ;;  %v395_v50 = vadd.f32 %v4836_v41, %v348_v42  ;;  %v768_v28 = vsel %vm767_vm15, 1, %v8360_v13 }
  0xd1   :  { %v375_v30 = vadd.f32 1.0, %v4860_v29  ;;  %770 = vperm.xlu1 %4834, %v768_v28   ;;  %v5955_v28 = vld [vmem:[%s8387_s2 + $0x108] sm:$0xff] }
  0xd3   :  { %4863 = vrcp.f32 %v375_v30  ;;  %v387_v58 = vand.u32 2147483648, %v375_v30  ;;  %vm381_vm11 = vweird.f32 %v375_v30  ;;  %v385_v59 = vand.u32 2147483647, %v375_v30 }
  0xd5   :  { %v388_v62 = vor.u32 1.1754944e-38, %v387_v58  ;;  %vm386_vm13 = vcmp.eq.f32.partialorder %v385_v59, 8.507059e+37 }
  0xd6   :  { %v4862_v31 = vpop.eup %4861 }
  0xd7   :  { %v355_v32 = vadd.f32 1.0, %v4862_v31  ;;  %v5866_v9 = vpop.f32.mrf.mxu2 }
  0xd8   :  { %8398 = vst [vmem:[#allocation18_spill] sm:$0xff] %v5866_v9 }
  0xd9   :  { %4865 = vrcp.f32 %v355_v32  ;;  %v4864_v33 = vpop.eup %4863  ;;  %v367_v43 = vand.u32 2147483648, %v355_v32  ;;  %v365_v45 = vand.u32 2147483647, %v355_v32  ;;  %vm361_vm7 = vweird.f32 %v355_v32 }
  0xda   :  { %v377_v34 = vmul.f32 %v4864_v33, %v375_v30  ;;  %vm382_vm10 = vweird.f32 %v4864_v33  ;;  %v4837_v30 = vld [vmem:[%s8396_s10] ss:$0 sm:$0xff] }
  0xdb   :  { %v368_v51 = vor.u32 1.1754944e-38, %v367_v43  ;;  %vm366_vm9 = vcmp.eq.f32.partialorder %v365_v45, 8.507059e+37  ;;  %vm383_vm12 = vmor %vm381_vm11, %vm382_vm10  ;;  %v952_v43 = vsel %vm951_vm1, 1, %v8360_v13  ;;  %vm2209_vm11 = vcmp.gt.s32.totalorder %v5514_v26, 10 }
  0xdc   :  { %v378_v38 = vsub.f32 1.0, %v377_v34  ;;  %954 = vperm.xlu1 %4834, %v952_v43  }
  0xde   :  { %v379_v47 = vmul.f32 %v4864_v33, %v378_v38 }
  0xdf   :  { %v4866_v36 = vpop.eup %4865 }
  0xe0   :  { %v357_v37 = vmul.f32 %v4866_v36, %v355_v32  ;;  %vm362_vm6 = vweird.f32 %v4866_v36  ;;  %v380_v55 = vadd.f32 %v4864_v33, %v379_v47 }
  0xe1   :  { %vm363_vm8 = vmor %vm361_vm7, %vm362_vm6  ;;  %v5868_v10 = vpop.f32.mrf.mxu2  ;;  %vm1672_vm7 = vcmp.gt.s32.totalorder %v5514_v26, 7 }
  0xe2   :  { %v358_v40 = vsub.f32 1.0, %v357_v37  ;;  %v384_v61 = vsel %vm383_vm12, %v4864_v33, %v380_v55  ;;  %8399 = vst [vmem:[#allocation19_spill] sm:$0xff] %v5868_v10  ;;  %v1673_v58 = vsel %vm1672_vm7, 1, %v8360_v13  ;;  %vm2788_vm12 = vcmp.gt.s32.totalorder %v5750_v1, 0 }
  0xe3   :  { %v389_v63 = vsel %vm386_vm13, %v388_v62, %v384_v61  ;;  %v2789_v26 = vsel %vm2788_vm12, 1, %v8360_v13 }
  0xe4   :  { %v359_v44 = vmul.f32 %v4866_v36, %v358_v40  ;;  %v399_v0 = vsub.f32 1.0, %v389_v63  ;;  %v401_v5 = vmul.f32 0.0, %v389_v63  ;;  %1675 = vperm.xlu1 %4834, %v1673_v58   ;;  %v6074_v58 = vld [vmem:[%s8387_s2 + $0x88] sm:$0xff] }
  0xe6   :  { %v360_v49 = vadd.f32 %v4866_v36, %v359_v44 }
  0xe8   :  { %v364_v52 = vsel %vm363_vm8, %v4866_v36, %v360_v49 }
  0xe9   :  { %v369_v54 = vsel %vm366_vm9, %v368_v51, %v364_v52 }
  0xea   :  { %v396_v57 = vmul.f32 %v395_v50, %v369_v54 }
  0xec   :  { %v397_v60 = vadd.f32 %v396_v57, %v5855_v53 }
  0xee   :  { %4867 = vtanh.f32 %v397_v60 }
  0xf4   :  { %v4868_v2 = vpop.eup %4867 }
  0xf5   :  { %v400_v4 = vmul.f32 %v4868_v2, %v399_v0  ;;  %v2210_v2 = vsel %vm2209_vm11, 1, %v8360_v13 }
  0xf6   :  { %2212 = vperm.xlu1 %4834, %v2210_v2   ;;  %v6108_v2 = vld [vmem:[%s8387_s2 + $0x50] sm:$0xff] }
  0xf7   :  { %v402_v6 = vadd.f32 %v401_v5, %v400_v4 }
  0xf9   :  { %4754 = vmatmul.msk.f32.vlgmr.msrb.gmra.mxu2 %vm408_vm14, %v402_v6  ;;  %4755 = vmatmul.msk.f32.vlgmr.msra.gmra.mxu3 %vm408_vm14, %v402_v6  ;;  %v5858_v7 = vsel %vm408_vm14, %v402_v6, 0.0 }
  0xfa   :  { %4756 = vmatmul.msk.f32.vlgmr.msra.gmra.mxu0 %vm408_vm14, %v402_v6  ;;  %410 = vst [vmem:[#allocation2] sm:$0x3] %v5858_v7  ;;  %867 = vmatpush.msrb.mxu2 %v5484_v21  ;;  %v579_v63 = vrot.slane %v5858_v7, 6  ;;  %v587_v6 = vpop.permute.xlu0 %586  ;;  %vm3175_vm14 = vcmp.gt.s32.totalorder %v5750_v1, 3  ;;  %v5909_v1 = vld [vmem:[%s8387_s2 + $0x170] sm:$0xff] }
  0xfb   :  { %vm588_vm13 = vcmp.eq.s32.totalorder %v587_v6, 1  ;;  %847 = vmatpush.msra.mxu1 %v5909_v1  ;;  %v6126_v6 = vld [vmem:[%s8387_s2 + $0x38] sm:$0xff] }
  0xfc   :  { %868 = vmatpush.msrb.mxu2 %v5491_v22 }
  0xfe   :  { %869 = vmatpush.msrb.mxu2 %v5509_v25  ;;  %2791 = vperm.xlu1 %4834, %v2789_v26   ;;  %v6137_v26 = vld [vmem:[%s8387_s2 + $0x20] sm:$0xff] }
 0x100   :  { %870 = vmatpush.msrb.mxu2 %v5563_v35 }
 0x102   :  { %871 = vmatpush.msrb.mxu2 %v5585_v39 }
 0x177   :  { %v516_v32 = vpop.f32.mrf.mxu0 }
 0x178   :  { %v569_v37 = vadd.f32 %v4837_v30, %v516_v32  ;;  %v5968_v30 = vld [vmem:[%s8387_s2 + $0xf0] sm:$0xff]  ;;  %v5978_v32 = vld [vmem:[%s8387_s2 + $0x100] sm:$0xff] }
 0x179   :  { %872 = vmatpush.msrb.mxu2 %v5978_v32 }
 0x17a   :  { %v571_v48 = vrot.slane %v569_v37, 6  ;;  %v5997_v37 = vld [vmem:[%s8387_s2 + $0xe8] sm:$0xff] }
 0x17b   :  { %873 = vmatpush.msrb.mxu2 %v5997_v37 }
 0x17c   :  { %v476_v12 = vpop.f32.mrf.mxu2  ;;  %v496_v15 = vpop.f32.mrf.mxu3 }
 0x17d   :  { %v520_v18 = vrot.slane %v476_v12, 6  ;;  %v543_v19 = vrot.slane %v496_v15, 6 }
 0x17f   :  { %v522_v20 = vadd.f32 %v520_v18, %v5846_v23  ;;  %v545_v21 = vadd.f32 %v543_v19, %v5843_v17  ;;  %v3176_v19 = vsel %vm3175_vm14, 1, %v8360_v13 }
 0x180   :  { %3178 = vperm.xlu1 %4834, %v3176_v19   ;;  %v6142_v19 = vld [vmem:[%s8387_s2 + $0x18] sm:$0xff] }
 0x181   :  { %v4757_v24 = vmul.f32 -1.442695, %v522_v20  ;;  %v4758_v22 = vmul.f32 -1.442695, %v545_v21  ;;  %v4651_v20 = vld [vmem:[%s8400_s7] sm:$0xff]  ;;  %v5904_v21 = vld [vmem:[%s8387_s2 + $0x168] sm:$0xff] }
 0x182   :  { %827 = vmatpush.msrb.mxu0 %v5904_v21  ;;  %1011 = vmatpush.msra.mxu3 %v5904_v21 }
 0x183   :  { %4869 = vpow2.f32 %v4757_v24  ;;  %v5916_v24 = vld [vmem:[%s8387_s2 + $0x150] sm:$0xff] }
 0x184   :  { %4871 = vpow2.f32 %v4758_v22  ;;  %v5921_v22 = vld [vmem:[%s8387_s2 + $0x158] sm:$0xff]  ;;  %828 = vmatpush.msrb.mxu0 %v5916_v24  ;;  %1012 = vmatpush.msra.mxu3 %v5916_v24 }
 0x185   :  { %848 = vmatpush.msra.mxu1 %v5921_v22 }
 0x189   :  { %v4870_v25 = vpop.eup %4869 }
 0x18a   :  { %v4872_v35 = vpop.eup %4871  ;;  %v526_v27 = vadd.f32 1.0, %v4870_v25  ;;  %v5929_v25 = vld [vmem:[%s8387_s2 + $0x140] sm:$0xff] }
 0x18b   :  { %v549_v39 = vadd.f32 1.0, %v4872_v35  ;;  %v5934_v35 = vld [vmem:[%s8387_s2 + $0x138] sm:$0xff]  ;;  %849 = vmatpush.msra.mxu1 %v5929_v25 }
 0x18c   :  { %4873 = vrcp.f32 %v526_v27  ;;  %v538_v38 = vand.u32 2147483648, %v526_v27  ;;  %v536_v42 = vand.u32 2147483647, %v526_v27  ;;  %vm532_vm3 = vweird.f32 %v526_v27  ;;  %829 = vmatpush.msrb.mxu0 %v5934_v35  ;;  %1013 = vmatpush.msra.mxu3 %v5934_v35 }
 0x18d   :  { %4875 = vrcp.f32 %v549_v39  ;;  %v561_v54 = vand.u32 2147483648, %v549_v39  ;;  %vm555_vm8 = vweird.f32 %v549_v39  ;;  %v559_v55 = vand.u32 2147483647, %v549_v39 }
 0x18e   :  { %v539_v47 = vor.u32 1.1754944e-38, %v538_v38  ;;  %vm537_vm5 = vcmp.eq.f32.partialorder %v536_v42, 8.507059e+37  ;;  %v6016_v42 = vld [vmem:[%s8387_s2 + $0xd0] sm:$0xff] }
 0x18f   :  { %v562_v60 = vor.u32 1.1754944e-38, %v561_v54  ;;  %vm560_vm10 = vcmp.eq.f32.partialorder %v559_v55, 8.507059e+37  ;;  %874 = vmatpush.msrb.mxu2 %v6016_v42  ;;  %v6064_v55 = vld [vmem:[%s8387_s2 + $0x80] sm:$0xff] }
 0x192   :  { %v4874_v29 = vpop.eup %4873 }
 0x193   :  { %v4876_v31 = vpop.eup %4875  ;;  %v528_v33 = vmul.f32 %v4874_v29, %v526_v27  ;;  %vm533_vm2 = vweird.f32 %v4874_v29  ;;  %v5942_v27 = vld [vmem:[%s8387_s2 + $0x120] sm:$0xff] }
 0x194   :  { %v551_v34 = vmul.f32 %v4876_v31, %v549_v39  ;;  %vm534_vm4 = vmor %vm532_vm3, %vm533_vm2  ;;  %vm556_vm6 = vweird.f32 %v4876_v31  ;;  %v5947_v39 = vld [vmem:[%s8387_s2 + $0x128] sm:$0xff]  ;;  %830 = vmatpush.msrb.mxu0 %v5942_v27  ;;  %1014 = vmatpush.msra.mxu3 %v5942_v27 }
 0x195   :  { %v529_v36 = vsub.f32 1.0, %v528_v33  ;;  %vm557_vm9 = vmor %vm555_vm8, %vm556_vm6  ;;  %850 = vmatpush.msra.mxu1 %v5947_v39 }
 0x196   :  { %v552_v40 = vsub.f32 1.0, %v551_v34  ;;  %831 = vmatpush.msrb.mxu0 %v5955_v28  ;;  %1015 = vmatpush.msra.mxu3 %v5955_v28  ;;  %v5987_v34 = vld [vmem:[%s8387_s2 + $0xe0] sm:$0xff] }
 0x197   :  { %v530_v41 = vmul.f32 %v4874_v29, %v529_v36  ;;  %v5992_v36 = vld [vmem:[%s8387_s2 + $0xd8] sm:$0xff] }
 0x198   :  { %v553_v44 = vmul.f32 %v4876_v31, %v552_v40  ;;  %832 = vmatpush.msrb.mxu0 %v5968_v30  ;;  %1016 = vmatpush.msra.mxu3 %v5968_v30  ;;  %v6006_v40 = vld [vmem:[%s8387_s2 + $0xc0] sm:$0xff] }
 0x199   :  { %v531_v45 = vadd.f32 %v4874_v29, %v530_v41  ;;  %v6011_v41 = vld [vmem:[%s8387_s2 + $0xc8] sm:$0xff] }
 0x19a   :  { %v554_v51 = vadd.f32 %v4876_v31, %v553_v44  ;;  %833 = vmatpush.msrb.mxu0 %v5992_v36  ;;  %1017 = vmatpush.msra.mxu3 %v5992_v36  ;;  %v6026_v44 = vld [vmem:[%s8387_s2 + $0xa8] sm:$0xff] }
 0x19b   :  { %v535_v49 = vsel %vm534_vm4, %v4874_v29, %v531_v45  ;;  %v5960_v29 = vld [vmem:[%s8387_s2 + $0x110] sm:$0xff] }
 0x19c   :  { %v540_v50 = vsel %vm537_vm5, %v539_v47, %v535_v49  ;;  %v558_v59 = vsel %vm557_vm9, %v4876_v31, %v554_v51  ;;  %851 = vmatpush.msra.mxu1 %v5960_v29  ;;  %v5973_v31 = vld [vmem:[%s8387_s2 + $0xf8] sm:$0xff]  ;;  %834 = vmatpush.msrb.mxu0 %v6006_v40  ;;  %v6031_v45 = vld [vmem:[%s8387_s2 + $0xb0] sm:$0xff] }
 0x19d   :  { %v573_v52 = vmul.f32 %v571_v48, %v540_v50  ;;  %v563_v61 = vsel %vm560_vm10, %v562_v60, %v558_v59  ;;  %v6036_v47 = vld [vmem:[%s8387_s2 + $0xb8] sm:$0xff]  ;;  %1018 = vmatpush.msra.mxu3 %v6006_v40  ;;  %v6045_v50 = vld [vmem:[%s8387_s2 + $0x90] sm:$0xff]  ;;  %v6084_v60 = vld [vmem:[%s8387_s2 + $0x60] sm:$0xff] }
 0x19e   :  { %v576_v62 = vsub.f32 1.0, %v563_v61  ;;  %v581_v4 = vmul.f32 %v579_v63, %v563_v61  ;;  %852 = vmatpush.msra.mxu1 %v5973_v31  ;;  %835 = vmatpush.msrb.mxu0 %v6026_v44  ;;  %v6050_v51 = vld [vmem:[%s8387_s2 + $0x98] sm:$0xff]  ;;  %v6089_v61 = vld [vmem:[%s8387_s2 + $0x68] sm:$0xff] }
 0x19f   :  { %v574_v57 = vadd.f32 %v573_v52, %v5855_v53  ;;  %875 = vmatpush.msrb.mxu2 %v6036_v47  ;;  %v6055_v52 = vld [vmem:[%s8387_s2 + $0xa0] sm:$0xff]  ;;  %1019 = vmatpush.msra.mxu3 %v6026_v44 }
 0x1a0   :  { %853 = vmatpush.msra.mxu1 %v5987_v34  ;;  %836 = vmatpush.msrb.mxu0 %v6045_v50 }
 0x1a1   :  { %4877 = vtanh.f32 %v574_v57  ;;  %876 = vmatpush.msrb.mxu2 %v6055_v52  ;;  %v6069_v57 = vld [vmem:[%s8387_s2 + $0x78] sm:$0xff]  ;;  %1020 = vmatpush.msra.mxu3 %v6045_v50 }
 0x1a2   :  { %854 = vmatpush.msra.mxu1 %v6011_v41  ;;  %837 = vmatpush.msrb.mxu0 %v6069_v57 }
 0x1a3   :  { %877 = vmatpush.msrb.mxu2 %v6074_v58  ;;  %1021 = vmatpush.msra.mxu3 %v6069_v57 }
 0x1a4   :  { %855 = vmatpush.msra.mxu1 %v6031_v45  ;;  %838 = vmatpush.msrb.mxu0 %v6084_v60 }
 0x1a5   :  { %1022 = vmatpush.msra.mxu3 %v6084_v60 }
 0x1a6   :  { %856 = vmatpush.msra.mxu1 %v6050_v51 }
 0x1a7   :  { %v4878_v0 = vpop.eup %4877 }
 0x1a8   :  { %v577_v3 = vmul.f32 %v4878_v0, %v576_v62  ;;  %857 = vmatpush.msra.mxu1 %v6064_v55  ;;  %v6094_v62 = vld [vmem:[%s8387_s2 + $0x70] sm:$0xff]  ;;  %v6103_v0 = vld [vmem:[%s8387_s2 + $0x48] sm:$0xff] }
 0x1a9   :  { %878 = vmatpush.msrb.mxu2 %v6094_v62  ;;  %839 = vmatpush.msrb.mxu0 %v6103_v0 }
 0x1aa   :  { %v582_v5 = vadd.f32 %v581_v4, %v577_v3  ;;  %858 = vmatpush.msra.mxu1 %v6089_v61  ;;  %v6116_v4 = vld [vmem:[%s8387_s2 + $0x58] sm:$0xff]  ;;  %1023 = vmatpush.msra.mxu3 %v6103_v0 }
 0x1ab   :  { %879 = vmatpush.msrb.mxu2 %v6116_v4 }
 0x1ac   :  { %v590_v12 = vrot.slane %v582_v5, 2  ;;  %859 = vmatpush.msra.mxu1 %v6108_v2  ;;  %v6121_v5 = vld [vmem:[%s8387_s2 + $0x30] sm:$0xff] }
 0x1ad   :  { %840 = vmatpush.msrb.mxu0 %v6121_v5  ;;  %1024 = vmatpush.msra.mxu3 %v6121_v5 }
 0x1ae   :  { %v5887_v15 = vsel %vm588_vm13, %v590_v12, %v5858_v7  ;;  %v593_v18 = vsel %vm588_vm13, %v590_v12, 0.0  ;;  %v4652_v7 = vld [vmem:[%s8400_s7 + $0x8] sm:$0x3f]  ;;  %860 = vmatpush.msra.mxu1 %v6126_v6 }
 0x1af   :  { %594 = vst [vmem:[#allocation2 + $0x2] sm:$0x3] %v593_v18  ;;  %659 = vmatmul.f32.vlgmr.msrb.gmra.mxu1 %v5887_v15  ;;  %679 = vmatmul.f32.vlgmr.msra.gmra.mxu2 %v5887_v15  ;;  %v6132_v18 = vld [vmem:[%s8387_s2 + $0x40] sm:$0xff] }
 0x1b0   :  { %699 = vmatmul.f32.vlgmr.msrb.gmra.mxu3 %v5887_v15  ;;  %4657 = vperm.xlu1 %4834, %v4652_v7   ;;  %v6150_v7 = vld [vmem:[%s8387_s2 + $0x28] sm:$0xff] }
 0x1b1   :  { %880 = vmatpush.msrb.mxu2 %v6132_v18  ;;  %861 = vmatpush.msra.mxu1 %v6137_v26 }
 0x1b2   :  { %841 = vmatpush.msrb.mxu0 %v6142_v19  ;;  %1025 = vmatpush.msra.mxu3 %v6142_v19 }
 0x1b3   :  { %881 = vmatpush.msrb.mxu2 %v6150_v7 }
 0x1b8   :  { %4654 = vperm.xlu1 %4834, %v4651_v20   ;;  %v6156_v20 = vld [vmem:[%s8387_s2] sm:$0xff] }
 0x1b9   :  { %842 = vmatpush.msrb.mxu0 %v6156_v20  ;;  %1026 = vmatpush.msra.mxu3 %v6156_v20 }
 0x1bb   :  { %1031 = vmatpush.msra.mxu0 %v5909_v1  ;;  %1200 = vmatpush.msrb.mxu3 %v5909_v1 }
 0x1bd   :  { %1032 = vmatpush.msra.mxu0 %v5921_v22  ;;  %1201 = vmatpush.msrb.mxu3 %v5921_v22 }
 0x1bf   :  { %1033 = vmatpush.msra.mxu0 %v5929_v25  ;;  %1202 = vmatpush.msrb.mxu3 %v5929_v25 }
 0x1c1   :  { %1034 = vmatpush.msra.mxu0 %v5947_v39  ;;  %1203 = vmatpush.msrb.mxu3 %v5947_v39 }
 0x1c3   :  { %1035 = vmatpush.msra.mxu0 %v5960_v29  ;;  %1204 = vmatpush.msrb.mxu3 %v5960_v29 }
 0x1c5   :  { %1036 = vmatpush.msra.mxu0 %v5973_v31  ;;  %1205 = vmatpush.msrb.mxu3 %v5973_v31 }
 0x1c7   :  { %1037 = vmatpush.msra.mxu0 %v5987_v34  ;;  %1206 = vmatpush.msrb.mxu3 %v5987_v34 }
 0x1c9   :  { %1038 = vmatpush.msra.mxu0 %v6011_v41  ;;  %1207 = vmatpush.msrb.mxu3 %v6011_v41 }
 0x1cb   :  { %1039 = vmatpush.msra.mxu0 %v6031_v45  ;;  %1208 = vmatpush.msrb.mxu3 %v6031_v45 }
 0x1cd   :  { %1040 = vmatpush.msra.mxu0 %v6050_v51  ;;  %1209 = vmatpush.msrb.mxu3 %v6050_v51 }
 0x1cf   :  { %1041 = vmatpush.msra.mxu0 %v6064_v55  ;;  %1210 = vmatpush.msrb.mxu3 %v6064_v55 }
 0x1d1   :  { %1042 = vmatpush.msra.mxu0 %v6089_v61  ;;  %1211 = vmatpush.msrb.mxu3 %v6089_v61 }
 0x1d3   :  { %1043 = vmatpush.msra.mxu0 %v6108_v2  ;;  %1212 = vmatpush.msrb.mxu3 %v6108_v2 }
 0x1d5   :  { %1044 = vmatpush.msra.mxu0 %v6126_v6  ;;  %1213 = vmatpush.msrb.mxu3 %v6126_v6 }
 0x1d7   :  { %1045 = vmatpush.msra.mxu0 %v6137_v26  ;;  %1214 = vmatpush.msrb.mxu3 %v6137_v26 }
 0x22c   :  { %v660_v33 = vpop.f32.mrf.mxu1 }
 0x22d   :  { %v704_v38 = vrot.slane %v660_v33, 4  ;;  %v6161_v33 = vld [vmem:[%s8387_s2 + $0x8] sm:$0xff] }
 0x22e   :  { %862 = vmatpush.msra.mxu1 %v6161_v33  ;;  %1046 = vmatpush.msra.mxu0 %v6161_v33 }
 0x22f   :  { %v706_v43 = vadd.f32 %v704_v38, %v5846_v23  ;;  %v6169_v38 = vld [vmem:[%s8387_s2 + $0x10] sm:$0xff]  ;;  %1215 = vmatpush.msrb.mxu3 %v6161_v33 }
 0x230   :  { %882 = vmatpush.msrb.mxu2 %v6169_v38 }
 0x231   :  { %v4759_v48 = vmul.f32 -1.442695, %v706_v43 }
 0x232   :  { %v680_v49 = vpop.f32.mrf.mxu2  ;;  %1180 = vmatpush.msra.mxu2 %v5904_v21 }
 0x233   :  { %4879 = vpow2.f32 %v4759_v48  ;;  %v727_v54 = vrot.slane %v680_v49, 4 }
 0x234   :  { %1181 = vmatpush.msra.mxu2 %v5916_v24 }
 0x235   :  { %v729_v59 = vadd.f32 %v727_v54, %v5843_v17 }
 0x236   :  { %1182 = vmatpush.msra.mxu2 %v5934_v35 }
 0x237   :  { %v4760_v63 = vmul.f32 -1.442695, %v729_v59  ;;  %v4838_v59 = vld [vmem:[%s8396_s10] ss:$0 sm:$0xff] }
 0x238   :  { %1183 = vmatpush.msra.mxu2 %v5942_v27 }
 0x239   :  { %v4880_v3 = vpop.eup %4879  ;;  %4881 = vpow2.f32 %v4760_v63  ;;  %v700_v63 = vpop.f32.mrf.mxu3 }
 0x23a   :  { %v710_v12 = vadd.f32 1.0, %v4880_v3  ;;  %v753_v10 = vadd.f32 %v4838_v59, %v700_v63  ;;  %1184 = vmatpush.msra.mxu2 %v5955_v28 }
 0x23c   :  { %4883 = vrcp.f32 %v710_v12  ;;  %v720_v13 = vand.u32 2147483647, %v710_v12  ;;  %vm716_vm1 = vweird.f32 %v710_v12  ;;  %1185 = vmatpush.msra.mxu2 %v5968_v30 }
 0x23e   :  { %vm721_vm3 = vcmp.eq.f32.partialorder %v720_v13, 8.507059e+37  ;;  %1186 = vmatpush.msra.mxu2 %v5992_v36 }
 0x23f   :  { %v4882_v43 = vpop.eup %4881 }
 0x240   :  { %v6175_v48 = vadd.f32 1.0, %v4882_v43  ;;  %v722_v43 = vand.u32 2147483648, %v710_v12  ;;  %1187 = vmatpush.msra.mxu2 %v6006_v40 }
 0x242   :  { %v4884_v49 = vpop.eup %4883  ;;  %4885 = vrcp.f32 %v6175_v48  ;;  %v723_v9 = vor.u32 1.1754944e-38, %v722_v43  ;;  %v743_v8 = vand.u32 2147483647, %v6175_v48  ;;  %vm739_vm5 = vweird.f32 %v6175_v48  ;;  %1188 = vmatpush.msra.mxu2 %v6026_v44 }
 0x243   :  { %v712_v54 = vmul.f32 %v4884_v49, %v710_v12  ;;  %vm717_vm15 = vweird.f32 %v4884_v49  ;;  %v745_v12 = vand.u32 2147483648, %v6175_v48 }
 0x244   :  { %vm718_vm2 = vmor %vm716_vm1, %vm717_vm15  ;;  %vm744_vm7 = vcmp.eq.f32.partialorder %v743_v8, 8.507059e+37  ;;  %1189 = vmatpush.msra.mxu2 %v6045_v50 }
 0x245   :  { %v713_v3 = vsub.f32 1.0, %v712_v54 }
 0x246   :  { %1190 = vmatpush.msra.mxu2 %v6069_v57 }
 0x247   :  { %v714_v56 = vmul.f32 %v4884_v49, %v713_v3  ;;  %v755_v3 = vrot.slane %v753_v10, 4 }
 0x248   :  { %v4886_v14 = vpop.eup %4885  ;;  %1191 = vmatpush.msra.mxu2 %v6084_v60 }
 0x249   :  { %v735_v54 = vmul.f32 %v4886_v14, %v6175_v48  ;;  %v715_v16 = vadd.f32 %v4884_v49, %v714_v56  ;;  %vm740_vm4 = vweird.f32 %v4886_v14  ;;  %v763_v48 = vrot.slane %v5887_v15, 4 }
 0x24a   :  { %vm741_vm6 = vmor %vm739_vm5, %vm740_vm4  ;;  %1192 = vmatpush.msra.mxu2 %v6103_v0 }
 0x24b   :  { %v736_v59 = vsub.f32 1.0, %v735_v54  ;;  %v719_v63 = vsel %vm718_vm2, %v4884_v49, %v715_v16 }
 0x24c   :  { %v724_v46 = vsel %vm721_vm3, %v723_v9, %v719_v63  ;;  %1193 = vmatpush.msra.mxu2 %v6121_v5 }
 0x24d   :  { %v737_v56 = vmul.f32 %v4886_v14, %v736_v59  ;;  %v757_v43 = vmul.f32 %v755_v3, %v724_v46  ;;  %v746_v46 = vor.u32 1.1754944e-38, %v745_v12  ;;  %v771_v59 = vpop.permute.xlu1 %770 }
 0x24e   :  { %vm772_vm8 = vcmp.eq.s32.totalorder %v771_v59, 1  ;;  %1194 = vmatpush.msra.mxu2 %v6142_v19 }
 0x24f   :  { %v738_v13 = vadd.f32 %v4886_v14, %v737_v56  ;;  %v758_v16 = vadd.f32 %v757_v43, %v5855_v53 }
 0x250   :  { %1195 = vmatpush.msra.mxu2 %v6156_v20 }
 0x251   :  { %v742_v9 = vsel %vm741_vm6, %v4886_v14, %v738_v13  ;;  %4887 = vtanh.f32 %v758_v16  ;;  %v4839_v16 = vld [vmem:[%s8396_s10] ss:$0 sm:$0xff] }
 0x252   :  { %v747_v10 = vsel %vm744_vm7, %v746_v46, %v742_v9 }
 0x253   :  { %v760_v14 = vsub.f32 1.0, %v747_v10  ;;  %v765_v54 = vmul.f32 %v763_v48, %v747_v10 }
 0x257   :  { %v4888_v8 = vpop.eup %4887 }
 0x258   :  { %v761_v49 = vmul.f32 %v4888_v8, %v760_v14 }
 0x25a   :  { %v766_v63 = vadd.f32 %v765_v54, %v761_v49 }
 0x25c   :  { %v774_v3 = vrot.slane %v766_v63, 4 }
 0x25e   :  { %v6234_v56 = vsel %vm772_vm8, %v774_v3, %v5887_v15  ;;  %v777_v12 = vsel %vm772_vm8, %v774_v3, 0.0  ;;  %v6262_v15 = vld [vmem:[%s8387_s2 + $0x178] sm:$0xff] }
 0x25f   :  { %778 = vst [vmem:[#allocation2 + $0x4] sm:$0x3] %v777_v12  ;;  %843 = vmatmul.f32.vlgmr.msrb.gmra.mxu0 %v6234_v56  ;;  %863 = vmatmul.f32.vlgmr.msra.gmra.mxu1 %v6234_v56 }
 0x260   :  { %883 = vmatmul.f32.vlgmr.msrb.gmra.mxu2 %v6234_v56  ;;  %1051 = vmatpush.msrb.mxu1 %v6262_v15 }
 0x261   :  { %1384 = vmatpush.msrb.mxu2 %v5909_v1  ;;  %1220 = vmatpush.msrb.mxu0 %v6262_v15  ;;  %v6269_v1 = vld [vmem:[%s8387_s2 + $0x160] sm:$0xff] }
 0x262   :  { %1052 = vmatpush.msrb.mxu1 %v6269_v1 }
 0x263   :  { %1385 = vmatpush.msrb.mxu2 %v5921_v22  ;;  %1221 = vmatpush.msrb.mxu0 %v6269_v1  ;;  %v6276_v22 = vld [vmem:[%s8387_s2 + $0x148] sm:$0xff] }
 0x264   :  { %1053 = vmatpush.msrb.mxu1 %v6276_v22 }
 0x265   :  { %1386 = vmatpush.msrb.mxu2 %v5929_v25  ;;  %1222 = vmatpush.msrb.mxu0 %v6276_v22  ;;  %v6283_v25 = vld [vmem:[%s8387_s2 + $0x130] sm:$0xff] }
 0x266   :  { %1054 = vmatpush.msrb.mxu1 %v6283_v25 }
 0x267   :  { %1387 = vmatpush.msrb.mxu2 %v5947_v39  ;;  %1223 = vmatpush.msrb.mxu0 %v6283_v25  ;;  %v6290_v39 = vld [vmem:[%s8387_s2 + $0x118] sm:$0xff] }
 0x268   :  { %1055 = vmatpush.msrb.mxu1 %v6290_v39 }
 0x269   :  { %1388 = vmatpush.msrb.mxu2 %v5960_v29  ;;  %1224 = vmatpush.msrb.mxu0 %v6290_v39 }
 0x26a   :  { %1056 = vmatpush.msrb.mxu1 %v5978_v32 }
 0x26b   :  { %1389 = vmatpush.msrb.mxu2 %v5973_v31  ;;  %1225 = vmatpush.msrb.mxu0 %v5978_v32 }
 0x26c   :  { %1057 = vmatpush.msrb.mxu1 %v5997_v37 }
 0x26d   :  { %1390 = vmatpush.msrb.mxu2 %v5987_v34  ;;  %1226 = vmatpush.msrb.mxu0 %v5997_v37 }
 0x26e   :  { %1058 = vmatpush.msrb.mxu1 %v6016_v42 }
 0x26f   :  { %1391 = vmatpush.msrb.mxu2 %v6011_v41  ;;  %1227 = vmatpush.msrb.mxu0 %v6016_v42 }
 0x270   :  { %1059 = vmatpush.msrb.mxu1 %v6036_v47 }
 0x271   :  { %1392 = vmatpush.msrb.mxu2 %v6031_v45  ;;  %1228 = vmatpush.msrb.mxu0 %v6036_v47 }
 0x272   :  { %1060 = vmatpush.msrb.mxu1 %v6055_v52 }
 0x273   :  { %1393 = vmatpush.msrb.mxu2 %v6050_v51  ;;  %1229 = vmatpush.msrb.mxu0 %v6055_v52 }
 0x274   :  { %1061 = vmatpush.msrb.mxu1 %v6074_v58 }
 0x275   :  { %1394 = vmatpush.msrb.mxu2 %v6064_v55  ;;  %1230 = vmatpush.msrb.mxu0 %v6074_v58 }
 0x276   :  { %1062 = vmatpush.msrb.mxu1 %v6094_v62 }
 0x277   :  { %1395 = vmatpush.msrb.mxu2 %v6089_v61  ;;  %1231 = vmatpush.msrb.mxu0 %v6094_v62 }
 0x278   :  { %1063 = vmatpush.msrb.mxu1 %v6116_v4 }
 0x279   :  { %1396 = vmatpush.msrb.mxu2 %v6108_v2  ;;  %1232 = vmatpush.msrb.mxu0 %v6116_v4 }
 0x27a   :  { %1064 = vmatpush.msrb.mxu1 %v6132_v18 }
 0x27b   :  { %1397 = vmatpush.msrb.mxu2 %v6126_v6  ;;  %1233 = vmatpush.msrb.mxu0 %v6132_v18 }
 0x27c   :  { %1065 = vmatpush.msrb.mxu1 %v6150_v7 }
 0x27d   :  { %1398 = vmatpush.msrb.mxu2 %v6137_v26  ;;  %1234 = vmatpush.msrb.mxu0 %v6150_v7  ;;  %v5099_v26 = vld [vmem:[%s8389_s28] sm:$0x3] }
 0x27e   :  { %1066 = vmatpush.msrb.mxu1 %v6169_v38  ;;  %vm1123_vm9 = vcmp.gt.s32.totalorder %v5099_v26, 4  ;;  %vm1304_vm10 = vcmp.gt.s32.totalorder %v5099_v26, 5  ;;  %vm1844_vm1 = vcmp.gt.s32.totalorder %v5099_v26, 8  ;;  %vm2393_vm5 = vcmp.gt.s32.totalorder %v5099_v26, 11 }
 0x27f   :  { %1399 = vmatpush.msrb.mxu2 %v6161_v33  ;;  %1235 = vmatpush.msrb.mxu0 %v6169_v38  ;;  %v8401_v33 = vmov 0  }
 0x280   :  { %1364 = vmatpush.msra.mxu1 %v5904_v21  ;;  %v1124_v43 = vsel %vm1123_vm9, 1, %v8401_v33  ;;  %v1305_v63 = vsel %vm1304_vm10, 1, %v8401_v33 }
 0x281   :  { %1126 = vperm.xlu2 %4835, %v1124_v43  }
 0x282   :  { %1365 = vmatpush.msra.mxu1 %v5916_v24 }
 0x284   :  { %1366 = vmatpush.msra.mxu1 %v5934_v35 }
 0x286   :  { %1367 = vmatpush.msra.mxu1 %v5942_v27 }
 0x288   :  { %1368 = vmatpush.msra.mxu1 %v5955_v28 }
 0x289   :  { %1307 = vperm.xlu2 %4835, %v1305_v63   ;;  %v8403_v63 = vld [vmem:[#allocation17_spill] sm:$0xff] }
 0x28a   :  { %1369 = vmatpush.msra.mxu1 %v5968_v30  ;;  %v1845_v30 = vsel %vm1844_vm1, 1, %v8401_v33 }
 0x28c   :  { %1370 = vmatpush.msra.mxu1 %v5992_v36 }
 0x28e   :  { %1371 = vmatpush.msra.mxu1 %v6006_v40  ;;  %v947_v40 = vrot.slane %v6234_v56, 2 }
 0x290   :  { %1372 = vmatpush.msra.mxu1 %v6026_v44 }
 0x291   :  { %1847 = vperm.xlu2 %4835, %v1845_v30  }
 0x292   :  { %1373 = vmatpush.msra.mxu1 %v6045_v50  ;;  %v955_v50 = vpop.permute.xlu1 %954 }
 0x293   :  { %vm956_vm7 = vcmp.eq.s32.totalorder %v955_v50, 1 }
 0x294   :  { %1374 = vmatpush.msra.mxu1 %v6069_v57  ;;  %v5100_v57 = vld [vmem:[%s8391_s14] sm:$0x3] }
 0x295   :  { %vm2915_vm6 = vcmp.gt.s32.totalorder %v5100_v57, 1 }
 0x296   :  { %1375 = vmatpush.msra.mxu1 %v6084_v60 }
 0x298   :  { %1376 = vmatpush.msra.mxu1 %v6103_v0  ;;  %v2916_v0 = vsel %vm2915_vm6, 1, %v8401_v33 }
 0x29a   :  { %1377 = vmatpush.msra.mxu1 %v6121_v5  ;;  %v8402_v5 = vld [vmem:[#allocation14_spill] sm:$0xff] }
 0x29c   :  { %1378 = vmatpush.msra.mxu1 %v6142_v19 }
 0x29e   :  { %1379 = vmatpush.msra.mxu1 %v6156_v20 }
 0x2db   :  { %v1127_v30 = vpop.permute.xlu2 %1126 }
 0x2dc   :  { %v844_v29 = vpop.f32.mrf.mxu0  ;;  %v864_v31 = vpop.f32.mrf.mxu1  ;;  %vm1128_vm1 = vcmp.eq.s32.totalorder %v1127_v30, 1  ;;  %v6448_v30 = vld [vmem:[%s8387_s2 + $0x120] sm:$0xff] }
 0x2dd   :  { %v888_v34 = vrot.slane %v844_v29, 2  ;;  %v911_v41 = vrot.slane %v864_v31, 2 }
 0x2df   :  { %v890_v45 = vadd.f32 %v888_v34, %v5846_v23  ;;  %v913_v51 = vadd.f32 %v911_v41, %v5843_v17 }
 0x2e1   :  { %v4761_v55 = vmul.f32 -1.442695, %v890_v45  ;;  %v4762_v61 = vmul.f32 -1.442695, %v913_v51 }
 0x2e3   :  { %4889 = vpow2.f32 %v4761_v55  ;;  %v884_v9 = vpop.f32.mrf.mxu2 }
 0x2e4   :  { %4891 = vpow2.f32 %v4762_v61  ;;  %v937_v49 = vadd.f32 %v4839_v16, %v884_v9  ;;  %v4840_v16 = vld [vmem:[%s8396_s10] ss:$0 sm:$0xff] }
 0x2e6   :  { %v939_v29 = vrot.slane %v937_v49, 2 }
 0x2e9   :  { %v4890_v17 = vpop.eup %4889 }
 0x2ea   :  { %v4892_v23 = vpop.eup %4891  ;;  %v894_v2 = vadd.f32 1.0, %v4890_v17  ;;  %v2394_v17 = vsel %vm2393_vm5, 1, %v8401_v33 }
 0x2eb   :  { %v917_v6 = vadd.f32 1.0, %v4892_v23  ;;  %2396 = vperm.xlu2 %4835, %v2394_v17  }
 0x2ec   :  { %4893 = vrcp.f32 %v894_v2  ;;  %v906_v21 = vand.u32 2147483648, %v894_v2  ;;  %v904_v59 = vand.u32 2147483647, %v894_v2  ;;  %vm900_vm12 = vweird.f32 %v894_v2 }
 0x2ed   :  { %4895 = vrcp.f32 %v917_v6  ;;  %v929_v34 = vand.u32 2147483648, %v917_v6  ;;  %vm923_vm2 = vweird.f32 %v917_v6  ;;  %v927_v28 = vand.u32 2147483647, %v917_v6 }
 0x2ee   :  { %v907_v12 = vor.u32 1.1754944e-38, %v906_v21  ;;  %vm905_vm14 = vcmp.eq.f32.partialorder %v904_v59, 8.507059e+37 }
 0x2ef   :  { %v930_v55 = vor.u32 1.1754944e-38, %v929_v34  ;;  %vm928_vm4 = vcmp.eq.f32.partialorder %v927_v28, 8.507059e+37 }
 0x2f2   :  { %v4894_v13 = vpop.eup %4893 }
 0x2f3   :  { %v4896_v46 = vpop.eup %4895  ;;  %v896_v10 = vmul.f32 %v4894_v13, %v894_v2  ;;  %vm901_vm11 = vweird.f32 %v4894_v13  ;;  %2918 = vperm.xlu2 %4835, %v2916_v0  }
 0x2f4   :  { %v919_v48 = vmul.f32 %v4896_v46, %v917_v6  ;;  %vm902_vm13 = vmor %vm900_vm12, %vm901_vm11  ;;  %vm924_vm15 = vweird.f32 %v4896_v46 }
 0x2f5   :  { %v897_v14 = vsub.f32 1.0, %v896_v10  ;;  %vm925_vm3 = vmor %vm923_vm2, %vm924_vm15 }
 0x2f6   :  { %v920_v8 = vsub.f32 1.0, %v919_v48 }
 0x2f7   :  { %v898_v54 = vmul.f32 %v4894_v13, %v897_v14 }
 0x2f8   :  { %v921_v3 = vmul.f32 %v4896_v46, %v920_v8 }
 0x2f9   :  { %v899_v24 = vadd.f32 %v4894_v13, %v898_v54 }
 0x2fa   :  { %v922_v31 = vadd.f32 %v4896_v46, %v921_v3  ;;  %v8404_v3 = vld [vmem:[#allocation18_spill] sm:$0xff] }
 0x2fb   :  { %v903_v35 = vsel %vm902_vm13, %v4894_v13, %v899_v24  ;;  %v6379_v24 = vadd.f32 %v8404_v3, %v8403_v63  ;;  %v1308_v3 = vpop.permute.xlu2 %1307 }
 0x2fc   :  { %v908_v27 = vsel %vm905_vm14, %v907_v12, %v903_v35  ;;  %v926_v51 = vsel %vm925_vm3, %v4896_v46, %v922_v31 }
 0x2fd   :  { %v941_v41 = vmul.f32 %v939_v29, %v908_v27  ;;  %v931_v36 = vsel %vm928_vm4, %v930_v55, %v926_v51 }
 0x2fe   :  { %v944_v61 = vsub.f32 1.0, %v931_v36  ;;  %v949_v44 = vmul.f32 %v947_v40, %v931_v36 }
 0x2ff   :  { %v942_v45 = vadd.f32 %v941_v41, %v5855_v53 }
 0x301   :  { %4897 = vtanh.f32 %v942_v45 }
 0x307   :  { %v4898_v53 = vpop.eup %4897 }
 0x308   :  { %v945_v23 = vmul.f32 %v4898_v53, %v944_v61 }
 0x30a   :  { %v950_v2 = vadd.f32 %v949_v44, %v945_v23 }
 0x30c   :  { %v958_v6 = vrot.slane %v950_v2, 6 }
 0x30e   :  { %v6349_v60 = vsel %vm956_vm7, %v958_v6, %v6234_v56  ;;  %v961_v26 = vsel %vm956_vm7, %v958_v6, 0.0 }
 0x30f   :  { %962 = vst [vmem:[#allocation2 + $0x6] sm:$0x3] %v961_v26  ;;  %1027 = vmatmul.f32.vlgmr.msra.gmra.mxu3 %v6349_v60  ;;  %1047 = vmatmul.f32.vlgmr.msra.gmra.mxu0 %v6349_v60  ;;  %v4841_v26 = vld [vmem:[%s8396_s10] ss:$0 sm:$0xff] }
 0x310   :  { %1067 = vmatmul.f32.vlgmr.msrb.gmra.mxu1 %v6349_v60  ;;  %1404 = vmatpush.msra.mxu3 %v6262_v15 }
 0x312   :  { %1405 = vmatpush.msra.mxu3 %v6269_v1 }
 0x314   :  { %1406 = vmatpush.msra.mxu3 %v6276_v22 }
 0x316   :  { %1407 = vmatpush.msra.mxu3 %v6283_v25 }
 0x318   :  { %1408 = vmatpush.msra.mxu3 %v6290_v39 }
 0x31a   :  { %1409 = vmatpush.msra.mxu3 %v5978_v32 }
 0x31c   :  { %1410 = vmatpush.msra.mxu3 %v5997_v37 }
 0x31e   :  { %1411 = vmatpush.msra.mxu3 %v6016_v42 }
 0x320   :  { %1412 = vmatpush.msra.mxu3 %v6036_v47 }
 0x322   :  { %1413 = vmatpush.msra.mxu3 %v6055_v52 }
 0x324   :  { %1414 = vmatpush.msra.mxu3 %v6074_v58 }
 0x326   :  { %1415 = vmatpush.msra.mxu3 %v6094_v62 }
 0x328   :  { %1416 = vmatpush.msra.mxu3 %v6116_v4 }
 0x32a   :  { %1417 = vmatpush.msra.mxu3 %v6132_v18 }
 0x32c   :  { %1418 = vmatpush.msra.mxu3 %v6150_v7 }
 0x32e   :  { %1419 = vmatpush.msra.mxu3 %v6169_v38 }
 0x38c   :  { %v1048_v32 = vpop.f32.mrf.mxu0 }
 0x38d   :  { %v1091_v37 = vadd.f32 %v1048_v32, %v5837_v11  ;;  %v1068_v10 = vpop.f32.mrf.mxu1 }
 0x38e   :  { %v1115_v21 = vadd.f32 %v4840_v16, %v1068_v10 }
 0x38f   :  { %v4764_v42 = vmul.f32 -1.442695, %v1091_v37 }
 0x391   :  { %4899 = vpow2.f32 %v4764_v42 }
 0x392   :  { %v1028_v47 = vpop.f32.mrf.mxu3 }
 0x393   :  { %v1071_v52 = vadd.f32 %v1028_v47, %v8402_v5 }
 0x395   :  { %v4763_v19 = vmul.f32 -1.442695, %v1071_v52 }
 0x397   :  { %v4900_v58 = vpop.eup %4899  ;;  %4901 = vpow2.f32 %v4763_v19 }
 0x398   :  { %v1095_v62 = vadd.f32 1.0, %v4900_v58 }
 0x39a   :  { %4903 = vrcp.f32 %v1095_v62  ;;  %v1107_v12 = vand.u32 2147483648, %v1095_v62  ;;  %vm1101_vm13 = vweird.f32 %v1095_v62  ;;  %v1105_v29 = vand.u32 2147483647, %v1095_v62 }
 0x39c   :  { %v1108_v34 = vor.u32 1.1754944e-38, %v1107_v12  ;;  %vm1106_vm15 = vcmp.eq.f32.partialorder %v1105_v29, 8.507059e+37 }
 0x39d   :  { %v4902_v4 = vpop.eup %4901 }
 0x39e   :  { %v1075_v20 = vadd.f32 1.0, %v4902_v4 }
 0x3a0   :  { %4905 = vrcp.f32 %v1075_v20  ;;  %v4904_v18 = vpop.eup %4903  ;;  %v1087_v13 = vand.u32 2147483648, %v1075_v20  ;;  %v1085_v9 = vand.u32 2147483647, %v1075_v20  ;;  %vm1081_vm9 = vweird.f32 %v1075_v20 }
 0x3a1   :  { %v1097_v7 = vmul.f32 %v4904_v18, %v1095_v62  ;;  %vm1102_vm12 = vweird.f32 %v4904_v18 }
 0x3a2   :  { %v1088_v8 = vor.u32 1.1754944e-38, %v1087_v13  ;;  %vm1086_vm11 = vcmp.eq.f32.partialorder %v1085_v9, 8.507059e+37  ;;  %vm1103_vm14 = vmor %vm1101_vm13, %vm1102_vm12 }
 0x3a3   :  { %v1098_v33 = vsub.f32 1.0, %v1097_v7 }
 0x3a5   :  { %v1099_v48 = vmul.f32 %v4904_v18, %v1098_v33 }
 0x3a6   :  { %v4906_v56 = vpop.eup %4905 }
 0x3a7   :  { %v1077_v38 = vmul.f32 %v4906_v56, %v1075_v20  ;;  %vm1082_vm8 = vweird.f32 %v4906_v56  ;;  %v1100_v59 = vadd.f32 %v4904_v18, %v1099_v48 }
 0x3a8   :  { %vm1083_vm10 = vmor %vm1081_vm9, %vm1082_vm8 }
 0x3a9   :  { %v1078_v43 = vsub.f32 1.0, %v1077_v38  ;;  %v1104_v31 = vsel %vm1103_vm14, %v4904_v18, %v1100_v59 }
 0x3aa   :  { %v1109_v41 = vsel %vm1106_vm15, %v1108_v34, %v1104_v31  ;;  %v6415_v31 = vld [vmem:[%s8387_s2 + $0x170] sm:$0xff] }
 0x3ab   :  { %v1079_v46 = vmul.f32 %v4906_v56, %v1078_v43  ;;  %v1119_v28 = vsub.f32 1.0, %v1109_v41  ;;  %v1121_v55 = vmul.f32 %v1109_v41, %v6349_v60  ;;  %1568 = vmatpush.msrb.mxu1 %v6415_v31  ;;  %v6422_v34 = vld [vmem:[%s8387_s2 + $0x150] sm:$0xff]  ;;  %v6427_v41 = vld [vmem:[%s8387_s2 + $0x158] sm:$0xff] }
 0x3ad   :  { %v1080_v14 = vadd.f32 %v4906_v56, %v1079_v46  ;;  %1569 = vmatpush.msrb.mxu1 %v6427_v41 }
 0x3af   :  { %v1084_v49 = vsel %vm1083_vm10, %v4906_v56, %v1080_v14  ;;  %vm1309_vm10 = vcmp.eq.s32.totalorder %v1308_v3, 1 }
 0x3b0   :  { %v1089_v54 = vsel %vm1086_vm11, %v1088_v8, %v1084_v49 }
 0x3b1   :  { %v1116_v35 = vmul.f32 %v1115_v21, %v1089_v54 }
 0x3b3   :  { %v1117_v27 = vadd.f32 %v1116_v35, %v6379_v24 }
 0x3b5   :  { %4907 = vtanh.f32 %v1117_v27  ;;  %v6410_v27 = vld [vmem:[%s8387_s2 + $0x168] sm:$0xff] }
 0x3b6   :  { %1548 = vmatpush.msra.mxu0 %v6410_v27 }
 0x3b8   :  { %1549 = vmatpush.msra.mxu0 %v6422_v34 }
 0x3bb   :  { %v4908_v45 = vpop.eup %4907 }
 0x3bc   :  { %v1120_v51 = vmul.f32 %v4908_v45, %v1119_v28  ;;  %v6435_v28 = vld [vmem:[%s8387_s2 + $0x138] sm:$0xff]  ;;  %v6440_v45 = vld [vmem:[%s8387_s2 + $0x140] sm:$0xff] }
 0x3bd   :  { %1550 = vmatpush.msra.mxu0 %v6435_v28  ;;  %1570 = vmatpush.msrb.mxu1 %v6440_v45 }
 0x3be   :  { %v1122_v36 = vadd.f32 %v1121_v55, %v1120_v51  ;;  %v6453_v51 = vld [vmem:[%s8387_s2 + $0x128] sm:$0xff] }
 0x3bf   :  { %1551 = vmatpush.msra.mxu0 %v6448_v30  ;;  %1571 = vmatpush.msrb.mxu1 %v6453_v51  ;;  %v6461_v55 = vld [vmem:[%s8387_s2 + $0x108] sm:$0xff] }
 0x3c0   :  { %v6384_v40 = vsel %vm1128_vm1, %v1122_v36, %v6349_v60  ;;  %v1130_v61 = vsel %vm1128_vm1, %v1122_v36, 0.0  ;;  %v6466_v36 = vld [vmem:[%s8387_s2 + $0x110] sm:$0xff] }
 0x3c1   :  { %1131 = vst [vmem:[#allocation2 + $0x8] sm:$0x3] %v1130_v61  ;;  %1196 = vmatmul.f32.vlgmr.msra.gmra.mxu2 %v6384_v40  ;;  %1216 = vmatmul.f32.vlgmr.msrb.gmra.mxu3 %v6384_v40  ;;  %v1300_v14 = vrot.slane %v6384_v40, 6  ;;  %v6479_v61 = vld [vmem:[%s8387_s2 + $0xf8] sm:$0xff] }
 0x3c2   :  { %1236 = vmatmul.f32.vlgmr.msrb.gmra.mxu0 %v6384_v40  ;;  %1588 = vmatpush.msra.mxu2 %v6262_v15 }
 0x3c3   :  { %1732 = vmatpush.msrb.mxu3 %v6410_v27  ;;  %1552 = vmatpush.msra.mxu0 %v6461_v55 }
 0x3c4   :  { %1589 = vmatpush.msra.mxu2 %v6269_v1  ;;  %1572 = vmatpush.msrb.mxu1 %v6466_v36 }
 0x3c5   :  { %1733 = vmatpush.msrb.mxu3 %v6422_v34 }
 0x3c6   :  { %1590 = vmatpush.msra.mxu2 %v6276_v22  ;;  %1573 = vmatpush.msrb.mxu1 %v6479_v61 }
 0x3c7   :  { %1734 = vmatpush.msrb.mxu3 %v6435_v28 }
 0x3c8   :  { %1591 = vmatpush.msra.mxu2 %v6283_v25 }
 0x3c9   :  { %1735 = vmatpush.msrb.mxu3 %v6448_v30 }
 0x3ca   :  { %1592 = vmatpush.msra.mxu2 %v6290_v39 }
 0x3cb   :  { %1736 = vmatpush.msrb.mxu3 %v6461_v55 }
 0x43f   :  { %v1237_v32 = vpop.f32.mrf.mxu0 }
 0x440   :  { %v1290_v19 = vadd.f32 %v4841_v26, %v1237_v32  ;;  %v6556_v32 = vld [vmem:[%s8387_s2 + $0x98] sm:$0xff] }
 0x442   :  { %v1292_v7 = vrot.slane %v1290_v19, 6  ;;  %v6580_v19 = vld [vmem:[%s8387_s2 + $0x88] sm:$0xff] }
 0x444   :  { %v1197_v53 = vpop.f32.mrf.mxu2  ;;  %v1217_v17 = vpop.f32.mrf.mxu3 }
 0x445   :  { %v1241_v23 = vrot.slane %v1197_v53, 6  ;;  %v1264_v44 = vrot.slane %v1217_v17, 6  ;;  %v6484_v53 = vld [vmem:[%s8387_s2 + $0x100] sm:$0xff] }
 0x446   :  { %1593 = vmatpush.msra.mxu2 %v6484_v53 }
 0x447   :  { %v1243_v2 = vadd.f32 %v1241_v23, %v8402_v5  ;;  %v1266_v50 = vadd.f32 %v1264_v44, %v5837_v11  ;;  %v6493_v23 = vld [vmem:[%s8387_s2 + $0xd8] sm:$0xff]  ;;  %v6498_v44 = vld [vmem:[%s8387_s2 + $0xe0] sm:$0xff] }
 0x448   :  { %1574 = vmatpush.msrb.mxu1 %v6498_v44 }
 0x449   :  { %v4765_v6 = vmul.f32 -1.442695, %v1243_v2  ;;  %v4766_v57 = vmul.f32 -1.442695, %v1266_v50  ;;  %v6503_v2 = vld [vmem:[%s8387_s2 + $0xe8] sm:$0xff] }
 0x44a   :  { %1594 = vmatpush.msra.mxu2 %v6503_v2 }
 0x44b   :  { %4909 = vpow2.f32 %v4765_v6  ;;  %v6512_v6 = vld [vmem:[%s8387_s2 + $0xc0] sm:$0xff] }
 0x44c   :  { %4911 = vpow2.f32 %v4766_v57  ;;  %v6517_v57 = vld [vmem:[%s8387_s2 + $0xc8] sm:$0xff] }
 0x44d   :  { %1575 = vmatpush.msrb.mxu1 %v6517_v57 }
 0x451   :  { %v4910_v15 = vpop.eup %4909 }
 0x452   :  { %v4912_v1 = vpop.eup %4911  ;;  %v1247_v60 = vadd.f32 1.0, %v4910_v15  ;;  %v6522_v15 = vld [vmem:[%s8387_s2 + $0xd0] sm:$0xff] }
 0x453   :  { %v1270_v22 = vadd.f32 1.0, %v4912_v1  ;;  %1595 = vmatpush.msra.mxu2 %v6522_v15 }
 0x454   :  { %4913 = vrcp.f32 %v1247_v60  ;;  %v1259_v47 = vand.u32 2147483648, %v1247_v60  ;;  %v1257_v62 = vand.u32 2147483647, %v1247_v60  ;;  %vm1253_vm3 = vweird.f32 %v1247_v60 }
 0x455   :  { %4915 = vrcp.f32 %v1270_v22  ;;  %v1282_v13 = vand.u32 2147483648, %v1270_v22  ;;  %vm1276_vm7 = vweird.f32 %v1270_v22  ;;  %v1280_v16 = vand.u32 2147483647, %v1270_v22 }
 0x456   :  { %v1260_v18 = vor.u32 1.1754944e-38, %v1259_v47  ;;  %vm1258_vm5 = vcmp.eq.f32.partialorder %v1257_v62, 8.507059e+37  ;;  %v6570_v47 = vld [vmem:[%s8387_s2 + $0x78] sm:$0xff]  ;;  %v6590_v62 = vld [vmem:[%s8387_s2 + $0x60] sm:$0xff] }
 0x457   :  { %v1283_v10 = vor.u32 1.1754944e-38, %v1282_v13  ;;  %vm1281_vm9 = vcmp.eq.f32.partialorder %v1280_v16, 8.507059e+37  ;;  %v6632_v13 = vld [vmem:[%s8387_s2 + $0x38] sm:$0xff]  ;;  %v6637_v16 = vld [vmem:[%s8387_s2 + $0x40] sm:$0xff] }
 0x45a   :  { %v4914_v25 = vpop.eup %4913 }
 0x45b   :  { %v4916_v39 = vpop.eup %4915  ;;  %v1249_v0 = vmul.f32 %v4914_v25, %v1247_v60  ;;  %vm1254_vm2 = vweird.f32 %v4914_v25  ;;  %v6532_v60 = vld [vmem:[%s8387_s2 + $0xa8] sm:$0xff] }
 0x45c   :  { %v1272_v37 = vmul.f32 %v4916_v39, %v1270_v22  ;;  %vm1255_vm4 = vmor %vm1253_vm3, %vm1254_vm2  ;;  %vm1277_vm6 = vweird.f32 %v4916_v39  ;;  %v6537_v22 = vld [vmem:[%s8387_s2 + $0xb0] sm:$0xff] }
 0x45d   :  { %v1250_v42 = vsub.f32 1.0, %v1249_v0  ;;  %vm1278_vm8 = vmor %vm1276_vm7, %vm1277_vm6  ;;  %1576 = vmatpush.msrb.mxu1 %v6537_v22  ;;  %v6551_v0 = vld [vmem:[%s8387_s2 + $0x90] sm:$0xff] }
 0x45e   :  { %v1273_v52 = vsub.f32 1.0, %v1272_v37  ;;  %v6561_v37 = vld [vmem:[%s8387_s2 + $0xa0] sm:$0xff] }
 0x45f   :  { %v1251_v58 = vmul.f32 %v4914_v25, %v1250_v42  ;;  %1577 = vmatpush.msrb.mxu1 %v6556_v32 }
 0x460   :  { %v1274_v4 = vmul.f32 %v4916_v39, %v1273_v52  ;;  %v6575_v52 = vld [vmem:[%s8387_s2 + $0x80] sm:$0xff] }
 0x461   :  { %v1252_v20 = vadd.f32 %v4914_v25, %v1251_v58  ;;  %1578 = vmatpush.msrb.mxu1 %v6575_v52 }
 0x462   :  { %v1275_v33 = vadd.f32 %v4916_v39, %v1274_v4  ;;  %v6595_v4 = vld [vmem:[%s8387_s2 + $0x68] sm:$0xff] }
 0x463   :  { %v1256_v56 = vsel %vm1255_vm4, %v4914_v25, %v1252_v20  ;;  %v6542_v25 = vld [vmem:[%s8387_s2 + $0xb8] sm:$0xff]  ;;  %v6600_v20 = vld [vmem:[%s8387_s2 + $0x70] sm:$0xff]  ;;  %1579 = vmatpush.msrb.mxu1 %v6595_v4 }
 0x464   :  { %v1261_v38 = vsel %vm1258_vm5, %v1260_v18, %v1256_v56  ;;  %v1279_v9 = vsel %vm1278_vm8, %v4916_v39, %v1275_v33  ;;  %1596 = vmatpush.msra.mxu2 %v6542_v25  ;;  %v6614_v56 = vld [vmem:[%s8387_s2 + $0x50] sm:$0xff] }
 0x465   :  { %v1294_v43 = vmul.f32 %v1292_v7, %v1261_v38  ;;  %v1284_v48 = vsel %vm1281_vm9, %v1283_v10, %v1279_v9  ;;  %v6609_v7 = vld [vmem:[%s8387_s2 + $0x48] sm:$0xff]  ;;  %v6619_v38 = vld [vmem:[%s8387_s2 + $0x58] sm:$0xff]  ;;  %1580 = vmatpush.msrb.mxu1 %v6614_v56  ;;  %v6648_v10 = vld [vmem:[%s8387_s2 + $0x20] sm:$0xff] }
 0x466   :  { %v1297_v8 = vsub.f32 1.0, %v1284_v48  ;;  %v1302_v54 = vmul.f32 %v1300_v14, %v1284_v48  ;;  %1597 = vmatpush.msra.mxu2 %v6561_v37  ;;  %v6643_v9 = vld [vmem:[%s8387_s2 + $0x18] sm:$0xff]  ;;  %v6656_v48 = vld [vmem:[%s8387_s2 + $0x28] sm:$0xff]  ;;  %v6662_v14 = vld [vmem:[%s8387_s2] sm:$0xff] }
 0x467   :  { %v1295_v46 = vadd.f32 %v1294_v43, %v6379_v24  ;;  %v6627_v43 = vld [vmem:[%s8387_s2 + $0x30] sm:$0xff]  ;;  %1581 = vmatpush.msrb.mxu1 %v6632_v13 }
 0x468   :  { %1598 = vmatpush.msra.mxu2 %v6580_v19 }
 0x469   :  { %4917 = vtanh.f32 %v1295_v46  ;;  %1582 = vmatpush.msrb.mxu1 %v6648_v10 }
 0x46a   :  { %1599 = vmatpush.msra.mxu2 %v6600_v20 }
 0x46c   :  { %1600 = vmatpush.msra.mxu2 %v6619_v38 }
 0x46e   :  { %1601 = vmatpush.msra.mxu2 %v6637_v16 }
 0x46f   :  { %v4918_v21 = vpop.eup %4917 }
 0x470   :  { %v1298_v49 = vmul.f32 %v4918_v21, %v1297_v8  ;;  %v6667_v8 = vld [vmem:[%s8387_s2 + $0x8] sm:$0xff]  ;;  %v6675_v21 = vld [vmem:[%s8387_s2 + $0x10] sm:$0xff]  ;;  %1602 = vmatpush.msra.mxu2 %v6656_v48 }
 0x471   :  { %1583 = vmatpush.msrb.mxu1 %v6667_v8 }
 0x472   :  { %v1303_v59 = vadd.f32 %v1302_v54, %v1298_v49  ;;  %1603 = vmatpush.msra.mxu2 %v6675_v21 }
 0x474   :  { %v1311_v12 = vrot.slane %v1303_v59, 2 }
 0x476   :  { %v6402_v35 = vsel %vm1309_vm10, %v1311_v12, %v6384_v40  ;;  %v1314_v29 = vsel %vm1309_vm10, %v1311_v12, 0.0  ;;  %v6474_v40 = vld [vmem:[%s8387_s2 + $0xf0] sm:$0xff]  ;;  %v4842_v12 = vld [vmem:[%s8396_s10] ss:$0 sm:$0xff] }
 0x477   :  { %1315 = vst [vmem:[#allocation2 + $0xa] sm:$0x3] %v1314_v29  ;;  %1380 = vmatmul.f32.vlgmr.msra.gmra.mxu1 %v6402_v35  ;;  %1400 = vmatmul.f32.vlgmr.msrb.gmra.mxu2 %v6402_v35 }
 0x478   :  { %1420 = vmatmul.f32.vlgmr.msra.gmra.mxu3 %v6402_v35  ;;  %1553 = vmatpush.msra.mxu0 %v6474_v40 }
 0x479   :  { %1737 = vmatpush.msrb.mxu3 %v6474_v40  ;;  %1901 = vmatpush.msrb.mxu2 %v6410_v27 }
 0x47a   :  { %1554 = vmatpush.msra.mxu0 %v6493_v23 }
 0x47b   :  { %1738 = vmatpush.msrb.mxu3 %v6493_v23  ;;  %1902 = vmatpush.msrb.mxu2 %v6422_v34 }
 0x47c   :  { %1555 = vmatpush.msra.mxu0 %v6512_v6 }
 0x47d   :  { %1739 = vmatpush.msrb.mxu3 %v6512_v6  ;;  %1903 = vmatpush.msrb.mxu2 %v6435_v28 }
 0x47e   :  { %1556 = vmatpush.msra.mxu0 %v6532_v60 }
 0x47f   :  { %1740 = vmatpush.msrb.mxu3 %v6532_v60  ;;  %1904 = vmatpush.msrb.mxu2 %v6448_v30 }
 0x480   :  { %1557 = vmatpush.msra.mxu0 %v6551_v0 }
 0x481   :  { %1741 = vmatpush.msrb.mxu3 %v6551_v0  ;;  %1905 = vmatpush.msrb.mxu2 %v6461_v55 }
 0x482   :  { %1558 = vmatpush.msra.mxu0 %v6570_v47 }
 0x483   :  { %1742 = vmatpush.msrb.mxu3 %v6570_v47  ;;  %1906 = vmatpush.msrb.mxu2 %v6474_v40 }
 0x484   :  { %1559 = vmatpush.msra.mxu0 %v6590_v62 }
 0x485   :  { %1743 = vmatpush.msrb.mxu3 %v6590_v62  ;;  %1907 = vmatpush.msrb.mxu2 %v6493_v23 }
 0x486   :  { %1560 = vmatpush.msra.mxu0 %v6609_v7 }
 0x487   :  { %1744 = vmatpush.msrb.mxu3 %v6609_v7  ;;  %1908 = vmatpush.msrb.mxu2 %v6512_v6 }
 0x488   :  { %1561 = vmatpush.msra.mxu0 %v6627_v43 }
 0x489   :  { %1745 = vmatpush.msrb.mxu3 %v6627_v43  ;;  %1909 = vmatpush.msrb.mxu2 %v6532_v60 }
 0x48a   :  { %1562 = vmatpush.msra.mxu0 %v6643_v9 }
 0x48b   :  { %1746 = vmatpush.msrb.mxu3 %v6643_v9  ;;  %1910 = vmatpush.msrb.mxu2 %v6551_v0 }
 0x48c   :  { %1563 = vmatpush.msra.mxu0 %v6662_v14 }
 0x48d   :  { %1747 = vmatpush.msrb.mxu3 %v6662_v14  ;;  %1911 = vmatpush.msrb.mxu2 %v6570_v47 }
 0x48e   :  { %1752 = vmatpush.msrb.mxu0 %v6415_v31 }
 0x48f   :  { %1921 = vmatpush.msra.mxu3 %v6415_v31  ;;  %1912 = vmatpush.msrb.mxu2 %v6590_v62 }
 0x490   :  { %1753 = vmatpush.msrb.mxu0 %v6427_v41 }
 0x491   :  { %1922 = vmatpush.msra.mxu3 %v6427_v41  ;;  %1913 = vmatpush.msrb.mxu2 %v6609_v7 }
 0x492   :  { %1754 = vmatpush.msrb.mxu0 %v6440_v45 }
 0x493   :  { %1923 = vmatpush.msra.mxu3 %v6440_v45  ;;  %1914 = vmatpush.msrb.mxu2 %v6627_v43 }
 0x494   :  { %1755 = vmatpush.msrb.mxu0 %v6453_v51 }
 0x495   :  { %1924 = vmatpush.msra.mxu3 %v6453_v51  ;;  %1915 = vmatpush.msrb.mxu2 %v6643_v9 }
 0x496   :  { %1756 = vmatpush.msrb.mxu0 %v6466_v36 }
 0x497   :  { %1925 = vmatpush.msra.mxu3 %v6466_v36  ;;  %1916 = vmatpush.msrb.mxu2 %v6662_v14 }
 0x498   :  { %1757 = vmatpush.msrb.mxu0 %v6479_v61 }
 0x499   :  { %1926 = vmatpush.msra.mxu3 %v6479_v61 }
 0x49a   :  { %1758 = vmatpush.msrb.mxu0 %v6498_v44 }
 0x49b   :  { %1927 = vmatpush.msra.mxu3 %v6498_v44 }
 0x49c   :  { %1759 = vmatpush.msrb.mxu0 %v6517_v57 }
 0x49d   :  { %1928 = vmatpush.msra.mxu3 %v6517_v57 }
 0x49e   :  { %1760 = vmatpush.msrb.mxu0 %v6537_v22 }
 0x49f   :  { %1929 = vmatpush.msra.mxu3 %v6537_v22 }
 0x4a0   :  { %1761 = vmatpush.msrb.mxu0 %v6556_v32 }
 0x4a1   :  { %1930 = vmatpush.msra.mxu3 %v6556_v32 }
 0x4a2   :  { %1762 = vmatpush.msrb.mxu0 %v6575_v52 }
 0x4a3   :  { %1931 = vmatpush.msra.mxu3 %v6575_v52 }
 0x4a4   :  { %1763 = vmatpush.msrb.mxu0 %v6595_v4 }
 0x4a5   :  { %1932 = vmatpush.msra.mxu3 %v6595_v4 }
 0x4a6   :  { %1764 = vmatpush.msrb.mxu0 %v6614_v56 }
 0x4a7   :  { %1933 = vmatpush.msra.mxu3 %v6614_v56 }
 0x4a8   :  { %1765 = vmatpush.msrb.mxu0 %v6632_v13 }
 0x4a9   :  { %1934 = vmatpush.msra.mxu3 %v6632_v13 }
 0x4aa   :  { %1766 = vmatpush.msrb.mxu0 %v6648_v10 }
 0x4ab   :  { %1935 = vmatpush.msra.mxu3 %v6648_v10 }
 0x4ac   :  { %1767 = vmatpush.msrb.mxu0 %v6667_v8 }
 0x4ad   :  { %1936 = vmatpush.msra.mxu3 %v6667_v8 }
 0x4f4   :  { %v1381_v17 = vpop.f32.mrf.mxu1 }
 0x4f5   :  { %v1425_v50 = vrot.slane %v1381_v17, 4 }
 0x4f7   :  { %v1427_v1 = vadd.f32 %v1425_v50, %v8402_v5 }
 0x4f9   :  { %v4767_v39 = vmul.f32 -1.442695, %v1427_v1 }
 0x4fa   :  { %v1401_v26 = vpop.f32.mrf.mxu2 }
 0x4fb   :  { %4919 = vpow2.f32 %v4767_v39  ;;  %v1448_v42 = vrot.slane %v1401_v26, 4  ;;  %v1421_v29 = vpop.f32.mrf.mxu3 }
 0x4fc   :  { %v1474_v26 = vadd.f32 %v4842_v12, %v1421_v29 }
 0x4fd   :  { %v1450_v58 = vadd.f32 %v1448_v42, %v5837_v11 }
 0x4fe   :  { %v1476_v12 = vrot.slane %v1474_v26, 4 }
 0x4ff   :  { %v4768_v18 = vmul.f32 -1.442695, %v1450_v58 }
 0x501   :  { %v4920_v33 = vpop.eup %4919  ;;  %4921 = vpow2.f32 %v4768_v18 }
 0x502   :  { %v1431_v46 = vadd.f32 1.0, %v4920_v33 }
 0x504   :  { %4923 = vrcp.f32 %v1431_v46  ;;  %v1443_v50 = vand.u32 2147483648, %v1431_v46  ;;  %v1441_v39 = vand.u32 2147483647, %v1431_v46  ;;  %vm1437_vm12 = vweird.f32 %v1431_v46 }
 0x506   :  { %v1444_v33 = vor.u32 1.1754944e-38, %v1443_v50  ;;  %vm1442_vm14 = vcmp.eq.f32.partialorder %v1441_v39, 8.507059e+37 }
 0x507   :  { %v4922_v49 = vpop.eup %4921 }
 0x508   :  { %v6681_v54 = vadd.f32 1.0, %v4922_v49 }
 0x50a   :  { %v4924_v59 = vpop.eup %4923  ;;  %4925 = vrcp.f32 %v6681_v54  ;;  %vm1460_vm1 = vweird.f32 %v6681_v54 }
 0x50b   :  { %v1433_v3 = vmul.f32 %v4924_v59, %v1431_v46  ;;  %vm1438_vm11 = vweird.f32 %v4924_v59 }
 0x50c   :  { %vm1439_vm13 = vmor %vm1437_vm12, %vm1438_vm11 }
 0x50d   :  { %v1434_v17 = vsub.f32 1.0, %v1433_v3 }
 0x50f   :  { %v1435_v1 = vmul.f32 %v4924_v59, %v1434_v17  ;;  %v1466_v17 = vand.u32 2147483648, %v6681_v54 }
 0x510   :  { %v4926_v42 = vpop.eup %4925 }
 0x511   :  { %v1456_v58 = vmul.f32 %v4926_v42, %v6681_v54  ;;  %v1436_v18 = vadd.f32 %v4924_v59, %v1435_v1  ;;  %vm1461_vm15 = vweird.f32 %v4926_v42  ;;  %v1464_v1 = vand.u32 2147483647, %v6681_v54 }
 0x512   :  { %vm1462_vm2 = vmor %vm1460_vm1, %vm1461_vm15  ;;  %v1467_v26 = vor.u32 1.1754944e-38, %v1466_v17 }
 0x513   :  { %v1457_v49 = vsub.f32 1.0, %v1456_v58  ;;  %v1440_v3 = vsel %vm1439_vm13, %v4924_v59, %v1436_v18  ;;  %vm1465_vm3 = vcmp.eq.f32.partialorder %v1464_v1, 8.507059e+37  ;;  %v1484_v18 = vrot.slane %v6402_v35, 4 }
 0x514   :  { %v1445_v29 = vsel %vm1442_vm14, %v1444_v33, %v1440_v3 }
 0x515   :  { %v1458_v46 = vmul.f32 %v4926_v42, %v1457_v49  ;;  %v1478_v50 = vmul.f32 %v1476_v12, %v1445_v29  ;;  %v1492_v29 = vpop.permute.xlu0 %1491 }
 0x516   :  { %vm1493_vm4 = vcmp.eq.s32.totalorder %v1492_v29, 1 }
 0x517   :  { %v1459_v59 = vadd.f32 %v4926_v42, %v1458_v46  ;;  %v1479_v39 = vadd.f32 %v1478_v50, %v6379_v24 }
 0x519   :  { %v1463_v58 = vsel %vm1462_vm2, %v4926_v42, %v1459_v59  ;;  %4927 = vtanh.f32 %v1479_v39  ;;  %v4843_v59 = vld [vmem:[%s8396_s10] ss:$0 sm:$0xff] }
 0x51a   :  { %v1468_v54 = vsel %vm1465_vm3, %v1467_v26, %v1463_v58 }
 0x51b   :  { %v1481_v42 = vsub.f32 1.0, %v1468_v54  ;;  %v1486_v3 = vmul.f32 %v1484_v18, %v1468_v54 }
 0x51f   :  { %v4928_v33 = vpop.eup %4927 }
 0x520   :  { %v1482_v49 = vmul.f32 %v4928_v33, %v1481_v42 }
 0x522   :  { %v1487_v12 = vadd.f32 %v1486_v3, %v1482_v49 }
 0x524   :  { %v1495_v46 = vrot.slane %v1487_v12, 4 }
 0x526   :  { %v6740_v17 = vsel %vm1493_vm4, %v1495_v46, %v6402_v35  ;;  %v1498_v50 = vsel %vm1493_vm4, %v1495_v46, 0.0  ;;  %v6768_v35 = vld [vmem:[%s8387_s2 + $0x178] sm:$0xff] }
 0x527   :  { %1499 = vst [vmem:[#allocation2 + $0xc] sm:$0x3] %v1498_v50  ;;  %1564 = vmatmul.f32.vlgmr.msra.gmra.mxu0 %v6740_v17  ;;  %1584 = vmatmul.f32.vlgmr.msrb.gmra.mxu1 %v6740_v17 }
 0x528   :  { %1604 = vmatmul.f32.vlgmr.msra.gmra.mxu2 %v6740_v17  ;;  %1772 = vmatpush.msra.mxu1 %v6768_v35 }
 0x529   :  { %2105 = vmatpush.msra.mxu2 %v6415_v31  ;;  %1941 = vmatpush.msra.mxu0 %v6768_v35  ;;  %v6775_v31 = vld [vmem:[%s8387_s2 + $0x160] sm:$0xff] }
 0x52a   :  { %1773 = vmatpush.msra.mxu1 %v6775_v31 }
 0x52b   :  { %2106 = vmatpush.msra.mxu2 %v6427_v41  ;;  %1942 = vmatpush.msra.mxu0 %v6775_v31  ;;  %v6782_v41 = vld [vmem:[%s8387_s2 + $0x148] sm:$0xff] }
 0x52c   :  { %1774 = vmatpush.msra.mxu1 %v6782_v41 }
 0x52d   :  { %2107 = vmatpush.msra.mxu2 %v6440_v45  ;;  %1943 = vmatpush.msra.mxu0 %v6782_v41  ;;  %v6789_v45 = vld [vmem:[%s8387_s2 + $0x130] sm:$0xff] }
 0x52e   :  { %1775 = vmatpush.msra.mxu1 %v6789_v45 }
 0x52f   :  { %2108 = vmatpush.msra.mxu2 %v6453_v51  ;;  %1944 = vmatpush.msra.mxu0 %v6789_v45  ;;  %v6796_v51 = vld [vmem:[%s8387_s2 + $0x118] sm:$0xff] }
 0x530   :  { %1776 = vmatpush.msra.mxu1 %v6796_v51 }
 0x531   :  { %2109 = vmatpush.msra.mxu2 %v6466_v36  ;;  %1945 = vmatpush.msra.mxu0 %v6796_v51 }
 0x532   :  { %1777 = vmatpush.msra.mxu1 %v6484_v53 }
 0x533   :  { %2110 = vmatpush.msra.mxu2 %v6479_v61  ;;  %1946 = vmatpush.msra.mxu0 %v6484_v53 }
 0x534   :  { %1778 = vmatpush.msra.mxu1 %v6503_v2 }
 0x535   :  { %2111 = vmatpush.msra.mxu2 %v6498_v44  ;;  %1947 = vmatpush.msra.mxu0 %v6503_v2 }
 0x536   :  { %1779 = vmatpush.msra.mxu1 %v6522_v15 }
 0x537   :  { %2112 = vmatpush.msra.mxu2 %v6517_v57  ;;  %1948 = vmatpush.msra.mxu0 %v6522_v15 }
 0x538   :  { %1780 = vmatpush.msra.mxu1 %v6542_v25 }
 0x539   :  { %2113 = vmatpush.msra.mxu2 %v6537_v22  ;;  %1949 = vmatpush.msra.mxu0 %v6542_v25 }
 0x53a   :  { %1781 = vmatpush.msra.mxu1 %v6561_v37 }
 0x53b   :  { %2114 = vmatpush.msra.mxu2 %v6556_v32  ;;  %1950 = vmatpush.msra.mxu0 %v6561_v37 }
 0x53c   :  { %1782 = vmatpush.msra.mxu1 %v6580_v19 }
 0x53d   :  { %2115 = vmatpush.msra.mxu2 %v6575_v52  ;;  %1951 = vmatpush.msra.mxu0 %v6580_v19 }
 0x53e   :  { %1783 = vmatpush.msra.mxu1 %v6600_v20 }
 0x53f   :  { %2116 = vmatpush.msra.mxu2 %v6595_v4  ;;  %1952 = vmatpush.msra.mxu0 %v6600_v20 }
 0x540   :  { %1784 = vmatpush.msra.mxu1 %v6619_v38 }
 0x541   :  { %2117 = vmatpush.msra.mxu2 %v6614_v56  ;;  %1953 = vmatpush.msra.mxu0 %v6619_v38 }
 0x542   :  { %1785 = vmatpush.msra.mxu1 %v6637_v16 }
 0x543   :  { %2118 = vmatpush.msra.mxu2 %v6632_v13  ;;  %1954 = vmatpush.msra.mxu0 %v6637_v16 }
 0x544   :  { %1786 = vmatpush.msra.mxu1 %v6656_v48 }
 0x545   :  { %2119 = vmatpush.msra.mxu2 %v6648_v10  ;;  %1955 = vmatpush.msra.mxu0 %v6656_v48 }
 0x546   :  { %1787 = vmatpush.msra.mxu1 %v6675_v21 }
 0x547   :  { %2120 = vmatpush.msra.mxu2 %v6667_v8  ;;  %1956 = vmatpush.msra.mxu0 %v6675_v21 }
 0x548   :  { %2085 = vmatpush.msrb.mxu1 %v6410_v27 }
 0x54a   :  { %2086 = vmatpush.msrb.mxu1 %v6422_v34 }
 0x54c   :  { %2087 = vmatpush.msrb.mxu1 %v6435_v28 }
 0x54e   :  { %2088 = vmatpush.msrb.mxu1 %v6448_v30 }
 0x550   :  { %2089 = vmatpush.msrb.mxu1 %v6461_v55 }
 0x552   :  { %2090 = vmatpush.msrb.mxu1 %v6474_v40 }
 0x554   :  { %2091 = vmatpush.msrb.mxu1 %v6493_v23  ;;  %v1668_v23 = vrot.slane %v6740_v17, 2 }
 0x556   :  { %2092 = vmatpush.msrb.mxu1 %v6512_v6 }
 0x558   :  { %2093 = vmatpush.msrb.mxu1 %v6532_v60  ;;  %v1676_v60 = vpop.permute.xlu1 %1675 }
 0x559   :  { %vm1677_vm13 = vcmp.eq.s32.totalorder %v1676_v60, 1 }
 0x55a   :  { %2094 = vmatpush.msrb.mxu1 %v6551_v0 }
 0x55c   :  { %2095 = vmatpush.msrb.mxu1 %v6570_v47 }
 0x55e   :  { %2096 = vmatpush.msrb.mxu1 %v6590_v62 }
 0x560   :  { %2097 = vmatpush.msrb.mxu1 %v6609_v7  ;;  %v8406_v7 = vld [vmem:[#allocation15_spill] sm:$0xff] }
 0x562   :  { %2098 = vmatpush.msrb.mxu1 %v6627_v43 }
 0x564   :  { %2099 = vmatpush.msrb.mxu1 %v6643_v9 }
 0x566   :  { %2100 = vmatpush.msrb.mxu1 %v6662_v14 }
 0x5a4   :  { %v1565_v36 = vpop.f32.mrf.mxu0  ;;  %v1585_v61 = vpop.f32.mrf.mxu1 }
 0x5a5   :  { %v1609_v44 = vrot.slane %v1565_v36, 2  ;;  %v1632_v57 = vrot.slane %v1585_v61, 2 }
 0x5a7   :  { %v1611_v22 = vadd.f32 %v1609_v44, %v8402_v5  ;;  %v1634_v32 = vadd.f32 %v1632_v57, %v5837_v11 }
 0x5a9   :  { %v4769_v52 = vmul.f32 -1.442695, %v1611_v22  ;;  %v4770_v4 = vmul.f32 -1.442695, %v1634_v32 }
 0x5ab   :  { %4929 = vpow2.f32 %v4769_v52  ;;  %v1605_v26 = vpop.f32.mrf.mxu2 }
 0x5ac   :  { %4931 = vpow2.f32 %v4770_v4  ;;  %v1658_v33 = vadd.f32 %v4843_v59, %v1605_v26 }
 0x5ae   :  { %v1660_v28 = vrot.slane %v1658_v33, 2 }
 0x5b1   :  { %v4930_v11 = vpop.eup %4929 }
 0x5b2   :  { %v4932_v5 = vpop.eup %4931  ;;  %v1615_v56 = vadd.f32 1.0, %v4930_v11 }
 0x5b3   :  { %v1638_v13 = vadd.f32 1.0, %v4932_v5  ;;  %v4844_v5 = vld [vmem:[%s8396_s10] ss:$0 sm:$0xff] }
 0x5b4   :  { %4933 = vrcp.f32 %v1615_v56  ;;  %v1627_v18 = vand.u32 2147483648, %v1615_v56  ;;  %v1625_v27 = vand.u32 2147483647, %v1615_v56  ;;  %vm1621_vm6 = vweird.f32 %v1615_v56 }
 0x5b5   :  { %4935 = vrcp.f32 %v1638_v13  ;;  %v1650_v30 = vand.u32 2147483648, %v1638_v13  ;;  %vm1644_vm10 = vweird.f32 %v1638_v13  ;;  %v1648_v36 = vand.u32 2147483647, %v1638_v13 }
 0x5b6   :  { %v1628_v3 = vor.u32 1.1754944e-38, %v1627_v18  ;;  %vm1626_vm8 = vcmp.eq.f32.partialorder %v1625_v27, 8.507059e+37  ;;  %v8407_v18 = vld [vmem:[#allocation19_spill] sm:$0xff] }
 0x5b7   :  { %v1651_v40 = vor.u32 1.1754944e-38, %v1650_v30  ;;  %vm1649_vm12 = vcmp.eq.f32.partialorder %v1648_v36, 8.507059e+37  ;;  %v1848_v36 = vpop.permute.xlu2 %1847 }
 0x5ba   :  { %v4934_v10 = vpop.eup %4933 }
 0x5bb   :  { %v4936_v8 = vpop.eup %4935  ;;  %v1617_v1 = vmul.f32 %v4934_v10, %v1615_v56  ;;  %vm1622_vm5 = vweird.f32 %v4934_v10 }
 0x5bc   :  { %v1640_v39 = vmul.f32 %v4936_v8, %v1638_v13  ;;  %vm1623_vm7 = vmor %vm1621_vm6, %vm1622_vm5  ;;  %vm1645_vm9 = vweird.f32 %v4936_v8 }
 0x5bd   :  { %v1618_v58 = vsub.f32 1.0, %v1617_v1  ;;  %vm1646_vm11 = vmor %vm1644_vm10, %vm1645_vm9 }
 0x5be   :  { %v1641_v54 = vsub.f32 1.0, %v1640_v39 }
 0x5bf   :  { %v1619_v42 = vmul.f32 %v4934_v10, %v1618_v58 }
 0x5c0   :  { %v1642_v34 = vmul.f32 %v4936_v8, %v1641_v54 }
 0x5c1   :  { %v1620_v49 = vadd.f32 %v4934_v10, %v1619_v42  ;;  %v6874_v42 = vadd.f32 %v8407_v18, %v8403_v63 }
 0x5c2   :  { %v1643_v46 = vadd.f32 %v4936_v8, %v1642_v34 }
 0x5c3   :  { %v1624_v12 = vsel %vm1623_vm7, %v4934_v10, %v1620_v49  ;;  %vm1849_vm7 = vcmp.eq.s32.totalorder %v1848_v36, 1  ;;  %v2255_v36 = vld [vmem:[%s8387_s2 + $0x110] sm:$0xff] }
 0x5c4   :  { %v1629_v29 = vsel %vm1626_vm8, %v1628_v3, %v1624_v12  ;;  %v1647_v61 = vsel %vm1646_vm11, %v4936_v8, %v1643_v46 }
 0x5c5   :  { %v1662_v50 = vmul.f32 %v1660_v28, %v1629_v29  ;;  %v1652_v44 = vsel %vm1649_vm12, %v1651_v40, %v1647_v61 }
 0x5c6   :  { %v1665_v57 = vsub.f32 1.0, %v1652_v44  ;;  %v1670_v32 = vmul.f32 %v1668_v23, %v1652_v44 }
 0x5c7   :  { %v1663_v55 = vadd.f32 %v1662_v50, %v6379_v24 }
 0x5c9   :  { %4937 = vtanh.f32 %v1663_v55 }
 0x5cf   :  { %v4938_v6 = vpop.eup %4937 }
 0x5d0   :  { %v1666_v22 = vmul.f32 %v4938_v6, %v1665_v57 }
 0x5d2   :  { %v1671_v24 = vadd.f32 %v1670_v32, %v1666_v22 }
 0x5d4   :  { %v1679_v52 = vrot.slane %v1671_v24, 6 }
 0x5d6   :  { %v6845_v0 = vsel %vm1677_vm13, %v1679_v52, %v6740_v17  ;;  %v1682_v47 = vsel %vm1677_vm13, %v1679_v52, 0.0  ;;  %v4845_v52 = vld [vmem:[%s8396_s10] ss:$0 sm:$0xff] }
 0x5d7   :  { %1683 = vst [vmem:[#allocation2 + $0xe] sm:$0x3] %v1682_v47  ;;  %1748 = vmatmul.f32.vlgmr.msrb.gmra.mxu3 %v6845_v0  ;;  %1768 = vmatmul.f32.vlgmr.msrb.gmra.mxu0 %v6845_v0 }
 0x5d8   :  { %1788 = vmatmul.f32.vlgmr.msra.gmra.mxu1 %v6845_v0  ;;  %2125 = vmatpush.msrb.mxu3 %v6768_v35 }
 0x5da   :  { %2126 = vmatpush.msrb.mxu3 %v6775_v31 }
 0x5dc   :  { %2127 = vmatpush.msrb.mxu3 %v6782_v41 }
 0x5de   :  { %2128 = vmatpush.msrb.mxu3 %v6789_v45 }
 0x5e0   :  { %2129 = vmatpush.msrb.mxu3 %v6796_v51 }
 0x5e2   :  { %2130 = vmatpush.msrb.mxu3 %v6484_v53 }
 0x5e4   :  { %2131 = vmatpush.msrb.mxu3 %v6503_v2  ;;  %v8405_v2 = vld [vmem:[#allocation16_spill] sm:$0xff] }
 0x5e6   :  { %2132 = vmatpush.msrb.mxu3 %v6522_v15 }
 0x5e8   :  { %2133 = vmatpush.msrb.mxu3 %v6542_v25 }
 0x5ea   :  { %2134 = vmatpush.msrb.mxu3 %v6561_v37 }
 0x5ec   :  { %2135 = vmatpush.msrb.mxu3 %v6580_v19 }
 0x5ee   :  { %2136 = vmatpush.msrb.mxu3 %v6600_v20 }
 0x5f0   :  { %2137 = vmatpush.msrb.mxu3 %v6619_v38 }
 0x5f2   :  { %2138 = vmatpush.msrb.mxu3 %v6637_v16 }
 0x5f4   :  { %2139 = vmatpush.msrb.mxu3 %v6656_v48 }
 0x5f6   :  { %2140 = vmatpush.msrb.mxu3 %v6675_v21 }
 0x654   :  { %v1769_v53 = vpop.f32.mrf.mxu0 }
 0x655   :  { %v1812_v62 = vadd.f32 %v1769_v53, %v8405_v2  ;;  %v1789_v8 = vpop.f32.mrf.mxu1 }
 0x656   :  { %v1836_v39 = vadd.f32 %v4844_v5, %v1789_v8 }
 0x657   :  { %v4772_v15 = vmul.f32 -1.442695, %v1812_v62 }
 0x659   :  { %4939 = vpow2.f32 %v4772_v15 }
 0x65a   :  { %v1749_v25 = vpop.f32.mrf.mxu3 }
 0x65b   :  { %v1792_v37 = vadd.f32 %v1749_v25, %v8406_v7 }
 0x65d   :  { %v4771_v43 = vmul.f32 -1.442695, %v1792_v37 }
 0x65f   :  { %v4940_v19 = vpop.eup %4939  ;;  %4941 = vpow2.f32 %v4771_v43 }
 0x660   :  { %v1816_v20 = vadd.f32 1.0, %v4940_v19 }
 0x662   :  { %4943 = vrcp.f32 %v1816_v20  ;;  %v1828_v27 = vand.u32 2147483648, %v1816_v20  ;;  %vm1822_vm4 = vweird.f32 %v1816_v20  ;;  %v1826_v34 = vand.u32 2147483647, %v1816_v20 }
 0x664   :  { %v1829_v12 = vor.u32 1.1754944e-38, %v1828_v27  ;;  %vm1827_vm6 = vcmp.eq.f32.partialorder %v1826_v34, 8.507059e+37  ;;  %v2266_v34 = vld [vmem:[%s8387_s2 + $0x168] sm:$0xff] }
 0x665   :  { %v4942_v38 = vpop.eup %4941  ;;  %2269 = vmatpush.msrb.mxu0 %v2266_v34 }
 0x666   :  { %v1796_v9 = vadd.f32 1.0, %v4942_v38 }
 0x668   :  { %4945 = vrcp.f32 %v1796_v9  ;;  %v4944_v16 = vpop.eup %4943  ;;  %v1808_v11 = vand.u32 2147483648, %v1796_v9  ;;  %v1806_v13 = vand.u32 2147483647, %v1796_v9  ;;  %vm1802_vm15 = vweird.f32 %v1796_v9 }
 0x669   :  { %v1818_v48 = vmul.f32 %v4944_v16, %v1816_v20  ;;  %vm1823_vm3 = vweird.f32 %v4944_v16 }
 0x66a   :  { %v1809_v59 = vor.u32 1.1754944e-38, %v1808_v11  ;;  %vm1807_vm2 = vcmp.eq.f32.partialorder %v1806_v13, 8.507059e+37  ;;  %vm1824_vm5 = vmor %vm1822_vm4, %vm1823_vm3 }
 0x66b   :  { %v1819_v17 = vsub.f32 1.0, %v1818_v48 }
 0x66d   :  { %v1820_v10 = vmul.f32 %v4944_v16, %v1819_v17 }
 0x66e   :  { %v4946_v14 = vpop.eup %4945 }
 0x66f   :  { %v1798_v21 = vmul.f32 %v4946_v14, %v1796_v9  ;;  %vm1803_vm14 = vweird.f32 %v4946_v14  ;;  %v1821_v54 = vadd.f32 %v4944_v16, %v1820_v10 }
 0x670   :  { %vm1804_vm1 = vmor %vm1802_vm15, %vm1803_vm14 }
 0x671   :  { %v1799_v4 = vsub.f32 1.0, %v1798_v21  ;;  %v1825_v3 = vsel %vm1824_vm5, %v4944_v16, %v1821_v54  ;;  %v2029_v54 = vpop.permute.xlu0 %2028 }
 0x672   :  { %v1830_v28 = vsel %vm1827_vm6, %v1829_v12, %v1825_v3  ;;  %v2263_v3 = vld [vmem:[%s8387_s2 + $0x150] sm:$0xff]  ;;  %v2264_v12 = vld [vmem:[%s8387_s2 + $0x158] sm:$0xff] }
 0x673   :  { %v1800_v56 = vmul.f32 %v4946_v14, %v1799_v4  ;;  %v1840_v29 = vsub.f32 1.0, %v1830_v28  ;;  %v1842_v50 = vmul.f32 %v1830_v28, %v6845_v0  ;;  %2270 = vmatpush.msrb.mxu0 %v2263_v3  ;;  %v2260_v28 = vld [vmem:[%s8387_s2 + $0x138] sm:$0xff] }
 0x675   :  { %v1801_v1 = vadd.f32 %v4946_v14, %v1800_v56  ;;  %2271 = vmatpush.msrb.mxu0 %v2260_v28 }
 0x677   :  { %v1805_v26 = vsel %vm1804_vm1, %v4946_v14, %v1801_v1  ;;  %vm2030_vm1 = vcmp.eq.s32.totalorder %v2029_v54, 1  ;;  %v4846_v54 = vld [vmem:[%s8396_s10] ss:$0 sm:$0xff] }
 0x678   :  { %v1810_v58 = vsel %vm1807_vm2, %v1809_v59, %v1805_v26 }
 0x679   :  { %v1837_v33 = vmul.f32 %v1836_v39, %v1810_v58 }
 0x67b   :  { %v1838_v49 = vadd.f32 %v1837_v33, %v6874_v42 }
 0x67d   :  { %4947 = vtanh.f32 %v1838_v49  ;;  %v2267_v49 = vld [vmem:[%s8387_s2 + $0x170] sm:$0xff] }
 0x67e   :  { %2289 = vmatpush.msra.mxu1 %v2267_v49 }
 0x680   :  { %2290 = vmatpush.msra.mxu1 %v2264_v12 }
 0x683   :  { %v4948_v46 = vpop.eup %4947 }
 0x684   :  { %v1841_v30 = vmul.f32 %v4948_v46, %v1840_v29  ;;  %v2261_v29 = vld [vmem:[%s8387_s2 + $0x140] sm:$0xff] }
 0x685   :  { %2291 = vmatpush.msra.mxu1 %v2261_v29  ;;  %v2257_v46 = vld [vmem:[%s8387_s2 + $0x120] sm:$0xff] }
 0x686   :  { %v1843_v63 = vadd.f32 %v1842_v50, %v1841_v30  ;;  %v2258_v30 = vld [vmem:[%s8387_s2 + $0x128] sm:$0xff]  ;;  %2272 = vmatpush.msrb.mxu0 %v2257_v46 }
 0x687   :  { %2292 = vmatpush.msra.mxu1 %v2258_v30  ;;  %v2254_v50 = vld [vmem:[%s8387_s2 + $0x108] sm:$0xff] }
 0x688   :  { %v6879_v55 = vsel %vm1849_vm7, %v1843_v63, %v6845_v0  ;;  %v1851_v61 = vsel %vm1849_vm7, %v1843_v63, 0.0  ;;  %2273 = vmatpush.msrb.mxu0 %v2254_v50  ;;  %v2251_v63 = vld [vmem:[%s8387_s2 + $0xf0] sm:$0xff] }
 0x689   :  { %1852 = vst [vmem:[#allocation2 + $0x10] sm:$0x3] %v1851_v61  ;;  %1917 = vmatmul.f32.vlgmr.msrb.gmra.mxu2 %v6879_v55  ;;  %1937 = vmatmul.f32.vlgmr.msra.gmra.mxu3 %v6879_v55  ;;  %v2021_v8 = vrot.slane %v6879_v55, 6  ;;  %v2253_v61 = vld [vmem:[%s8387_s2 + $0x100] sm:$0xff] }
 0x68a   :  { %1957 = vmatmul.f32.vlgmr.msra.gmra.mxu0 %v6879_v55  ;;  %2309 = vmatpush.msrb.mxu2 %v6768_v35 }
 0x68b   :  { %2293 = vmatpush.msra.mxu1 %v2255_v36  ;;  %2274 = vmatpush.msrb.mxu0 %v2251_v63 }
 0x68c   :  { %2310 = vmatpush.msrb.mxu2 %v6775_v31 }
 0x68e   :  { %2311 = vmatpush.msrb.mxu2 %v6782_v41 }
 0x690   :  { %2312 = vmatpush.msrb.mxu2 %v6789_v45 }
 0x692   :  { %2313 = vmatpush.msrb.mxu2 %v6796_v51 }
 0x694   :  { %2314 = vmatpush.msrb.mxu2 %v2253_v61 }
 0x707   :  { %v1958_v47 = vpop.f32.mrf.mxu0 }
 0x708   :  { %v2011_v37 = vadd.f32 %v4845_v52, %v1958_v47  ;;  %v2240_v52 = vld [vmem:[%s8387_s2 + $0x98] sm:$0xff] }
 0x70a   :  { %v2013_v16 = vrot.slane %v2011_v37, 6  ;;  %v2233_v37 = vld [vmem:[%s8387_s2 + $0x60] sm:$0xff] }
 0x70c   :  { %v1918_v40 = vpop.f32.mrf.mxu2  ;;  %v1938_v44 = vpop.f32.mrf.mxu3 }
 0x70d   :  { %v1962_v23 = vrot.slane %v1918_v40, 6  ;;  %v1985_v57 = vrot.slane %v1938_v44, 6  ;;  %v2248_v44 = vld [vmem:[%s8387_s2 + $0xd8] sm:$0xff] }
 0x70e   :  { %2275 = vmatpush.msrb.mxu0 %v2248_v44 }
 0x70f   :  { %v1964_v6 = vadd.f32 %v1962_v23, %v8406_v7  ;;  %v1987_v22 = vadd.f32 %v1985_v57, %v8405_v2  ;;  %v2249_v23 = vld [vmem:[%s8387_s2 + $0xe0] sm:$0xff]  ;;  %v2250_v57 = vld [vmem:[%s8387_s2 + $0xe8] sm:$0xff] }
 0x710   :  { %2315 = vmatpush.msrb.mxu2 %v2250_v57 }
 0x711   :  { %v4773_v32 = vmul.f32 -1.442695, %v1964_v6  ;;  %v4774_v24 = vmul.f32 -1.442695, %v1987_v22  ;;  %v2245_v22 = vld [vmem:[%s8387_s2 + $0xc0] sm:$0xff] }
 0x712   :  { %2276 = vmatpush.msrb.mxu0 %v2245_v22 }
 0x713   :  { %4949 = vpow2.f32 %v4773_v32  ;;  %v2246_v32 = vld [vmem:[%s8387_s2 + $0xc8] sm:$0xff] }
 0x714   :  { %4951 = vpow2.f32 %v4774_v24  ;;  %v2247_v24 = vld [vmem:[%s8387_s2 + $0xd0] sm:$0xff] }
 0x715   :  { %2316 = vmatpush.msrb.mxu2 %v2247_v24 }
 0x719   :  { %v4950_v35 = vpop.eup %4949 }
 0x71a   :  { %v4952_v31 = vpop.eup %4951  ;;  %v1968_v60 = vadd.f32 1.0, %v4950_v35 }
 0x71b   :  { %v1991_v41 = vadd.f32 1.0, %v4952_v31  ;;  %v2242_v31 = vld [vmem:[%s8387_s2 + $0xa8] sm:$0xff] }
 0x71c   :  { %4953 = vrcp.f32 %v1968_v60  ;;  %v1980_v15 = vand.u32 2147483648, %v1968_v60  ;;  %v1978_v19 = vand.u32 2147483647, %v1968_v60  ;;  %vm1974_vm9 = vweird.f32 %v1968_v60  ;;  %2277 = vmatpush.msrb.mxu0 %v2242_v31 }
 0x71d   :  { %4955 = vrcp.f32 %v1991_v41  ;;  %v2003_v4 = vand.u32 2147483648, %v1991_v41  ;;  %vm1997_vm13 = vweird.f32 %v1991_v41  ;;  %v2001_v11 = vand.u32 2147483647, %v1991_v41 }
 0x71e   :  { %v1981_v9 = vor.u32 1.1754944e-38, %v1980_v15  ;;  %vm1979_vm11 = vcmp.eq.f32.partialorder %v1978_v19, 8.507059e+37 }
 0x71f   :  { %v2004_v13 = vor.u32 1.1754944e-38, %v2003_v4  ;;  %vm2002_vm15 = vcmp.eq.f32.partialorder %v2001_v11, 8.507059e+37  ;;  %v2229_v4 = vld [vmem:[%s8387_s2 + $0x40] sm:$0xff] }
 0x722   :  { %v4954_v45 = vpop.eup %4953 }
 0x723   :  { %v4956_v51 = vpop.eup %4955  ;;  %v1970_v0 = vmul.f32 %v4954_v45, %v1968_v60  ;;  %vm1975_vm8 = vweird.f32 %v4954_v45  ;;  %v2243_v60 = vld [vmem:[%s8387_s2 + $0xb0] sm:$0xff] }
 0x724   :  { %v1993_v53 = vmul.f32 %v4956_v51, %v1991_v41  ;;  %vm1976_vm10 = vmor %vm1974_vm9, %vm1975_vm8  ;;  %vm1998_vm12 = vweird.f32 %v4956_v51  ;;  %v2244_v41 = vld [vmem:[%s8387_s2 + $0xb8] sm:$0xff] }
 0x725   :  { %v1971_v62 = vsub.f32 1.0, %v1970_v0  ;;  %vm1999_vm14 = vmor %vm1997_vm13, %vm1998_vm12  ;;  %v2241_v0 = vld [vmem:[%s8387_s2 + $0xa0] sm:$0xff]  ;;  %2317 = vmatpush.msrb.mxu2 %v2244_v41 }
 0x726   :  { %v1994_v25 = vsub.f32 1.0, %v1993_v53  ;;  %v2236_v53 = vld [vmem:[%s8387_s2 + $0x78] sm:$0xff] }
 0x727   :  { %v1972_v43 = vmul.f32 %v4954_v45, %v1971_v62  ;;  %v2237_v62 = vld [vmem:[%s8387_s2 + $0x80] sm:$0xff]  ;;  %2318 = vmatpush.msrb.mxu2 %v2241_v0 }
 0x728   :  { %v1995_v20 = vmul.f32 %v4956_v51, %v1994_v25  ;;  %v2238_v25 = vld [vmem:[%s8387_s2 + $0x88] sm:$0xff] }
 0x729   :  { %v1973_v38 = vadd.f32 %v4954_v45, %v1972_v43  ;;  %v2234_v43 = vld [vmem:[%s8387_s2 + $0x68] sm:$0xff]  ;;  %2319 = vmatpush.msrb.mxu2 %v2238_v25 }
 0x72a   :  { %v1996_v21 = vadd.f32 %v4956_v51, %v1995_v20  ;;  %v2235_v20 = vld [vmem:[%s8387_s2 + $0x70] sm:$0xff] }
 0x72b   :  { %v1977_v48 = vsel %vm1976_vm10, %v4954_v45, %v1973_v38  ;;  %v2230_v38 = vld [vmem:[%s8387_s2 + $0x48] sm:$0xff]  ;;  %2320 = vmatpush.msrb.mxu2 %v2235_v20 }
 0x72c   :  { %v1982_v14 = vsel %vm1979_vm11, %v1981_v9, %v1977_v48  ;;  %v2000_v56 = vsel %vm1999_vm14, %v4956_v51, %v1996_v21  ;;  %v2239_v51 = vld [vmem:[%s8387_s2 + $0x90] sm:$0xff]  ;;  %v2232_v48 = vld [vmem:[%s8387_s2 + $0x58] sm:$0xff] }
 0x72d   :  { %v2015_v17 = vmul.f32 %v2013_v16, %v1982_v14  ;;  %v2005_v10 = vsel %vm2002_vm15, %v2004_v13, %v2000_v56  ;;  %2278 = vmatpush.msrb.mxu0 %v2239_v51  ;;  %v2231_v9 = vld [vmem:[%s8387_s2 + $0x50] sm:$0xff]  ;;  %v2228_v21 = vld [vmem:[%s8387_s2 + $0x38] sm:$0xff]  ;;  %2321 = vmatpush.msrb.mxu2 %v2232_v48  ;;  %v2225_v56 = vld [vmem:[%s8387_s2 + $0x20] sm:$0xff] }
 0x72e   :  { %v2018_v1 = vsub.f32 1.0, %v2005_v10  ;;  %v2023_v26 = vmul.f32 %v2021_v8, %v2005_v10  ;;  %v2227_v14 = vld [vmem:[%s8387_s2 + $0x30] sm:$0xff]  ;;  %v2226_v13 = vld [vmem:[%s8387_s2 + $0x28] sm:$0xff]  ;;  %v2221_v10 = vld [vmem:[%s8387_s2] sm:$0xff] }
 0x72f   :  { %v2016_v5 = vadd.f32 %v2015_v17, %v6874_v42  ;;  %2279 = vmatpush.msrb.mxu0 %v2236_v53  ;;  %2322 = vmatpush.msrb.mxu2 %v2229_v4  ;;  %v2222_v8 = vld [vmem:[%s8387_s2 + $0x8] sm:$0xff]  ;;  %v4847_v4 = vld [vmem:[%s8396_s10] ss:$0 sm:$0xff] }
 0x731   :  { %4957 = vtanh.f32 %v2016_v5  ;;  %2280 = vmatpush.msrb.mxu0 %v2233_v37  ;;  %v2224_v5 = vld [vmem:[%s8387_s2 + $0x18] sm:$0xff]  ;;  %2323 = vmatpush.msrb.mxu2 %v2226_v13 }
 0x733   :  { %2281 = vmatpush.msrb.mxu0 %v2230_v38 }
 0x735   :  { %2282 = vmatpush.msrb.mxu0 %v2227_v14 }
 0x737   :  { %v4958_v59 = vpop.eup %4957  ;;  %2283 = vmatpush.msrb.mxu0 %v2224_v5 }
 0x738   :  { %v2019_v39 = vmul.f32 %v4958_v59, %v2018_v1  ;;  %v2223_v1 = vld [vmem:[%s8387_s2 + $0x10] sm:$0xff] }
 0x739   :  { %2284 = vmatpush.msrb.mxu0 %v2221_v10  ;;  %2324 = vmatpush.msrb.mxu2 %v2223_v1 }
 0x73a   :  { %v2024_v58 = vadd.f32 %v2023_v26, %v2019_v39 }
 0x73c   :  { %v2032_v18 = vrot.slane %v2024_v58, 2 }
 0x73e   :  { %v6897_v27 = vsel %vm2030_vm1, %v2032_v18, %v6879_v55  ;;  %v2035_v33 = vsel %vm2030_vm1, %v2032_v18, 0.0  ;;  %v2252_v55 = vld [vmem:[%s8387_s2 + $0xf8] sm:$0xff]  ;;  %s5213_s2 = smov [#allocation10]  }
 0x73f   :  { %2036 = vst [vmem:[#allocation2 + $0x12] sm:$0x3] %v2035_v33  ;;  %2101 = vmatmul.f32.vlgmr.msrb.gmra.mxu1 %v6897_v27  ;;  %2121 = vmatmul.f32.vlgmr.msra.gmra.mxu2 %v6897_v27 }
 0x740   :  { %2141 = vmatmul.f32.vlgmr.msrb.gmra.mxu3 %v6897_v27  ;;  %2294 = vmatpush.msra.mxu1 %v2252_v55 }
 0x742   :  { %2295 = vmatpush.msra.mxu1 %v2249_v23 }
 0x744   :  { %2296 = vmatpush.msra.mxu1 %v2246_v32 }
 0x746   :  { %2297 = vmatpush.msra.mxu1 %v2243_v60 }
 0x748   :  { %2298 = vmatpush.msra.mxu1 %v2240_v52  ;;  %v2213_v52 = vpop.permute.xlu1 %2212 }
 0x749   :  { %vm2214_vm10 = vcmp.eq.s32.totalorder %v2213_v52, 1  ;;  %v2481_v52 = vld [vmem:[#allocation4 + $0x148] sm:$0xff] }
 0x74a   :  { %2299 = vmatpush.msra.mxu1 %v2237_v62 }
 0x74c   :  { %2300 = vmatpush.msra.mxu1 %v2234_v43 }
 0x74e   :  { %2301 = vmatpush.msra.mxu1 %v2231_v9 }
 0x750   :  { %2302 = vmatpush.msra.mxu1 %v2228_v21 }
 0x752   :  { %2303 = vmatpush.msra.mxu1 %v2225_v56 }
 0x754   :  { %2304 = vmatpush.msra.mxu1 %v2222_v8 }
 0x7bc   :  { %v2102_v40 = vpop.f32.mrf.mxu1 }
 0x7bd   :  { %v2146_v6 = vrot.slane %v2102_v40, 4 }
 0x7bf   :  { %v2148_v35 = vadd.f32 %v2146_v6, %v8406_v7 }
 0x7c1   :  { %v4775_v45 = vmul.f32 -1.442695, %v2148_v35  ;;  %v2205_v35 = vrot.slane %v6897_v27, 4 }
 0x7c2   :  { %v2122_v47 = vpop.f32.mrf.mxu2 }
 0x7c3   :  { %4959 = vpow2.f32 %v4775_v45  ;;  %v2169_v15 = vrot.slane %v2122_v47, 4  ;;  %v2142_v18 = vpop.f32.mrf.mxu3 }
 0x7c4   :  { %v2195_v12 = vadd.f32 %v4846_v54, %v2142_v18 }
 0x7c5   :  { %v2171_v19 = vadd.f32 %v2169_v15, %v8405_v2 }
 0x7c6   :  { %v2197_v63 = vrot.slane %v2195_v12, 4 }
 0x7c7   :  { %v4776_v16 = vmul.f32 -1.442695, %v2171_v19 }
 0x7c9   :  { %v4960_v17 = vpop.eup %4959  ;;  %4961 = vpow2.f32 %v4776_v16 }
 0x7ca   :  { %v2152_v11 = vadd.f32 1.0, %v4960_v17 }
 0x7cc   :  { %4963 = vrcp.f32 %v2152_v11  ;;  %v2164_v34 = vand.u32 2147483648, %v2152_v11  ;;  %v2162_v3 = vand.u32 2147483647, %v2152_v11  ;;  %vm2158_vm3 = vweird.f32 %v2152_v11 }
 0x7ce   :  { %v2165_v30 = vor.u32 1.1754944e-38, %v2164_v34  ;;  %vm2163_vm5 = vcmp.eq.f32.partialorder %v2162_v3, 8.507059e+37 }
 0x7cf   :  { %v4962_v59 = vpop.eup %4961 }
 0x7d0   :  { %v2175_v39 = vadd.f32 1.0, %v4962_v59 }
 0x7d2   :  { %v4964_v26 = vpop.eup %4963  ;;  %4965 = vrcp.f32 %v2175_v39  ;;  %v2187_v44 = vand.u32 2147483648, %v2175_v39  ;;  %v2185_v23 = vand.u32 2147483647, %v2175_v39  ;;  %vm2181_vm7 = vweird.f32 %v2175_v39 }
 0x7d3   :  { %v2154_v58 = vmul.f32 %v4964_v26, %v2152_v11  ;;  %vm2159_vm2 = vweird.f32 %v4964_v26 }
 0x7d4   :  { %vm2160_vm4 = vmor %vm2158_vm3, %vm2159_vm2  ;;  %v2188_v32 = vor.u32 1.1754944e-38, %v2187_v44  ;;  %vm2186_vm9 = vcmp.eq.f32.partialorder %v2185_v23, 8.507059e+37  ;;  %v7051_v23 = vld [vmem:[%s8408_s5] sm:$0xff] }
 0x7d5   :  { %v2155_v33 = vsub.f32 1.0, %v2154_v58 }
 0x7d7   :  { %v2156_v49 = vmul.f32 %v4964_v26, %v2155_v33 }
 0x7d8   :  { %v4966_v28 = vpop.eup %4965 }
 0x7d9   :  { %v2177_v29 = vmul.f32 %v4966_v28, %v2175_v39  ;;  %v2157_v46 = vadd.f32 %v4964_v26, %v2156_v49  ;;  %vm2182_vm6 = vweird.f32 %v4966_v28 }
 0x7da   :  { %vm2183_vm8 = vmor %vm2181_vm7, %vm2182_vm6  ;;  %vm2416_vm7 = vcmask 195584  }
 0x7db   :  { %v2178_v50 = vsub.f32 1.0, %v2177_v29  ;;  %v2161_v36 = vsel %vm2160_vm4, %v4964_v26, %v2157_v46 }
 0x7dc   :  { %v2166_v55 = vsel %vm2163_vm5, %v2165_v30, %v2161_v36  ;;  %vm2492_vm5 = vcmask 64512  }
 0x7dd   :  { %v2199_v61 = vmul.f32 %v2197_v63, %v2166_v55  ;;  %v2179_v40 = vmul.f32 %v4966_v28, %v2178_v50  ;;  %v2489_v55 = vld [vmem:[%s8334_s13] sm:$0xff] }
 0x7de   :  { %2511 = vmatpush.msra.mxu2 %v2489_v55  ;;  %v2448_v55 = vld [vmem:[#allocation4 + $0x40] sm:$0xff] }
 0x7df   :  { %v2200_v57 = vadd.f32 %v2199_v61, %v6874_v42  ;;  %v2180_v6 = vadd.f32 %v4966_v28, %v2179_v40  ;;  %v2397_v40 = vpop.permute.xlu2 %2396 }
 0x7e0   :  { %vm2398_vm4 = vcmp.eq.s32.totalorder %v2397_v40, 1  ;;  %v7101_v40 = vld [vmem:[#allocation7 + $0x60] sm:$0xff] }
 0x7e1   :  { %4967 = vtanh.f32 %v2200_v57  ;;  %v2184_v22 = vsel %vm2183_vm8, %v4966_v28, %v2180_v6  ;;  %v2407_v57 = vlaneseq  ;;  %v2490_v6 = vld [vmem:[%s8334_s13 + $0x8] sm:$0xff] }
 0x7e2   :  { %v2189_v24 = vsel %vm2186_vm9, %v2188_v32, %v2184_v22  ;;  %v2486_v22 = vld [vmem:[#allocation4 + $0x170] sm:$0xff]  ;;  %v2487_v32 = vld [vmem:[#allocation4 + $0x178] sm:$0xff] }
 0x7e3   :  { %v2202_v31 = vsub.f32 1.0, %v2189_v24  ;;  %v2207_v45 = vmul.f32 %v2205_v35, %v2189_v24  ;;  %v7058_v24 = vand.u32 127, %v2407_v57  ;;  %2576 = vmatpush.msra.mxu0 %v2486_v22  ;;  %2596 = vmatpush.msrb.mxu1 %v2487_v32  ;;  %v2483_v35 = vld [vmem:[#allocation4 + $0x158] sm:$0xff]  ;;  %v2452_v57 = vld [vmem:[#allocation4 + $0x60] sm:$0xff]  ;;  %v2449_v22 = vld [vmem:[#allocation4 + $0x48] sm:$0xff] }
 0x7e4   :  { %v2446_v32 = vld [vmem:[#allocation4 + $0x30] sm:$0xff] }
 0x7e5   :  { %2577 = vmatpush.msra.mxu0 %v2483_v35  ;;  %v2443_v35 = vld [vmem:[#allocation4 + $0x18] sm:$0xff] }
 0x7e7   :  { %v4968_v60 = vpop.eup %4967 }
 0x7e8   :  { %v2203_v41 = vmul.f32 %v4968_v60, %v2202_v31  ;;  %v2484_v31 = vld [vmem:[#allocation4 + $0x160] sm:$0xff]  ;;  %v2491_v60 = vld [vmem:[%s8334_s13 + $0x10] sm:$0xff] }
 0x7e9   :  { %2597 = vmatpush.msrb.mxu1 %v2484_v31  ;;  %v7109_v31 = vld [vmem:[#allocation7 + $0x170] sm:$0xff] }
 0x7ea   :  { %v2208_v51 = vadd.f32 %v2207_v45, %v2203_v41  ;;  %v2412_v45 = vpop.permute.xlu0 %2411 }
 0x7eb   :  { %vm2413_vm6 = vcmp.eq.s32.totalorder %v7058_v24, %v2412_v45  ;;  %2598 = vmatpush.msrb.mxu1 %v2481_v52  ;;  %v7117_v45 = vld [vmem:[#allocation7 + $0x128] sm:$0xff]  ;;  %v7123_v52 = vld [vmem:[#allocation7 + $0xf8] sm:$0xff] }
 0x7ec   :  { %v2216_v0 = vrot.slane %v2208_v51, 4  ;;  %v2480_v51 = vld [vmem:[#allocation4 + $0x140] sm:$0xff] }
 0x7ed   :  { %2578 = vmatpush.msra.mxu0 %v2480_v51  ;;  %v7120_v51 = vld [vmem:[#allocation7 + $0x110] sm:$0xff] }
 0x7ee   :  { %v2218_v47 = vsel %vm2214_vm10, %v2216_v0, %v6897_v27  ;;  %v2219_v53 = vsel %vm2214_vm10, %v2216_v0, 0.0  ;;  %v7063_v0 = vld [vmem:[#allocation7 + $0x168] sm:$0xff] }
 0x7ef   :  { %2220 = vst [vmem:[#allocation2 + $0x14] sm:$0x3] %v2219_v53  ;;  %2285 = vmatmul.f32.vlgmr.msrb.gmra.mxu0 %v2218_v47  ;;  %2305 = vmatmul.f32.vlgmr.msra.gmra.mxu1 %v2218_v47  ;;  %v2389_v46 = vrot.slane %v2218_v47, 2  ;;  %v2477_v53 = vld [vmem:[#allocation4 + $0x128] sm:$0xff] }
 0x7f0   :  { %2325 = vmatmul.f32.vlgmr.msrb.gmra.mxu2 %v2218_v47  ;;  %v2405_v47 = vld [vmem:[#allocation2 + $0x8] sm:$0xff]  ;;  %2579 = vmatpush.msra.mxu0 %v2477_v53  ;;  %v7129_v53 = vld [vmem:[#allocation7 + $0xc8] sm:$0xff] }
 0x7f1   :  { %2531 = vmatpush.msrb.mxu2 %v2490_v6  ;;  %v7105_v6 = vld [vmem:[#allocation7 + $0x48] sm:$0xff] }
 0x7f8   :  { %4781 = vmatmul.msk.f32.vlgmr.msra.gmra.mxu2 %vm2492_vm5, %v7051_v23 }
 0x7f9   :  { %2551 = vmatpush.msra.mxu2 %v2491_v60  ;;  %v7111_v60 = vld [vmem:[#allocation7 + $0x158] sm:$0xff] }
 0x800   :  { %4782 = vmatmul.msk.f32.vlgmr.msrb.gmra.mxu2 %vm2492_vm5, %v7051_v23 }
 0x801   :  { %2676 = vmatpush.msrb.mxu2 %v7063_v0 }
 0x808   :  { %4783 = vmatmul.msk.f32.vlgmr.msra.gmra.mxu2 %vm2492_vm5, %v7051_v23  ;;  %v2440_v23 = vld [vmem:[#allocation4] sm:$0xff] }
 0x86c   :  { %v2286_v62 = vpop.f32.mrf.mxu0  ;;  %v2306_v15 = vpop.f32.mrf.mxu1 }
 0x86d   :  { %v2330_v25 = vrot.slane %v2286_v62, 2  ;;  %v2353_v37 = vrot.slane %v2306_v15, 2  ;;  %v2478_v62 = vld [vmem:[#allocation4 + $0x130] sm:$0xff] }
 0x86e   :  { %v7068_v15 = vld [vmem:[#allocation7 + $0x150] sm:$0xff]  ;;  %2599 = vmatpush.msrb.mxu1 %v2478_v62 }
 0x86f   :  { %v2332_v43 = vadd.f32 %v2330_v25, %v8406_v7  ;;  %v2355_v19 = vadd.f32 %v2353_v37, %v8405_v2  ;;  %v2404_v25 = vld [vmem:[#allocation2] sm:$0xff]  ;;  %v2485_v37 = vld [vmem:[#allocation4 + $0x168] sm:$0xff]  ;;  %2677 = vmatpush.msrb.mxu2 %v7068_v15  ;;  %v7132_v62 = vld [vmem:[#allocation7 + $0xb0] sm:$0xff] }
 0x871   :  { %v4777_v20 = vmul.f32 -1.442695, %v2332_v43  ;;  %v4778_v38 = vmul.f32 -1.442695, %v2355_v19  ;;  %v8409_v43 = vmov 0.0  }
 0x872   :  { %v4779_v19 = vsel %vm2413_vm6, 1.0, %v8409_v43 }
 0x873   :  { %4969 = vpow2.f32 %v4777_v20  ;;  %v2326_v11 = vpop.f32.mrf.mxu2  ;;  %v2474_v20 = vld [vmem:[#allocation4 + $0x110] sm:$0xff] }
 0x874   :  { %4971 = vpow2.f32 %v4778_v38  ;;  %v2379_v8 = vadd.f32 %v4847_v4, %v2326_v11  ;;  %v2475_v38 = vld [vmem:[#allocation4 + $0x118] sm:$0xff]  ;;  %2580 = vmatpush.msra.mxu0 %v2474_v20  ;;  %v2469_v4 = vld [vmem:[#allocation4 + $0xe8] sm:$0xff]  ;;  %v2476_v11 = vld [vmem:[#allocation4 + $0x120] sm:$0xff] }
 0x875   :  { %2600 = vmatpush.msrb.mxu1 %v2475_v38  ;;  %v2442_v20 = vld [vmem:[#allocation4 + $0x10] sm:$0xff] }
 0x876   :  { %v2381_v58 = vrot.slane %v2379_v8, 2  ;;  %v2463_v8 = vld [vmem:[#allocation4 + $0xb8] sm:$0xff]  ;;  %v7142_v38 = vld [vmem:[#allocation7 + $0x30] sm:$0xff] }
 0x879   :  { %v4970_v9 = vpop.eup %4969 }
 0x87a   :  { %v4972_v16 = vpop.eup %4971  ;;  %v2336_v27 = vadd.f32 1.0, %v4970_v9  ;;  %v7072_v9 = vld [vmem:[#allocation7 + $0x138] sm:$0xff] }
 0x87b   :  { %v2359_v48 = vadd.f32 1.0, %v4972_v16  ;;  %v2482_v16 = vld [vmem:[#allocation4 + $0x150] sm:$0xff]  ;;  %2678 = vmatpush.msrb.mxu2 %v7072_v9 }
 0x87c   :  { %4973 = vrcp.f32 %v2336_v27  ;;  %v2348_v56 = vand.u32 2147483648, %v2336_v27  ;;  %v2346_v10 = vand.u32 2147483647, %v2336_v27  ;;  %vm2342_vm12 = vweird.f32 %v2336_v27 }
 0x87d   :  { %4975 = vrcp.f32 %v2359_v48  ;;  %v2371_v33 = vand.u32 2147483648, %v2359_v48  ;;  %vm2365_vm1 = vweird.f32 %v2359_v48  ;;  %v2369_v49 = vand.u32 2147483647, %v2359_v48 }
 0x87e   :  { %v2349_v39 = vor.u32 1.1754944e-38, %v2348_v56  ;;  %vm2347_vm14 = vcmp.eq.f32.partialorder %v2346_v10, 8.507059e+37  ;;  %v7082_v56 = vld [vmem:[#allocation7 + $0xf0] sm:$0xff] }
 0x87f   :  { %v2372_v28 = vor.u32 1.1754944e-38, %v2371_v33  ;;  %vm2370_vm3 = vcmp.eq.f32.partialorder %v2369_v49, 8.507059e+37  ;;  %v2462_v10 = vld [vmem:[#allocation4 + $0xb0] sm:$0xff]  ;;  %v2457_v33 = vld [vmem:[#allocation4 + $0x88] sm:$0xff]  ;;  %v2464_v49 = vld [vmem:[#allocation4 + $0xc0] sm:$0xff] }
 0x882   :  { %v4974_v14 = vpop.eup %4973 }
 0x883   :  { %v4976_v21 = vpop.eup %4975  ;;  %v2338_v17 = vmul.f32 %v4974_v14, %v2336_v27  ;;  %vm2343_vm11 = vweird.f32 %v4974_v14  ;;  %v2471_v27 = vld [vmem:[#allocation4 + $0xf8] sm:$0xff] }
 0x884   :  { %v2361_v7 = vmul.f32 %v4976_v21, %v2359_v48  ;;  %vm2344_vm13 = vmor %vm2342_vm12, %vm2343_vm11  ;;  %vm2366_vm15 = vweird.f32 %v4976_v21  ;;  %v2472_v48 = vld [vmem:[#allocation4 + $0x100] sm:$0xff]  ;;  %2581 = vmatpush.msra.mxu0 %v2471_v27  ;;  %v7148_v27 = vld [vmem:[#allocation7 + $0x18] sm:$0xff] }
 0x885   :  { %v2339_v2 = vsub.f32 1.0, %v2338_v17  ;;  %vm2367_vm2 = vmor %vm2365_vm1, %vm2366_vm15  ;;  %v2468_v17 = vld [vmem:[#allocation4 + $0xe0] sm:$0xff]  ;;  %2601 = vmatpush.msrb.mxu1 %v2472_v48  ;;  %v7150_v48 = vld [vmem:[#allocation7 + $0x50] sm:$0xff] }
 0x886   :  { %v2362_v5 = vsub.f32 1.0, %v2361_v7  ;;  %v7079_v7 = vld [vmem:[#allocation7 + $0x108] sm:$0xff]  ;;  %2582 = vmatpush.msra.mxu0 %v2468_v17  ;;  %v7154_v17 = vld [vmem:[#allocation7 + $0x38] sm:$0xff] }
 0x887   :  { %v2340_v13 = vmul.f32 %v4974_v14, %v2339_v2  ;;  %v2465_v2 = vld [vmem:[#allocation4 + $0xc8] sm:$0xff]  ;;  %2602 = vmatpush.msrb.mxu1 %v2469_v4  ;;  %v7159_v4 = vld [vmem:[#allocation7 + $0x178] sm:$0xff] }
 0x888   :  { %v2363_v1 = vmul.f32 %v4976_v21, %v2362_v5  ;;  %v2466_v5 = vld [vmem:[#allocation4 + $0xd0] sm:$0xff]  ;;  %2583 = vmatpush.msra.mxu0 %v2465_v2  ;;  %v7168_v2 = vld [vmem:[#allocation7 + $0x8] sm:$0xff] }
 0x889   :  { %v2341_v59 = vadd.f32 %v4974_v14, %v2340_v13  ;;  %v2473_v13 = vld [vmem:[#allocation4 + $0x108] sm:$0xff]  ;;  %2603 = vmatpush.msrb.mxu1 %v2466_v5  ;;  %v7173_v5 = vld [vmem:[#allocation7 + $0x160] sm:$0xff] }
 0x88a   :  { %v2364_v18 = vadd.f32 %v4976_v21, %v2363_v1  ;;  %v7085_v1 = vld [vmem:[#allocation7 + $0xd8] sm:$0xff]  ;;  %2584 = vmatpush.msra.mxu0 %v2462_v10  ;;  %v7180_v10 = vld [vmem:[#allocation7 + $0x130] sm:$0xff] }
 0x88b   :  { %v2345_v26 = vsel %vm2344_vm13, %v4974_v14, %v2341_v59  ;;  %v7076_v14 = vld [vmem:[#allocation7 + $0x120] sm:$0xff]  ;;  %v2470_v59 = vld [vmem:[#allocation4 + $0xf0] sm:$0xff]  ;;  %2604 = vmatpush.msrb.mxu1 %v2463_v8  ;;  %v7185_v8 = vld [vmem:[#allocation7 + $0x118] sm:$0xff] }
 0x88c   :  { %v2350_v54 = vsel %vm2347_vm14, %v2349_v39, %v2345_v26  ;;  %v2368_v12 = vsel %vm2367_vm2, %v4976_v21, %v2364_v18  ;;  %v2479_v21 = vld [vmem:[#allocation4 + $0x138] sm:$0xff]  ;;  %2679 = vmatpush.msrb.mxu2 %v7076_v14  ;;  %v2460_v26 = vld [vmem:[#allocation4 + $0xa0] sm:$0xff] }
 0x88d   :  { %v2383_v34 = vmul.f32 %v2381_v58, %v2350_v54  ;;  %v2373_v29 = vsel %vm2370_vm3, %v2372_v28, %v2368_v12  ;;  %v2459_v39 = vld [vmem:[#allocation4 + $0x98] sm:$0xff]  ;;  %v7088_v58 = vld [vmem:[#allocation7 + $0xc0] sm:$0xff]  ;;  %2605 = vmatpush.msrb.mxu1 %v2460_v26  ;;  %v2454_v12 = vld [vmem:[#allocation4 + $0x70] sm:$0xff] }
 0x88e   :  { %v2386_v30 = vsub.f32 1.0, %v2373_v29  ;;  %v2391_v63 = vmul.f32 %v2389_v46, %v2373_v29  ;;  %2680 = vmatpush.msrb.mxu2 %v7079_v7  ;;  %v2467_v54 = vld [vmem:[#allocation4 + $0xd8] sm:$0xff]  ;;  %v2456_v18 = vld [vmem:[#allocation4 + $0x80] sm:$0xff]  ;;  %2585 = vmatpush.msra.mxu0 %v2459_v39  ;;  %v7094_v28 = vld [vmem:[#allocation7 + $0x90] sm:$0xff] }
 0x88f   :  { %v2384_v3 = vadd.f32 %v2383_v34, %v6874_v42  ;;  %v7091_v34 = vld [vmem:[#allocation7 + $0xa8] sm:$0xff]  ;;  %2606 = vmatpush.msrb.mxu1 %v2457_v33  ;;  %v2450_v46 = vld [vmem:[#allocation4 + $0x50] sm:$0xff] }
 0x890   :  { %2681 = vmatpush.msrb.mxu2 %v7082_v56  ;;  %2586 = vmatpush.msra.mxu0 %v2456_v18  ;;  %v2461_v29 = vld [vmem:[#allocation4 + $0xa8] sm:$0xff]  ;;  %v7200_v26 = vld [vmem:[#allocation7 + $0xd0] sm:$0xff]  ;;  %v7210_v18 = vld [vmem:[#allocation7 + $0xa0] sm:$0xff] }
 0x891   :  { %4977 = vtanh.f32 %v2384_v3  ;;  %v2453_v3 = vld [vmem:[#allocation4 + $0x68] sm:$0xff]  ;;  %2607 = vmatpush.msrb.mxu1 %v2454_v12  ;;  %v7230_v12 = vld [vmem:[#allocation7 + $0x40] sm:$0xff] }
 0x892   :  { %2682 = vmatpush.msrb.mxu2 %v7085_v1  ;;  %2587 = vmatpush.msra.mxu0 %v2453_v3  ;;  %v7195_v39 = vld [vmem:[#allocation7 + $0xe8] sm:$0xff]  ;;  %v7225_v3 = vld [vmem:[#allocation7 + $0x58] sm:$0xff] }
 0x893   :  { %v7215_v33 = vld [vmem:[#allocation7 + $0x88] sm:$0xff] }
 0x894   :  { %2683 = vmatpush.msrb.mxu2 %v7088_v58  ;;  %2588 = vmatpush.msra.mxu0 %v2450_v46  ;;  %v7235_v46 = vld [vmem:[#allocation7 + $0x28] sm:$0xff] }
 0x896   :  { %2684 = vmatpush.msrb.mxu2 %v7091_v34 }
 0x897   :  { %v4978_v50 = vpop.eup %4977 }
 0x898   :  { %v2387_v36 = vmul.f32 %v4978_v50, %v2386_v30  ;;  %v2451_v30 = vld [vmem:[#allocation4 + $0x58] sm:$0xff]  ;;  %2685 = vmatpush.msrb.mxu2 %v7094_v28 }
 0x899   :  { %v7097_v50 = vld [vmem:[#allocation7 + $0x78] sm:$0xff]  ;;  %2608 = vmatpush.msrb.mxu1 %v2451_v30  ;;  %v7238_v30 = vld [vmem:[#allocation7 + $0x10] sm:$0xff] }
 0x89a   :  { %v2392_v61 = vadd.f32 %v2391_v63, %v2387_v36  ;;  %v2458_v36 = vld [vmem:[#allocation4 + $0x90] sm:$0xff]  ;;  %v2447_v63 = vld [vmem:[#allocation4 + $0x38] sm:$0xff]  ;;  %2686 = vmatpush.msrb.mxu2 %v7097_v50 }
 0x89b   :  { %2589 = vmatpush.msra.mxu0 %v2447_v63  ;;  %2609 = vmatpush.msrb.mxu1 %v2448_v55 }
 0x89c   :  { %v2400_v44 = vrot.slane %v2392_v61, 6  ;;  %v2455_v61 = vld [vmem:[#allocation4 + $0x78] sm:$0xff]  ;;  %2687 = vmatpush.msrb.mxu2 %v7101_v40 }
 0x89e   :  { %v2402_v42 = vsel %vm2398_vm4, %v2400_v44, 0.0  ;;  %v2444_v44 = vld [vmem:[#allocation4 + $0x20] sm:$0xff]  ;;  %2688 = vmatpush.msrb.mxu2 %v7105_v6 }
 0x89f   :  { %2403 = vst [vmem:[#allocation2 + $0x16] sm:$0x3] %v2402_v42  ;;  %v2445_v42 = vld [vmem:[#allocation4 + $0x28] sm:$0xff]  ;;  %2590 = vmatpush.msra.mxu0 %v2444_v44 }
 0x8a0   :  { %2610 = vmatpush.msrb.mxu1 %v2445_v42  ;;  %2689 = vmatpush.msrb.mxu2 %v7142_v38 }
 0x8a2   :  { %2611 = vmatpush.msrb.mxu1 %v2442_v20  ;;  %2690 = vmatpush.msrb.mxu2 %v7148_v27 }
 0x8a4   :  { %2795 = vmatpush.msra.mxu1 %v7063_v0 }
 0x8a6   :  { %v2406_v41 = vld [vmem:[#allocation2 + $0x10] sm:$0xff]  ;;  %2796 = vmatpush.msra.mxu1 %v7068_v15 }
 0x8a7   :  { %2433 = vmatpush.msra.mxu3 %v2406_v41  ;;  %v7114_v41 = vld [vmem:[#allocation7 + $0x140] sm:$0xff] }
 0x8a8   :  { %2797 = vmatpush.msra.mxu1 %v7072_v9 }
 0x8a9   :  { %2434 = vmatpush.msra.mxu3 %v2405_v47  ;;  %v7126_v47 = vld [vmem:[#allocation7 + $0xe0] sm:$0xff] }
 0x8aa   :  { %2798 = vmatpush.msra.mxu1 %v7076_v14 }
 0x8ab   :  { %2435 = vmatpush.msra.mxu3 %v2404_v25  ;;  %v7135_v25 = vld [vmem:[#allocation7 + $0x98] sm:$0xff] }
 0x8ac   :  { %4780 = vmatmul.msk.f32.vlgmr.msra.gmra.mxu3 %vm2416_vm7, %v4779_v19  ;;  %v2441_v19 = vld [vmem:[#allocation4 + $0x8] sm:$0xff]  ;;  %2799 = vmatpush.msra.mxu1 %v7079_v7 }
 0x8ad   :  { %2556 = vmatpush.msrb.mxu3 %v2485_v37  ;;  %v7138_v37 = vld [vmem:[#allocation7 + $0x80] sm:$0xff]  ;;  %2591 = vmatpush.msra.mxu0 %v2441_v19 }
 0x8ae   :  { %2800 = vmatpush.msra.mxu1 %v7082_v56 }
 0x8af   :  { %2557 = vmatpush.msrb.mxu3 %v2482_v16  ;;  %v7144_v16 = vld [vmem:[#allocation7 + $0x68] sm:$0xff]  ;;  %2716 = vmatpush.msrb.mxu0 %v7159_v4 }
 0x8b0   :  { %2801 = vmatpush.msra.mxu1 %v7085_v1 }
 0x8b1   :  { %2558 = vmatpush.msrb.mxu3 %v2479_v21  ;;  %v7152_v21 = vld [vmem:[#allocation7] sm:$0xff]  ;;  %2717 = vmatpush.msrb.mxu0 %v7173_v5 }
 0x8b2   :  { %2691 = vmatpush.msrb.mxu2 %v7152_v21  ;;  %2802 = vmatpush.msra.mxu1 %v7088_v58 }
 0x8b3   :  { %2559 = vmatpush.msrb.mxu3 %v2476_v11  ;;  %v7161_v11 = vld [vmem:[#allocation7 + $0x20] sm:$0xff]  ;;  %2692 = vmatmul.f32.vlgmr.msrb.gmra.mxu2 %v8409_v43 }
 0x8b4   :  { %2815 = vmatpush.msra.mxu2 %v7109_v31  ;;  %2803 = vmatpush.msra.mxu1 %v7091_v34 }
 0x8b5   :  { %2560 = vmatpush.msrb.mxu3 %v2473_v13  ;;  %v7175_v13 = vld [vmem:[#allocation7 + $0x148] sm:$0xff] }
 0x8b6   :  { %2816 = vmatpush.msra.mxu2 %v7111_v60  ;;  %2718 = vmatpush.msrb.mxu0 %v7175_v13 }
 0x8b7   :  { %2561 = vmatpush.msrb.mxu3 %v2470_v59  ;;  %v7190_v59 = vld [vmem:[#allocation7 + $0x100] sm:$0xff]  ;;  %2804 = vmatpush.msra.mxu1 %v7094_v28 }
 0x8b8   :  { %2817 = vmatpush.msra.mxu2 %v7114_v41  ;;  %2719 = vmatpush.msrb.mxu0 %v7180_v10 }
 0x8b9   :  { %2562 = vmatpush.msrb.mxu3 %v2467_v54  ;;  %v7205_v54 = vld [vmem:[#allocation7 + $0xb8] sm:$0xff]  ;;  %2805 = vmatpush.msra.mxu1 %v7097_v50 }
 0x8ba   :  { %2818 = vmatpush.msra.mxu2 %v7117_v45  ;;  %2720 = vmatpush.msrb.mxu0 %v7185_v8 }
 0x8bb   :  { %2563 = vmatpush.msrb.mxu3 %v2464_v49  ;;  %2806 = vmatpush.msra.mxu1 %v7101_v40  ;;  %v7220_v49 = vld [vmem:[#allocation7 + $0x70] sm:$0xff] }
 0x8bc   :  { %2819 = vmatpush.msra.mxu2 %v7120_v51  ;;  %2721 = vmatpush.msrb.mxu0 %v7190_v59 }
 0x8bd   :  { %2564 = vmatpush.msrb.mxu3 %v2461_v29  ;;  %2807 = vmatpush.msra.mxu1 %v7105_v6 }
 0x8be   :  { %2820 = vmatpush.msra.mxu2 %v7123_v52  ;;  %2722 = vmatpush.msrb.mxu0 %v7195_v39 }
 0x8bf   :  { %2565 = vmatpush.msrb.mxu3 %v2458_v36  ;;  %2808 = vmatpush.msra.mxu1 %v7142_v38 }
 0x8c0   :  { %2821 = vmatpush.msra.mxu2 %v7126_v47  ;;  %2723 = vmatpush.msrb.mxu0 %v7200_v26 }
 0x8c1   :  { %2566 = vmatpush.msrb.mxu3 %v2455_v61  ;;  %2809 = vmatpush.msra.mxu1 %v7148_v27 }
 0x8c2   :  { %2822 = vmatpush.msra.mxu2 %v7129_v53  ;;  %2724 = vmatpush.msrb.mxu0 %v7205_v54 }
 0x8c3   :  { %2567 = vmatpush.msrb.mxu3 %v2452_v57  ;;  %2810 = vmatpush.msra.mxu1 %v7152_v21 }
 0x8c4   :  { %2823 = vmatpush.msra.mxu2 %v7132_v62  ;;  %2725 = vmatpush.msrb.mxu0 %v7210_v18 }
 0x8c5   :  { %2568 = vmatpush.msrb.mxu3 %v2449_v22 }
 0x8c6   :  { %2824 = vmatpush.msra.mxu2 %v7135_v25  ;;  %2726 = vmatpush.msrb.mxu0 %v7215_v33 }
 0x8c7   :  { %2569 = vmatpush.msrb.mxu3 %v2446_v32 }
 0x8c8   :  { %2825 = vmatpush.msra.mxu2 %v7138_v37  ;;  %2727 = vmatpush.msrb.mxu0 %v7220_v49 }
 0x8c9   :  { %2570 = vmatpush.msrb.mxu3 %v2443_v35 }
 0x8ca   :  { %2826 = vmatpush.msra.mxu2 %v7144_v16  ;;  %2728 = vmatpush.msrb.mxu0 %v7225_v3 }
 0x8cb   :  { %2571 = vmatpush.msrb.mxu3 %v2440_v23 }
 0x8cc   :  { %2729 = vmatpush.msrb.mxu0 %v7230_v12  ;;  %2827 = vmatpush.msra.mxu2 %v7150_v48 }
 0x8cd   :  { %2696 = vmatpush.msra.mxu3 %v7109_v31 }
 0x8ce   :  { %2730 = vmatpush.msrb.mxu0 %v7235_v46  ;;  %2828 = vmatpush.msra.mxu2 %v7154_v17 }
 0x8cf   :  { %2697 = vmatpush.msra.mxu3 %v7111_v60 }
 0x8d0   :  { %2731 = vmatpush.msrb.mxu0 %v7238_v30  ;;  %2829 = vmatpush.msra.mxu2 %v7161_v11 }
 0x8d1   :  { %2698 = vmatpush.msra.mxu3 %v7114_v41 }
 0x8d2   :  { %2830 = vmatpush.msra.mxu2 %v7168_v2 }
 0x8d3   :  { %2699 = vmatpush.msra.mxu3 %v7117_v45 }
 0x8d4   :  { %2965 = vmatpush.msrb.mxu2 %v7159_v4 }
 0x8d5   :  { %2700 = vmatpush.msra.mxu3 %v7120_v51 }
 0x8d6   :  { %2966 = vmatpush.msrb.mxu2 %v7173_v5 }
 0x8d7   :  { %2701 = vmatpush.msra.mxu3 %v7123_v52 }
 0x8d8   :  { %2967 = vmatpush.msrb.mxu2 %v7175_v13 }
 0x8d9   :  { %2702 = vmatpush.msra.mxu3 %v7126_v47 }
 0x8da   :  { %2968 = vmatpush.msrb.mxu2 %v7180_v10 }
 0x8db   :  { %2703 = vmatpush.msra.mxu3 %v7129_v53 }
 0x8dc   :  { %2969 = vmatpush.msrb.mxu2 %v7185_v8 }
 0x8dd   :  { %2704 = vmatpush.msra.mxu3 %v7132_v62 }
 0x8de   :  { %2970 = vmatpush.msrb.mxu2 %v7190_v59 }
 0x8df   :  { %2705 = vmatpush.msra.mxu3 %v7135_v25 }
 0x8e0   :  { %2971 = vmatpush.msrb.mxu2 %v7195_v39 }
 0x8e1   :  { %2706 = vmatpush.msra.mxu3 %v7138_v37 }
 0x8e2   :  { %2972 = vmatpush.msrb.mxu2 %v7200_v26 }
 0x8e3   :  { %2707 = vmatpush.msra.mxu3 %v7144_v16 }
 0x8e4   :  { %2973 = vmatpush.msrb.mxu2 %v7205_v54 }
 0x8e5   :  { %2708 = vmatpush.msra.mxu3 %v7150_v48 }
 0x8e6   :  { %2974 = vmatpush.msrb.mxu2 %v7210_v18 }
 0x8e7   :  { %2709 = vmatpush.msra.mxu3 %v7154_v17 }
 0x8e8   :  { %2975 = vmatpush.msrb.mxu2 %v7215_v33 }
 0x8e9   :  { %2710 = vmatpush.msra.mxu3 %v7161_v11 }
 0x8ea   :  { %2976 = vmatpush.msrb.mxu2 %v7220_v49 }
 0x8eb   :  { %2711 = vmatpush.msra.mxu3 %v7168_v2 }
 0x8ec   :  { %2977 = vmatpush.msrb.mxu2 %v7225_v3 }
 0x8ee   :  { %2978 = vmatpush.msrb.mxu2 %v7230_v12 }
 0x8f0   :  { %2979 = vmatpush.msrb.mxu2 %v7235_v46 }
 0x8f2   :  { %2980 = vmatpush.msrb.mxu2 %v7238_v30 }
 0x92f   :  { %v2437_v29 = vpop.f32.mrf.mxu3 }
 0x930   :  { %2572 = vmatmul.f32.vlgmr.msrb.gmra.mxu3 %v2437_v29  ;;  %2592 = vmatmul.f32.vlgmr.msra.gmra.mxu0 %v2437_v29 }
 0x931   :  { %2612 = vmatmul.f32.vlgmr.msrb.gmra.mxu1 %v2437_v29  ;;  %2835 = vmatpush.msrb.mxu3 %v7159_v4 }
 0x932   :  { %2945 = vmatpush.msrb.mxu1 %v7109_v31  ;;  %2925 = vmatpush.msra.mxu0 %v7063_v0 }
 0x933   :  { %2836 = vmatpush.msrb.mxu3 %v7173_v5 }
 0x934   :  { %2946 = vmatpush.msrb.mxu1 %v7111_v60  ;;  %2926 = vmatpush.msra.mxu0 %v7068_v15 }
 0x935   :  { %2837 = vmatpush.msrb.mxu3 %v7175_v13 }
 0x936   :  { %2947 = vmatpush.msrb.mxu1 %v7114_v41  ;;  %2927 = vmatpush.msra.mxu0 %v7072_v9 }
 0x937   :  { %2838 = vmatpush.msrb.mxu3 %v7180_v10 }
 0x938   :  { %2712 = vmatmul.f32.vlgmr.msra.gmra.mxu3 %v8409_v43  ;;  %2732 = vmatmul.f32.vlgmr.msrb.gmra.mxu0 %v8409_v43 }
 0x939   :  { %2839 = vmatpush.msrb.mxu3 %v7185_v8  ;;  %2948 = vmatpush.msrb.mxu1 %v7117_v45 }
 0x93a   :  { %2928 = vmatpush.msra.mxu0 %v7076_v14 }
 0x93b   :  { %2840 = vmatpush.msrb.mxu3 %v7190_v59  ;;  %2949 = vmatpush.msrb.mxu1 %v7120_v51 }
 0x93c   :  { %2929 = vmatpush.msra.mxu0 %v7079_v7 }
 0x93d   :  { %2841 = vmatpush.msrb.mxu3 %v7195_v39  ;;  %2950 = vmatpush.msrb.mxu1 %v7123_v52 }
 0x93e   :  { %2930 = vmatpush.msra.mxu0 %v7082_v56 }
 0x93f   :  { %2842 = vmatpush.msrb.mxu3 %v7200_v26  ;;  %2951 = vmatpush.msrb.mxu1 %v7126_v47 }
 0x940   :  { %2931 = vmatpush.msra.mxu0 %v7085_v1 }
 0x941   :  { %2843 = vmatpush.msrb.mxu3 %v7205_v54  ;;  %2952 = vmatpush.msrb.mxu1 %v7129_v53 }
 0x942   :  { %2932 = vmatpush.msra.mxu0 %v7088_v58 }
 0x943   :  { %2844 = vmatpush.msrb.mxu3 %v7210_v18  ;;  %2953 = vmatpush.msrb.mxu1 %v7132_v62 }
 0x944   :  { %2933 = vmatpush.msra.mxu0 %v7091_v34 }
 0x945   :  { %2845 = vmatpush.msrb.mxu3 %v7215_v33  ;;  %2954 = vmatpush.msrb.mxu1 %v7135_v25 }
 0x946   :  { %2934 = vmatpush.msra.mxu0 %v7094_v28 }
 0x947   :  { %2846 = vmatpush.msrb.mxu3 %v7220_v49  ;;  %2955 = vmatpush.msrb.mxu1 %v7138_v37 }
 0x948   :  { %2935 = vmatpush.msra.mxu0 %v7097_v50 }
 0x949   :  { %2847 = vmatpush.msrb.mxu3 %v7225_v3  ;;  %2956 = vmatpush.msrb.mxu1 %v7144_v16 }
 0x94a   :  { %2936 = vmatpush.msra.mxu0 %v7101_v40 }
 0x94b   :  { %2848 = vmatpush.msrb.mxu3 %v7230_v12  ;;  %2957 = vmatpush.msrb.mxu1 %v7150_v48 }
 0x94c   :  { %2937 = vmatpush.msra.mxu0 %v7105_v6 }
 0x94d   :  { %2849 = vmatpush.msrb.mxu3 %v7235_v46  ;;  %2958 = vmatpush.msrb.mxu1 %v7154_v17 }
 0x94e   :  { %2938 = vmatpush.msra.mxu0 %v7142_v38 }
 0x94f   :  { %2850 = vmatpush.msrb.mxu3 %v7238_v30  ;;  %2959 = vmatpush.msrb.mxu1 %v7161_v11 }
 0x950   :  { %2939 = vmatpush.msra.mxu0 %v7148_v27 }
 0x951   :  { %3055 = vmatpush.msra.mxu3 %v7063_v0  ;;  %2960 = vmatpush.msrb.mxu1 %v7168_v2  ;;  %v2513_v0 = vpop.f32.mrf.mxu2 }
 0x952   :  { %2940 = vmatpush.msra.mxu0 %v7152_v21 }
 0x953   :  { %3056 = vmatpush.msra.mxu3 %v7068_v15 }
 0x954   :  { %3075 = vmatpush.msrb.mxu0 %v7109_v31 }
 0x955   :  { %3057 = vmatpush.msra.mxu3 %v7072_v9 }
 0x956   :  { %3076 = vmatpush.msrb.mxu0 %v7111_v60 }
 0x957   :  { %3058 = vmatpush.msra.mxu3 %v7076_v14  ;;  %v2616_v14 = vld [vmem:[%s8336_s15] sm:$0x7] }
 0x958   :  { %3077 = vmatpush.msrb.mxu0 %v7114_v41  ;;  %v7357_v41 = vld [vmem:[%s8337_s16] ss:$0 sm:$0xff] }
 0x959   :  { %3059 = vmatpush.msra.mxu3 %v7079_v7  ;;  %v2533_v15 = vpop.f32.mrf.mxu2  ;;  %v2618_v7 = vperm.slane %v2616_v14, 0 }
 0x95a   :  { %3078 = vmatpush.msrb.mxu0 %v7117_v45 }
 0x95b   :  { %3060 = vmatpush.msra.mxu3 %v7082_v56 }
 0x95c   :  { %3079 = vmatpush.msrb.mxu0 %v7120_v51 }
 0x95d   :  { %3061 = vmatpush.msra.mxu3 %v7085_v1 }
 0x95e   :  { %3080 = vmatpush.msrb.mxu0 %v7123_v52 }
 0x95f   :  { %3062 = vmatpush.msra.mxu3 %v7088_v58 }
 0x960   :  { %3081 = vmatpush.msrb.mxu0 %v7126_v47 }
 0x961   :  { %3063 = vmatpush.msra.mxu3 %v7091_v34  ;;  %v2553_v9 = vpop.f32.mrf.mxu2 }
 0x962   :  { %3082 = vmatpush.msrb.mxu0 %v7129_v53 }
 0x963   :  { %3064 = vmatpush.msra.mxu3 %v7094_v28 }
 0x964   :  { %3083 = vmatpush.msrb.mxu0 %v7132_v62 }
 0x965   :  { %3065 = vmatpush.msra.mxu3 %v7097_v50  ;;  %v2619_v50 = vperm.slane %v2616_v14, 1 }
 0x966   :  { %3084 = vmatpush.msrb.mxu0 %v7135_v25 }
 0x967   :  { %3066 = vmatpush.msra.mxu3 %v7101_v40 }
 0x968   :  { %3085 = vmatpush.msrb.mxu0 %v7138_v37  ;;  %v2620_v37 = vperm.slane %v2616_v14, 2 }
 0x969   :  { %3067 = vmatpush.msra.mxu3 %v7105_v6  ;;  %v2693_v34 = vpop.f32.mrf.mxu2 }
 0x96a   :  { %3086 = vmatpush.msrb.mxu0 %v7144_v16 }
 0x96b   :  { %3068 = vmatpush.msra.mxu3 %v7142_v38 }
 0x96c   :  { %3087 = vmatpush.msrb.mxu0 %v7150_v48 }
 0x96d   :  { %3069 = vmatpush.msra.mxu3 %v7148_v27 }
 0x96e   :  { %3088 = vmatpush.msrb.mxu0 %v7154_v17 }
 0x96f   :  { %3070 = vmatpush.msra.mxu3 %v7152_v21 }
 0x970   :  { %3089 = vmatpush.msrb.mxu0 %v7161_v11 }
 0x972   :  { %3090 = vmatpush.msrb.mxu0 %v7168_v2 }
 0x9ad   :  { %v2593_v56 = vpop.f32.mrf.mxu0 }
 0x9ae   :  { %v2594_v28 = vadd.f32 %v2593_v56, %v2533_v15  ;;  %v2613_v31 = vpop.f32.mrf.mxu1 }
 0x9af   :  { %v2614_v25 = vadd.f32 %v2613_v31, %v2553_v9 }
 0x9b0   :  { %v7351_v55 = vadd.f32 %v2619_v50, %v2594_v28  ;;  %v2792_v28 = vpop.permute.xlu1 %2791 }
 0x9b1   :  { %v7360_v17 = vadd.f32 %v2620_v37, %v2614_v25  ;;  %vm2793_vm1 = vcmp.eq.s32.totalorder %v2792_v28, 1 }
 0x9b3   :  { %v2573_v1 = vpop.f32.mrf.mxu3 }
 0x9b4   :  { %v2574_v58 = vadd.f32 %v2573_v1, %v2513_v0 }
 0x9b5   :  { %v2733_v51 = vpop.f32.mrf.mxu0 }
 0x9b6   :  { %v7348_v36 = vadd.f32 %v2618_v7, %v2574_v58  ;;  %v2780_v38 = vadd.f32 %v7357_v41, %v2733_v51 }
 0x9b8   :  { %v2736_v63 = vadd.f32 %v2693_v34, %v7348_v36 }
 0x9ba   :  { %v4784_v61 = vmul.f32 -1.442695, %v2736_v63 }
 0x9bb   :  { %v2713_v40 = vpop.f32.mrf.mxu3 }
 0x9bc   :  { %4979 = vpow2.f32 %v4784_v61  ;;  %v2756_v44 = vadd.f32 %v2713_v40, %v7351_v55 }
 0x9be   :  { %v4785_v42 = vmul.f32 -1.442695, %v2756_v44 }
 0x9c0   :  { %4981 = vpow2.f32 %v4785_v42 }
 0x9c2   :  { %v4980_v57 = vpop.eup %4979 }
 0x9c3   :  { %v2740_v6 = vadd.f32 1.0, %v4980_v57 }
 0x9c5   :  { %4983 = vrcp.f32 %v2740_v6  ;;  %v2752_v52 = vand.u32 2147483648, %v2740_v6  ;;  %v2750_v62 = vand.u32 2147483647, %v2740_v6  ;;  %vm2746_vm9 = vweird.f32 %v2740_v6 }
 0x9c6   :  { %v4982_v22 = vpop.eup %4981 }
 0x9c7   :  { %v2760_v32 = vadd.f32 1.0, %v4982_v22  ;;  %v2753_v16 = vor.u32 1.1754944e-38, %v2752_v52  ;;  %vm2751_vm11 = vcmp.eq.f32.partialorder %v2750_v62, 8.507059e+37 }
 0x9c9   :  { %4985 = vrcp.f32 %v2760_v32  ;;  %v2772_v2 = vand.u32 2147483648, %v2760_v32  ;;  %vm2766_vm13 = vweird.f32 %v2760_v32  ;;  %v2770_v0 = vand.u32 2147483647, %v2760_v32 }
 0x9cb   :  { %v4984_v35 = vpop.eup %4983  ;;  %v2773_v14 = vor.u32 1.1754944e-38, %v2772_v2  ;;  %vm2771_vm15 = vcmp.eq.f32.partialorder %v2770_v0, 8.507059e+37 }
 0x9cc   :  { %v2742_v23 = vmul.f32 %v4984_v35, %v2740_v6  ;;  %vm2747_vm8 = vweird.f32 %v4984_v35 }
 0x9cd   :  { %vm2748_vm10 = vmor %vm2746_vm9, %vm2747_vm8 }
 0x9ce   :  { %v2743_v60 = vsub.f32 1.0, %v2742_v23 }
 0x9cf   :  { %v4986_v45 = vpop.eup %4985 }
 0x9d0   :  { %v2762_v47 = vmul.f32 %v4986_v45, %v2760_v32  ;;  %v2744_v53 = vmul.f32 %v4984_v35, %v2743_v60  ;;  %vm2767_vm12 = vweird.f32 %v4986_v45 }
 0x9d1   :  { %vm2768_vm14 = vmor %vm2766_vm13, %vm2767_vm12 }
 0x9d2   :  { %v2763_v19 = vsub.f32 1.0, %v2762_v47  ;;  %v2745_v20 = vadd.f32 %v4984_v35, %v2744_v53 }
 0x9d4   :  { %v2764_v27 = vmul.f32 %v4986_v45, %v2763_v19  ;;  %v2749_v48 = vsel %vm2748_vm10, %v4984_v35, %v2745_v20 }
 0x9d5   :  { %v2754_v21 = vsel %vm2751_vm11, %v2753_v16, %v2749_v48 }
 0x9d6   :  { %v2765_v11 = vadd.f32 %v4986_v45, %v2764_v27  ;;  %v2781_v29 = vmul.f32 %v2780_v38, %v2754_v21  ;;  %v2919_v21 = vpop.permute.xlu2 %2918 }
 0x9d7   :  { %vm2920_vm11 = vcmp.eq.s32.totalorder %v2919_v21, 1  ;;  %v3245_v21 = vld [vmem:[%s8345_s24 + $0x68] sm:$0xff] }
 0x9d8   :  { %v2782_v15 = vadd.f32 %v2781_v29, %v7360_v17  ;;  %v2769_v9 = vsel %vm2768_vm14, %v4986_v45, %v2765_v11 }
 0x9d9   :  { %v2774_v7 = vsel %vm2771_vm15, %v2773_v14, %v2769_v9 }
 0x9da   :  { %4987 = vtanh.f32 %v2782_v15  ;;  %v2784_v56 = vsub.f32 1.0, %v2774_v7  ;;  %v2786_v34 = vmul.f32 0.0, %v2774_v7 }
 0x9e0   :  { %v4988_v1 = vpop.eup %4987 }
 0x9e1   :  { %v2785_v58 = vmul.f32 %v4988_v1, %v2784_v56 }
 0x9e3   :  { %v2787_v50 = vadd.f32 %v2786_v34, %v2785_v58 }
 0x9e5   :  { %4786 = vmatmul.msk.f32.vlgmr.msra.gmra.mxu1 %vm2793_vm1, %v2787_v50  ;;  %4787 = vmatmul.msk.f32.vlgmr.msra.gmra.mxu2 %vm2793_vm1, %v2787_v50  ;;  %v7363_v63 = vsel %vm2793_vm1, %v2787_v50, 0.0 }
 0x9e6   :  { %4788 = vmatmul.msk.f32.vlgmr.msrb.gmra.mxu3 %vm2793_vm1, %v2787_v50  ;;  %3095 = vmatpush.msra.mxu1 %v7159_v4  ;;  %v2911_v38 = vrot.slane %v7363_v63, 6 }
 0x9e8   :  { %3096 = vmatpush.msra.mxu1 %v7173_v5 }
 0x9ea   :  { %3097 = vmatpush.msra.mxu1 %v7175_v13 }
 0x9ec   :  { %3098 = vmatpush.msra.mxu1 %v7180_v10 }
 0x9ee   :  { %3099 = vmatpush.msra.mxu1 %v7185_v8 }
 0x9f0   :  { %3100 = vmatpush.msra.mxu1 %v7190_v59 }
 0x9f2   :  { %3101 = vmatpush.msra.mxu1 %v7195_v39 }
 0x9f4   :  { %3102 = vmatpush.msra.mxu1 %v7200_v26 }
 0x9f6   :  { %3103 = vmatpush.msra.mxu1 %v7205_v54 }
 0x9f8   :  { %3104 = vmatpush.msra.mxu1 %v7210_v18 }
 0x9fa   :  { %3105 = vmatpush.msra.mxu1 %v7215_v33 }
 0x9fc   :  { %3106 = vmatpush.msra.mxu1 %v7220_v49 }
 0x9fe   :  { %3107 = vmatpush.msra.mxu1 %v7225_v3 }
 0xa00   :  { %3108 = vmatpush.msra.mxu1 %v7230_v12 }
 0xa02   :  { %3109 = vmatpush.msra.mxu1 %v7235_v46 }
 0xa04   :  { %3110 = vmatpush.msra.mxu1 %v7238_v30 }
 0xa62   :  { %v2812_v4 = vpop.f32.mrf.mxu1 }
 0xa63   :  { %v2856_v5 = vrot.slane %v2812_v4, 6  ;;  %v3188_v4 = vld [vmem:[%s8342_s21 + $0x10] sm:$0xff] }
 0xa64   :  { %3209 = vmatpush.msra.mxu2 %v3188_v4  ;;  %v3224_v4 = vld [vmem:[%s8344_s23 + $0x40] sm:$0xff] }
 0xa65   :  { %v2858_v13 = vadd.f32 %v2856_v5, %v7348_v36  ;;  %v3187_v5 = vld [vmem:[%s8342_s21 + $0x8] sm:$0xff] }
 0xa66   :  { %3210 = vmatpush.msra.mxu2 %v3187_v5  ;;  %v3239_v5 = vld [vmem:[%s8345_s24 + $0x38] sm:$0xff] }
 0xa67   :  { %v4789_v10 = vmul.f32 -1.442695, %v2858_v13 }
 0xa68   :  { %v2832_v8 = vpop.f32.mrf.mxu2 }
 0xa69   :  { %4989 = vpow2.f32 %v4789_v10  ;;  %v2879_v59 = vrot.slane %v2832_v8, 6  ;;  %v2852_v46 = vpop.f32.mrf.mxu3  ;;  %v3186_v10 = vld [vmem:[%s8342_s21] sm:$0xff] }
 0xa6a   :  { %v2901_v42 = vadd.f32 %v7357_v41, %v2852_v46  ;;  %3211 = vmatpush.msra.mxu2 %v3186_v10 }
 0xa6b   :  { %v2881_v39 = vadd.f32 %v2879_v59, %v7351_v55 }
 0xa6c   :  { %v2903_v31 = vrot.slane %v2901_v42, 6 }
 0xa6d   :  { %v4790_v26 = vmul.f32 -1.442695, %v2881_v39  ;;  %v3185_v39 = vld [vmem:[%s8410_s1] sm:$0x3] }
 0xa6f   :  { %v4990_v54 = vpop.eup %4989  ;;  %4991 = vpow2.f32 %v4790_v26 }
 0xa70   :  { %v2862_v18 = vadd.f32 1.0, %v4990_v54 }
 0xa72   :  { %4993 = vrcp.f32 %v2862_v18  ;;  %v2874_v61 = vand.u32 2147483648, %v2862_v18  ;;  %v2872_v44 = vand.u32 2147483647, %v2862_v18  ;;  %vm2868_vm3 = vweird.f32 %v2862_v18 }
 0xa74   :  { %v2875_v32 = vor.u32 1.1754944e-38, %v2874_v61  ;;  %vm2873_vm5 = vcmp.eq.f32.partialorder %v2872_v44, 8.507059e+37 }
 0xa75   :  { %v4992_v33 = vpop.eup %4991 }
 0xa76   :  { %v2885_v49 = vadd.f32 1.0, %v4992_v33 }
 0xa78   :  { %v4994_v3 = vpop.eup %4993  ;;  %4995 = vrcp.f32 %v2885_v49  ;;  %v2897_v52 = vand.u32 2147483648, %v2885_v49  ;;  %v2895_v47 = vand.u32 2147483647, %v2885_v49  ;;  %vm2891_vm8 = vweird.f32 %v2885_v49 }
 0xa79   :  { %v2864_v12 = vmul.f32 %v4994_v3, %v2862_v18  ;;  %vm2869_vm2 = vweird.f32 %v4994_v3 }
 0xa7a   :  { %vm2870_vm4 = vmor %vm2868_vm3, %vm2869_vm2  ;;  %v2898_v37 = vor.u32 1.1754944e-38, %v2897_v52  ;;  %vm2896_vm10 = vcmp.eq.f32.partialorder %v2895_v47, 8.507059e+37 }
 0xa7b   :  { %v2865_v30 = vsub.f32 1.0, %v2864_v12 }
 0xa7d   :  { %v2866_v40 = vmul.f32 %v4994_v3, %v2865_v30 }
 0xa7e   :  { %v4996_v57 = vpop.eup %4995 }
 0xa7f   :  { %v2887_v6 = vmul.f32 %v4996_v57, %v2885_v49  ;;  %v2867_v22 = vadd.f32 %v4994_v3, %v2866_v40  ;;  %vm2892_vm6 = vweird.f32 %v4996_v57 }
 0xa80   :  { %vm2893_vm9 = vmor %vm2891_vm8, %vm2892_vm6 }
 0xa81   :  { %v2888_v35 = vsub.f32 1.0, %v2887_v6  ;;  %v2871_v23 = vsel %vm2870_vm4, %v4994_v3, %v2867_v22 }
 0xa82   :  { %v2876_v60 = vsel %vm2873_vm5, %v2875_v32, %v2871_v23 }
 0xa83   :  { %v2889_v45 = vmul.f32 %v4996_v57, %v2888_v35  ;;  %v2905_v51 = vmul.f32 %v2903_v31, %v2876_v60 }
 0xa85   :  { %v2906_v53 = vadd.f32 %v2905_v51, %v7360_v17  ;;  %v2890_v62 = vadd.f32 %v4996_v57, %v2889_v45 }
 0xa87   :  { %4997 = vtanh.f32 %v2906_v53  ;;  %v2894_v25 = vsel %vm2893_vm9, %v4996_v57, %v2890_v62 }
 0xa88   :  { %v2899_v19 = vsel %vm2896_vm10, %v2898_v37, %v2894_v25  ;;  %v3049_v25 = vpop.permute.xlu0 %3048 }
 0xa89   :  { %v2908_v20 = vsub.f32 1.0, %v2899_v19  ;;  %v2913_v48 = vmul.f32 %v2911_v38, %v2899_v19  ;;  %vm3050_vm4 = vcmp.eq.s32.totalorder %v3049_v25, 1  ;;  %v3247_v38 = vld [vmem:[%s8345_s24 + $0x78] sm:$0xff] }
 0xa8a   :  { %v7547_v25 = vld [vmem:[#allocation9 + $0x170] sm:$0xff] }
 0xa8d   :  { %v4998_v16 = vpop.eup %4997 }
 0xa8e   :  { %v2909_v27 = vmul.f32 %v4998_v16, %v2908_v20  ;;  %v3231_v16 = vld [vmem:[%s8344_s23 + $0x78] sm:$0xff] }
 0xa8f   :  { %3268 = vmatpush.msrb.mxu3 %v3231_v16  ;;  %v7553_v16 = vld [vmem:[#allocation9 + $0x150] sm:$0xff] }
 0xa90   :  { %v2914_v11 = vadd.f32 %v2913_v48, %v2909_v27  ;;  %v3246_v27 = vld [vmem:[%s8345_s24 + $0x70] sm:$0xff] }
 0xa91   :  { %v3230_v48 = vld [vmem:[%s8344_s23 + $0x70] sm:$0xff] }
 0xa92   :  { %v2922_v2 = vrot.slane %v2914_v11, 2  ;;  %3269 = vmatpush.msrb.mxu3 %v3230_v48  ;;  %v3229_v11 = vld [vmem:[%s8344_s23 + $0x68] sm:$0xff] }
 0xa94   :  { %v7387_v29 = vsel %vm2920_vm11, %v2922_v2, %v7363_v63  ;;  %3270 = vmatpush.msrb.mxu3 %v3229_v11  ;;  %v7559_v11 = vld [vmem:[#allocation9 + $0x160] sm:$0xff] }
 0xa95   :  { %2941 = vmatmul.f32.vlgmr.msra.gmra.mxu0 %v7387_v29  ;;  %2961 = vmatmul.f32.vlgmr.msrb.gmra.mxu1 %v7387_v29  ;;  %v3041_v51 = vrot.slane %v7387_v29, 4 }
 0xa96   :  { %2981 = vmatmul.f32.vlgmr.msrb.gmra.mxu2 %v7387_v29 }
 0xa97   :  { %3248 = vmatpush.msrb.mxu2 %v3247_v38 }
 0xa99   :  { %3249 = vmatpush.msrb.mxu2 %v3246_v27  ;;  %v7555_v27 = vld [vmem:[#allocation9 + $0x158] sm:$0xff] }
 0xa9b   :  { %3250 = vmatpush.msrb.mxu2 %v3245_v21 }
 0xa9e   :  { %4795 = vmatmul.msk.f32.vlgmr.msra.gmra.mxu2 %vm2416_vm7, %v3185_v39 }
 0xb12   :  { %v2942_v0 = vpop.f32.mrf.mxu0  ;;  %v2962_v15 = vpop.f32.mrf.mxu1 }
 0xb13   :  { %v2986_v9 = vrot.slane %v2942_v0, 4  ;;  %v3009_v14 = vrot.slane %v2962_v15, 4  ;;  %v3228_v0 = vld [vmem:[%s8344_s23 + $0x60] sm:$0xff] }
 0xb14   :  { %3271 = vmatpush.msrb.mxu3 %v3228_v0  ;;  %v7564_v0 = vld [vmem:[#allocation9 + $0x140] sm:$0xff] }
 0xb15   :  { %v2988_v7 = vadd.f32 %v2986_v9, %v7348_v36  ;;  %v3011_v56 = vadd.f32 %v3009_v14, %v7351_v55  ;;  %v3243_v9 = vld [vmem:[%s8345_s24 + $0x58] sm:$0xff] }
 0xb16   :  { %v3227_v14 = vld [vmem:[%s8344_s23 + $0x58] sm:$0xff] }
 0xb17   :  { %v4791_v1 = vmul.f32 -1.442695, %v2988_v7  ;;  %v4792_v58 = vmul.f32 -1.442695, %v3011_v56  ;;  %3272 = vmatpush.msrb.mxu3 %v3227_v14  ;;  %v3242_v56 = vld [vmem:[%s8345_s24 + $0x50] sm:$0xff] }
 0xb19   :  { %4999 = vpow2.f32 %v4791_v1  ;;  %v2982_v54 = vpop.f32.mrf.mxu2  ;;  %v3226_v1 = vld [vmem:[%s8344_s23 + $0x50] sm:$0xff] }
 0xb1a   :  { %5001 = vpow2.f32 %v4792_v58  ;;  %v3031_v46 = vadd.f32 %v7357_v41, %v2982_v54  ;;  %3273 = vmatpush.msrb.mxu3 %v3226_v1  ;;  %v7575_v1 = vld [vmem:[#allocation9 + $0x120] sm:$0xff] }
 0xb1c   :  { %v3033_v42 = vrot.slane %v3031_v46, 4  ;;  %v3234_v46 = vld [vmem:[%s8345_s24 + $0x10] sm:$0xff] }
 0xb1f   :  { %v5000_v34 = vpop.eup %4999 }
 0xb20   :  { %v5002_v28 = vpop.eup %5001  ;;  %v2992_v50 = vadd.f32 1.0, %v5000_v34 }
 0xb21   :  { %v3015_v63 = vadd.f32 1.0, %v5002_v28  ;;  %v3241_v28 = vld [vmem:[%s8345_s24 + $0x48] sm:$0xff] }
 0xb22   :  { %5003 = vrcp.f32 %v2992_v50  ;;  %v3004_v49 = vand.u32 2147483648, %v2992_v50  ;;  %v3002_v12 = vand.u32 2147483647, %v2992_v50  ;;  %vm2998_vm13 = vweird.f32 %v2992_v50 }
 0xb23   :  { %5005 = vrcp.f32 %v3015_v63  ;;  %v3027_v22 = vand.u32 2147483648, %v3015_v63  ;;  %vm3021_vm2 = vweird.f32 %v3015_v63  ;;  %v3025_v35 = vand.u32 2147483647, %v3015_v63 }
 0xb24   :  { %v3005_v40 = vor.u32 1.1754944e-38, %v3004_v49  ;;  %vm3003_vm15 = vcmp.eq.f32.partialorder %v3002_v12, 8.507059e+37  ;;  %v3220_v49 = vld [vmem:[%s8344_s23 + $0x20] sm:$0xff]  ;;  %v3219_v12 = vld [vmem:[%s8344_s23 + $0x18] sm:$0xff] }
 0xb25   :  { %v3028_v60 = vor.u32 1.1754944e-38, %v3027_v22  ;;  %vm3026_vm3 = vcmp.eq.f32.partialorder %v3025_v35, 8.507059e+37  ;;  %v3216_v35 = vld [vmem:[%s8344_s23] sm:$0xff] }
 0xb28   :  { %v5004_v13 = vpop.eup %5003 }
 0xb29   :  { %v5006_v8 = vpop.eup %5005  ;;  %v2994_v59 = vmul.f32 %v5004_v13, %v2992_v50  ;;  %vm2999_vm12 = vweird.f32 %v5004_v13  ;;  %v3240_v50 = vld [vmem:[%s8345_s24 + $0x40] sm:$0xff] }
 0xb2a   :  { %v3017_v26 = vmul.f32 %v5006_v8, %v3015_v63  ;;  %vm3000_vm14 = vmor %vm2998_vm13, %vm2999_vm12  ;;  %vm3022_vm1 = vweird.f32 %v5006_v8 }
 0xb2b   :  { %v2995_v18 = vsub.f32 1.0, %v2994_v59  ;;  %vm3023_vm7 = vmor %vm3021_vm2, %vm3022_vm1  ;;  %v3222_v59 = vld [vmem:[%s8344_s23 + $0x30] sm:$0xff] }
 0xb2c   :  { %v3018_v33 = vsub.f32 1.0, %v3017_v26  ;;  %v3237_v26 = vld [vmem:[%s8345_s24 + $0x28] sm:$0xff] }
 0xb2d   :  { %v2996_v3 = vmul.f32 %v5004_v13, %v2995_v18 }
 0xb2e   :  { %v3019_v30 = vmul.f32 %v5006_v8, %v3018_v33  ;;  %v3236_v33 = vld [vmem:[%s8345_s24 + $0x20] sm:$0xff] }
 0xb2f   :  { %v2997_v61 = vadd.f32 %v5004_v13, %v2996_v3  ;;  %v3235_v3 = vld [vmem:[%s8345_s24 + $0x18] sm:$0xff] }
 0xb30   :  { %v3020_v6 = vadd.f32 %v5006_v8, %v3019_v30  ;;  %v3218_v30 = vld [vmem:[%s8344_s23 + $0x10] sm:$0xff] }
 0xb31   :  { %v3001_v44 = vsel %vm3000_vm14, %v5004_v13, %v2997_v61  ;;  %v3223_v13 = vld [vmem:[%s8344_s23 + $0x38] sm:$0xff]  ;;  %v4849_v61 = vld [vmem:[%s8343_s22] ss:$0 sm:$0xff]  ;;  %s8418_s22 = sld [smem:[#allocation33_spill]] }
 0xb32   :  { %v3006_v57 = vsel %vm3003_vm15, %v3005_v40, %v3001_v44  ;;  %v3024_v31 = vsel %vm3023_vm7, %v5006_v8, %v3020_v6  ;;  %v3238_v8 = vld [vmem:[%s8345_s24 + $0x30] sm:$0xff]  ;;  %v3213_v44 = vpop.f32.mrf.mxu2  ;;  %v3217_v6 = vld [vmem:[%s8344_s23 + $0x8] sm:$0xff] }
 0xb33   :  { %v3035_v32 = vmul.f32 %v3033_v42, %v3006_v57  ;;  %v3029_v45 = vsel %vm3026_vm3, %v3028_v60, %v3024_v31  ;;  %v3233_v57 = vld [vmem:[%s8345_s24 + $0x8] sm:$0xff]  ;;  %v3214_v22 = vadd.f32 %v4849_v61, %v3213_v44  ;;  %v3298_v31 = vld [vmem:[%s8338_s17 + $0x18] sm:$0xff]  ;;  %v3299_v60 = vld [vmem:[%s8338_s17 + $0x20] sm:$0xff] }
 0xb34   :  { %v3038_v52 = vsub.f32 1.0, %v3029_v45  ;;  %v3043_v62 = vmul.f32 %v3041_v51, %v3029_v45  ;;  %v3300_v45 = vld [vmem:[%s8338_s17 + $0x28] sm:$0xff]  ;;  %3329 = vmatpush.msra.mxu0 %v3298_v31  ;;  %3352 = vmatpush.msrb.mxu1 %v3299_v60  ;;  %v7635_v44 = vld [vmem:[#allocation9 + $0xc8] sm:$0xff]  ;;  %v7664_v31 = vld [vmem:[#allocation9 + $0x98] sm:$0xff] }
 0xb35   :  { %v3036_v23 = vadd.f32 %v3035_v32, %v7360_v17  ;;  %v3232_v32 = vld [vmem:[%s8345_s24] sm:$0xff]  ;;  %v7666_v60 = vld [vmem:[#allocation9 + $0xa0] sm:$0xff] }
 0xb37   :  { %5007 = vtanh.f32 %v3036_v23  ;;  %s4732_s1 = sshll.u32 %s8418_s22, 4  ;;  %s4733_s1 = int_to_ptr.hbm [resolvable:$true] %s4732_s1 }
 0xb3d   :  { %v5008_v47 = vpop.eup %5007 }
 0xb3e   :  { %v3039_v53 = vmul.f32 %v5008_v47, %v3038_v52  ;;  %v3295_v52 = vld [vmem:[%s8338_s17] sm:$0xff]  ;;  %v3296_v47 = vld [vmem:[%s8338_s17 + $0x8] sm:$0xff] }
 0xb3f   :  { %3330 = vmatpush.msra.mxu0 %v3295_v52  ;;  %3353 = vmatpush.msrb.mxu1 %v3296_v47  ;;  %v7674_v47 = vld [vmem:[#allocation9 + $0x80] sm:$0xff] }
 0xb40   :  { %v3044_v37 = vadd.f32 %v3043_v62, %v3039_v53  ;;  %v3297_v53 = vld [vmem:[%s8338_s17 + $0x10] sm:$0xff] }
 0xb41   :  { %v7545_v62 = vld [vmem:[#allocation9 + $0x168] sm:$0xff] }
 0xb42   :  { %v3052_v19 = vrot.slane %v3044_v37, 4 }
 0xb44   :  { %v7411_v20 = vsel %vm3050_vm4, %v3052_v19, %v7387_v29  ;;  %v3244_v29 = vld [vmem:[%s8345_s24 + $0x60] sm:$0xff] }
 0xb45   :  { %3071 = vmatmul.f32.vlgmr.msra.gmra.mxu3 %v7411_v20  ;;  %3091 = vmatmul.f32.vlgmr.msrb.gmra.mxu0 %v7411_v20  ;;  %v7549_v19 = vld [vmem:[#allocation9 + $0x178] sm:$0xff] }
 0xb46   :  { %3111 = vmatmul.f32.vlgmr.msra.gmra.mxu1 %v7411_v20  ;;  %3251 = vmatpush.msrb.mxu2 %v3244_v29  ;;  %v7562_v29 = vld [vmem:[#allocation9 + $0x138] sm:$0xff] }
 0xb47   :  { %3432 = vmatpush.msrb.mxu0 %v7545_v62  ;;  %3452 = vmatpush.msra.mxu1 %v7547_v25 }
 0xb48   :  { %3252 = vmatpush.msrb.mxu2 %v3243_v9  ;;  %v7570_v9 = vld [vmem:[#allocation9 + $0x148] sm:$0xff] }
 0xb49   :  { %3433 = vmatpush.msrb.mxu0 %v7553_v16  ;;  %3453 = vmatpush.msra.mxu1 %v7555_v27 }
 0xb4a   :  { %3253 = vmatpush.msrb.mxu2 %v3242_v56 }
 0xb4b   :  { %3434 = vmatpush.msrb.mxu0 %v7562_v29  ;;  %3454 = vmatpush.msra.mxu1 %v7564_v0 }
 0xb4c   :  { %3254 = vmatpush.msrb.mxu2 %v3241_v28  ;;  %v7583_v28 = vld [vmem:[#allocation9 + $0x130] sm:$0xff] }
 0xb4d   :  { %3435 = vmatpush.msrb.mxu0 %v7575_v1 }
 0xb4e   :  { %3255 = vmatpush.msrb.mxu2 %v3240_v50  ;;  %v7589_v50 = vld [vmem:[#allocation9 + $0x110] sm:$0xff] }
 0xb50   :  { %3256 = vmatpush.msrb.mxu2 %v3239_v5  ;;  %v7598_v5 = vld [vmem:[#allocation9 + $0x118] sm:$0xff] }
 0xb52   :  { %3257 = vmatpush.msrb.mxu2 %v3238_v8  ;;  %v7601_v8 = vld [vmem:[#allocation9 + $0xf0] sm:$0xff] }
 0xb54   :  { %3258 = vmatpush.msrb.mxu2 %v3237_v26 }
 0xb56   :  { %3259 = vmatpush.msrb.mxu2 %v3236_v33 }
 0xb58   :  { %3260 = vmatpush.msrb.mxu2 %v3235_v3  ;;  %v7616_v3 = vld [vmem:[#allocation9 + $0xe0] sm:$0xff] }
 0xb5a   :  { %3261 = vmatpush.msrb.mxu2 %v3234_v46  ;;  %v7623_v46 = vld [vmem:[#allocation9 + $0xe8] sm:$0xff] }
 0xb5c   :  { %3262 = vmatpush.msrb.mxu2 %v3233_v57 }
 0xb5e   :  { %3263 = vmatpush.msrb.mxu2 %v3232_v32  ;;  %v7656_v32 = vld [vmem:[#allocation9 + $0xb8] sm:$0xff] }
 0xb5f   :  { %3264 = vmatmul.f32.vlgmr.msrb.gmra.mxu2 %v3214_v22  ;;  %v7654_v22 = vld [vmem:[#allocation9 + $0xb0] sm:$0xff] }
 0xb60   :  { %3375 = vmatpush.msra.mxu2 %v3300_v45  ;;  %v7670_v45 = vld [vmem:[#allocation9 + $0x78] sm:$0xff] }
 0xb62   :  { %3376 = vmatpush.msra.mxu2 %v3297_v53  ;;  %v7676_v53 = vld [vmem:[#allocation9 + $0x88] sm:$0xff] }
 0xb64   :  { %3472 = vmatpush.msrb.mxu2 %v7549_v19 }
 0xb66   :  { %3473 = vmatpush.msrb.mxu2 %v7559_v11 }
 0xb68   :  { %3474 = vmatpush.msrb.mxu2 %v7570_v9 }
 0xb6a   :  { %3475 = vmatpush.msrb.mxu2 %v7583_v28 }
 0xb6c   :  { %3476 = vmatpush.msrb.mxu2 %v7598_v5 }
 0xbc2   :  { %v3092_v2 = vpop.f32.mrf.mxu0 }
 0xbc3   :  { %v3139_v15 = vrot.slane %v3092_v2, 2  ;;  %v3112_v21 = vpop.f32.mrf.mxu1 }
 0xbc4   :  { %v3161_v14 = vadd.f32 %v7357_v41, %v3112_v21 }
 0xbc5   :  { %v3141_v7 = vadd.f32 %v3139_v15, %v7351_v55  ;;  %v3225_v55 = vld [vmem:[%s8344_s23 + $0x48] sm:$0xff] }
 0xbc6   :  { %3274 = vmatpush.msrb.mxu3 %v3225_v55  ;;  %v7587_v55 = vld [vmem:[#allocation9 + $0x108] sm:$0xff] }
 0xbc7   :  { %v4794_v58 = vmul.f32 -1.442695, %v3141_v7  ;;  %3436 = vmatpush.msrb.mxu0 %v7587_v55 }
 0xbc8   :  { %v3072_v34 = vpop.f32.mrf.mxu3  ;;  %3275 = vmatpush.msrb.mxu3 %v3224_v4 }
 0xbc9   :  { %5009 = vpow2.f32 %v4794_v58  ;;  %v3116_v63 = vrot.slane %v3072_v34, 2  ;;  %v7577_v58 = vld [vmem:[#allocation9 + $0x128] sm:$0xff]  ;;  %3437 = vmatpush.msrb.mxu0 %v7601_v8 }
 0xbca   :  { %3276 = vmatpush.msrb.mxu3 %v3223_v13  ;;  %3455 = vmatpush.msra.mxu1 %v7577_v58  ;;  %v3163_v13 = vrot.slane %v3161_v14, 2  ;;  %v7691_v14 = vld [vmem:[#allocation9 + $0x48] sm:$0xff] }
 0xbcb   :  { %v3118_v10 = vadd.f32 %v3116_v63, %v7348_v36  ;;  %v3221_v36 = vld [vmem:[%s8344_s23 + $0x28] sm:$0xff]  ;;  %v3293_v63 = vld [vmem:[%s8411_s29] sm:$0xff] }
 0xbcc   :  { %3277 = vmatpush.msrb.mxu3 %v3222_v59  ;;  %v7603_v59 = vld [vmem:[#allocation9 + $0xf8] sm:$0xff]  ;;  %4796 = vmatmul.msk.f32.vlgmr.msra.gmra.mxu0 %vm154_vm0, %v3293_v63 }
 0xbcd   :  { %v4793_v39 = vmul.f32 -1.442695, %v3118_v10  ;;  %3456 = vmatpush.msra.mxu1 %v7589_v50  ;;  %4800 = vmatmul.msk.f32.vlgmr.msra.gmra.mxu2 %vm154_vm0, %v3293_v63 }
 0xbce   :  { %3278 = vmatpush.msrb.mxu3 %v3221_v36  ;;  %v7610_v36 = vld [vmem:[#allocation9 + $0x100] sm:$0xff]  ;;  %4798 = vmatmul.msk.f32.vlgmr.msrb.gmra.mxu1 %vm154_vm0, %v3293_v63 }
 0xbcf   :  { %v5010_v54 = vpop.eup %5009  ;;  %5011 = vpow2.f32 %v4793_v39  ;;  %3457 = vmatpush.msra.mxu1 %v7603_v59  ;;  %3477 = vmatpush.msrb.mxu2 %v7610_v36 }
 0xbd0   :  { %v7484_v18 = vadd.f32 1.0, %v5010_v54  ;;  %3279 = vmatpush.msrb.mxu3 %v3220_v49  ;;  %v7614_v49 = vld [vmem:[#allocation9 + $0xd8] sm:$0xff] }
 0xbd1   :  { %3438 = vmatpush.msrb.mxu0 %v7614_v49  ;;  %3458 = vmatpush.msra.mxu1 %v7616_v3 }
 0xbd2   :  { %5013 = vrcp.f32 %v7484_v18  ;;  %3280 = vmatpush.msrb.mxu3 %v3219_v12  ;;  %v3157_v54 = vand.u32 2147483648, %v7484_v18  ;;  %vm3151_vm11 = vweird.f32 %v7484_v18  ;;  %v3155_v12 = vand.u32 2147483647, %v7484_v18  ;;  %3478 = vmatpush.msrb.mxu2 %v7623_v46 }
 0xbd3   :  { %3459 = vmatpush.msra.mxu1 %v7635_v44 }
 0xbd4   :  { %3281 = vmatpush.msrb.mxu3 %v3218_v30  ;;  %v3158_v57 = vor.u32 1.1754944e-38, %v3157_v54  ;;  %vm3156_vm13 = vcmp.eq.f32.partialorder %v3155_v12, 8.507059e+37  ;;  %v7724_v54 = vld [vmem:[#allocation9 + $0x28] sm:$0xff]  ;;  %v7733_v30 = vld [vmem:[#allocation9 + $0x10] sm:$0xff] }
 0xbd5   :  { %v5012_v40 = vpop.eup %5011  ;;  %3460 = vmatpush.msra.mxu1 %v7654_v22  ;;  %v7731_v12 = vld [vmem:[#allocation9 + $0x8] sm:$0xff] }
 0xbd6   :  { %v7508_v42 = vadd.f32 1.0, %v5012_v40  ;;  %3282 = vmatpush.msrb.mxu3 %v3217_v6  ;;  %v7633_v40 = vld [vmem:[#allocation9 + $0xc0] sm:$0xff]  ;;  %v7649_v6 = vld [vmem:[#allocation9 + $0xa8] sm:$0xff] }
 0xbd7   :  { %3439 = vmatpush.msrb.mxu0 %v7633_v40  ;;  %3461 = vmatpush.msra.mxu1 %v7664_v31 }
 0xbd8   :  { %5015 = vrcp.f32 %v7508_v42  ;;  %v7523_v23 = vpop.eup %5013  ;;  %3283 = vmatpush.msrb.mxu3 %v3216_v35  ;;  %v3134_v15 = vand.u32 2147483648, %v7508_v42  ;;  %v3132_v56 = vand.u32 2147483647, %v7508_v42  ;;  %vm3128_vm6 = vweird.f32 %v7508_v42 }
 0xbd9   :  { %v3147_v51 = vmul.f32 %v7523_v23, %v7484_v18  ;;  %vm3152_vm10 = vweird.f32 %v7523_v23  ;;  %3440 = vmatpush.msrb.mxu0 %v7649_v6  ;;  %3462 = vmatpush.msra.mxu1 %v7674_v47 }
 0xbda   :  { %3593 = vmatpush.msra.mxu3 %v7545_v62  ;;  %v3135_v4 = vor.u32 1.1754944e-38, %v3134_v15  ;;  %vm3133_vm9 = vcmp.eq.f32.partialorder %v3132_v56, 8.507059e+37  ;;  %vm7627_vm12 = vmor %vm3151_vm11, %vm3152_vm10  ;;  %v7686_v15 = vld [vmem:[#allocation9 + $0x70] sm:$0xff] }
 0xbdb   :  { %v3148_v48 = vsub.f32 1.0, %v3147_v51  ;;  %v3171_v51 = vrot.slane %v7411_v20, 2  ;;  %v7694_v56 = vld [vmem:[#allocation9 + $0x50] sm:$0xff] }
 0xbdc   :  { %3594 = vmatpush.msra.mxu3 %v7553_v16 }
 0xbdd   :  { %v3149_v34 = vmul.f32 %v7523_v23, %v3148_v48 }
 0xbde   :  { %v5016_v37 = vpop.eup %5015  ;;  %3595 = vmatpush.msra.mxu3 %v7562_v29 }
 0xbdf   :  { %v3124_v38 = vmul.f32 %v5016_v37, %v7508_v42  ;;  %vm3129_vm5 = vweird.f32 %v5016_v37  ;;  %v3150_v26 = vadd.f32 %v7523_v23, %v3149_v34  ;;  %v7643_v42 = vld [vmem:[#allocation9 + $0xd0] sm:$0xff]  ;;  %v7696_v34 = vld [vmem:[#allocation9 + $0x58] sm:$0xff] }
 0xbe0   :  { %3596 = vmatpush.msra.mxu3 %v7575_v1  ;;  %vm3130_vm8 = vmor %vm3128_vm6, %vm3129_vm5  ;;  %3479 = vmatpush.msrb.mxu2 %v7643_v42 }
 0xbe1   :  { %v3125_v2 = vsub.f32 1.0, %v3124_v38  ;;  %v3154_v18 = vsel %vm7627_vm12, %v7523_v23, %v3150_v26  ;;  %v7659_v23 = vld [vmem:[#allocation9 + $0x90] sm:$0xff]  ;;  %v7681_v38 = vld [vmem:[#allocation9 + $0x60] sm:$0xff] }
 0xbe2   :  { %3597 = vmatpush.msra.mxu3 %v7587_v55  ;;  %v3159_v35 = vsel %vm3156_vm13, %v3158_v57, %v3154_v18  ;;  %3480 = vmatpush.msrb.mxu2 %v7656_v32  ;;  %v7722_v26 = vld [vmem:[#allocation9 + $0x20] sm:$0xff]  ;;  %v4850_v18 = vld [vmem:[%s8346_s25] ss:$0 sm:$0xff]  ;;  %s4730_s25 = sshll.u32 %s5213_s2, 4  ;;  %s4731_s25 = int_to_ptr.vmem [resolvable:$true] %s4730_s25 }
 0xbe3   :  { %v3126_v7 = vmul.f32 %v5016_v37, %v3125_v2  ;;  %v3168_v52 = vsub.f32 1.0, %v3159_v35  ;;  %3441 = vmatpush.msrb.mxu0 %v7659_v23  ;;  %v3173_v21 = vmul.f32 %v3171_v51, %v3159_v35  ;;  %v7684_v2 = vld [vmem:[#allocation9 + $0x68] sm:$0xff] }
 0xbe4   :  { %3598 = vmatpush.msra.mxu3 %v7601_v8  ;;  %3481 = vmatpush.msrb.mxu2 %v7666_v60 }
 0xbe5   :  { %v3127_v41 = vadd.f32 %v5016_v37, %v3126_v7  ;;  %3442 = vmatpush.msrb.mxu0 %v7670_v45  ;;  %3463 = vmatpush.msra.mxu1 %v7684_v2 }
 0xbe6   :  { %3599 = vmatpush.msra.mxu3 %v7614_v49  ;;  %3482 = vmatpush.msrb.mxu2 %v7676_v53 }
 0xbe7   :  { %v3131_v10 = vsel %vm3130_vm8, %v5016_v37, %v3127_v41  ;;  %3443 = vmatpush.msrb.mxu0 %v7681_v38  ;;  %v3179_v41 = vpop.permute.xlu1 %3178  ;;  %3464 = vmatpush.msra.mxu1 %v7694_v56 }
 0xbe8   :  { %v3136_v39 = vsel %vm3133_vm9, %v3135_v4, %v3131_v10  ;;  %3600 = vmatpush.msra.mxu3 %v7633_v40  ;;  %3483 = vmatpush.msrb.mxu2 %v7686_v15  ;;  %vm3180_vm14 = vcmp.eq.s32.totalorder %v3179_v41, 1  ;;  %v7713_v10 = vld [vmem:[#allocation9 + $0x38] sm:$0xff] }
 0xbe9   :  { %v3165_v33 = vmul.f32 %v3163_v13, %v3136_v39  ;;  %3444 = vmatpush.msrb.mxu0 %v7691_v14  ;;  %v7711_v13 = vld [vmem:[#allocation9 + $0x30] sm:$0xff]  ;;  %v7715_v39 = vld [vmem:[#allocation9 + $0x40] sm:$0xff]  ;;  %3465 = vmatpush.msra.mxu1 %v7713_v10 }
 0xbea   :  { %3484 = vmatpush.msrb.mxu2 %v7696_v34  ;;  %3601 = vmatpush.msra.mxu3 %v7649_v6 }
 0xbeb   :  { %v3166_v61 = vadd.f32 %v3165_v33, %v7360_v17  ;;  %v3294_v17 = vld [vmem:[%s8411_s29 + $0x8] sm:$0x3f]  ;;  %3445 = vmatpush.msrb.mxu0 %v7711_v13  ;;  %3466 = vmatpush.msra.mxu1 %v7722_v26 }
 0xbec   :  { %4797 = vmatmul.msk.f32.gmra.mxu0 %vm154_vm0, %v3294_v17  ;;  %4799 = vmatmul.msk.f32.gmra.mxu1 %vm154_vm0, %v3294_v17  ;;  %v7729_v33 = vld [vmem:[#allocation9] sm:$0xff] }
 0xbed   :  { %5017 = vtanh.f32 %v3166_v61  ;;  %4801 = vmatmul.msk.f32.gmra.mxu2 %vm154_vm0, %v3294_v17  ;;  %3602 = vmatpush.msra.mxu3 %v7659_v23  ;;  %v3265_v61 = vpop.f32.mrf.mxu2 }
 0xbee   :  { %3485 = vmatpush.msrb.mxu2 %v7715_v39  ;;  %3467 = vmatpush.msra.mxu1 %v7731_v12 }
 0xbef   :  { %3603 = vmatpush.msra.mxu3 %v7670_v45 }
 0xbf0   :  { %3486 = vmatpush.msrb.mxu2 %v7724_v54  ;;  %3633 = vmatpush.msrb.mxu1 %v7549_v19 }
 0xbf1   :  { %3604 = vmatpush.msra.mxu3 %v7681_v38 }
 0xbf2   :  { %3487 = vmatpush.msrb.mxu2 %v7733_v30  ;;  %3634 = vmatpush.msrb.mxu1 %v7559_v11 }
 0xbf3   :  { %v5018_v37 = vpop.eup %5017  ;;  %3605 = vmatpush.msra.mxu3 %v7691_v14 }
 0xbf4   :  { %v3169_v48 = vmul.f32 %v5018_v37, %v3168_v52  ;;  %3769 = vmatpush.msra.mxu2 %v7545_v62  ;;  %3635 = vmatpush.msrb.mxu1 %v7570_v9 }
 0xbf5   :  { %3606 = vmatpush.msra.mxu3 %v7711_v13 }
 0xbf6   :  { %v3174_v7 = vadd.f32 %v3173_v21, %v3169_v48  ;;  %3770 = vmatpush.msra.mxu2 %v7553_v16  ;;  %3636 = vmatpush.msrb.mxu1 %v7583_v28 }
 0xbf8   :  { %v3182_v63 = vrot.slane %v3174_v7, 6  ;;  %3771 = vmatpush.msra.mxu2 %v7562_v29  ;;  %3637 = vmatpush.msrb.mxu1 %v7598_v5  ;;  %v4851_v7 = vld [vmem:[%s8341_s20] ss:$0 sm:$0xff] }
 0xbfa   :  { %v3184_v4 = vsel %vm3180_vm14, %v3182_v63, %v7411_v20  ;;  %v7720_v20 = vld [vmem:[#allocation9 + $0x18] sm:$0xff]  ;;  %3772 = vmatpush.msra.mxu2 %v7575_v1  ;;  %3638 = vmatpush.msrb.mxu1 %v7610_v36 }
 0xbfb   :  { %3284 = vmatmul.f32.vlgmr.msrb.gmra.mxu3 %v3184_v4  ;;  %3446 = vmatpush.msrb.mxu0 %v7720_v20 }
 0xbfc   :  { %3607 = vmatpush.msra.mxu3 %v7720_v20  ;;  %3773 = vmatpush.msra.mxu2 %v7587_v55 }
 0xbfd   :  { %3447 = vmatpush.msrb.mxu0 %v7729_v33  ;;  %3639 = vmatpush.msrb.mxu1 %v7623_v46 }
 0xbfe   :  { %3608 = vmatpush.msra.mxu3 %v7729_v33  ;;  %3774 = vmatpush.msra.mxu2 %v7601_v8 }
 0xbff   :  { %3613 = vmatpush.msra.mxu0 %v7547_v25  ;;  %3640 = vmatpush.msrb.mxu1 %v7643_v42 }
 0xc00   :  { %3789 = vmatpush.msrb.mxu3 %v7547_v25  ;;  %3775 = vmatpush.msra.mxu2 %v7614_v49 }
 0xc01   :  { %3614 = vmatpush.msra.mxu0 %v7555_v27  ;;  %3641 = vmatpush.msrb.mxu1 %v7656_v32 }
 0xc02   :  { %3790 = vmatpush.msrb.mxu3 %v7555_v27  ;;  %3776 = vmatpush.msra.mxu2 %v7633_v40 }
 0xc03   :  { %3615 = vmatpush.msra.mxu0 %v7564_v0  ;;  %3642 = vmatpush.msrb.mxu1 %v7666_v60 }
 0xc04   :  { %3791 = vmatpush.msrb.mxu3 %v7564_v0  ;;  %3777 = vmatpush.msra.mxu2 %v7649_v6 }
 0xc05   :  { %3616 = vmatpush.msra.mxu0 %v7577_v58  ;;  %3643 = vmatpush.msrb.mxu1 %v7676_v53 }
 0xc06   :  { %3792 = vmatpush.msrb.mxu3 %v7577_v58  ;;  %3778 = vmatpush.msra.mxu2 %v7659_v23 }
 0xc07   :  { %3617 = vmatpush.msra.mxu0 %v7589_v50  ;;  %3644 = vmatpush.msrb.mxu1 %v7686_v15 }
 0xc08   :  { %3793 = vmatpush.msrb.mxu3 %v7589_v50  ;;  %3779 = vmatpush.msra.mxu2 %v7670_v45 }
 0xc09   :  { %3618 = vmatpush.msra.mxu0 %v7603_v59  ;;  %3645 = vmatpush.msrb.mxu1 %v7696_v34 }
 0xc0a   :  { %3794 = vmatpush.msrb.mxu3 %v7603_v59  ;;  %3780 = vmatpush.msra.mxu2 %v7681_v38 }
 0xc0b   :  { %3619 = vmatpush.msra.mxu0 %v7616_v3  ;;  %3646 = vmatpush.msrb.mxu1 %v7715_v39 }
 0xc0c   :  { %3795 = vmatpush.msrb.mxu3 %v7616_v3  ;;  %3781 = vmatpush.msra.mxu2 %v7691_v14 }
 0xc0d   :  { %3620 = vmatpush.msra.mxu0 %v7635_v44  ;;  %3647 = vmatpush.msrb.mxu1 %v7724_v54 }
 0xc0e   :  { %3796 = vmatpush.msrb.mxu3 %v7635_v44  ;;  %3782 = vmatpush.msra.mxu2 %v7711_v13 }
 0xc0f   :  { %3621 = vmatpush.msra.mxu0 %v7654_v22  ;;  %3648 = vmatpush.msrb.mxu1 %v7733_v30 }
 0xc10   :  { %3797 = vmatpush.msrb.mxu3 %v7654_v22  ;;  %3783 = vmatpush.msra.mxu2 %v7720_v20 }
 0xc11   :  { %3622 = vmatpush.msra.mxu0 %v7664_v31 }
 0xc12   :  { %3798 = vmatpush.msrb.mxu3 %v7664_v31  ;;  %3784 = vmatpush.msra.mxu2 %v7729_v33 }
 0xc13   :  { %3623 = vmatpush.msra.mxu0 %v7674_v47 }
 0xc14   :  { %3799 = vmatpush.msrb.mxu3 %v7674_v47 }
 0xc15   :  { %3624 = vmatpush.msra.mxu0 %v7684_v2 }
 0xc16   :  { %3800 = vmatpush.msrb.mxu3 %v7684_v2 }
 0xc17   :  { %3625 = vmatpush.msra.mxu0 %v7694_v56 }
 0xc18   :  { %3801 = vmatpush.msrb.mxu3 %v7694_v56 }
 0xc19   :  { %3626 = vmatpush.msra.mxu0 %v7713_v10 }
 0xc1a   :  { %3802 = vmatpush.msrb.mxu3 %v7713_v10 }
 0xc1b   :  { %3627 = vmatpush.msra.mxu0 %v7722_v26 }
 0xc1c   :  { %3803 = vmatpush.msrb.mxu3 %v7722_v26 }
 0xc1d   :  { %3628 = vmatpush.msra.mxu0 %v7731_v12 }
 0xc1e   :  { %3804 = vmatpush.msrb.mxu3 %v7731_v12 }
 0xc7e   :  { %v3285_v17 = vpop.f32.mrf.mxu3 }
 0xc7f   :  { %v3286_v57 = vadd.f32 %v3285_v17, %v3265_v61 }
 0xc81   :  { %v7800_v35 = vadd.f32 %v4850_v18, %v3286_v57 }
 0xc83   :  { %3448 = vmatmul.f32.vlgmr.msrb.gmra.mxu0 %v7800_v35  ;;  %3468 = vmatmul.f32.vlgmr.msra.gmra.mxu1 %v7800_v35 }
 0xc84   :  { %3488 = vmatmul.f32.vlgmr.msrb.gmra.mxu2 %v7800_v35  ;;  %3809 = vmatpush.msrb.mxu0 %v7549_v19 }
 0xc85   :  { %3944 = vmatpush.msra.mxu1 %v7545_v62  ;;  %3964 = vmatpush.msrb.mxu2 %v7547_v25  ;;  %v3332_v62 = vpop.f32.mrf.mxu0  ;;  %v3355_v25 = vpop.f32.mrf.mxu1 }
 0xc86   :  { %3810 = vmatpush.msrb.mxu0 %v7559_v11 }
 0xc87   :  { %3945 = vmatpush.msra.mxu1 %v7553_v16  ;;  %3965 = vmatpush.msrb.mxu2 %v7555_v27 }
 0xc88   :  { %3811 = vmatpush.msrb.mxu0 %v7570_v9 }
 0xc89   :  { %3946 = vmatpush.msra.mxu1 %v7562_v29  ;;  %3966 = vmatpush.msrb.mxu2 %v7564_v0  ;;  %v7868_v29 = vld [vmem:[%s8340_s19] sm:$0x7] }
 0xc8a   :  { %3812 = vmatpush.msrb.mxu0 %v7583_v28  ;;  %v8369_v0 = vperm.slane %v7868_v29, 0  ;;  %v8367_v63 = vperm.slane %v7868_v29, 2 }
 0xc8b   :  { %3947 = vmatpush.msra.mxu1 %v7575_v1  ;;  %3967 = vmatpush.msrb.mxu2 %v7577_v58  ;;  %v8368_v1 = vperm.slane %v7868_v29, 1 }
 0xc8c   :  { %3813 = vmatpush.msrb.mxu0 %v7598_v5  ;;  %v7874_v58 = vadd.f32 %v3332_v62, %v8369_v0 }
 0xc8d   :  { %3948 = vmatpush.msra.mxu1 %v7587_v55  ;;  %3968 = vmatpush.msrb.mxu2 %v7589_v50  ;;  %v7861_v16 = vpop.f32.mrf.mxu0  ;;  %v7863_v27 = vpop.f32.mrf.mxu1  ;;  %v7878_v55 = vadd.f32 %v3355_v25, %v8368_v1 }
 0xc8e   :  { %3814 = vmatpush.msrb.mxu0 %v7610_v36 }
 0xc8f   :  { %3949 = vmatpush.msra.mxu1 %v7601_v8  ;;  %3969 = vmatpush.msrb.mxu2 %v7603_v59 }
 0xc90   :  { %3815 = vmatpush.msrb.mxu0 %v7623_v46 }
 0xc91   :  { %3950 = vmatpush.msra.mxu1 %v7614_v49  ;;  %3970 = vmatpush.msrb.mxu2 %v7616_v3 }
 0xc92   :  { %3816 = vmatpush.msrb.mxu0 %v7643_v42 }
 0xc93   :  { %3951 = vmatpush.msra.mxu1 %v7633_v40  ;;  %3971 = vmatpush.msrb.mxu2 %v7635_v44  ;;  %v3378_v44 = vpop.f32.mrf.mxu2 }
 0xc94   :  { %3817 = vmatpush.msrb.mxu0 %v7656_v32 }
 0xc95   :  { %3952 = vmatpush.msra.mxu1 %v7649_v6  ;;  %3972 = vmatpush.msrb.mxu2 %v7654_v22 }
 0xc96   :  { %3818 = vmatpush.msrb.mxu0 %v7666_v60 }
 0xc97   :  { %3953 = vmatpush.msra.mxu1 %v7659_v23  ;;  %3973 = vmatpush.msrb.mxu2 %v7664_v31 }
 0xc98   :  { %3819 = vmatpush.msrb.mxu0 %v7676_v53 }
 0xc99   :  { %3954 = vmatpush.msra.mxu1 %v7670_v45  ;;  %3974 = vmatpush.msrb.mxu2 %v7674_v47 }
 0xc9a   :  { %3820 = vmatpush.msrb.mxu0 %v7686_v15 }
 0xc9b   :  { %3955 = vmatpush.msra.mxu1 %v7681_v38  ;;  %3975 = vmatpush.msrb.mxu2 %v7684_v2  ;;  %v7882_v45 = vpop.f32.mrf.mxu2 }
 0xc9c   :  { %3821 = vmatpush.msrb.mxu0 %v7696_v34 }
 0xc9d   :  { %3956 = vmatpush.msra.mxu1 %v7691_v14  ;;  %3976 = vmatpush.msrb.mxu2 %v7694_v56 }
 0xc9e   :  { %3822 = vmatpush.msrb.mxu0 %v7715_v39 }
 0xc9f   :  { %3957 = vmatpush.msra.mxu1 %v7711_v13  ;;  %3977 = vmatpush.msrb.mxu2 %v7713_v10 }
 0xca0   :  { %3823 = vmatpush.msrb.mxu0 %v7724_v54 }
 0xca1   :  { %3958 = vmatpush.msra.mxu1 %v7720_v20  ;;  %3978 = vmatpush.msrb.mxu2 %v7722_v26 }
 0xca2   :  { %3824 = vmatpush.msrb.mxu0 %v7733_v30 }
 0xca3   :  { %3959 = vmatpush.msra.mxu1 %v7729_v33  ;;  %3979 = vmatpush.msrb.mxu2 %v7731_v12  ;;  %v7890_v12 = vadd.f32 %v3378_v44, %v8367_v63 }
 0xd00   :  { %v3449_v50 = vpop.f32.mrf.mxu0  ;;  %v3469_v8 = vpop.f32.mrf.mxu1 }
 0xd01   :  { %v3492_v59 = vadd.f32 %v3449_v50, %v7874_v58  ;;  %v3512_v49 = vadd.f32 %v3469_v8, %v7878_v55 }
 0xd03   :  { %v4802_v3 = vmul.f32 -1.442695, %v3492_v59  ;;  %v4803_v40 = vmul.f32 -1.442695, %v3512_v49 }
 0xd05   :  { %5019 = vpow2.f32 %v4802_v3 }
 0xd06   :  { %5021 = vpow2.f32 %v4803_v40 }
 0xd07   :  { %v3489_v41 = vpop.f32.mrf.mxu2 }
 0xd08   :  { %v3536_v20 = vadd.f32 %v4851_v7, %v3489_v41 }
 0xd0b   :  { %v5020_v6 = vpop.eup %5019 }
 0xd0c   :  { %v5022_v22 = vpop.eup %5021  ;;  %v3496_v23 = vadd.f32 1.0, %v5020_v6 }
 0xd0d   :  { %v3516_v31 = vadd.f32 1.0, %v5022_v22 }
 0xd0e   :  { %5023 = vrcp.f32 %v3496_v23  ;;  %v3508_v21 = vand.u32 2147483648, %v3496_v23  ;;  %v3506_v14 = vand.u32 2147483647, %v3496_v23  ;;  %vm3502_vm15 = vweird.f32 %v3496_v23 }
 0xd0f   :  { %5025 = vrcp.f32 %v3516_v31  ;;  %v3528_v61 = vand.u32 2147483648, %v3516_v31  ;;  %vm3522_vm3 = vweird.f32 %v3516_v31  ;;  %v3526_v17 = vand.u32 2147483647, %v3516_v31 }
 0xd10   :  { %v3509_v13 = vor.u32 1.1754944e-38, %v3508_v21  ;;  %vm3507_vm2 = vcmp.eq.f32.partialorder %v3506_v14, 8.507059e+37 }
 0xd11   :  { %v3529_v25 = vor.u32 1.1754944e-38, %v3528_v61  ;;  %vm3527_vm5 = vcmp.eq.f32.partialorder %v3526_v17, 8.507059e+37 }
 0xd14   :  { %v5024_v51 = vpop.eup %5023 }
 0xd15   :  { %v5026_v52 = vpop.eup %5025  ;;  %v3498_v47 = vmul.f32 %v5024_v51, %v3496_v23  ;;  %vm3503_vm0 = vweird.f32 %v5024_v51 }
 0xd16   :  { %v3518_v37 = vmul.f32 %v5026_v52, %v3516_v31  ;;  %vm3504_vm1 = vmor %vm3502_vm15, %vm3503_vm0  ;;  %vm3523_vm7 = vweird.f32 %v5026_v52 }
 0xd17   :  { %v3499_v38 = vsub.f32 1.0, %v3498_v47  ;;  %vm3524_vm4 = vmor %vm3522_vm3, %vm3523_vm7 }
 0xd18   :  { %v3519_v48 = vsub.f32 1.0, %v3518_v37 }
 0xd19   :  { %v3500_v2 = vmul.f32 %v5024_v51, %v3499_v38 }
 0xd1a   :  { %v3520_v56 = vmul.f32 %v5026_v52, %v3519_v48 }
 0xd1b   :  { %v3501_v4 = vadd.f32 %v5024_v51, %v3500_v2 }
 0xd1c   :  { %v3521_v26 = vadd.f32 %v5026_v52, %v3520_v56 }
 0xd1d   :  { %v3505_v10 = vsel %vm3504_vm1, %v5024_v51, %v3501_v4 }
 0xd1e   :  { %v3510_v33 = vsel %vm3507_vm2, %v3509_v13, %v3505_v10  ;;  %v3525_v62 = vsel %vm3524_vm4, %v5026_v52, %v3521_v26 }
 0xd1f   :  { %v3537_v18 = vmul.f32 %v3536_v20, %v3510_v33  ;;  %v3530_v50 = vsel %vm3527_vm5, %v3529_v25, %v3525_v62 }
 0xd20   :  { %v3540_v8 = vsub.f32 1.0, %v3530_v50  ;;  %v3542_v3 = vmul.f32 %v3530_v50, %v7800_v35 }
 0xd21   :  { %v3538_v57 = vadd.f32 %v3537_v18, %v7890_v12 }
 0xd23   :  { %5027 = vtanh.f32 %v3538_v57 }
 0xd29   :  { %v5028_v59 = vpop.eup %5027 }
 0xd2a   :  { %v3541_v49 = vmul.f32 %v5028_v59, %v3540_v8 }
 0xd2c   :  { %v7894_v40 = vadd.f32 %v3542_v3, %v3541_v49 }
 0xd2e   :  { %3544 = vst [vmem:[#allocation3] sm:$0x3] %v7894_v40  ;;  %3609 = vmatmul.f32.vlgmr.msra.gmra.mxu3 %v7894_v40  ;;  %3629 = vmatmul.f32.vlgmr.msra.gmra.mxu0 %v7894_v40  ;;  %v3713_v33 = vrot.slane %v7894_v40, 6 }
 0xd2f   :  { %3649 = vmatmul.f32.vlgmr.msrb.gmra.mxu1 %v7894_v40  ;;  %3984 = vmatpush.msra.mxu3 %v7549_v19 }
 0xd31   :  { %3985 = vmatpush.msra.mxu3 %v7559_v11 }
 0xd33   :  { %3986 = vmatpush.msra.mxu3 %v7570_v9 }
 0xd35   :  { %3987 = vmatpush.msra.mxu3 %v7583_v28 }
 0xd37   :  { %3988 = vmatpush.msra.mxu3 %v7598_v5 }
 0xd39   :  { %3989 = vmatpush.msra.mxu3 %v7610_v36 }
 0xd3b   :  { %3990 = vmatpush.msra.mxu3 %v7623_v46 }
 0xd3d   :  { %3991 = vmatpush.msra.mxu3 %v7643_v42 }
 0xd3f   :  { %3992 = vmatpush.msra.mxu3 %v7656_v32 }
 0xd41   :  { %3993 = vmatpush.msra.mxu3 %v7666_v60 }
 0xd43   :  { %3994 = vmatpush.msra.mxu3 %v7676_v53 }
 0xd45   :  { %3995 = vmatpush.msra.mxu3 %v7686_v15 }
 0xd47   :  { %3996 = vmatpush.msra.mxu3 %v7696_v34 }
 0xd49   :  { %3997 = vmatpush.msra.mxu3 %v7715_v39 }
 0xd4b   :  { %3998 = vmatpush.msra.mxu3 %v7724_v54 }
 0xd4d   :  { %3999 = vmatpush.msra.mxu3 %v7733_v30  ;;  %v4852_v30 = vld [vmem:[%s8341_s20] ss:$0 sm:$0xff] }
 0xdab   :  { %v3630_v19 = vpop.f32.mrf.mxu0 }
 0xdac   :  { %v3677_v11 = vrot.slane %v3630_v19, 6  ;;  %v3650_v6 = vpop.f32.mrf.mxu1 }
 0xdad   :  { %v3703_v31 = vadd.f32 %v4852_v30, %v3650_v6 }
 0xdae   :  { %v3679_v9 = vadd.f32 %v3677_v11, %v7878_v55 }
 0xdaf   :  { %v3705_v48 = vrot.slane %v3703_v31, 6 }
 0xdb0   :  { %v4805_v28 = vmul.f32 -1.442695, %v3679_v9 }
 0xdb1   :  { %v3610_v5 = vpop.f32.mrf.mxu3 }
 0xdb2   :  { %5029 = vpow2.f32 %v4805_v28  ;;  %v3654_v36 = vrot.slane %v3610_v5, 6 }
 0xdb4   :  { %v3656_v46 = vadd.f32 %v3654_v36, %v7874_v58 }
 0xdb6   :  { %v4804_v42 = vmul.f32 -1.442695, %v3656_v46 }
 0xdb8   :  { %v5030_v32 = vpop.eup %5029  ;;  %5031 = vpow2.f32 %v4804_v42  ;;  %v4853_v42 = vld [vmem:[%s8341_s20] ss:$0 sm:$0xff] }
 0xdb9   :  { %v3683_v60 = vadd.f32 1.0, %v5030_v32 }
 0xdbb   :  { %5033 = vrcp.f32 %v3683_v60  ;;  %v3695_v7 = vand.u32 2147483648, %v3683_v60  ;;  %vm3689_vm12 = vweird.f32 %v3683_v60  ;;  %v3693_v41 = vand.u32 2147483647, %v3683_v60 }
 0xdbd   :  { %v3696_v10 = vor.u32 1.1754944e-38, %v3695_v7  ;;  %vm3694_vm14 = vcmp.eq.f32.partialorder %v3693_v41, 8.507059e+37 }
 0xdbe   :  { %v5032_v53 = vpop.eup %5031 }
 0xdbf   :  { %v3660_v15 = vadd.f32 1.0, %v5032_v53 }
 0xdc1   :  { %5035 = vrcp.f32 %v3660_v15  ;;  %v5034_v34 = vpop.eup %5033  ;;  %v3672_v23 = vand.u32 2147483648, %v3660_v15  ;;  %v3670_v52 = vand.u32 2147483647, %v3660_v15  ;;  %vm3666_vm8 = vweird.f32 %v3660_v15 }
 0xdc2   :  { %v3685_v39 = vmul.f32 %v5034_v34, %v3683_v60  ;;  %vm3690_vm11 = vweird.f32 %v5034_v34 }
 0xdc3   :  { %v3673_v38 = vor.u32 1.1754944e-38, %v3672_v23  ;;  %vm3671_vm10 = vcmp.eq.f32.partialorder %v3670_v52, 8.507059e+37  ;;  %vm3691_vm13 = vmor %vm3689_vm12, %vm3690_vm11 }
 0xdc4   :  { %v3686_v44 = vsub.f32 1.0, %v3685_v39 }
 0xdc6   :  { %v3687_v47 = vmul.f32 %v5034_v34, %v3686_v44 }
 0xdc7   :  { %v5036_v54 = vpop.eup %5035 }
 0xdc8   :  { %v3662_v35 = vmul.f32 %v5036_v54, %v3660_v15  ;;  %vm3667_vm6 = vweird.f32 %v5036_v54  ;;  %v3688_v14 = vadd.f32 %v5034_v34, %v3687_v47 }
 0xdc9   :  { %vm3668_vm9 = vmor %vm3666_vm8, %vm3667_vm6 }
 0xdca   :  { %v3663_v22 = vsub.f32 1.0, %v3662_v35  ;;  %v3692_v13 = vsel %vm3691_vm13, %v5034_v34, %v3688_v14 }
 0xdcb   :  { %v3697_v20 = vsel %vm3694_vm14, %v3696_v10, %v3692_v13 }
 0xdcc   :  { %v3664_v51 = vmul.f32 %v5036_v54, %v3663_v22  ;;  %v3710_v26 = vsub.f32 1.0, %v3697_v20  ;;  %v3715_v17 = vmul.f32 %v3713_v33, %v3697_v20  ;;  %v7935_v33 = vld [vmem:[#allocation9 + $0x170] sm:$0xff] }
 0xdcd   :  { %4139 = vmatpush.msrb.mxu1 %v7935_v33 }
 0xdce   :  { %v3665_v37 = vadd.f32 %v5036_v54, %v3664_v51 }
 0xdd0   :  { %v3669_v21 = vsel %vm3668_vm9, %v5036_v54, %v3665_v37 }
 0xdd1   :  { %v3674_v2 = vsel %vm3671_vm10, %v3673_v38, %v3669_v21 }
 0xdd2   :  { %v3707_v56 = vmul.f32 %v3705_v48, %v3674_v2 }
 0xdd4   :  { %v3708_v4 = vadd.f32 %v3707_v56, %v7890_v12 }
 0xdd6   :  { %5037 = vtanh.f32 %v3708_v4 }
 0xddc   :  { %v5038_v61 = vpop.eup %5037 }
 0xddd   :  { %v3711_v18 = vmul.f32 %v5038_v61, %v3710_v26  ;;  %v7933_v26 = vld [vmem:[#allocation9 + $0x168] sm:$0xff]  ;;  %v7937_v61 = vld [vmem:[#allocation9 + $0x178] sm:$0xff] }
 0xdde   :  { %4119 = vmatpush.msra.mxu0 %v7933_v26 }
 0xddf   :  { %v3716_v57 = vadd.f32 %v3715_v17, %v3711_v18  ;;  %v7942_v18 = vld [vmem:[#allocation9 + $0x150] sm:$0xff]  ;;  %v7944_v17 = vld [vmem:[#allocation9 + $0x158] sm:$0xff] }
 0xde0   :  { %4120 = vmatpush.msra.mxu0 %v7942_v18  ;;  %4140 = vmatpush.msrb.mxu1 %v7944_v17 }
 0xde1   :  { %3717 = vst [vmem:[#allocation3] sm:$0xc] %v3716_v57  ;;  %v3767_v62 = vrot.slane %v3716_v57, 2  ;;  %v3888_v56 = vrot.slane %v3716_v57, 6  ;;  %v7946_v57 = vld [vmem:[#allocation9 + $0x160] sm:$0xff] }
 0xde3   :  { %3785 = vmatmul.f32.vlgmr.msra.gmra.mxu2 %v3767_v62  ;;  %3805 = vmatmul.f32.vlgmr.msrb.gmra.mxu3 %v3767_v62 }
 0xde4   :  { %3825 = vmatmul.f32.vlgmr.msrb.gmra.mxu0 %v3767_v62  ;;  %4159 = vmatpush.msra.mxu2 %v7937_v61  ;;  %v7952_v62 = vld [vmem:[#allocation9 + $0x138] sm:$0xff] }
 0xde5   :  { %4280 = vmatpush.msrb.mxu3 %v7933_v26  ;;  %4121 = vmatpush.msra.mxu0 %v7952_v62 }
 0xde6   :  { %4160 = vmatpush.msra.mxu2 %v7946_v57 }
 0xde7   :  { %4281 = vmatpush.msrb.mxu3 %v7942_v18 }
 0xde9   :  { %4282 = vmatpush.msrb.mxu3 %v7952_v62 }
 0xe61   :  { %v3826_v60 = vpop.f32.mrf.mxu0 }
 0xe62   :  { %v3879_v54 = vadd.f32 %v4853_v42, %v3826_v60  ;;  %v8002_v60 = vld [vmem:[#allocation9 + $0xc0] sm:$0xff] }
 0xe64   :  { %v3881_v23 = vrot.slane %v3879_v54, 4  ;;  %v8015_v54 = vld [vmem:[#allocation9 + $0xb0] sm:$0xff] }
 0xe66   :  { %v3786_v25 = vpop.f32.mrf.mxu2  ;;  %v3806_v50 = vpop.f32.mrf.mxu3 }
 0xe67   :  { %v3830_v8 = vrot.slane %v3786_v25, 4  ;;  %v3853_v59 = vrot.slane %v3806_v50, 4  ;;  %v7954_v25 = vld [vmem:[#allocation9 + $0x140] sm:$0xff]  ;;  %v7956_v50 = vld [vmem:[#allocation9 + $0x148] sm:$0xff] }
 0xe68   :  { %4141 = vmatpush.msrb.mxu1 %v7954_v25  ;;  %4161 = vmatpush.msra.mxu2 %v7956_v50 }
 0xe69   :  { %v3832_v49 = vadd.f32 %v3830_v8, %v7874_v58  ;;  %v3855_v3 = vadd.f32 %v3853_v59, %v7878_v55  ;;  %v7962_v8 = vld [vmem:[#allocation9 + $0x120] sm:$0xff]  ;;  %v7964_v59 = vld [vmem:[#allocation9 + $0x128] sm:$0xff] }
 0xe6a   :  { %4122 = vmatpush.msra.mxu0 %v7962_v8  ;;  %4142 = vmatpush.msrb.mxu1 %v7964_v59 }
 0xe6b   :  { %v4806_v19 = vmul.f32 -1.442695, %v3832_v49  ;;  %v4807_v11 = vmul.f32 -1.442695, %v3855_v3  ;;  %v7966_v49 = vld [vmem:[#allocation9 + $0x130] sm:$0xff]  ;;  %v7972_v3 = vld [vmem:[#allocation9 + $0x108] sm:$0xff]  ;;  %4283 = vmatpush.msrb.mxu3 %v7962_v8 }
 0xe6c   :  { %4162 = vmatpush.msra.mxu2 %v7966_v49  ;;  %4123 = vmatpush.msra.mxu0 %v7972_v3 }
 0xe6d   :  { %5039 = vpow2.f32 %v4806_v19  ;;  %v7974_v19 = vld [vmem:[#allocation9 + $0x110] sm:$0xff]  ;;  %4284 = vmatpush.msrb.mxu3 %v7972_v3 }
 0xe6e   :  { %5041 = vpow2.f32 %v4807_v11  ;;  %v7976_v11 = vld [vmem:[#allocation9 + $0x118] sm:$0xff]  ;;  %4143 = vmatpush.msrb.mxu1 %v7974_v19 }
 0xe6f   :  { %4163 = vmatpush.msra.mxu2 %v7976_v11 }
 0xe73   :  { %v5040_v40 = vpop.eup %5039 }
 0xe74   :  { %v5042_v9 = vpop.eup %5041  ;;  %v3836_v28 = vadd.f32 1.0, %v5040_v40  ;;  %v7982_v40 = vld [vmem:[#allocation9 + $0xf0] sm:$0xff] }
 0xe75   :  { %v3859_v5 = vadd.f32 1.0, %v5042_v9  ;;  %v7984_v9 = vld [vmem:[#allocation9 + $0xf8] sm:$0xff]  ;;  %4124 = vmatpush.msra.mxu0 %v7982_v40  ;;  %4285 = vmatpush.msrb.mxu3 %v7982_v40 }
 0xe76   :  { %5043 = vrcp.f32 %v3836_v28  ;;  %v3848_v34 = vand.u32 2147483648, %v3836_v28  ;;  %v3846_v35 = vand.u32 2147483647, %v3836_v28  ;;  %vm3842_vm15 = vweird.f32 %v3836_v28  ;;  %4144 = vmatpush.msrb.mxu1 %v7984_v9 }
 0xe77   :  { %5045 = vrcp.f32 %v3859_v5  ;;  %v3871_v37 = vand.u32 2147483648, %v3859_v5  ;;  %vm3865_vm3 = vweird.f32 %v3859_v5  ;;  %v3869_v38 = vand.u32 2147483647, %v3859_v5 }
 0xe78   :  { %v3849_v22 = vor.u32 1.1754944e-38, %v3848_v34  ;;  %vm3847_vm2 = vcmp.eq.f32.partialorder %v3846_v35, 8.507059e+37 }
 0xe79   :  { %v3872_v2 = vor.u32 1.1754944e-38, %v3871_v37  ;;  %vm3870_vm5 = vcmp.eq.f32.partialorder %v3869_v38, 8.507059e+37  ;;  %v8041_v37 = vld [vmem:[#allocation9 + $0x68] sm:$0xff]  ;;  %v8046_v38 = vld [vmem:[#allocation9 + $0x70] sm:$0xff] }
 0xe7c   :  { %v5044_v36 = vpop.eup %5043 }
 0xe7d   :  { %v5046_v46 = vpop.eup %5045  ;;  %v3838_v32 = vmul.f32 %v5044_v36, %v3836_v28  ;;  %vm3843_vm0 = vweird.f32 %v5044_v36  ;;  %v7986_v28 = vld [vmem:[#allocation9 + $0x100] sm:$0xff] }
 0xe7e   :  { %v3861_v53 = vmul.f32 %v5046_v46, %v3859_v5  ;;  %vm3844_vm1 = vmor %vm3842_vm15, %vm3843_vm0  ;;  %vm3866_vm7 = vweird.f32 %v5046_v46  ;;  %4164 = vmatpush.msra.mxu2 %v7986_v28  ;;  %v7992_v5 = vld [vmem:[#allocation9 + $0xd8] sm:$0xff] }
 0xe7f   :  { %v3839_v15 = vsub.f32 1.0, %v3838_v32  ;;  %vm3867_vm4 = vmor %vm3865_vm3, %vm3866_vm7  ;;  %4125 = vmatpush.msra.mxu0 %v7992_v5  ;;  %4286 = vmatpush.msrb.mxu3 %v7992_v5 }
 0xe80   :  { %v3862_v39 = vsub.f32 1.0, %v3861_v53  ;;  %v8004_v53 = vld [vmem:[#allocation9 + $0xc8] sm:$0xff] }
 0xe81   :  { %v3840_v30 = vmul.f32 %v5044_v36, %v3839_v15  ;;  %v8006_v15 = vld [vmem:[#allocation9 + $0xd0] sm:$0xff]  ;;  %4126 = vmatpush.msra.mxu0 %v8002_v60  ;;  %4287 = vmatpush.msrb.mxu3 %v8002_v60 }
 0xe82   :  { %v3863_v44 = vmul.f32 %v5046_v46, %v3862_v39  ;;  %v8013_v39 = vld [vmem:[#allocation9 + $0xa8] sm:$0xff] }
 0xe83   :  { %v3841_v6 = vadd.f32 %v5044_v36, %v3840_v30  ;;  %v8017_v30 = vld [vmem:[#allocation9 + $0xb8] sm:$0xff]  ;;  %4127 = vmatpush.msra.mxu0 %v8013_v39  ;;  %4288 = vmatpush.msrb.mxu3 %v8013_v39 }
 0xe84   :  { %v3864_v52 = vadd.f32 %v5046_v46, %v3863_v44  ;;  %v8023_v44 = vld [vmem:[#allocation9 + $0x90] sm:$0xff] }
 0xe85   :  { %v3845_v31 = vsel %vm3844_vm1, %v5044_v36, %v3841_v6  ;;  %v7994_v36 = vld [vmem:[#allocation9 + $0xe0] sm:$0xff]  ;;  %4128 = vmatpush.msra.mxu0 %v8023_v44  ;;  %4289 = vmatpush.msrb.mxu3 %v8023_v44 }
 0xe86   :  { %v3850_v51 = vsel %vm3847_vm2, %v3849_v22, %v3845_v31  ;;  %v3868_v21 = vsel %vm3867_vm4, %v5046_v46, %v3864_v52  ;;  %v7996_v46 = vld [vmem:[#allocation9 + $0xe8] sm:$0xff]  ;;  %4145 = vmatpush.msrb.mxu1 %v7994_v36  ;;  %v8027_v6 = vld [vmem:[#allocation9 + $0xa0] sm:$0xff] }
 0xe87   :  { %v3883_v47 = vmul.f32 %v3881_v23, %v3850_v51  ;;  %v3873_v14 = vsel %vm3870_vm5, %v3872_v2, %v3868_v21  ;;  %4165 = vmatpush.msra.mxu2 %v7996_v46  ;;  %v8032_v23 = vld [vmem:[#allocation9 + $0x78] sm:$0xff]  ;;  %v8034_v31 = vld [vmem:[#allocation9 + $0x80] sm:$0xff]  ;;  %v8036_v51 = vld [vmem:[#allocation9 + $0x88] sm:$0xff] }
 0xe88   :  { %v3886_v7 = vsub.f32 1.0, %v3873_v14  ;;  %v3890_v13 = vmul.f32 %v3888_v56, %v3873_v14  ;;  %4146 = vmatpush.msrb.mxu1 %v8004_v53  ;;  %4129 = vmatpush.msra.mxu0 %v8032_v23  ;;  %v8050_v21 = vld [vmem:[#allocation9 + $0x48] sm:$0xff]  ;;  %v8052_v2 = vld [vmem:[#allocation9 + $0x50] sm:$0xff]  ;;  %v8057_v14 = vld [vmem:[#allocation9 + $0x58] sm:$0xff] }
 0xe89   :  { %v3884_v48 = vadd.f32 %v3883_v47, %v7890_v12  ;;  %4166 = vmatpush.msra.mxu2 %v8006_v15  ;;  %v8039_v47 = vld [vmem:[#allocation9 + $0x60] sm:$0xff]  ;;  %4290 = vmatpush.msrb.mxu3 %v8032_v23  ;;  %v8060_v56 = vld [vmem:[#allocation9 + $0x30] sm:$0xff] }
 0xe8a   :  { %4147 = vmatpush.msrb.mxu1 %v8015_v54  ;;  %4130 = vmatpush.msra.mxu0 %v8039_v47 }
 0xe8b   :  { %5047 = vtanh.f32 %v3884_v48  ;;  %4167 = vmatpush.msra.mxu2 %v8017_v30  ;;  %4291 = vmatpush.msrb.mxu3 %v8039_v47 }
 0xe8c   :  { %4131 = vmatpush.msra.mxu0 %v8050_v21 }
 0xe8d   :  { %4168 = vmatpush.msra.mxu2 %v8027_v6  ;;  %4292 = vmatpush.msrb.mxu3 %v8050_v21 }
 0xe8e   :  { %4132 = vmatpush.msra.mxu0 %v8060_v56 }
 0xe8f   :  { %4169 = vmatpush.msra.mxu2 %v8036_v51  ;;  %4293 = vmatpush.msrb.mxu3 %v8060_v56 }
 0xe91   :  { %v5048_v41 = vpop.eup %5047  ;;  %4170 = vmatpush.msra.mxu2 %v8046_v38 }
 0xe92   :  { %v3887_v4 = vmul.f32 %v5048_v41, %v3886_v7  ;;  %v8067_v41 = vld [vmem:[#allocation9 + $0x40] sm:$0xff] }
 0xe93   :  { %4171 = vmatpush.msra.mxu2 %v8057_v14 }
 0xe94   :  { %v7929_v10 = vadd.f32 %v3890_v13, %v3887_v4  ;;  %v8070_v13 = vld [vmem:[#allocation9 + $0x18] sm:$0xff] }
 0xe95   :  { %4172 = vmatpush.msra.mxu2 %v8067_v41  ;;  %4133 = vmatpush.msra.mxu0 %v8070_v13 }
 0xe96   :  { %3892 = vst [vmem:[#allocation3] sm:$0x30] %v7929_v10  ;;  %v3942_v20 = vrot.slane %v7929_v10, 4  ;;  %4294 = vmatpush.msrb.mxu3 %v8070_v13 }
 0xe98   :  { %3960 = vmatmul.f32.vlgmr.msra.gmra.mxu1 %v3942_v20  ;;  %3980 = vmatmul.f32.vlgmr.msrb.gmra.mxu2 %v3942_v20 }
 0xe99   :  { %4000 = vmatmul.f32.vlgmr.msra.gmra.mxu3 %v3942_v20  ;;  %v8072_v20 = vld [vmem:[#allocation9 + $0x20] sm:$0xff] }
 0xf15   :  { %v3961_v42 = vpop.f32.mrf.mxu1 }
 0xf16   :  { %v4005_v32 = vrot.slane %v3961_v42, 2 }
 0xf18   :  { %v4007_v34 = vadd.f32 %v4005_v32, %v7874_v58  ;;  %v8025_v58 = vld [vmem:[#allocation9 + $0x98] sm:$0xff]  ;;  %v8077_v32 = vld [vmem:[#allocation9 + $0x28] sm:$0xff] }
 0xf19   :  { %4148 = vmatpush.msrb.mxu1 %v8025_v58  ;;  %4173 = vmatpush.msra.mxu2 %v8077_v32 }
 0xf1a   :  { %v4808_v35 = vmul.f32 -1.442695, %v4007_v34  ;;  %v8080_v34 = vld [vmem:[#allocation9] sm:$0xff] }
 0xf1b   :  { %v3981_v22 = vpop.f32.mrf.mxu2  ;;  %4149 = vmatpush.msrb.mxu1 %v8034_v31  ;;  %4134 = vmatpush.msra.mxu0 %v8080_v34 }
 0xf1c   :  { %5049 = vpow2.f32 %v4808_v35  ;;  %v4028_v52 = vrot.slane %v3981_v22, 2  ;;  %v8082_v35 = vld [vmem:[#allocation9 + $0x8] sm:$0xff]  ;;  %v8087_v22 = vld [vmem:[#allocation9 + $0x10] sm:$0xff]  ;;  %4295 = vmatpush.msrb.mxu3 %v8080_v34  ;;  %v4001_v63 = vpop.f32.mrf.mxu3 }
 0xf1d   :  { %4150 = vmatpush.msrb.mxu1 %v8041_v37  ;;  %4174 = vmatpush.msra.mxu2 %v8087_v22 }
 0xf1e   :  { %v4030_v48 = vadd.f32 %v4028_v52, %v7878_v55  ;;  %v8062_v55 = vld [vmem:[#allocation9 + $0x38] sm:$0xff]  ;;  %4300 = vmatpush.msrb.mxu0 %v7935_v33  ;;  %4476 = vmatpush.msra.mxu3 %v7935_v33 }
 0xf1f   :  { %4151 = vmatpush.msrb.mxu1 %v8052_v2  ;;  %4456 = vmatpush.msrb.mxu2 %v7933_v26 }
 0xf20   :  { %v4809_v7 = vmul.f32 -1.442695, %v4030_v48  ;;  %4301 = vmatpush.msrb.mxu0 %v7944_v17  ;;  %4477 = vmatpush.msra.mxu3 %v7944_v17 }
 0xf21   :  { %4152 = vmatpush.msrb.mxu1 %v8062_v55  ;;  %4457 = vmatpush.msrb.mxu2 %v7942_v18 }
 0xf22   :  { %v5050_v4 = vpop.eup %5049  ;;  %5051 = vpow2.f32 %v4809_v7  ;;  %4302 = vmatpush.msrb.mxu0 %v7954_v25  ;;  %4478 = vmatpush.msra.mxu3 %v7954_v25 }
 0xf23   :  { %v4011_v42 = vadd.f32 1.0, %v5050_v4  ;;  %4153 = vmatpush.msrb.mxu1 %v8072_v20  ;;  %4458 = vmatpush.msrb.mxu2 %v7952_v62 }
 0xf24   :  { %4303 = vmatpush.msrb.mxu0 %v7964_v59  ;;  %4479 = vmatpush.msra.mxu3 %v7964_v59 }
 0xf25   :  { %5053 = vrcp.f32 %v4011_v42  ;;  %4154 = vmatpush.msrb.mxu1 %v8082_v35  ;;  %v4023_v33 = vand.u32 2147483648, %v4011_v42  ;;  %v4021_v0 = vand.u32 2147483647, %v4011_v42  ;;  %4459 = vmatpush.msrb.mxu2 %v7962_v8  ;;  %vm4017_vm8 = vweird.f32 %v4011_v42 }
 0xf26   :  { %4304 = vmatpush.msrb.mxu0 %v7974_v19  ;;  %4480 = vmatpush.msra.mxu3 %v7974_v19 }
 0xf27   :  { %4320 = vmatpush.msra.mxu1 %v7937_v61  ;;  %4460 = vmatpush.msrb.mxu2 %v7972_v3  ;;  %v4024_v25 = vor.u32 1.1754944e-38, %v4023_v33  ;;  %vm4022_vm10 = vcmp.eq.f32.partialorder %v4021_v0, 8.507059e+37 }
 0xf28   :  { %v5052_v52 = vpop.eup %5051  ;;  %4305 = vmatpush.msrb.mxu0 %v7984_v9  ;;  %4481 = vmatpush.msra.mxu3 %v7984_v9 }
 0xf29   :  { %v8095_v48 = vadd.f32 1.0, %v5052_v52  ;;  %4321 = vmatpush.msra.mxu1 %v7946_v57  ;;  %v4854_v52 = vld [vmem:[%s8341_s20] ss:$0 sm:$0xff]  ;;  %4461 = vmatpush.msrb.mxu2 %v7982_v40 }
 0xf2a   :  { %v4054_v43 = vadd.f32 %v4854_v52, %v4001_v63  ;;  %4306 = vmatpush.msrb.mxu0 %v7994_v36  ;;  %4482 = vmatpush.msra.mxu3 %v7994_v36  ;;  %v4063_v36 = vrot.slane %v7929_v10, 6 }
 0xf2b   :  { %v5054_v7 = vpop.eup %5053  ;;  %5055 = vrcp.f32 %v8095_v48  ;;  %4322 = vmatpush.msra.mxu1 %v7956_v50  ;;  %4462 = vmatpush.msrb.mxu2 %v7992_v5  ;;  %vm4040_vm12 = vweird.f32 %v8095_v48 }
 0xf2c   :  { %v4013_v4 = vmul.f32 %v5054_v7, %v4011_v42  ;;  %vm4018_vm6 = vweird.f32 %v5054_v7  ;;  %v4046_v42 = vand.u32 2147483648, %v8095_v48  ;;  %4307 = vmatpush.msrb.mxu0 %v8004_v53  ;;  %4483 = vmatpush.msra.mxu3 %v8004_v53 }
 0xf2d   :  { %4323 = vmatpush.msra.mxu1 %v7966_v49  ;;  %vm4019_vm9 = vmor %vm4017_vm8, %vm4018_vm6  ;;  %4463 = vmatpush.msrb.mxu2 %v8002_v60  ;;  %vm4625_vm6 = vcmp.lt.s32.totalorder %v7058_v24, 64 }
 0xf2e   :  { %v4014_v26 = vsub.f32 1.0, %v4013_v4  ;;  %v4056_v4 = vrot.slane %v4054_v43, 2  ;;  %v4044_v43 = vand.u32 2147483647, %v8095_v48  ;;  %4308 = vmatpush.msrb.mxu0 %v8015_v54  ;;  %v4047_v9 = vor.u32 1.1754944e-38, %v4046_v42  ;;  %4484 = vmatpush.msra.mxu3 %v8015_v54 }
 0xf2f   :  { %4324 = vmatpush.msra.mxu1 %v7976_v11  ;;  %4464 = vmatpush.msrb.mxu2 %v8013_v39 }
 0xf30   :  { %v4015_v1 = vmul.f32 %v5054_v7, %v4014_v26  ;;  %vm4045_vm14 = vcmp.eq.f32.partialorder %v4044_v43, 8.507059e+37  ;;  %4309 = vmatpush.msrb.mxu0 %v8025_v58  ;;  %4485 = vmatpush.msra.mxu3 %v8025_v58  ;;  %v8416_v43 = vperm.slane %v7868_v29, 2 }
 0xf31   :  { %v5056_v18 = vpop.eup %5055  ;;  %4325 = vmatpush.msra.mxu1 %v7986_v28  ;;  %4465 = vmatpush.msrb.mxu2 %v8023_v44 }
 0xf32   :  { %v4036_v17 = vmul.f32 %v5056_v18, %v8095_v48  ;;  %v4016_v62 = vadd.f32 %v5054_v7, %v4015_v1  ;;  %vm4041_vm11 = vweird.f32 %v5056_v18  ;;  %4310 = vmatpush.msrb.mxu0 %v8034_v31  ;;  %4486 = vmatpush.msra.mxu3 %v8034_v31 }
 0xf33   :  { %4326 = vmatpush.msra.mxu1 %v7996_v46  ;;  %vm4042_vm13 = vmor %vm4040_vm12, %vm4041_vm11  ;;  %4466 = vmatpush.msrb.mxu2 %v8032_v23 }
 0xf34   :  { %v4037_v63 = vsub.f32 1.0, %v4036_v17  ;;  %v4020_v8 = vsel %vm4019_vm9, %v5054_v7, %v4016_v62  ;;  %4311 = vmatpush.msrb.mxu0 %v8041_v37  ;;  %4487 = vmatpush.msra.mxu3 %v8041_v37  ;;  %v4589_v37 = vld [vmem:[%s8347_s26 + $0x38] sm:$0xff]  ;;  %v4855_v62 = vld [vmem:[%s8341_s20] ss:$0 sm:$0xff] }
 0xf35   :  { %v4025_v1 = vsel %vm4022_vm10, %v4024_v25, %v4020_v8  ;;  %4327 = vmatpush.msra.mxu1 %v8006_v15  ;;  %4467 = vmatpush.msrb.mxu2 %v8039_v47  ;;  %v4590_v47 = vld [vmem:[%s8347_s26 + $0x40] sm:$0xff] }
 0xf36   :  { %v4038_v59 = vmul.f32 %v5056_v18, %v4037_v63  ;;  %v4058_v3 = vmul.f32 %v4056_v4, %v4025_v1  ;;  %4312 = vmatpush.msrb.mxu0 %v8052_v2  ;;  %4488 = vmatpush.msra.mxu3 %v8052_v2 }
 0xf37   :  { %4328 = vmatpush.msra.mxu1 %v8017_v30  ;;  %4468 = vmatpush.msrb.mxu2 %v8050_v21  ;;  %v4587_v21 = vld [vmem:[%s8347_s26 + $0x28] sm:$0xff] }
 0xf38   :  { %v4059_v0 = vadd.f32 %v4058_v3, %v7890_v12  ;;  %v4039_v19 = vadd.f32 %v5056_v18, %v4038_v59  ;;  %4313 = vmatpush.msrb.mxu0 %v8062_v55  ;;  %4489 = vmatpush.msra.mxu3 %v8062_v55 }
 0xf39   :  { %4329 = vmatpush.msra.mxu1 %v8027_v6  ;;  %4469 = vmatpush.msrb.mxu2 %v8060_v56 }
 0xf3a   :  { %5057 = vtanh.f32 %v4059_v0  ;;  %v4043_v40 = vsel %vm4042_vm13, %v5056_v18, %v4039_v19  ;;  %4314 = vmatpush.msrb.mxu0 %v8072_v20  ;;  %4490 = vmatpush.msra.mxu3 %v8072_v20  ;;  %v4584_v20 = vld [vmem:[%s8347_s26 + $0x10] sm:$0xff]  ;;  %v8258_v0 = vadd.f32 %v7882_v45, %v8416_v43 }
 0xf3b   :  { %v4048_v12 = vsel %vm4045_vm14, %v4047_v9, %v4043_v40  ;;  %4330 = vmatpush.msra.mxu1 %v8036_v51  ;;  %4470 = vmatpush.msrb.mxu2 %v8070_v13  ;;  %v4585_v13 = vld [vmem:[%s8347_s26 + $0x18] sm:$0xff] }
 0xf3c   :  { %v4061_v5 = vsub.f32 1.0, %v4048_v12  ;;  %v4065_v39 = vmul.f32 %v4063_v36, %v4048_v12  ;;  %4315 = vmatpush.msrb.mxu0 %v8082_v35  ;;  %4491 = vmatpush.msra.mxu3 %v8082_v35 }
 0xf3d   :  { %4331 = vmatpush.msra.mxu1 %v8046_v38  ;;  %4471 = vmatpush.msrb.mxu2 %v8080_v34  ;;  %v4582_v34 = vld [vmem:[%s8347_s26] sm:$0xff] }
 0xf3f   :  { %4332 = vmatpush.msra.mxu1 %v8057_v14 }
 0xf40   :  { %v5058_v60 = vpop.eup %5057 }
 0xf41   :  { %v4062_v53 = vmul.f32 %v5058_v60, %v4061_v5  ;;  %4333 = vmatpush.msra.mxu1 %v8067_v41 }
 0xf43   :  { %v4066_v10 = vadd.f32 %v4065_v39, %v4062_v53  ;;  %4334 = vmatpush.msra.mxu1 %v8077_v32 }
 0xf45   :  { %4067 = vst [vmem:[#allocation3] sm:$0xc0] %v4066_v10  ;;  %v8163_v54 = vrot.slane %v4066_v10, 6  ;;  %4335 = vmatpush.msra.mxu1 %v8087_v22 }
 0xf47   :  { %4135 = vmatmul.f32.vlgmr.msra.gmra.mxu0 %v8163_v54  ;;  %4155 = vmatmul.f32.vlgmr.msrb.gmra.mxu1 %v8163_v54 }
 0xf48   :  { %4175 = vmatmul.f32.vlgmr.msra.gmra.mxu2 %v8163_v54  ;;  %4496 = vmatpush.msra.mxu0 %v7937_v61  ;;  %v4597_v61 = vld [vmem:[%s8347_s26 + $0x78] sm:$0xff] }
 0xf49   :  { %4602 = vmatpush.msrb.mxu1 %v4597_v61 }
 0xf4a   :  { %4497 = vmatpush.msra.mxu0 %v7946_v57  ;;  %v4596_v57 = vld [vmem:[%s8347_s26 + $0x70] sm:$0xff] }
 0xf4b   :  { %4603 = vmatpush.msrb.mxu1 %v4596_v57 }
 0xf4c   :  { %4498 = vmatpush.msra.mxu0 %v7956_v50  ;;  %v4595_v50 = vld [vmem:[%s8347_s26 + $0x68] sm:$0xff]  ;;  %v4580_v45 = vld [vmem:[#allocation3] sm:$0xff] }
 0xf4d   :  { %4604 = vmatpush.msrb.mxu1 %v4595_v50 }
 0xf4e   :  { %4499 = vmatpush.msra.mxu0 %v7966_v49  ;;  %v4594_v49 = vld [vmem:[%s8347_s26 + $0x60] sm:$0xff] }
 0xf4f   :  { %4605 = vmatpush.msrb.mxu1 %v4594_v49 }
 0xf50   :  { %4500 = vmatpush.msra.mxu0 %v7976_v11  ;;  %v8414_v11 = vperm.slane %v7868_v29, 0 }
 0xf52   :  { %4501 = vmatpush.msra.mxu0 %v7986_v28  ;;  %v8207_v28 = vadd.f32 %v7861_v16, %v8414_v11  ;;  %v4592_v16 = vld [vmem:[%s8347_s26 + $0x50] sm:$0xff] }
 0xf54   :  { %4502 = vmatpush.msra.mxu0 %v7996_v46  ;;  %v8415_v46 = vperm.slane %v7868_v29, 1 }
 0xf56   :  { %4503 = vmatpush.msra.mxu0 %v8006_v15  ;;  %v8212_v15 = vadd.f32 %v7863_v27, %v8415_v46  ;;  %v4591_v27 = vld [vmem:[%s8347_s26 + $0x48] sm:$0xff] }
 0xf58   :  { %4504 = vmatpush.msra.mxu0 %v8017_v30  ;;  %v4593_v30 = vld [vmem:[%s8347_s26 + $0x58] sm:$0xff] }
 0xf59   :  { %4606 = vmatpush.msrb.mxu1 %v4593_v30  ;;  %v8269_v30 = vpop.permute.xlu1 %4657 }
 0xf5a   :  { %4505 = vmatpush.msra.mxu0 %v8027_v6 }
 0xf5b   :  { %4607 = vmatpush.msrb.mxu1 %v4592_v16 }
 0xf5c   :  { %4506 = vmatpush.msra.mxu0 %v8036_v51 }
 0xf5d   :  { %4608 = vmatpush.msrb.mxu1 %v4591_v27 }
 0xf5e   :  { %4507 = vmatpush.msra.mxu0 %v8046_v38  ;;  %v4588_v38 = vld [vmem:[%s8347_s26 + $0x30] sm:$0xff] }
 0xf5f   :  { %4609 = vmatpush.msrb.mxu1 %v4590_v47 }
 0xf60   :  { %4508 = vmatpush.msra.mxu0 %v8057_v14  ;;  %v4586_v14 = vld [vmem:[%s8347_s26 + $0x20] sm:$0xff] }
 0xf61   :  { %4610 = vmatpush.msrb.mxu1 %v4589_v37  ;;  %v4655_v37 = vpop.permute.xlu1 %4654 }
 0xf62   :  { %4509 = vmatpush.msra.mxu0 %v8067_v41  ;;  %vm4659_vm8 = vcmp.eq.s32.totalorder %v7058_v24, %v4655_v37 }
 0xf63   :  { %4611 = vmatpush.msrb.mxu1 %v4588_v38 }
 0xf64   :  { %4510 = vmatpush.msra.mxu0 %v8077_v32  ;;  %v4583_v32 = vld [vmem:[%s8347_s26 + $0x8] sm:$0xff] }
 0xf65   :  { %4612 = vmatpush.msrb.mxu1 %v4587_v21 }
 0xf66   :  { %4511 = vmatpush.msra.mxu0 %v8087_v22 }
 0xf67   :  { %4613 = vmatpush.msrb.mxu1 %v4586_v14 }
 0xf69   :  { %4614 = vmatpush.msrb.mxu1 %v4585_v13 }
 0xf6b   :  { %4615 = vmatpush.msrb.mxu1 %v4584_v20 }
 0xf6d   :  { %4616 = vmatpush.msrb.mxu1 %v4583_v32 }
 0xf6f   :  { %4617 = vmatpush.msrb.mxu1 %v4582_v34 }
 0xfc4   :  { %v4136_v44 = vpop.f32.mrf.mxu0  ;;  %v4156_v58 = vpop.f32.mrf.mxu1 }
 0xfc5   :  { %v4179_v6 = vadd.f32 %v4136_v44, %v8207_v28  ;;  %v4199_v23 = vadd.f32 %v4156_v58, %v8212_v15  ;;  %v8274_v44 = vld [vmem:[%s8348_s27] ss:$0 sm:$0xff] }
 0xfc7   :  { %v4810_v31 = vmul.f32 -1.442695, %v4179_v6  ;;  %v4811_v51 = vmul.f32 -1.442695, %v4199_v23 }
 0xfc9   :  { %5059 = vpow2.f32 %v4810_v31 }
 0xfca   :  { %5061 = vpow2.f32 %v4811_v51 }
 0xfcb   :  { %v4176_v63 = vpop.f32.mrf.mxu2 }
 0xfcc   :  { %v4223_v59 = vadd.f32 %v4855_v62, %v4176_v63 }
 0xfcf   :  { %v5060_v2 = vpop.eup %5059 }
 0xfd0   :  { %v5062_v56 = vpop.eup %5061  ;;  %v4183_v55 = vadd.f32 1.0, %v5060_v2 }
 0xfd1   :  { %v4203_v41 = vadd.f32 1.0, %v5062_v56 }
 0xfd2   :  { %5063 = vrcp.f32 %v4183_v55  ;;  %v4195_v33 = vand.u32 2147483648, %v4183_v55  ;;  %v4193_v17 = vand.u32 2147483647, %v4183_v55  ;;  %vm4189_vm15 = vweird.f32 %v4183_v55 }
 0xfd3   :  { %5065 = vrcp.f32 %v4203_v41  ;;  %v4215_v19 = vand.u32 2147483648, %v4203_v41  ;;  %vm4209_vm3 = vweird.f32 %v4203_v41  ;;  %v4213_v9 = vand.u32 2147483647, %v4203_v41 }
 0xfd4   :  { %v4196_v4 = vor.u32 1.1754944e-38, %v4195_v33  ;;  %vm4194_vm2 = vcmp.eq.f32.partialorder %v4193_v17, 8.507059e+37 }
 0xfd5   :  { %v4216_v36 = vor.u32 1.1754944e-38, %v4215_v19  ;;  %vm4214_vm5 = vcmp.eq.f32.partialorder %v4213_v9, 8.507059e+37 }
 0xfd8   :  { %v5064_v35 = vpop.eup %5063 }
 0xfd9   :  { %v5066_v22 = vpop.eup %5065  ;;  %v4185_v48 = vmul.f32 %v5064_v35, %v4183_v55  ;;  %vm4190_vm0 = vweird.f32 %v5064_v35 }
 0xfda   :  { %v4205_v7 = vmul.f32 %v5066_v22, %v4203_v41  ;;  %vm4191_vm1 = vmor %vm4189_vm15, %vm4190_vm0  ;;  %vm4210_vm7 = vweird.f32 %v5066_v22  ;;  %v4856_v41 = vld [vmem:[%s8341_s20] ss:$0 sm:$0xff] }
 0xfdb   :  { %v4186_v52 = vsub.f32 1.0, %v4185_v48  ;;  %vm4211_vm4 = vmor %vm4209_vm3, %vm4210_vm7 }
 0xfdc   :  { %v4206_v26 = vsub.f32 1.0, %v4205_v7 }
 0xfdd   :  { %v4187_v18 = vmul.f32 %v5064_v35, %v4186_v52 }
 0xfde   :  { %v4207_v25 = vmul.f32 %v5066_v22, %v4206_v26 }
 0xfdf   :  { %v4188_v8 = vadd.f32 %v5064_v35, %v4187_v18 }
 0xfe0   :  { %v4208_v3 = vadd.f32 %v5066_v22, %v4207_v25 }
 0xfe1   :  { %v4192_v1 = vsel %vm4191_vm1, %v5064_v35, %v4188_v8 }
 0xfe2   :  { %v4197_v42 = vsel %vm4194_vm2, %v4196_v4, %v4192_v1  ;;  %v4212_v5 = vsel %vm4211_vm4, %v5066_v22, %v4208_v3 }
 0xfe3   :  { %v4224_v40 = vmul.f32 %v4223_v59, %v4197_v42  ;;  %v4217_v60 = vsel %vm4214_vm5, %v4216_v36, %v4212_v5 }
 0xfe4   :  { %v4227_v53 = vsub.f32 1.0, %v4217_v60  ;;  %v4229_v29 = vmul.f32 %v4217_v60, %v8163_v54 }
 0xfe5   :  { %v4225_v12 = vadd.f32 %v4224_v40, %v8258_v0 }
 0xfe7   :  { %5067 = vtanh.f32 %v4225_v12 }
 0xfed   :  { %v5068_v39 = vpop.eup %5067 }
 0xfee   :  { %v4228_v10 = vmul.f32 %v5068_v39, %v4227_v53 }
 0xff0   :  { %v8262_v61 = vadd.f32 %v4229_v29, %v4228_v10 }
 0xff2   :  { %4231 = vst [vmem:[#allocation3 + $0x8] sm:$0x3] %v8262_v61  ;;  %4296 = vmatmul.f32.vlgmr.msrb.gmra.mxu3 %v8262_v61  ;;  %4316 = vmatmul.f32.vlgmr.msrb.gmra.mxu0 %v8262_v61  ;;  %v4400_v43 = vrot.slane %v8262_v61, 6 }
 0xff3   :  { %4336 = vmatmul.f32.vlgmr.msra.gmra.mxu1 %v8262_v61 }
 0xffb   :  { %4618 = vmatmul.f32.vlgmr.msrb.gmra.mxu1 %v4580_v45 }
0x106f   :  { %v4317_v57 = vpop.f32.mrf.mxu0 }
0x1070   :  { %v4364_v50 = vrot.slane %v4317_v57, 6  ;;  %v4337_v49 = vpop.f32.mrf.mxu1 }
0x1071   :  { %v4390_v35 = vadd.f32 %v4856_v41, %v4337_v49 }
0x1072   :  { %v4366_v11 = vadd.f32 %v4364_v50, %v8212_v15 }
0x1073   :  { %v4392_v33 = vrot.slane %v4390_v35, 6 }
0x1074   :  { %v4813_v46 = vmul.f32 -1.442695, %v4366_v11 }
0x1075   :  { %v4297_v54 = vpop.f32.mrf.mxu3 }
0x1076   :  { %5069 = vpow2.f32 %v4813_v46  ;;  %v4341_v58 = vrot.slane %v4297_v54, 6 }
0x1078   :  { %v4343_v6 = vadd.f32 %v4341_v58, %v8207_v28  ;;  %v4619_v23 = vpop.f32.mrf.mxu1  ;;  %v4858_v58 = vld [vmem:[%s8341_s20] ss:$0 sm:$0xff] }
0x1079   :  { %v4620_v16 = vadd.f32 %v8274_v44, %v4619_v23 }
0x107a   :  { %v4812_v31 = vmul.f32 -1.442695, %v4343_v6 }
0x107b   :  { %v8281_v51 = vsel %vm4625_vm6, %v4620_v16, -1e+30 }
0x107c   :  { %v5070_v27 = vpop.eup %5069  ;;  %5071 = vpow2.f32 %v4812_v31  ;;  %4628 = vmax.xlane.f32.xlu0 %v8281_v51  ;;  %v4661_v2 = vsel %vm4659_vm8, %v8281_v51, 0.0 }
0x107d   :  { %v4370_v47 = vadd.f32 1.0, %v5070_v27 }
0x107f   :  { %5073 = vrcp.f32 %v4370_v47  ;;  %v4382_v25 = vand.u32 2147483648, %v4370_v47  ;;  %vm4376_vm14 = vweird.f32 %v4370_v47  ;;  %v4380_v8 = vand.u32 2147483647, %v4370_v47 }
0x1081   :  { %v4383_v59 = vor.u32 1.1754944e-38, %v4382_v25  ;;  %vm4381_vm15 = vcmp.eq.f32.partialorder %v4380_v8, 8.507059e+37 }
0x1082   :  { %v5072_v38 = vpop.eup %5071 }
0x1083   :  { %v4347_v21 = vadd.f32 1.0, %v5072_v38 }
0x1084   :  { %4663 = vadd.xlane.f32.xlu0 %v4661_v2 }
0x1085   :  { %5075 = vrcp.f32 %v4347_v21  ;;  %v5074_v14 = vpop.eup %5073  ;;  %v4359_v34 = vand.u32 2147483648, %v4347_v21  ;;  %v4357_v48 = vand.u32 2147483647, %v4347_v21  ;;  %vm4353_vm10 = vweird.f32 %v4347_v21 }
0x1086   :  { %v4372_v56 = vmul.f32 %v5074_v14, %v4370_v47  ;;  %vm4377_vm13 = vweird.f32 %v5074_v14 }
0x1087   :  { %v4360_v26 = vor.u32 1.1754944e-38, %v4359_v34  ;;  %vm4358_vm12 = vcmp.eq.f32.partialorder %v4357_v48, 8.507059e+37  ;;  %vm4378_vm0 = vmor %vm4376_vm14, %vm4377_vm13  ;;  %vm4676_vm13 = vcmask 5120   ;;  %vm4660_vm14 = vcmp.eq.s32.totalorder %v7058_v24, %v8269_v30 }
0x1088   :  { %v4373_v20 = vsub.f32 1.0, %v4372_v56 }
0x108a   :  { %v4374_v7 = vmul.f32 %v5074_v14, %v4373_v20 }
0x108b   :  { %v5076_v55 = vpop.eup %5075 }
0x108c   :  { %v4349_v13 = vmul.f32 %v5076_v55, %v4347_v21  ;;  %vm4354_vm9 = vweird.f32 %v5076_v55  ;;  %v4375_v17 = vadd.f32 %v5074_v14, %v4374_v7 }
0x108d   :  { %vm4355_vm11 = vmor %vm4353_vm10, %vm4354_vm9  ;;  %vm4630_vm10 = vcmask 1045504  }
0x108e   :  { %v4350_v32 = vsub.f32 1.0, %v4349_v13  ;;  %v4379_v1 = vsel %vm4378_vm0, %v5074_v14, %v4375_v17 }
0x108f   :  { %v4384_v3 = vsel %vm4381_vm15, %v4383_v59, %v4379_v1 }
0x1090   :  { %v4351_v22 = vmul.f32 %v5076_v55, %v4350_v32  ;;  %v4397_v42 = vsub.f32 1.0, %v4384_v3  ;;  %v4402_v9 = vmul.f32 %v4400_v43, %v4384_v3 }
0x1092   :  { %v4352_v52 = vadd.f32 %v5076_v55, %v4351_v22 }
0x1094   :  { %v4356_v18 = vsel %vm4355_vm11, %v5076_v55, %v4352_v52 }
0x1095   :  { %v4361_v62 = vsel %vm4358_vm12, %v4360_v26, %v4356_v18 }
0x1096   :  { %v4394_v63 = vmul.f32 %v4392_v33, %v4361_v62 }
0x1098   :  { %v4395_v4 = vadd.f32 %v4394_v63, %v8258_v0 }
0x109a   :  { %5077 = vtanh.f32 %v4395_v4 }
0x10a0   :  { %v5078_v19 = vpop.eup %5077 }
0x10a1   :  { %v4398_v40 = vmul.f32 %v5078_v19, %v4397_v42  ;;  %v5101_v42 = vld [vmem:[%s8400_s7 + $0x8] sm:$0x3f] }
0x10a2   :  { %vm4669_vm11 = vcmp.ne.s32.totalorder %v5101_v42, 0 }
0x10a3   :  { %v4403_v12 = vadd.f32 %v4402_v9, %v4398_v40 }
0x10a5   :  { %4404 = vst [vmem:[#allocation3 + $0x8] sm:$0xc] %v4403_v12  ;;  %v4454_v5 = vrot.slane %v4403_v12, 2  ;;  %v4575_v7 = vrot.slane %v4403_v12, 6 }
0x10a7   :  { %4472 = vmatmul.f32.vlgmr.msrb.gmra.mxu2 %v4454_v5  ;;  %4492 = vmatmul.f32.vlgmr.msra.gmra.mxu3 %v4454_v5 }
0x10a8   :  { %4512 = vmatmul.f32.vlgmr.msra.gmra.mxu0 %v4454_v5 }
0x10ef   :  { %v4629_v25 = vpop.xlane.xlu0 %4628 }
0x10f0   :  { %v4634_v63 = vsub.f32 %v8281_v51, %v4629_v25  ;;  %v8417_v51 = vmov 0.0  }
0x10f1   :  { %v4817_v19 = vsel %vm4669_vm11, 1.0, %v8417_v51 }
0x10f2   :  { %v4636_v4 = vmul.f32 1.442695, %v4634_v63  ;;  %v4677_v9 = vsel %vm4676_vm13, %v4817_v19, 0.0 }
0x112a   :  { %v4473_v36 = vpop.f32.mrf.mxu2  ;;  %v4493_v60 = vpop.f32.mrf.mxu3 }
0x112b   :  { %v4517_v53 = vrot.slane %v4473_v36, 4  ;;  %v4540_v39 = vrot.slane %v4493_v60, 4 }
0x112d   :  { %v4519_v10 = vadd.f32 %v4517_v53, %v8207_v28  ;;  %v4542_v29 = vadd.f32 %v4540_v39, %v8212_v15  ;;  %v4513_v28 = vpop.f32.mrf.mxu0 }
0x112e   :  { %v4566_v27 = vadd.f32 %v4858_v58, %v4513_v28 }
0x112f   :  { %v4814_v45 = vmul.f32 -1.442695, %v4519_v10  ;;  %v4815_v57 = vmul.f32 -1.442695, %v4542_v29 }
0x1130   :  { %v4568_v14 = vrot.slane %v4566_v27, 4 }
0x1131   :  { %5079 = vpow2.f32 %v4814_v45 }
0x1132   :  { %5081 = vpow2.f32 %v4815_v57 }
0x1137   :  { %v5080_v61 = vpop.eup %5079 }
0x1138   :  { %v5082_v50 = vpop.eup %5081  ;;  %v4523_v49 = vadd.f32 1.0, %v5080_v61 }
0x1139   :  { %v4546_v11 = vadd.f32 1.0, %v5082_v50  ;;  %v4664_v50 = vpop.xlane.xlu0 %4663 }
0x113a   :  { %5083 = vrcp.f32 %v4523_v49  ;;  %v4535_v16 = vand.u32 2147483648, %v4523_v49  ;;  %v4533_v37 = vand.u32 2147483647, %v4523_v49  ;;  %vm4529_vm2 = vweird.f32 %v4523_v49 }
0x113b   :  { %5085 = vrcp.f32 %v4546_v11  ;;  %v4558_v20 = vand.u32 2147483648, %v4546_v11  ;;  %vm4552_vm5 = vweird.f32 %v4546_v11  ;;  %v4556_v32 = vand.u32 2147483647, %v4546_v11 }
0x113c   :  { %v4536_v2 = vor.u32 1.1754944e-38, %v4535_v16  ;;  %vm4534_vm3 = vcmp.eq.f32.partialorder %v4533_v37, 8.507059e+37 }
0x113d   :  { %v4559_v22 = vor.u32 1.1754944e-38, %v4558_v20  ;;  %vm4557_vm9 = vcmp.eq.f32.partialorder %v4556_v32, 8.507059e+37 }
0x1140   :  { %v5084_v46 = vpop.eup %5083 }
0x1141   :  { %v5086_v54 = vpop.eup %5085  ;;  %v4525_v6 = vmul.f32 %v5084_v46, %v4523_v49  ;;  %vm4530_vm1 = vweird.f32 %v5084_v46 }
0x1142   :  { %v4548_v23 = vmul.f32 %v5086_v54, %v4546_v11  ;;  %vm4531_vm7 = vmor %vm4529_vm2, %vm4530_vm1  ;;  %vm4553_vm4 = vweird.f32 %v5086_v54 }
0x1143   :  { %v4526_v15 = vsub.f32 1.0, %v4525_v6  ;;  %vm4554_vm8 = vmor %vm4552_vm5, %vm4553_vm4 }
0x1144   :  { %v4549_v31 = vsub.f32 1.0, %v4548_v23 }
0x1145   :  { %v4527_v47 = vmul.f32 %v5084_v46, %v4526_v15 }
0x1146   :  { %v4550_v38 = vmul.f32 %v5086_v54, %v4549_v31 }
0x1147   :  { %v4528_v21 = vadd.f32 %v5084_v46, %v4527_v47 }
0x1148   :  { %v4551_v41 = vadd.f32 %v5086_v54, %v4550_v38 }
0x1149   :  { %v4532_v56 = vsel %vm4531_vm7, %v5084_v46, %v4528_v21  ;;  %vm4723_vm7 = vcmask 0  }
0x114a   :  { %v4537_v55 = vsel %vm4534_vm3, %v4536_v2, %v4532_v56  ;;  %v4555_v35 = vsel %vm4554_vm8, %v5086_v54, %v4551_v41 }
0x114b   :  { %v4570_v13 = vmul.f32 %v4568_v14, %v4537_v55  ;;  %v4560_v48 = vsel %vm4557_vm9, %v4559_v22, %v4555_v35 }
0x114c   :  { %v4573_v52 = vsub.f32 1.0, %v4560_v48  ;;  %v4577_v18 = vmul.f32 %v4575_v7, %v4560_v48 }
0x114d   :  { %v4571_v34 = vadd.f32 %v4570_v13, %v8258_v0 }
0x114f   :  { %5087 = vtanh.f32 %v4571_v34 }
0x1150   :  { %5089 = vpow2.f32 %v4636_v4 }
0x1155   :  { %v5088_v26 = vpop.eup %5087 }
0x1156   :  { %v4574_v33 = vmul.f32 %v5088_v26, %v4573_v52  ;;  %v5090_v3 = vpop.eup %5089 }
0x1158   :  { %v4578_v17 = vadd.f32 %v4577_v18, %v4574_v33 }
0x115a   :  { %4579 = vst [vmem:[#allocation3 + $0x8] sm:$0x30] %v4578_v17 }
0x1161   :  { %v4581_v62 = vld [vmem:[#allocation3 + $0x8] sm:$0x3f] }
0x1162   :  { %4621 = vmatmul.f32.gmra.mxu1 %v4581_v62 }
0x11df   :  { %v4622_v8 = vpop.f32.mrf.mxu1 }
0x11e0   :  { %v4623_v0 = vadd.f32 %v8274_v44, %v4622_v8  ;;  %v5102_v44 = vld [vmem:[%s8400_s7] sm:$0xff] }
0x11e1   :  { %vm4668_vm12 = vcmp.ne.s32.totalorder %v5102_v44, 0 }
0x11e2   :  { %v4627_v1 = vsel %vm4625_vm6, %v4623_v0, -1e+30  ;;  %v4816_v43 = vsel %vm4668_vm12, 1.0, %v8417_v51  ;;  %vm4674_vm6 = vcmask 7168  }
0x11e3   :  { %v4631_v59 = vsel %vm4630_vm10, %v4627_v1, -inf  ;;  %v4675_v40 = vsel %vm4674_vm6, %v4816_v43, 0.0  ;;  %v4662_v57 = vsel %vm4660_vm14, %v4627_v1, 0.0 }
0x11e4   :  { %4632 = vmax.xlane.f32.xlu2 %v4631_v59  ;;  %v4678_v12 = vadd.f32 %v4677_v9, %v4675_v40  ;;  %v4665_v11 = vsel %vm4630_vm10, %v4662_v57, 0.0 }
0x11e6   :  { %4679 = vadd.xlane.f32.xlu1 %v4678_v12 }
0x11ec   :  { %4640 = vadd.xlane.f32.xlu2 %v5090_v3 }
0x1257   :  { %v4633_v5 = vpop.xlane.xlu2 %4632 }
0x1258   :  { %v4635_v36 = vsub.f32 %v4627_v1, %v4633_v5 }
0x1259   :  { %v4680_v58 = vpop.xlane.xlu1 %4679 }
0x125a   :  { %v4638_v60 = vmul.f32 1.442695, %v4635_v36  ;;  %v4681_v6 = vrot.slane %v4680_v58, 4 }
0x125c   :  { %5091 = vpow2.f32 %v4638_v60  ;;  %v4682_v28 = vadd.f32 %v4681_v6, %v4680_v58 }
0x125e   :  { %v4683_v23 = vrot.slane %v4682_v28, 2 }
0x125f   :  { %v4641_v53 = vpop.xlane.xlu2 %4640 }
0x1260   :  { %5093 = vlog2.f32 %v4641_v53  ;;  %v4684_v15 = vadd.f32 %v4683_v23, %v4682_v28 }
0x1262   :  { %v5092_v39 = vpop.eup %5091  ;;  %v4685_v16 = vrot.slane %v4684_v15, 1 }
0x1263   :  { %v4642_v10 = vsel %vm4630_vm10, %v5092_v39, 0.0 }
0x1264   :  { %4643 = vadd.xlane.f32.xlu2 %v4642_v10  ;;  %v4686_v31 = vadd.f32 %v4685_v16, %v4684_v15 }
0x1266   :  { %v5094_v29 = vpop.eup %5093  ;;  %4818 = vpush %v4686_v31 }
0x1267   :  { %v4646_v45 = vmul.f32 0.6931472, %v5094_v29 }
0x1269   :  { %v4649_v61 = vadd.f32 %v4646_v45, %v4629_v25 }
0x126b   :  { %v4689_v49 = vsub.f32 %v4649_v61, %v4664_v50 }
0x126c   :  { %4666 = vadd.xlane.f32.xlu2 %v4665_v11 }
0x126d   :  { %v4691_v46 = vmul.f32 %v4816_v43, %v4689_v49 }
0x126f   :  { %v4693_v54 = vsel %vm4674_vm6, %v4691_v46, 0.0 }
0x1297   :  { %s4819_s7 = spop %4818 }
0x1298   :  { %s4688_s14 = smax.f32 %s5212_s12, %s4819_s7 }
0x1299   :  { %v4705_v56 = vstv %s4688_s14 }
0x129a   :  { %vm4711_vm0 = vweird.f32 %v4705_v56  ;;  %v4717_v48 = vand.u32 2147483648, %v4705_v56  ;;  %v4715_v52 = vand.u32 2147483647, %v4705_v56 }
0x129c   :  { %v4718_v18 = vor.u32 1.1754944e-38, %v4717_v48  ;;  %vm4716_vm2 = vcmp.eq.f32.partialorder %v4715_v52, 8.507059e+37 }
0x12d7   :  { %v4644_v27 = vpop.xlane.xlu2 %4643 }
0x12d8   :  { %5095 = vlog2.f32 %v4644_v27 }
0x12d9   :  { %5097 = vrcp.f32 %v4705_v56 }
0x12de   :  { %v5096_v24 = vpop.eup %5095 }
0x12df   :  { %v4648_v30 = vmul.f32 0.6931472, %v5096_v24  ;;  %v4667_v37 = vpop.xlane.xlu2 %4666  ;;  %v5098_v55 = vpop.eup %5097 }
0x12e0   :  { %v4707_v41 = vmul.f32 %v5098_v55, %v4705_v56  ;;  %vm4712_vm15 = vweird.f32 %v5098_v55 }
0x12e1   :  { %v4650_v47 = vadd.f32 %v4648_v30, %v4633_v5  ;;  %vm4713_vm1 = vmor %vm4711_vm0, %vm4712_vm15 }
0x12e2   :  { %v4708_v13 = vsub.f32 1.0, %v4707_v41 }
0x12e3   :  { %v4690_v38 = vsub.f32 %v4650_v47, %v4667_v37 }
0x12e4   :  { %v4709_v34 = vmul.f32 %v5098_v55, %v4708_v13 }
0x12e5   :  { %v4692_v21 = vmul.f32 %v4817_v19, %v4690_v38 }
0x12e6   :  { %v4710_v7 = vadd.f32 %v5098_v55, %v4709_v34 }
0x12e7   :  { %v4694_v2 = vsel %vm4676_vm13, %v4692_v21, 0.0 }
0x12e8   :  { %v4695_v14 = vadd.f32 %v4694_v2, %v4693_v54  ;;  %v4714_v17 = vsel %vm4713_vm1, %v5098_v55, %v4710_v7 }
0x12e9   :  { %v4719_v25 = vsel %vm4716_vm2, %v4718_v18, %v4714_v17 }
0x12ea   :  { %4696 = vadd.xlane.f32.xlu0 %v4695_v14 }
0x135d   :  { %v4697_v20 = vpop.xlane.xlu0 %4696 }
0x135e   :  { %v4698_v32 = vrot.slane %v4697_v20, 4 }
0x1360   :  { %v4699_v35 = vadd.f32 %v4698_v32, %v4697_v20 }
0x1362   :  { %v4700_v22 = vrot.slane %v4699_v35, 2 }
0x1364   :  { %v4701_v26 = vadd.f32 %v4700_v22, %v4699_v35 }
0x1366   :  { %v4702_v33 = vrot.slane %v4701_v26, 1 }
0x1368   :  { %v4703_v62 = vadd.f32 %v4702_v33, %v4701_v26 }
0x136a   :  { %4820 = vpush %v4703_v62 }
0x136b   :  { %4822 = vpush %v4719_v25 }
0x139b   :  { %s4821_s30 = spop %4820 }
0x139c   :  { %s4823_s21 = spop %4822 }
0x139d   :  { %s4721_s4 = smul.f32 %s4823_s21, %s4821_s30 }
0x139f   :  { %v4722_v63 = vstv %s4721_s4 }
0x13a0   :  { %4724 = vst.msk [vmem:[#allocation10] sm:$0x1] %vm4723_vm7, %v4722_v63 }
0x13a1   :  { %4735 = dma.vmem_to_hbm [thread:$0]  %s4731_s25, 16, %s4733_s1, [#allocation6]  }
0x13a2   :  { %5203 = dma.done.wait [#allocation6], 16  }
0x13a3   :  { %5204 = vsyncadd [#allocation6], 4294967280 }
0x13a4   :  { %4740 = vsyncpa [#allocation5], 1 }
0x13a5   :  { %4741 = vsyncpa [#allocation8], 1 }
0x13a6   :  { %4742 = vsyncpa [#allocation6], 1 }

</bundles_post_ra>
